<compile_context>
chip_gen: v7x
topology: tpu7x:2x2x1
jax: 0.10.0
libtpu: 0.0.40
codegen_flags: <defaults>
</compile_context>

<pallas_src>
import functools

import jax
import jax.numpy as jnp
from jax.experimental import pallas as pl
from jax.experimental.pallas import tpu as pltpu


C1, C2 = 8, 16          # conv channel counts fixed by the module
WF1_GROUPS = 4          # fc1 weight streamed in 4 DMA chunks (4 channels each)


# ---------------------------------------------------------------------------
# Fused forward kernel.
# ---------------------------------------------------------------------------
def _fused_cnn_kernel(xp_ref, w1t_ref, b1_ref, w2t_ref, b2_ref, perm_ref,
                      wf1_hbm, bf1_ref, wf2_ref, bf2_ref,
                      out_ref,
                      p1_ref, a1_ref, p2_ref, a2_ref, fcin_ref, fcc_ref,
                      wf1_vmem, wf1_sems,
                      *, nb, cinp, pitch, l1, l2, out_h, out_w):
    c1, c2 = C1, C2
    groups = WF1_GROUPS
    cpg = c2 // groups
    n_hidden = bf1_ref.shape[1]

    # -- 0) fc1 weight stream (HBM -> VMEM): 4 grouped DMAs started up front so
    #       they overlap the conv compute; each group is waited on just before
    #       its matmuls.
    wf1_copies = [
        pltpu.make_async_copy(wf1_hbm.at[pl.ds(g * cpg, cpg)],
                              wf1_vmem.at[pl.ds(g * cpg, cpg)],
                              wf1_sems.at[g])
        for g in range(groups)
    ]
    for cp in wf1_copies:
        cp.start()

    # -- 1) conv1: batched im2col (full-pitch rows) + ONE MXU matmul.
    #       Input channels are pre-padded to 8, so every tap write is an
    #       aligned 8-sublane block.
    for n in range(nb):
        for kh in range(3):
            for kw in range(3):
                k = kh * 3 + kw
                off = kh * pitch + kw
                p1_ref[k * cinp:(k + 1) * cinp, n * l1:(n + 1) * l1] = (
                    xp_ref[n, :, off:off + l1])
    a1_ref[...] = jnp.maximum(
        jnp.dot(w1t_ref[...], p1_ref[...], preferred_element_type=jnp.float32)
        + b1_ref[...], 0.0)                                    # (c1, nb*l1)

    # -- 2) conv2: same trick, one matmul for the whole batch.
    for n in range(nb):
        for kh in range(3):
            for kw in range(3):
                k = kh * 3 + kw
                off = kh * pitch + kw
                p2_ref[k * c1:(k + 1) * c1, n * l2:(n + 1) * l2] = (
                    a1_ref[:, n * l1 + off:n * l1 + off + l2])
    a2_ref[...] = jnp.maximum(
        jnp.dot(w2t_ref[...], p2_ref[...], preferred_element_type=jnp.float32)
        + b2_ref[...], 0.0)                                    # (c2, nb*l2)

    # -- 3) Compact valid columns into torch's (C,H,W) flatten layout,
    #       sample-major rows (n*c2 + c): 12 block stores per sample.
    for n in range(nb):
        for r in range(out_h):
            fcin_ref[n * c2:(n + 1) * c2, r * out_w:(r + 1) * out_w] = (
                a2_ref[:, n * l2 + r * pitch:n * l2 + r * pitch + out_w])

    # -- 4) Reorder rows (n,c)-major -> (c,n)-major with ONE tiny permutation
    #       matmul (and cast once to bf16), so every fc1 chunk below is a
    #       single contiguous (nb, hw) slice — no per-chunk gathers/concats.
    fcc_ref[...] = jnp.dot(perm_ref[...], fcin_ref[...],
                           preferred_element_type=jnp.float32).astype(jnp.bfloat16)

    # -- 5) fc1 (+ReLU): per-conv2-channel matmuls, DMA-waited per group; f32
    #       accumulation.
    acc = jnp.zeros((nb, n_hidden), jnp.float32) + bf1_ref[...]
    for g in range(groups):
        wf1_copies[g].wait()                       # this 4-channel chunk landed
        for cl in range(cpg):
            c = g * cpg + cl
            a_c = fcc_ref[c * nb:(c + 1) * nb, :]              # (nb, hw) bf16
            acc = acc + jnp.dot(a_c, wf1_vmem[c],
                                preferred_element_type=jnp.float32)
    h1 = jnp.maximum(acc, 0.0)

    # -- 6) fc2: lane-dense (n_classes, 512) weight, contracted on the 512 dim.
    y = jax.lax.dot_general(h1, wf2_ref[...], (((1,), (1,)), ((), ())),
                            preferred_element_type=jnp.float32) + bf2_ref[...]
    out_ref[...] = y.astype(out_ref.dtype)


def make_cnn_forward(n_batch, cin, h, w, n_classes, n_hidden=512):
    c1, c2 = C1, C2
    groups = WF1_GROUPS
    assert c2 % groups == 0
    cinp = ((cin + 7) // 8) * 8               # pad input channels to sublane mult
    h1_, w1_ = h - 2, w - 2
    h2_, w2_ = h - 4, w - 4
    pitch = w
    l1 = (h1_ - 1) * pitch + w1_              # conv1 full-pitch output length
    l2 = (h2_ - 1) * pitch + w2_              # conv2 full-pitch output length
    assert 2 * pitch + 2 + l1 <= h * w and 2 * pitch + 2 + l2 <= l1
    hw = h2_ * w2_                            # per-channel flatten size

    kernel = functools.partial(
        _fused_cnn_kernel, nb=n_batch, cinp=cinp, pitch=pitch,
        l1=l1, l2=l2, out_h=h2_, out_w=w2_)

    # Row permutation matrix: (n,c)-major rows -> (c,n)-major rows.
    rows = jnp.arange(c2 * n_batch)
    perm = jax.nn.one_hot((rows % n_batch) * c2 + rows // n_batch,
                          c2 * n_batch, dtype=jnp.float32)

    flops = 2 * (c1 * 9 * cinp * n_batch * l1
                 + c2 * 9 * c1 * n_batch * l2
                 + (c2 * n_batch) ** 2 * hw
                 + n_batch * c2 * hw * n_hidden
                 + n_batch * n_hidden * n_classes)
    bytes_accessed = (4 * n_batch * cinp * h * w
                      + 2 * c2 * hw * n_hidden               # bf16 fc1 weights
                      + 4 * ((c2 * n_batch) ** 2
                             + c1 * 9 * cinp + c2 * 9 * c1
                             + n_hidden * (1 + n_classes) + n_classes)
                      + 4 * n_batch * n_classes)

    vmem = pltpu.MemorySpace.VMEM
    call = pl.pallas_call(
        kernel,
        out_shape=jax.ShapeDtypeStruct((n_batch, n_classes), jnp.float32),
        in_specs=[
            pl.BlockSpec(memory_space=vmem),     # xp   (N, cinp, H*W)
            pl.BlockSpec(memory_space=vmem),     # w1t  (8, 9*cinp)
            pl.BlockSpec(memory_space=vmem),     # b1   (8, 1)
            pl.BlockSpec(memory_space=vmem),     # w2t  (16, 72)
            pl.BlockSpec(memory_space=vmem),     # b2   (16, 1)
            pl.BlockSpec(memory_space=vmem),     # perm (c2*N, N*c2)
            pl.BlockSpec(memory_space=pl.ANY),   # wf1 stays in HBM; manual DMA
            pl.BlockSpec(memory_space=vmem),     # bf1  (1, 512)
            pl.BlockSpec(memory_space=vmem),     # wf2  (n_classes, 512) lane-dense
            pl.BlockSpec(memory_space=vmem),     # bf2  (1, n_classes)
        ],
        out_specs=pl.BlockSpec(memory_space=vmem),
        scratch_shapes=[
            pltpu.VMEM((9 * cinp, n_batch * l1), jnp.float32),   # conv1 im2col
            pltpu.VMEM((c1, n_batch * l1), jnp.float32),         # conv1 output
            pltpu.VMEM((9 * c1, n_batch * l2), jnp.float32),     # conv2 im2col
            pltpu.VMEM((c2, n_batch * l2), jnp.float32),         # conv2 output
            pltpu.VMEM((n_batch * c2, hw), jnp.float32),         # flatten (n,c)
            pltpu.VMEM((c2 * n_batch, hw), jnp.bfloat16),        # flatten (c,n)
            pltpu.VMEM((c2, hw, n_hidden), jnp.bfloat16),        # fc1 weight buf
            pltpu.SemaphoreType.DMA((groups,)),                  # per-group sems
        ],
        compiler_params=pltpu.CompilerParams(
            vmem_limit_bytes=32 * 1024 * 1024),   # headroom for larger batches
        cost_estimate=pl.CostEstimate(flops=flops, transcendentals=0,
                                      bytes_accessed=bytes_accessed),
    )

    def forward(x_nchw, prep):
        # Flatten spatial dims (keep pitch W) and zero-pad channels to `cinp`
        # so every im2col tap write inside the kernel is an aligned 8-row block.
        xp = jnp.pad(x_nchw.reshape(n_batch, cin, h * w),
                     ((0, 0), (0, cinp - cin), (0, 0)))
        return call(xp, prep["w1t"], prep["b1"], prep["w2t"], prep["b2"], perm,
                    prep["wf1"], prep["bf1"], prep["wf2"], prep["bf2"])

    return forward


# ---------------------------------------------------------------------------
# Parameters (PyTorch-convention shapes) and one-time kernel-layout prep.
# ---------------------------------------------------------------------------
def init_params(key, history_length, n_classes, h, w):
    c1, c2 = C1, C2
    fc1_in = c2 * (h - 4) * (w - 4)
    ks = jax.random.split(key, 8)
    s = 0.05
    return {
        "conv1_w": s * jax.random.normal(ks[0], (c1, history_length, 3, 3), jnp.float32),
        "conv1_b": s * jax.random.normal(ks[1], (c1,), jnp.float32),
        "conv2_w": s * jax.random.normal(ks[2], (c2, c1, 3, 3), jnp.float32),
        "conv2_b": s * jax.random.normal(ks[3], (c2,), jnp.float32),
        "fc1_w": s * jax.random.normal(ks[4], (512, fc1_in), jnp.float32),
        "fc1_b": s * jax.random.normal(ks[5], (512,), jnp.float32),
        "fc2_w": s * jax.random.normal(ks[6], (n_classes, 512), jnp.float32),
        "fc2_b": s * jax.random.normal(ks[7], (n_classes,), jnp.float32),
    }


def prepare_params(p, h, w):
    """One-time (outside jit) layout / dtype prep for the fused kernel."""
    c1, c2 = C1, C2
    hw = (h - 4) * (w - 4)
    cin = p["conv1_w"].shape[1]
    cinp = ((cin + 7) // 8) * 8
    n_hidden = p["fc1_b"].shape[0]
    # Conv weights -> (Cout, 9*Cin_padded), column order (kh, kw, cin_pad),
    # matching the kernel's im2col rows; padded input-channel columns are zero.
    w1 = jnp.transpose(p["conv1_w"], (0, 2, 3, 1))                # (8,3,3,cin)
    w1 = jnp.pad(w1, ((0, 0), (0, 0), (0, 0), (0, cinp - cin)))
    w2 = jnp.transpose(p["conv2_w"], (0, 2, 3, 1))                # (16,3,3,8)
    return {
        "w1t": w1.reshape(c1, 9 * cinp),
        "b1": p["conv1_b"].reshape(c1, 1),
        "w2t": w2.reshape(c2, 9 * c1),
        "b2": p["conv2_b"].reshape(c2, 1),
        # fc1.weight.T split per conv2 channel; bf16 halves the dominant HBM
        # stream (accumulation stays f32 in the kernel).
        "wf1": p["fc1_w"].T.reshape(c2, hw, n_hidden).astype(jnp.bfloat16),
        "bf1": p["fc1_b"].reshape(1, n_hidden),
        # fc2 weight kept in torch layout (n_classes, 512): lane-dense.
        "wf2": p["fc2_w"].astype(jnp.float32),
        "bf2": p["fc2_b"].reshape(1, -1),
    }


# ---------------------------------------------------------------------------
# Pure-JAX reference (exactly the PyTorch forward, f32) for a sanity check.
# ---------------------------------------------------------------------------
def cnn_reference(x, p):
    dn = ("NCHW", "OIHW", "NCHW")
    y = jax.lax.conv_general_dilated(x, p["conv1_w"], (1, 1), "VALID",
                                     dimension_numbers=dn)
    y = jax.nn.relu(y + p["conv1_b"].reshape(1, -1, 1, 1))
    y = jax.lax.conv_general_dilated(y, p["conv2_w"], (1, 1), "VALID",
                                     dimension_numbers=dn)
    y = jax.nn.relu(y + p["conv2_b"].reshape(1, -1, 1, 1))
    y = y.reshape(y.shape[0], -1)                      # torch .view(-1, C*H*W)
    y = jax.nn.relu(y @ p["fc1_w"].T + p["fc1_b"])
    return y @ p["fc2_w"].T + p["fc2_b"]


if __name__ == "__main__":
    key = jax.random.PRNGKey(0)
    # batch=8 amortizes the fc1 weight stream (review item #1) and keeps every
    # fc1 chunk slice sublane-aligned; the kernel itself is batch-generic.
    batch, history_length, H, W = 8, 4, 16, 16
    n_classes = 4

    kx, kp = jax.random.split(key)
    x = jax.random.normal(kx, (batch, history_length, H, W), jnp.float32)
    params = init_params(kp, history_length, n_classes, H, W)
    prep = prepare_params(params, H, W)           # one-time layout/dtype prep

    forward = jax.jit(make_cnn_forward(batch, history_length, H, W, n_classes))
    out = jax.block_until_ready(forward(x, prep))

    assert out.shape == (batch, n_classes), out.shape
    assert bool(jnp.all(jnp.isfinite(out)))

    ref = jax.block_until_ready(cnn_reference(x, params))
    assert bool(jnp.allclose(out, ref, rtol=3e-2, atol=3e-2)), (out, ref)

    print("KERNEL_OK")
</pallas_src>

<mosaic_0001>
module attributes {stable_mosaic.version = 11 : i64} {
  func.func @_fused_cnn_kernel(%arg0: memref<8x8x256xf32, #tpu.memory_space<vmem>>, %arg1: memref<8x72xf32, #tpu.memory_space<vmem>>, %arg2: memref<8x1xf32, #tpu.memory_space<vmem>>, %arg3: memref<16x72xf32, #tpu.memory_space<vmem>>, %arg4: memref<16x1xf32, #tpu.memory_space<vmem>>, %arg5: memref<128x128xf32, #tpu.memory_space<vmem>>, %arg6: memref<16x144x512xbf16, #tpu.memory_space<any>>, %arg7: memref<1x512xf32, #tpu.memory_space<vmem>>, %arg8: memref<4x512xf32, #tpu.memory_space<vmem>>, %arg9: memref<1x4xf32, #tpu.memory_space<vmem>>, %arg10: memref<8x4xf32, #tpu.memory_space<vmem>>, %arg11: memref<72x1776xf32, #tpu.memory_space<vmem>>, %arg12: memref<8x1776xf32, #tpu.memory_space<vmem>>, %arg13: memref<72x1504xf32, #tpu.memory_space<vmem>>, %arg14: memref<16x1504xf32, #tpu.memory_space<vmem>>, %arg15: memref<128x144xf32, #tpu.memory_space<vmem>>, %arg16: memref<128x144xbf16, #tpu.memory_space<vmem>>, %arg17: memref<16x144x512xbf16, #tpu.memory_space<vmem>>, %arg18: memref<4x!tpu.dma_semaphore, #tpu.memory_space<semaphore_mem>>) attributes {dimension_semantics = [], scalar_prefetch = 0 : i64, scratch_operands = 8 : i64, tpu.core_type = #tpu.core_type<tc>} {
    %c0_i32 = arith.constant 0 : i32
    %c0_i32_0 = arith.constant 0 : i32
    %c0_i32_1 = arith.constant 0 : i32
    %c0_i32_2 = arith.constant 0 : i32
    %0 = tpu.memref_slice %arg6[%c0_i32_0, %c0_i32_1, %c0_i32_2] : memref<16x144x512xbf16, #tpu.memory_space<any>> -> memref<4x144x512xbf16, #tpu.memory_space<any>>
    %c0_i32_3 = arith.constant 0 : i32
    %c0_i32_4 = arith.constant 0 : i32
    %c0_i32_5 = arith.constant 0 : i32
    %1 = tpu.memref_slice %arg17[%c0_i32_3, %c0_i32_4, %c0_i32_5] : memref<16x144x512xbf16, #tpu.memory_space<vmem>> -> memref<4x144x512xbf16, #tpu.memory_space<vmem>>
    %2 = tpu.memref_slice %arg18[%c0_i32] : memref<4x!tpu.dma_semaphore, #tpu.memory_space<semaphore_mem>> -> memref<1x!tpu.dma_semaphore, #tpu.memory_space<semaphore_mem>>
    %3 = tpu.memref_squeeze %2 : memref<1x!tpu.dma_semaphore, #tpu.memory_space<semaphore_mem>> -> memref<!tpu.dma_semaphore, #tpu.memory_space<semaphore_mem>>
    tpu.enqueue_dma source(%0 : memref<4x144x512xbf16, #tpu.memory_space<any>>) target(%1 : memref<4x144x512xbf16, #tpu.memory_space<vmem>>) target_semaphore(%3 : memref<!tpu.dma_semaphore, #tpu.memory_space<semaphore_mem>>)
    %c1_i32 = arith.constant 1 : i32
    %c4_i32 = arith.constant 4 : i32
    %c0_i32_6 = arith.constant 0 : i32
    %c0_i32_7 = arith.constant 0 : i32
    %4 = tpu.memref_slice %arg6[%c4_i32, %c0_i32_6, %c0_i32_7] : memref<16x144x512xbf16, #tpu.memory_space<any>> -> memref<4x144x512xbf16, #tpu.memory_space<any>>
    %c4_i32_8 = arith.constant 4 : i32
    %c0_i32_9 = arith.constant 0 : i32
    %c0_i32_10 = arith.constant 0 : i32
    %5 = tpu.memref_slice %arg17[%c4_i32_8, %c0_i32_9, %c0_i32_10] : memref<16x144x512xbf16, #tpu.memory_space<vmem>> -> memref<4x144x512xbf16, #tpu.memory_space<vmem>>
    %6 = tpu.memref_slice %arg18[%c1_i32] : memref<4x!tpu.dma_semaphore, #tpu.memory_space<semaphore_mem>> -> memref<1x!tpu.dma_semaphore, #tpu.memory_space<semaphore_mem>>
    %7 = tpu.memref_squeeze %6 : memref<1x!tpu.dma_semaphore, #tpu.memory_space<semaphore_mem>> -> memref<!tpu.dma_semaphore, #tpu.memory_space<semaphore_mem>>
    tpu.enqueue_dma source(%4 : memref<4x144x512xbf16, #tpu.memory_space<any>>) target(%5 : memref<4x144x512xbf16, #tpu.memory_space<vmem>>) target_semaphore(%7 : memref<!tpu.dma_semaphore, #tpu.memory_space<semaphore_mem>>)
    %c2_i32 = arith.constant 2 : i32
    %c8_i32 = arith.constant 8 : i32
    %c0_i32_11 = arith.constant 0 : i32
    %c0_i32_12 = arith.constant 0 : i32
    %8 = tpu.memref_slice %arg6[%c8_i32, %c0_i32_11, %c0_i32_12] : memref<16x144x512xbf16, #tpu.memory_space<any>> -> memref<4x144x512xbf16, #tpu.memory_space<any>>
    %c8_i32_13 = arith.constant 8 : i32
    %c0_i32_14 = arith.constant 0 : i32
    %c0_i32_15 = arith.constant 0 : i32
    %9 = tpu.memref_slice %arg17[%c8_i32_13, %c0_i32_14, %c0_i32_15] : memref<16x144x512xbf16, #tpu.memory_space<vmem>> -> memref<4x144x512xbf16, #tpu.memory_space<vmem>>
    %10 = tpu.memref_slice %arg18[%c2_i32] : memref<4x!tpu.dma_semaphore, #tpu.memory_space<semaphore_mem>> -> memref<1x!tpu.dma_semaphore, #tpu.memory_space<semaphore_mem>>
    %11 = tpu.memref_squeeze %10 : memref<1x!tpu.dma_semaphore, #tpu.memory_space<semaphore_mem>> -> memref<!tpu.dma_semaphore, #tpu.memory_space<semaphore_mem>>
    tpu.enqueue_dma source(%8 : memref<4x144x512xbf16, #tpu.memory_space<any>>) target(%9 : memref<4x144x512xbf16, #tpu.memory_space<vmem>>) target_semaphore(%11 : memref<!tpu.dma_semaphore, #tpu.memory_space<semaphore_mem>>)
    %c3_i32 = arith.constant 3 : i32
    %c12_i32 = arith.constant 12 : i32
    %c0_i32_16 = arith.constant 0 : i32
    %c0_i32_17 = arith.constant 0 : i32
    %12 = tpu.memref_slice %arg6[%c12_i32, %c0_i32_16, %c0_i32_17] : memref<16x144x512xbf16, #tpu.memory_space<any>> -> memref<4x144x512xbf16, #tpu.memory_space<any>>
    %c12_i32_18 = arith.constant 12 : i32
    %c0_i32_19 = arith.constant 0 : i32
    %c0_i32_20 = arith.constant 0 : i32
    %13 = tpu.memref_slice %arg17[%c12_i32_18, %c0_i32_19, %c0_i32_20] : memref<16x144x512xbf16, #tpu.memory_space<vmem>> -> memref<4x144x512xbf16, #tpu.memory_space<vmem>>
    %14 = tpu.memref_slice %arg18[%c3_i32] : memref<4x!tpu.dma_semaphore, #tpu.memory_space<semaphore_mem>> -> memref<1x!tpu.dma_semaphore, #tpu.memory_space<semaphore_mem>>
    %15 = tpu.memref_squeeze %14 : memref<1x!tpu.dma_semaphore, #tpu.memory_space<semaphore_mem>> -> memref<!tpu.dma_semaphore, #tpu.memory_space<semaphore_mem>>
    tpu.enqueue_dma source(%12 : memref<4x144x512xbf16, #tpu.memory_space<any>>) target(%13 : memref<4x144x512xbf16, #tpu.memory_space<vmem>>) target_semaphore(%15 : memref<!tpu.dma_semaphore, #tpu.memory_space<semaphore_mem>>)
    %c0 = arith.constant 0 : index
    %c0_21 = arith.constant 0 : index
    %c0_22 = arith.constant 0 : index
    %16 = vector.load %arg0[%c0, %c0_21, %c0_22] : memref<8x8x256xf32, #tpu.memory_space<vmem>>, vector<1x8x222xf32>
    %17 = vector.shape_cast %16 : vector<1x8x222xf32> to vector<8x222xf32>
    %c0_23 = arith.constant 0 : index
    %c0_24 = arith.constant 0 : index
    %18 = vector.load %arg11[%c0_23, %c0_24] : memref<72x1776xf32, #tpu.memory_space<vmem>>, vector<8x222xf32>
    tpu.vector_store %arg11[%c0_23, %c0_24], %17 {strides = array<i32>} : memref<72x1776xf32, #tpu.memory_space<vmem>>, vector<8x222xf32>,
    %c0_25 = arith.constant 0 : index
    %c0_26 = arith.constant 0 : index
    %c1 = arith.constant 1 : index
    %19 = vector.load %arg0[%c0_25, %c0_26, %c1] : memref<8x8x256xf32, #tpu.memory_space<vmem>>, vector<1x8x222xf32>
    %20 = vector.shape_cast %19 : vector<1x8x222xf32> to vector<8x222xf32>
    %c8 = arith.constant 8 : index
    %c0_27 = arith.constant 0 : index
    %21 = vector.load %arg11[%c8, %c0_27] : memref<72x1776xf32, #tpu.memory_space<vmem>>, vector<8x222xf32>
    tpu.vector_store %arg11[%c8, %c0_27], %20 {strides = array<i32>} : memref<72x1776xf32, #tpu.memory_space<vmem>>, vector<8x222xf32>,
    %c0_28 = arith.constant 0 : index
    %c0_29 = arith.constant 0 : index
    %c2 = arith.constant 2 : index
    %22 = vector.load %arg0[%c0_28, %c0_29, %c2] : memref<8x8x256xf32, #tpu.memory_space<vmem>>, vector<1x8x222xf32>
    %23 = vector.shape_cast %22 : vector<1x8x222xf32> to vector<8x222xf32>
    %c16 = arith.constant 16 : index
    %c0_30 = arith.constant 0 : index
    %24 = vector.load %arg11[%c16, %c0_30] : memref<72x1776xf32, #tpu.memory_space<vmem>>, vector<8x222xf32>
    tpu.vector_store %arg11[%c16, %c0_30], %23 {strides = array<i32>} : memref<72x1776xf32, #tpu.memory_space<vmem>>, vector<8x222xf32>,
    %c0_31 = arith.constant 0 : index
    %c0_32 = arith.constant 0 : index
    %c16_33 = arith.constant 16 : index
    %25 = vector.load %arg0[%c0_31, %c0_32, %c16_33] : memref<8x8x256xf32, #tpu.memory_space<vmem>>, vector<1x8x222xf32>
    %26 = vector.shape_cast %25 : vector<1x8x222xf32> to vector<8x222xf32>
    %c24 = arith.constant 24 : index
    %c0_34 = arith.constant 0 : index
    %27 = vector.load %arg11[%c24, %c0_34] : memref<72x1776xf32, #tpu.memory_space<vmem>>, vector<8x222xf32>
    tpu.vector_store %arg11[%c24, %c0_34], %26 {strides = array<i32>} : memref<72x1776xf32, #tpu.memory_space<vmem>>, vector<8x222xf32>,
    %c0_35 = arith.constant 0 : index
    %c0_36 = arith.constant 0 : index
    %c17 = arith.constant 17 : index
    %28 = vector.load %arg0[%c0_35, %c0_36, %c17] : memref<8x8x256xf32, #tpu.memory_space<vmem>>, vector<1x8x222xf32>
    %29 = vector.shape_cast %28 : vector<1x8x222xf32> to vector<8x222xf32>
    %c32 = arith.constant 32 : index
    %c0_37 = arith.constant 0 : index
    %30 = vector.load %arg11[%c32, %c0_37] : memref<72x1776xf32, #tpu.memory_space<vmem>>, vector<8x222xf32>
    tpu.vector_store %arg11[%c32, %c0_37], %29 {strides = array<i32>} : memref<72x1776xf32, #tpu.memory_space<vmem>>, vector<8x222xf32>,
    %c0_38 = arith.constant 0 : index
    %c0_39 = arith.constant 0 : index
    %c18 = arith.constant 18 : index
    %31 = vector.load %arg0[%c0_38, %c0_39, %c18] : memref<8x8x256xf32, #tpu.memory_space<vmem>>, vector<1x8x222xf32>
    %32 = vector.shape_cast %31 : vector<1x8x222xf32> to vector<8x222xf32>
    %c40 = arith.constant 40 : index
    %c0_40 = arith.constant 0 : index
    %33 = vector.load %arg11[%c40, %c0_40] : memref<72x1776xf32, #tpu.memory_space<vmem>>, vector<8x222xf32>
    tpu.vector_store %arg11[%c40, %c0_40], %32 {strides = array<i32>} : memref<72x1776xf32, #tpu.memory_space<vmem>>, vector<8x222xf32>,
    %c0_41 = arith.constant 0 : index
    %c0_42 = arith.constant 0 : index
    %c32_43 = arith.constant 32 : index
    %34 = vector.load %arg0[%c0_41, %c0_42, %c32_43] : memref<8x8x256xf32, #tpu.memory_space<vmem>>, vector<1x8x222xf32>
    %35 = vector.shape_cast %34 : vector<1x8x222xf32> to vector<8x222xf32>
    %c48 = arith.constant 48 : index
    %c0_44 = arith.constant 0 : index
    %36 = vector.load %arg11[%c48, %c0_44] : memref<72x1776xf32, #tpu.memory_space<vmem>>, vector<8x222xf32>
    tpu.vector_store %arg11[%c48, %c0_44], %35 {strides = array<i32>} : memref<72x1776xf32, #tpu.memory_space<vmem>>, vector<8x222xf32>,
    %c0_45 = arith.constant 0 : index
    %c0_46 = arith.constant 0 : index
    %c33 = arith.constant 33 : index
    %37 = vector.load %arg0[%c0_45, %c0_46, %c33] : memref<8x8x256xf32, #tpu.memory_space<vmem>>, vector<1x8x222xf32>
    %38 = vector.shape_cast %37 : vector<1x8x222xf32> to vector<8x222xf32>
    %c56 = arith.constant 56 : index
    %c0_47 = arith.constant 0 : index
    %39 = vector.load %arg11[%c56, %c0_47] : memref<72x1776xf32, #tpu.memory_space<vmem>>, vector<8x222xf32>
    tpu.vector_store %arg11[%c56, %c0_47], %38 {strides = array<i32>} : memref<72x1776xf32, #tpu.memory_space<vmem>>, vector<8x222xf32>,
    %c0_48 = arith.constant 0 : index
    %c0_49 = arith.constant 0 : index
    %c34 = arith.constant 34 : index
    %40 = vector.load %arg0[%c0_48, %c0_49, %c34] : memref<8x8x256xf32, #tpu.memory_space<vmem>>, vector<1x8x222xf32>
    %41 = vector.shape_cast %40 : vector<1x8x222xf32> to vector<8x222xf32>
    %c64 = arith.constant 64 : index
    %c0_50 = arith.constant 0 : index
    %42 = vector.load %arg11[%c64, %c0_50] : memref<72x1776xf32, #tpu.memory_space<vmem>>, vector<8x222xf32>
    tpu.vector_store %arg11[%c64, %c0_50], %41 {strides = array<i32>} : memref<72x1776xf32, #tpu.memory_space<vmem>>, vector<8x222xf32>,
    %c1_51 = arith.constant 1 : index
    %c0_52 = arith.constant 0 : index
    %c0_53 = arith.constant 0 : index
    %43 = vector.load %arg0[%c1_51, %c0_52, %c0_53] : memref<8x8x256xf32, #tpu.memory_space<vmem>>, vector<1x8x222xf32>
    %44 = vector.shape_cast %43 : vector<1x8x222xf32> to vector<8x222xf32>
    %c0_54 = arith.constant 0 : index
    %c222 = arith.constant 222 : index
    %45 = vector.load %arg11[%c0_54, %c222] : memref<72x1776xf32, #tpu.memory_space<vmem>>, vector<8x222xf32>
    tpu.vector_store %arg11[%c0_54, %c222], %44 {strides = array<i32>} : memref<72x1776xf32, #tpu.memory_space<vmem>>, vector<8x222xf32>,
    %c1_55 = arith.constant 1 : index
    %c0_56 = arith.constant 0 : index
    %c1_57 = arith.constant 1 : index
    %46 = vector.load %arg0[%c1_55, %c0_56, %c1_57] : memref<8x8x256xf32, #tpu.memory_space<vmem>>, vector<1x8x222xf32>
    %47 = vector.shape_cast %46 : vector<1x8x222xf32> to vector<8x222xf32>
    %c8_58 = arith.constant 8 : index
    %c222_59 = arith.constant 222 : index
    %48 = vector.load %arg11[%c8_58, %c222_59] : memref<72x1776xf32, #tpu.memory_space<vmem>>, vector<8x222xf32>
    tpu.vector_store %arg11[%c8_58, %c222_59], %47 {strides = array<i32>} : memref<72x1776xf32, #tpu.memory_space<vmem>>, vector<8x222xf32>,
    %c1_60 = arith.constant 1 : index
    %c0_61 = arith.constant 0 : index
    %c2_62 = arith.constant 2 : index
    %49 = vector.load %arg0[%c1_60, %c0_61, %c2_62] : memref<8x8x256xf32, #tpu.memory_space<vmem>>, vector<1x8x222xf32>
    %50 = vector.shape_cast %49 : vector<1x8x222xf32> to vector<8x222xf32>
    %c16_63 = arith.constant 16 : index
    %c222_64 = arith.constant 222 : index
    %51 = vector.load %arg11[%c16_63, %c222_64] : memref<72x1776xf32, #tpu.memory_space<vmem>>, vector<8x222xf32>
    tpu.vector_store %arg11[%c16_63, %c222_64], %50 {strides = array<i32>} : memref<72x1776xf32, #tpu.memory_space<vmem>>, vector<8x222xf32>,
    %c1_65 = arith.constant 1 : index
    %c0_66 = arith.constant 0 : index
    %c16_67 = arith.constant 16 : index
    %52 = vector.load %arg0[%c1_65, %c0_66, %c16_67] : memref<8x8x256xf32, #tpu.memory_space<vmem>>, vector<1x8x222xf32>
    %53 = vector.shape_cast %52 : vector<1x8x222xf32> to vector<8x222xf32>
    %c24_68 = arith.constant 24 : index
    %c222_69 = arith.constant 222 : index
    %54 = vector.load %arg11[%c24_68, %c222_69] : memref<72x1776xf32, #tpu.memory_space<vmem>>, vector<8x222xf32>
    tpu.vector_store %arg11[%c24_68, %c222_69], %53 {strides = array<i32>} : memref<72x1776xf32, #tpu.memory_space<vmem>>, vector<8x222xf32>,
    %c1_70 = arith.constant 1 : index
    %c0_71 = arith.constant 0 : index
    %c17_72 = arith.constant 17 : index
    %55 = vector.load %arg0[%c1_70, %c0_71, %c17_72] : memref<8x8x256xf32, #tpu.memory_space<vmem>>, vector<1x8x222xf32>
    %56 = vector.shape_cast %55 : vector<1x8x222xf32> to vector<8x222xf32>
    %c32_73 = arith.constant 32 : index
    %c222_74 = arith.constant 222 : index
    %57 = vector.load %arg11[%c32_73, %c222_74] : memref<72x1776xf32, #tpu.memory_space<vmem>>, vector<8x222xf32>
    tpu.vector_store %arg11[%c32_73, %c222_74], %56 {strides = array<i32>} : memref<72x1776xf32, #tpu.memory_space<vmem>>, vector<8x222xf32>,
    %c1_75 = arith.constant 1 : index
    %c0_76 = arith.constant 0 : index
    %c18_77 = arith.constant 18 : index
    %58 = vector.load %arg0[%c1_75, %c0_76, %c18_77] : memref<8x8x256xf32, #tpu.memory_space<vmem>>, vector<1x8x222xf32>
    %59 = vector.shape_cast %58 : vector<1x8x222xf32> to vector<8x222xf32>
    %c40_78 = arith.constant 40 : index
    %c222_79 = arith.constant 222 : index
    %60 = vector.load %arg11[%c40_78, %c222_79] : memref<72x1776xf32, #tpu.memory_space<vmem>>, vector<8x222xf32>
    tpu.vector_store %arg11[%c40_78, %c222_79], %59 {strides = array<i32>} : memref<72x1776xf32, #tpu.memory_space<vmem>>, vector<8x222xf32>,
    %c1_80 = arith.constant 1 : index
    %c0_81 = arith.constant 0 : index
    %c32_82 = arith.constant 32 : index
    %61 = vector.load %arg0[%c1_80, %c0_81, %c32_82] : memref<8x8x256xf32, #tpu.memory_space<vmem>>, vector<1x8x222xf32>
    %62 = vector.shape_cast %61 : vector<1x8x222xf32> to vector<8x222xf32>
    %c48_83 = arith.constant 48 : index
    %c222_84 = arith.constant 222 : index
    %63 = vector.load %arg11[%c48_83, %c222_84] : memref<72x1776xf32, #tpu.memory_space<vmem>>, vector<8x222xf32>
    tpu.vector_store %arg11[%c48_83, %c222_84], %62 {strides = array<i32>} : memref<72x1776xf32, #tpu.memory_space<vmem>>, vector<8x222xf32>,
    %c1_85 = arith.constant 1 : index
    %c0_86 = arith.constant 0 : index
    %c33_87 = arith.constant 33 : index
    %64 = vector.load %arg0[%c1_85, %c0_86, %c33_87] : memref<8x8x256xf32, #tpu.memory_space<vmem>>, vector<1x8x222xf32>
    %65 = vector.shape_cast %64 : vector<1x8x222xf32> to vector<8x222xf32>
    %c56_88 = arith.constant 56 : index
    %c222_89 = arith.constant 222 : index
    %66 = vector.load %arg11[%c56_88, %c222_89] : memref<72x1776xf32, #tpu.memory_space<vmem>>, vector<8x222xf32>
    tpu.vector_store %arg11[%c56_88, %c222_89], %65 {strides = array<i32>} : memref<72x1776xf32, #tpu.memory_space<vmem>>, vector<8x222xf32>,
    %c1_90 = arith.constant 1 : index
    %c0_91 = arith.constant 0 : index
    %c34_92 = arith.constant 34 : index
    %67 = vector.load %arg0[%c1_90, %c0_91, %c34_92] : memref<8x8x256xf32, #tpu.memory_space<vmem>>, vector<1x8x222xf32>
    %68 = vector.shape_cast %67 : vector<1x8x222xf32> to vector<8x222xf32>
    %c64_93 = arith.constant 64 : index
    %c222_94 = arith.constant 222 : index
    %69 = vector.load %arg11[%c64_93, %c222_94] : memref<72x1776xf32, #tpu.memory_space<vmem>>, vector<8x222xf32>
    tpu.vector_store %arg11[%c64_93, %c222_94], %68 {strides = array<i32>} : memref<72x1776xf32, #tpu.memory_space<vmem>>, vector<8x222xf32>,
    %c2_95 = arith.constant 2 : index
    %c0_96 = arith.constant 0 : index
    %c0_97 = arith.constant 0 : index
    %70 = vector.load %arg0[%c2_95, %c0_96, %c0_97] : memref<8x8x256xf32, #tpu.memory_space<vmem>>, vector<1x8x222xf32>
    %71 = vector.shape_cast %70 : vector<1x8x222xf32> to vector<8x222xf32>
    %c0_98 = arith.constant 0 : index
    %c444 = arith.constant 444 : index
    %72 = vector.load %arg11[%c0_98, %c444] : memref<72x1776xf32, #tpu.memory_space<vmem>>, vector<8x222xf32>
    tpu.vector_store %arg11[%c0_98, %c444], %71 {strides = array<i32>} : memref<72x1776xf32, #tpu.memory_space<vmem>>, vector<8x222xf32>,
    %c2_99 = arith.constant 2 : index
    %c0_100 = arith.constant 0 : index
    %c1_101 = arith.constant 1 : index
    %73 = vector.load %arg0[%c2_99, %c0_100, %c1_101] : memref<8x8x256xf32, #tpu.memory_space<vmem>>, vector<1x8x222xf32>
    %74 = vector.shape_cast %73 : vector<1x8x222xf32> to vector<8x222xf32>
    %c8_102 = arith.constant 8 : index
    %c444_103 = arith.constant 444 : index
    %75 = vector.load %arg11[%c8_102, %c444_103] : memref<72x1776xf32, #tpu.memory_space<vmem>>, vector<8x222xf32>
    tpu.vector_store %arg11[%c8_102, %c444_103], %74 {strides = array<i32>} : memref<72x1776xf32, #tpu.memory_space<vmem>>, vector<8x222xf32>,
    %c2_104 = arith.constant 2 : index
    %c0_105 = arith.constant 0 : index
    %c2_106 = arith.constant 2 : index
    %76 = vector.load %arg0[%c2_104, %c0_105, %c2_106] : memref<8x8x256xf32, #tpu.memory_space<vmem>>, vector<1x8x222xf32>
    %77 = vector.shape_cast %76 : vector<1x8x222xf32> to vector<8x222xf32>
    %c16_107 = arith.constant 16 : index
    %c444_108 = arith.constant 444 : index
    %78 = vector.load %arg11[%c16_107, %c444_108] : memref<72x1776xf32, #tpu.memory_space<vmem>>, vector<8x222xf32>
    tpu.vector_store %arg11[%c16_107, %c444_108], %77 {strides = array<i32>} : memref<72x1776xf32, #tpu.memory_space<vmem>>, vector<8x222xf32>,
    %c2_109 = arith.constant 2 : index
    %c0_110 = arith.constant 0 : index
    %c16_111 = arith.constant 16 : index
    %79 = vector.load %arg0[%c2_109, %c0_110, %c16_111] : memref<8x8x256xf32, #tpu.memory_space<vmem>>, vector<1x8x222xf32>
    %80 = vector.shape_cast %79 : vector<1x8x222xf32> to vector<8x222xf32>
    %c24_112 = arith.constant 24 : index
    %c444_113 = arith.constant 444 : index
    %81 = vector.load %arg11[%c24_112, %c444_113] : memref<72x1776xf32, #tpu.memory_space<vmem>>, vector<8x222xf32>
    tpu.vector_store %arg11[%c24_112, %c444_113], %80 {strides = array<i32>} : memref<72x1776xf32, #tpu.memory_space<vmem>>, vector<8x222xf32>,
    %c2_114 = arith.constant 2 : index
    %c0_115 = arith.constant 0 : index
    %c17_116 = arith.constant 17 : index
    %82 = vector.load %arg0[%c2_114, %c0_115, %c17_116] : memref<8x8x256xf32, #tpu.memory_space<vmem>>, vector<1x8x222xf32>
    %83 = vector.shape_cast %82 : vector<1x8x222xf32> to vector<8x222xf32>
    %c32_117 = arith.constant 32 : index
    %c444_118 = arith.constant 444 : index
    %84 = vector.load %arg11[%c32_117, %c444_118] : memref<72x1776xf32, #tpu.memory_space<vmem>>, vector<8x222xf32>
    tpu.vector_store %arg11[%c32_117, %c444_118], %83 {strides = array<i32>} : memref<72x1776xf32, #tpu.memory_space<vmem>>, vector<8x222xf32>,
    %c2_119 = arith.constant 2 : index
    %c0_120 = arith.constant 0 : index
    %c18_121 = arith.constant 18 : index
    %85 = vector.load %arg0[%c2_119, %c0_120, %c18_121] : memref<8x8x256xf32, #tpu.memory_space<vmem>>, vector<1x8x222xf32>
    %86 = vector.shape_cast %85 : vector<1x8x222xf32> to vector<8x222xf32>
    %c40_122 = arith.constant 40 : index
    %c444_123 = arith.constant 444 : index
    %87 = vector.load %arg11[%c40_122, %c444_123] : memref<72x1776xf32, #tpu.memory_space<vmem>>, vector<8x222xf32>
    tpu.vector_store %arg11[%c40_122, %c444_123], %86 {strides = array<i32>} : memref<72x1776xf32, #tpu.memory_space<vmem>>, vector<8x222xf32>,
    %c2_124 = arith.constant 2 : index
    %c0_125 = arith.constant 0 : index
    %c32_126 = arith.constant 32 : index
    %88 = vector.load %arg0[%c2_124, %c0_125, %c32_126] : memref<8x8x256xf32, #tpu.memory_space<vmem>>, vector<1x8x222xf32>
    %89 = vector.shape_cast %88 : vector<1x8x222xf32> to vector<8x222xf32>
    %c48_127 = arith.constant 48 : index
    %c444_128 = arith.constant 444 : index
    %90 = vector.load %arg11[%c48_127, %c444_128] : memref<72x1776xf32, #tpu.memory_space<vmem>>, vector<8x222xf32>
    tpu.vector_store %arg11[%c48_127, %c444_128], %89 {strides = array<i32>} : memref<72x1776xf32, #tpu.memory_space<vmem>>, vector<8x222xf32>,
    %c2_129 = arith.constant 2 : index
    %c0_130 = arith.constant 0 : index
    %c33_131 = arith.constant 33 : index
    %91 = vector.load %arg0[%c2_129, %c0_130, %c33_131] : memref<8x8x256xf32, #tpu.memory_space<vmem>>, vector<1x8x222xf32>
    %92 = vector.shape_cast %91 : vector<1x8x222xf32> to vector<8x222xf32>
    %c56_132 = arith.constant 56 : index
    %c444_133 = arith.constant 444 : index
    %93 = vector.load %arg11[%c56_132, %c444_133] : memref<72x1776xf32, #tpu.memory_space<vmem>>, vector<8x222xf32>
    tpu.vector_store %arg11[%c56_132, %c444_133], %92 {strides = array<i32>} : memref<72x1776xf32, #tpu.memory_space<vmem>>, vector<8x222xf32>,
    %c2_134 = arith.constant 2 : index
    %c0_135 = arith.constant 0 : index
    %c34_136 = arith.constant 34 : index
    %94 = vector.load %arg0[%c2_134, %c0_135, %c34_136] : memref<8x8x256xf32, #tpu.memory_space<vmem>>, vector<1x8x222xf32>
    %95 = vector.shape_cast %94 : vector<1x8x222xf32> to vector<8x222xf32>
    %c64_137 = arith.constant 64 : index
    %c444_138 = arith.constant 444 : index
    %96 = vector.load %arg11[%c64_137, %c444_138] : memref<72x1776xf32, #tpu.memory_space<vmem>>, vector<8x222xf32>
    tpu.vector_store %arg11[%c64_137, %c444_138], %95 {strides = array<i32>} : memref<72x1776xf32, #tpu.memory_space<vmem>>, vector<8x222xf32>,
    %c3 = arith.constant 3 : index
    %c0_139 = arith.constant 0 : index
    %c0_140 = arith.constant 0 : index
    %97 = vector.load %arg0[%c3, %c0_139, %c0_140] : memref<8x8x256xf32, #tpu.memory_space<vmem>>, vector<1x8x222xf32>
    %98 = vector.shape_cast %97 : vector<1x8x222xf32> to vector<8x222xf32>
    %c0_141 = arith.constant 0 : index
    %c666 = arith.constant 666 : index
    %99 = vector.load %arg11[%c0_141, %c666] : memref<72x1776xf32, #tpu.memory_space<vmem>>, vector<8x222xf32>
    tpu.vector_store %arg11[%c0_141, %c666], %98 {strides = array<i32>} : memref<72x1776xf32, #tpu.memory_space<vmem>>, vector<8x222xf32>,
    %c3_142 = arith.constant 3 : index
    %c0_143 = arith.constant 0 : index
    %c1_144 = arith.constant 1 : index
    %100 = vector.load %arg0[%c3_142, %c0_143, %c1_144] : memref<8x8x256xf32, #tpu.memory_space<vmem>>, vector<1x8x222xf32>
    %101 = vector.shape_cast %100 : vector<1x8x222xf32> to vector<8x222xf32>
    %c8_145 = arith.constant 8 : index
    %c666_146 = arith.constant 666 : index
    %102 = vector.load %arg11[%c8_145, %c666_146] : memref<72x1776xf32, #tpu.memory_space<vmem>>, vector<8x222xf32>
    tpu.vector_store %arg11[%c8_145, %c666_146], %101 {strides = array<i32>} : memref<72x1776xf32, #tpu.memory_space<vmem>>, vector<8x222xf32>,
    %c3_147 = arith.constant 3 : index
    %c0_148 = arith.constant 0 : index
    %c2_149 = arith.constant 2 : index
    %103 = vector.load %arg0[%c3_147, %c0_148, %c2_149] : memref<8x8x256xf32, #tpu.memory_space<vmem>>, vector<1x8x222xf32>
    %104 = vector.shape_cast %103 : vector<1x8x222xf32> to vector<8x222xf32>
    %c16_150 = arith.constant 16 : index
    %c666_151 = arith.constant 666 : index
    %105 = vector.load %arg11[%c16_150, %c666_151] : memref<72x1776xf32, #tpu.memory_space<vmem>>, vector<8x222xf32>
    tpu.vector_store %arg11[%c16_150, %c666_151], %104 {strides = array<i32>} : memref<72x1776xf32, #tpu.memory_space<vmem>>, vector<8x222xf32>,
    %c3_152 = arith.constant 3 : index
    %c0_153 = arith.constant 0 : index
    %c16_154 = arith.constant 16 : index
    %106 = vector.load %arg0[%c3_152, %c0_153, %c16_154] : memref<8x8x256xf32, #tpu.memory_space<vmem>>, vector<1x8x222xf32>
    %107 = vector.shape_cast %106 : vector<1x8x222xf32> to vector<8x222xf32>
    %c24_155 = arith.constant 24 : index
    %c666_156 = arith.constant 666 : index
    %108 = vector.load %arg11[%c24_155, %c666_156] : memref<72x1776xf32, #tpu.memory_space<vmem>>, vector<8x222xf32>
    tpu.vector_store %arg11[%c24_155, %c666_156], %107 {strides = array<i32>} : memref<72x1776xf32, #tpu.memory_space<vmem>>, vector<8x222xf32>,
    %c3_157 = arith.constant 3 : index
    %c0_158 = arith.constant 0 : index
    %c17_159 = arith.constant 17 : index
    %109 = vector.load %arg0[%c3_157, %c0_158, %c17_159] : memref<8x8x256xf32, #tpu.memory_space<vmem>>, vector<1x8x222xf32>
    %110 = vector.shape_cast %109 : vector<1x8x222xf32> to vector<8x222xf32>
    %c32_160 = arith.constant 32 : index
    %c666_161 = arith.constant 666 : index
    %111 = vector.load %arg11[%c32_160, %c666_161] : memref<72x1776xf32, #tpu.memory_space<vmem>>, vector<8x222xf32>
    tpu.vector_store %arg11[%c32_160, %c666_161], %110 {strides = array<i32>} : memref<72x1776xf32, #tpu.memory_space<vmem>>, vector<8x222xf32>,
    %c3_162 = arith.constant 3 : index
    %c0_163 = arith.constant 0 : index
    %c18_164 = arith.constant 18 : index
    %112 = vector.load %arg0[%c3_162, %c0_163, %c18_164] : memref<8x8x256xf32, #tpu.memory_space<vmem>>, vector<1x8x222xf32>
    %113 = vector.shape_cast %112 : vector<1x8x222xf32> to vector<8x222xf32>
    %c40_165 = arith.constant 40 : index
    %c666_166 = arith.constant 666 : index
    %114 = vector.load %arg11[%c40_165, %c666_166] : memref<72x1776xf32, #tpu.memory_space<vmem>>, vector<8x222xf32>
    tpu.vector_store %arg11[%c40_165, %c666_166], %113 {strides = array<i32>} : memref<72x1776xf32, #tpu.memory_space<vmem>>, vector<8x222xf32>,
    %c3_167 = arith.constant 3 : index
    %c0_168 = arith.constant 0 : index
    %c32_169 = arith.constant 32 : index
    %115 = vector.load %arg0[%c3_167, %c0_168, %c32_169] : memref<8x8x256xf32, #tpu.memory_space<vmem>>, vector<1x8x222xf32>
    %116 = vector.shape_cast %115 : vector<1x8x222xf32> to vector<8x222xf32>
    %c48_170 = arith.constant 48 : index
    %c666_171 = arith.constant 666 : index
    %117 = vector.load %arg11[%c48_170, %c666_171] : memref<72x1776xf32, #tpu.memory_space<vmem>>, vector<8x222xf32>
    tpu.vector_store %arg11[%c48_170, %c666_171], %116 {strides = array<i32>} : memref<72x1776xf32, #tpu.memory_space<vmem>>, vector<8x222xf32>,
    %c3_172 = arith.constant 3 : index
    %c0_173 = arith.constant 0 : index
    %c33_174 = arith.constant 33 : index
    %118 = vector.load %arg0[%c3_172, %c0_173, %c33_174] : memref<8x8x256xf32, #tpu.memory_space<vmem>>, vector<1x8x222xf32>
    %119 = vector.shape_cast %118 : vector<1x8x222xf32> to vector<8x222xf32>
    %c56_175 = arith.constant 56 : index
    %c666_176 = arith.constant 666 : index
    %120 = vector.load %arg11[%c56_175, %c666_176] : memref<72x1776xf32, #tpu.memory_space<vmem>>, vector<8x222xf32>
    tpu.vector_store %arg11[%c56_175, %c666_176], %119 {strides = array<i32>} : memref<72x1776xf32, #tpu.memory_space<vmem>>, vector<8x222xf32>,
    %c3_177 = arith.constant 3 : index
    %c0_178 = arith.constant 0 : index
    %c34_179 = arith.constant 34 : index
    %121 = vector.load %arg0[%c3_177, %c0_178, %c34_179] : memref<8x8x256xf32, #tpu.memory_space<vmem>>, vector<1x8x222xf32>
    %122 = vector.shape_cast %121 : vector<1x8x222xf32> to vector<8x222xf32>
    %c64_180 = arith.constant 64 : index
    %c666_181 = arith.constant 666 : index
    %123 = vector.load %arg11[%c64_180, %c666_181] : memref<72x1776xf32, #tpu.memory_space<vmem>>, vector<8x222xf32>
    tpu.vector_store %arg11[%c64_180, %c666_181], %122 {strides = array<i32>} : memref<72x1776xf32, #tpu.memory_space<vmem>>, vector<8x222xf32>,
    %c4 = arith.constant 4 : index
    %c0_182 = arith.constant 0 : index
    %c0_183 = arith.constant 0 : index
    %124 = vector.load %arg0[%c4, %c0_182, %c0_183] : memref<8x8x256xf32, #tpu.memory_space<vmem>>, vector<1x8x222xf32>
    %125 = vector.shape_cast %124 : vector<1x8x222xf32> to vector<8x222xf32>
    %c0_184 = arith.constant 0 : index
    %c888 = arith.constant 888 : index
    %126 = vector.load %arg11[%c0_184, %c888] : memref<72x1776xf32, #tpu.memory_space<vmem>>, vector<8x222xf32>
    tpu.vector_store %arg11[%c0_184, %c888], %125 {strides = array<i32>} : memref<72x1776xf32, #tpu.memory_space<vmem>>, vector<8x222xf32>,
    %c4_185 = arith.constant 4 : index
    %c0_186 = arith.constant 0 : index
    %c1_187 = arith.constant 1 : index
    %127 = vector.load %arg0[%c4_185, %c0_186, %c1_187] : memref<8x8x256xf32, #tpu.memory_space<vmem>>, vector<1x8x222xf32>
    %128 = vector.shape_cast %127 : vector<1x8x222xf32> to vector<8x222xf32>
    %c8_188 = arith.constant 8 : index
    %c888_189 = arith.constant 888 : index
    %129 = vector.load %arg11[%c8_188, %c888_189] : memref<72x1776xf32, #tpu.memory_space<vmem>>, vector<8x222xf32>
    tpu.vector_store %arg11[%c8_188, %c888_189], %128 {strides = array<i32>} : memref<72x1776xf32, #tpu.memory_space<vmem>>, vector<8x222xf32>,
    %c4_190 = arith.constant 4 : index
    %c0_191 = arith.constant 0 : index
    %c2_192 = arith.constant 2 : index
    %130 = vector.load %arg0[%c4_190, %c0_191, %c2_192] : memref<8x8x256xf32, #tpu.memory_space<vmem>>, vector<1x8x222xf32>
    %131 = vector.shape_cast %130 : vector<1x8x222xf32> to vector<8x222xf32>
    %c16_193 = arith.constant 16 : index
    %c888_194 = arith.constant 888 : index
    %132 = vector.load %arg11[%c16_193, %c888_194] : memref<72x1776xf32, #tpu.memory_space<vmem>>, vector<8x222xf32>
    tpu.vector_store %arg11[%c16_193, %c888_194], %131 {strides = array<i32>} : memref<72x1776xf32, #tpu.memory_space<vmem>>, vector<8x222xf32>,
    %c4_195 = arith.constant 4 : index
    %c0_196 = arith.constant 0 : index
    %c16_197 = arith.constant 16 : index
    %133 = vector.load %arg0[%c4_195, %c0_196, %c16_197] : memref<8x8x256xf32, #tpu.memory_space<vmem>>, vector<1x8x222xf32>
    %134 = vector.shape_cast %133 : vector<1x8x222xf32> to vector<8x222xf32>
    %c24_198 = arith.constant 24 : index
    %c888_199 = arith.constant 888 : index
    %135 = vector.load %arg11[%c24_198, %c888_199] : memref<72x1776xf32, #tpu.memory_space<vmem>>, vector<8x222xf32>
    tpu.vector_store %arg11[%c24_198, %c888_199], %134 {strides = array<i32>} : memref<72x1776xf32, #tpu.memory_space<vmem>>, vector<8x222xf32>,
    %c4_200 = arith.constant 4 : index
    %c0_201 = arith.constant 0 : index
    %c17_202 = arith.constant 17 : index
    %136 = vector.load %arg0[%c4_200, %c0_201, %c17_202] : memref<8x8x256xf32, #tpu.memory_space<vmem>>, vector<1x8x222xf32>
    %137 = vector.shape_cast %136 : vector<1x8x222xf32> to vector<8x222xf32>
    %c32_203 = arith.constant 32 : index
    %c888_204 = arith.constant 888 : index
    %138 = vector.load %arg11[%c32_203, %c888_204] : memref<72x1776xf32, #tpu.memory_space<vmem>>, vector<8x222xf32>
    tpu.vector_store %arg11[%c32_203, %c888_204], %137 {strides = array<i32>} : memref<72x1776xf32, #tpu.memory_space<vmem>>, vector<8x222xf32>,
    %c4_205 = arith.constant 4 : index
    %c0_206 = arith.constant 0 : index
    %c18_207 = arith.constant 18 : index
    %139 = vector.load %arg0[%c4_205, %c0_206, %c18_207] : memref<8x8x256xf32, #tpu.memory_space<vmem>>, vector<1x8x222xf32>
    %140 = vector.shape_cast %139 : vector<1x8x222xf32> to vector<8x222xf32>
    %c40_208 = arith.constant 40 : index
    %c888_209 = arith.constant 888 : index
    %141 = vector.load %arg11[%c40_208, %c888_209] : memref<72x1776xf32, #tpu.memory_space<vmem>>, vector<8x222xf32>
    tpu.vector_store %arg11[%c40_208, %c888_209], %140 {strides = array<i32>} : memref<72x1776xf32, #tpu.memory_space<vmem>>, vector<8x222xf32>,
    %c4_210 = arith.constant 4 : index
    %c0_211 = arith.constant 0 : index
    %c32_212 = arith.constant 32 : index
    %142 = vector.load %arg0[%c4_210, %c0_211, %c32_212] : memref<8x8x256xf32, #tpu.memory_space<vmem>>, vector<1x8x222xf32>
    %143 = vector.shape_cast %142 : vector<1x8x222xf32> to vector<8x222xf32>
    %c48_213 = arith.constant 48 : index
    %c888_214 = arith.constant 888 : index
    %144 = vector.load %arg11[%c48_213, %c888_214] : memref<72x1776xf32, #tpu.memory_space<vmem>>, vector<8x222xf32>
    tpu.vector_store %arg11[%c48_213, %c888_214], %143 {strides = array<i32>} : memref<72x1776xf32, #tpu.memory_space<vmem>>, vector<8x222xf32>,
    %c4_215 = arith.constant 4 : index
    %c0_216 = arith.constant 0 : index
    %c33_217 = arith.constant 33 : index
    %145 = vector.load %arg0[%c4_215, %c0_216, %c33_217] : memref<8x8x256xf32, #tpu.memory_space<vmem>>, vector<1x8x222xf32>
    %146 = vector.shape_cast %145 : vector<1x8x222xf32> to vector<8x222xf32>
    %c56_218 = arith.constant 56 : index
    %c888_219 = arith.constant 888 : index
    %147 = vector.load %arg11[%c56_218, %c888_219] : memref<72x1776xf32, #tpu.memory_space<vmem>>, vector<8x222xf32>
    tpu.vector_store %arg11[%c56_218, %c888_219], %146 {strides = array<i32>} : memref<72x1776xf32, #tpu.memory_space<vmem>>, vector<8x222xf32>,
    %c4_220 = arith.constant 4 : index
    %c0_221 = arith.constant 0 : index
    %c34_222 = arith.constant 34 : index
    %148 = vector.load %arg0[%c4_220, %c0_221, %c34_222] : memref<8x8x256xf32, #tpu.memory_space<vmem>>, vector<1x8x222xf32>
    %149 = vector.shape_cast %148 : vector<1x8x222xf32> to vector<8x222xf32>
    %c64_223 = arith.constant 64 : index
    %c888_224 = arith.constant 888 : index
    %150 = vector.load %arg11[%c64_223, %c888_224] : memref<72x1776xf32, #tpu.memory_space<vmem>>, vector<8x222xf32>
    tpu.vector_store %arg11[%c64_223, %c888_224], %149 {strides = array<i32>} : memref<72x1776xf32, #tpu.memory_space<vmem>>, vector<8x222xf32>,
    %c5 = arith.constant 5 : index
    %c0_225 = arith.constant 0 : index
    %c0_226 = arith.constant 0 : index
    %151 = vector.load %arg0[%c5, %c0_225, %c0_226] : memref<8x8x256xf32, #tpu.memory_space<vmem>>, vector<1x8x222xf32>
    %152 = vector.shape_cast %151 : vector<1x8x222xf32> to vector<8x222xf32>
    %c0_227 = arith.constant 0 : index
    %c1110 = arith.constant 1110 : index
    %153 = vector.load %arg11[%c0_227, %c1110] : memref<72x1776xf32, #tpu.memory_space<vmem>>, vector<8x222xf32>
    tpu.vector_store %arg11[%c0_227, %c1110], %152 {strides = array<i32>} : memref<72x1776xf32, #tpu.memory_space<vmem>>, vector<8x222xf32>,
    %c5_228 = arith.constant 5 : index
    %c0_229 = arith.constant 0 : index
    %c1_230 = arith.constant 1 : index
    %154 = vector.load %arg0[%c5_228, %c0_229, %c1_230] : memref<8x8x256xf32, #tpu.memory_space<vmem>>, vector<1x8x222xf32>
    %155 = vector.shape_cast %154 : vector<1x8x222xf32> to vector<8x222xf32>
    %c8_231 = arith.constant 8 : index
    %c1110_232 = arith.constant 1110 : index
    %156 = vector.load %arg11[%c8_231, %c1110_232] : memref<72x1776xf32, #tpu.memory_space<vmem>>, vector<8x222xf32>
    tpu.vector_store %arg11[%c8_231, %c1110_232], %155 {strides = array<i32>} : memref<72x1776xf32, #tpu.memory_space<vmem>>, vector<8x222xf32>,
    %c5_233 = arith.constant 5 : index
    %c0_234 = arith.constant 0 : index
    %c2_235 = arith.constant 2 : index
    %157 = vector.load %arg0[%c5_233, %c0_234, %c2_235] : memref<8x8x256xf32, #tpu.memory_space<vmem>>, vector<1x8x222xf32>
    %158 = vector.shape_cast %157 : vector<1x8x222xf32> to vector<8x222xf32>
    %c16_236 = arith.constant 16 : index
    %c1110_237 = arith.constant 1110 : index
    %159 = vector.load %arg11[%c16_236, %c1110_237] : memref<72x1776xf32, #tpu.memory_space<vmem>>, vector<8x222xf32>
    tpu.vector_store %arg11[%c16_236, %c1110_237], %158 {strides = array<i32>} : memref<72x1776xf32, #tpu.memory_space<vmem>>, vector<8x222xf32>,
    %c5_238 = arith.constant 5 : index
    %c0_239 = arith.constant 0 : index
    %c16_240 = arith.constant 16 : index
    %160 = vector.load %arg0[%c5_238, %c0_239, %c16_240] : memref<8x8x256xf32, #tpu.memory_space<vmem>>, vector<1x8x222xf32>
    %161 = vector.shape_cast %160 : vector<1x8x222xf32> to vector<8x222xf32>
    %c24_241 = arith.constant 24 : index
    %c1110_242 = arith.constant 1110 : index
    %162 = vector.load %arg11[%c24_241, %c1110_242] : memref<72x1776xf32, #tpu.memory_space<vmem>>, vector<8x222xf32>
    tpu.vector_store %arg11[%c24_241, %c1110_242], %161 {strides = array<i32>} : memref<72x1776xf32, #tpu.memory_space<vmem>>, vector<8x222xf32>,
    %c5_243 = arith.constant 5 : index
    %c0_244 = arith.constant 0 : index
    %c17_245 = arith.constant 17 : index
    %163 = vector.load %arg0[%c5_243, %c0_244, %c17_245] : memref<8x8x256xf32, #tpu.memory_space<vmem>>, vector<1x8x222xf32>
    %164 = vector.shape_cast %163 : vector<1x8x222xf32> to vector<8x222xf32>
    %c32_246 = arith.constant 32 : index
    %c1110_247 = arith.constant 1110 : index
    %165 = vector.load %arg11[%c32_246, %c1110_247] : memref<72x1776xf32, #tpu.memory_space<vmem>>, vector<8x222xf32>
    tpu.vector_store %arg11[%c32_246, %c1110_247], %164 {strides = array<i32>} : memref<72x1776xf32, #tpu.memory_space<vmem>>, vector<8x222xf32>,
    %c5_248 = arith.constant 5 : index
    %c0_249 = arith.constant 0 : index
    %c18_250 = arith.constant 18 : index
    %166 = vector.load %arg0[%c5_248, %c0_249, %c18_250] : memref<8x8x256xf32, #tpu.memory_space<vmem>>, vector<1x8x222xf32>
    %167 = vector.shape_cast %166 : vector<1x8x222xf32> to vector<8x222xf32>
    %c40_251 = arith.constant 40 : index
    %c1110_252 = arith.constant 1110 : index
    %168 = vector.load %arg11[%c40_251, %c1110_252] : memref<72x1776xf32, #tpu.memory_space<vmem>>, vector<8x222xf32>
    tpu.vector_store %arg11[%c40_251, %c1110_252], %167 {strides = array<i32>} : memref<72x1776xf32, #tpu.memory_space<vmem>>, vector<8x222xf32>,
    %c5_253 = arith.constant 5 : index
    %c0_254 = arith.constant 0 : index
    %c32_255 = arith.constant 32 : index
    %169 = vector.load %arg0[%c5_253, %c0_254, %c32_255] : memref<8x8x256xf32, #tpu.memory_space<vmem>>, vector<1x8x222xf32>
    %170 = vector.shape_cast %169 : vector<1x8x222xf32> to vector<8x222xf32>
    %c48_256 = arith.constant 48 : index
    %c1110_257 = arith.constant 1110 : index
    %171 = vector.load %arg11[%c48_256, %c1110_257] : memref<72x1776xf32, #tpu.memory_space<vmem>>, vector<8x222xf32>
    tpu.vector_store %arg11[%c48_256, %c1110_257], %170 {strides = array<i32>} : memref<72x1776xf32, #tpu.memory_space<vmem>>, vector<8x222xf32>,
    %c5_258 = arith.constant 5 : index
    %c0_259 = arith.constant 0 : index
    %c33_260 = arith.constant 33 : index
    %172 = vector.load %arg0[%c5_258, %c0_259, %c33_260] : memref<8x8x256xf32, #tpu.memory_space<vmem>>, vector<1x8x222xf32>
    %173 = vector.shape_cast %172 : vector<1x8x222xf32> to vector<8x222xf32>
    %c56_261 = arith.constant 56 : index
    %c1110_262 = arith.constant 1110 : index
    %174 = vector.load %arg11[%c56_261, %c1110_262] : memref<72x1776xf32, #tpu.memory_space<vmem>>, vector<8x222xf32>
    tpu.vector_store %arg11[%c56_261, %c1110_262], %173 {strides = array<i32>} : memref<72x1776xf32, #tpu.memory_space<vmem>>, vector<8x222xf32>,
    %c5_263 = arith.constant 5 : index
    %c0_264 = arith.constant 0 : index
    %c34_265 = arith.constant 34 : index
    %175 = vector.load %arg0[%c5_263, %c0_264, %c34_265] : memref<8x8x256xf32, #tpu.memory_space<vmem>>, vector<1x8x222xf32>
    %176 = vector.shape_cast %175 : vector<1x8x222xf32> to vector<8x222xf32>
    %c64_266 = arith.constant 64 : index
    %c1110_267 = arith.constant 1110 : index
    %177 = vector.load %arg11[%c64_266, %c1110_267] : memref<72x1776xf32, #tpu.memory_space<vmem>>, vector<8x222xf32>
    tpu.vector_store %arg11[%c64_266, %c1110_267], %176 {strides = array<i32>} : memref<72x1776xf32, #tpu.memory_space<vmem>>, vector<8x222xf32>,
    %c6 = arith.constant 6 : index
    %c0_268 = arith.constant 0 : index
    %c0_269 = arith.constant 0 : index
    %178 = vector.load %arg0[%c6, %c0_268, %c0_269] : memref<8x8x256xf32, #tpu.memory_space<vmem>>, vector<1x8x222xf32>
    %179 = vector.shape_cast %178 : vector<1x8x222xf32> to vector<8x222xf32>
    %c0_270 = arith.constant 0 : index
    %c1332 = arith.constant 1332 : index
    %180 = vector.load %arg11[%c0_270, %c1332] : memref<72x1776xf32, #tpu.memory_space<vmem>>, vector<8x222xf32>
    tpu.vector_store %arg11[%c0_270, %c1332], %179 {strides = array<i32>} : memref<72x1776xf32, #tpu.memory_space<vmem>>, vector<8x222xf32>,
    %c6_271 = arith.constant 6 : index
    %c0_272 = arith.constant 0 : index
    %c1_273 = arith.constant 1 : index
    %181 = vector.load %arg0[%c6_271, %c0_272, %c1_273] : memref<8x8x256xf32, #tpu.memory_space<vmem>>, vector<1x8x222xf32>
    %182 = vector.shape_cast %181 : vector<1x8x222xf32> to vector<8x222xf32>
    %c8_274 = arith.constant 8 : index
    %c1332_275 = arith.constant 1332 : index
    %183 = vector.load %arg11[%c8_274, %c1332_275] : memref<72x1776xf32, #tpu.memory_space<vmem>>, vector<8x222xf32>
    tpu.vector_store %arg11[%c8_274, %c1332_275], %182 {strides = array<i32>} : memref<72x1776xf32, #tpu.memory_space<vmem>>, vector<8x222xf32>,
    %c6_276 = arith.constant 6 : index
    %c0_277 = arith.constant 0 : index
    %c2_278 = arith.constant 2 : index
    %184 = vector.load %arg0[%c6_276, %c0_277, %c2_278] : memref<8x8x256xf32, #tpu.memory_space<vmem>>, vector<1x8x222xf32>
    %185 = vector.shape_cast %184 : vector<1x8x222xf32> to vector<8x222xf32>
    %c16_279 = arith.constant 16 : index
    %c1332_280 = arith.constant 1332 : index
    %186 = vector.load %arg11[%c16_279, %c1332_280] : memref<72x1776xf32, #tpu.memory_space<vmem>>, vector<8x222xf32>
    tpu.vector_store %arg11[%c16_279, %c1332_280], %185 {strides = array<i32>} : memref<72x1776xf32, #tpu.memory_space<vmem>>, vector<8x222xf32>,
    %c6_281 = arith.constant 6 : index
    %c0_282 = arith.constant 0 : index
    %c16_283 = arith.constant 16 : index
    %187 = vector.load %arg0[%c6_281, %c0_282, %c16_283] : memref<8x8x256xf32, #tpu.memory_space<vmem>>, vector<1x8x222xf32>
    %188 = vector.shape_cast %187 : vector<1x8x222xf32> to vector<8x222xf32>
    %c24_284 = arith.constant 24 : index
    %c1332_285 = arith.constant 1332 : index
    %189 = vector.load %arg11[%c24_284, %c1332_285] : memref<72x1776xf32, #tpu.memory_space<vmem>>, vector<8x222xf32>
    tpu.vector_store %arg11[%c24_284, %c1332_285], %188 {strides = array<i32>} : memref<72x1776xf32, #tpu.memory_space<vmem>>, vector<8x222xf32>,
    %c6_286 = arith.constant 6 : index
    %c0_287 = arith.constant 0 : index
    %c17_288 = arith.constant 17 : index
    %190 = vector.load %arg0[%c6_286, %c0_287, %c17_288] : memref<8x8x256xf32, #tpu.memory_space<vmem>>, vector<1x8x222xf32>
    %191 = vector.shape_cast %190 : vector<1x8x222xf32> to vector<8x222xf32>
    %c32_289 = arith.constant 32 : index
    %c1332_290 = arith.constant 1332 : index
    %192 = vector.load %arg11[%c32_289, %c1332_290] : memref<72x1776xf32, #tpu.memory_space<vmem>>, vector<8x222xf32>
    tpu.vector_store %arg11[%c32_289, %c1332_290], %191 {strides = array<i32>} : memref<72x1776xf32, #tpu.memory_space<vmem>>, vector<8x222xf32>,
    %c6_291 = arith.constant 6 : index
    %c0_292 = arith.constant 0 : index
    %c18_293 = arith.constant 18 : index
    %193 = vector.load %arg0[%c6_291, %c0_292, %c18_293] : memref<8x8x256xf32, #tpu.memory_space<vmem>>, vector<1x8x222xf32>
    %194 = vector.shape_cast %193 : vector<1x8x222xf32> to vector<8x222xf32>
    %c40_294 = arith.constant 40 : index
    %c1332_295 = arith.constant 1332 : index
    %195 = vector.load %arg11[%c40_294, %c1332_295] : memref<72x1776xf32, #tpu.memory_space<vmem>>, vector<8x222xf32>
    tpu.vector_store %arg11[%c40_294, %c1332_295], %194 {strides = array<i32>} : memref<72x1776xf32, #tpu.memory_space<vmem>>, vector<8x222xf32>,
    %c6_296 = arith.constant 6 : index
    %c0_297 = arith.constant 0 : index
    %c32_298 = arith.constant 32 : index
    %196 = vector.load %arg0[%c6_296, %c0_297, %c32_298] : memref<8x8x256xf32, #tpu.memory_space<vmem>>, vector<1x8x222xf32>
    %197 = vector.shape_cast %196 : vector<1x8x222xf32> to vector<8x222xf32>
    %c48_299 = arith.constant 48 : index
    %c1332_300 = arith.constant 1332 : index
    %198 = vector.load %arg11[%c48_299, %c1332_300] : memref<72x1776xf32, #tpu.memory_space<vmem>>, vector<8x222xf32>
    tpu.vector_store %arg11[%c48_299, %c1332_300], %197 {strides = array<i32>} : memref<72x1776xf32, #tpu.memory_space<vmem>>, vector<8x222xf32>,
    %c6_301 = arith.constant 6 : index
    %c0_302 = arith.constant 0 : index
    %c33_303 = arith.constant 33 : index
    %199 = vector.load %arg0[%c6_301, %c0_302, %c33_303] : memref<8x8x256xf32, #tpu.memory_space<vmem>>, vector<1x8x222xf32>
    %200 = vector.shape_cast %199 : vector<1x8x222xf32> to vector<8x222xf32>
    %c56_304 = arith.constant 56 : index
    %c1332_305 = arith.constant 1332 : index
    %201 = vector.load %arg11[%c56_304, %c1332_305] : memref<72x1776xf32, #tpu.memory_space<vmem>>, vector<8x222xf32>
    tpu.vector_store %arg11[%c56_304, %c1332_305], %200 {strides = array<i32>} : memref<72x1776xf32, #tpu.memory_space<vmem>>, vector<8x222xf32>,
    %c6_306 = arith.constant 6 : index
    %c0_307 = arith.constant 0 : index
    %c34_308 = arith.constant 34 : index
    %202 = vector.load %arg0[%c6_306, %c0_307, %c34_308] : memref<8x8x256xf32, #tpu.memory_space<vmem>>, vector<1x8x222xf32>
    %203 = vector.shape_cast %202 : vector<1x8x222xf32> to vector<8x222xf32>
    %c64_309 = arith.constant 64 : index
    %c1332_310 = arith.constant 1332 : index
    %204 = vector.load %arg11[%c64_309, %c1332_310] : memref<72x1776xf32, #tpu.memory_space<vmem>>, vector<8x222xf32>
    tpu.vector_store %arg11[%c64_309, %c1332_310], %203 {strides = array<i32>} : memref<72x1776xf32, #tpu.memory_space<vmem>>, vector<8x222xf32>,
    %c7 = arith.constant 7 : index
    %c0_311 = arith.constant 0 : index
    %c0_312 = arith.constant 0 : index
    %205 = vector.load %arg0[%c7, %c0_311, %c0_312] : memref<8x8x256xf32, #tpu.memory_space<vmem>>, vector<1x8x222xf32>
    %206 = vector.shape_cast %205 : vector<1x8x222xf32> to vector<8x222xf32>
    %c0_313 = arith.constant 0 : index
    %c1554 = arith.constant 1554 : index
    %207 = vector.load %arg11[%c0_313, %c1554] : memref<72x1776xf32, #tpu.memory_space<vmem>>, vector<8x222xf32>
    tpu.vector_store %arg11[%c0_313, %c1554], %206 {strides = array<i32>} : memref<72x1776xf32, #tpu.memory_space<vmem>>, vector<8x222xf32>,
    %c7_314 = arith.constant 7 : index
    %c0_315 = arith.constant 0 : index
    %c1_316 = arith.constant 1 : index
    %208 = vector.load %arg0[%c7_314, %c0_315, %c1_316] : memref<8x8x256xf32, #tpu.memory_space<vmem>>, vector<1x8x222xf32>
    %209 = vector.shape_cast %208 : vector<1x8x222xf32> to vector<8x222xf32>
    %c8_317 = arith.constant 8 : index
    %c1554_318 = arith.constant 1554 : index
    %210 = vector.load %arg11[%c8_317, %c1554_318] : memref<72x1776xf32, #tpu.memory_space<vmem>>, vector<8x222xf32>
    tpu.vector_store %arg11[%c8_317, %c1554_318], %209 {strides = array<i32>} : memref<72x1776xf32, #tpu.memory_space<vmem>>, vector<8x222xf32>,
    %c7_319 = arith.constant 7 : index
    %c0_320 = arith.constant 0 : index
    %c2_321 = arith.constant 2 : index
    %211 = vector.load %arg0[%c7_319, %c0_320, %c2_321] : memref<8x8x256xf32, #tpu.memory_space<vmem>>, vector<1x8x222xf32>
    %212 = vector.shape_cast %211 : vector<1x8x222xf32> to vector<8x222xf32>
    %c16_322 = arith.constant 16 : index
    %c1554_323 = arith.constant 1554 : index
    %213 = vector.load %arg11[%c16_322, %c1554_323] : memref<72x1776xf32, #tpu.memory_space<vmem>>, vector<8x222xf32>
    tpu.vector_store %arg11[%c16_322, %c1554_323], %212 {strides = array<i32>} : memref<72x1776xf32, #tpu.memory_space<vmem>>, vector<8x222xf32>,
    %c7_324 = arith.constant 7 : index
    %c0_325 = arith.constant 0 : index
    %c16_326 = arith.constant 16 : index
    %214 = vector.load %arg0[%c7_324, %c0_325, %c16_326] : memref<8x8x256xf32, #tpu.memory_space<vmem>>, vector<1x8x222xf32>
    %215 = vector.shape_cast %214 : vector<1x8x222xf32> to vector<8x222xf32>
    %c24_327 = arith.constant 24 : index
    %c1554_328 = arith.constant 1554 : index
    %216 = vector.load %arg11[%c24_327, %c1554_328] : memref<72x1776xf32, #tpu.memory_space<vmem>>, vector<8x222xf32>
    tpu.vector_store %arg11[%c24_327, %c1554_328], %215 {strides = array<i32>} : memref<72x1776xf32, #tpu.memory_space<vmem>>, vector<8x222xf32>,
    %c7_329 = arith.constant 7 : index
    %c0_330 = arith.constant 0 : index
    %c17_331 = arith.constant 17 : index
    %217 = vector.load %arg0[%c7_329, %c0_330, %c17_331] : memref<8x8x256xf32, #tpu.memory_space<vmem>>, vector<1x8x222xf32>
    %218 = vector.shape_cast %217 : vector<1x8x222xf32> to vector<8x222xf32>
    %c32_332 = arith.constant 32 : index
    %c1554_333 = arith.constant 1554 : index
    %219 = vector.load %arg11[%c32_332, %c1554_333] : memref<72x1776xf32, #tpu.memory_space<vmem>>, vector<8x222xf32>
    tpu.vector_store %arg11[%c32_332, %c1554_333], %218 {strides = array<i32>} : memref<72x1776xf32, #tpu.memory_space<vmem>>, vector<8x222xf32>,
    %c7_334 = arith.constant 7 : index
    %c0_335 = arith.constant 0 : index
    %c18_336 = arith.constant 18 : index
    %220 = vector.load %arg0[%c7_334, %c0_335, %c18_336] : memref<8x8x256xf32, #tpu.memory_space<vmem>>, vector<1x8x222xf32>
    %221 = vector.shape_cast %220 : vector<1x8x222xf32> to vector<8x222xf32>
    %c40_337 = arith.constant 40 : index
    %c1554_338 = arith.constant 1554 : index
    %222 = vector.load %arg11[%c40_337, %c1554_338] : memref<72x1776xf32, #tpu.memory_space<vmem>>, vector<8x222xf32>
    tpu.vector_store %arg11[%c40_337, %c1554_338], %221 {strides = array<i32>} : memref<72x1776xf32, #tpu.memory_space<vmem>>, vector<8x222xf32>,
    %c7_339 = arith.constant 7 : index
    %c0_340 = arith.constant 0 : index
    %c32_341 = arith.constant 32 : index
    %223 = vector.load %arg0[%c7_339, %c0_340, %c32_341] : memref<8x8x256xf32, #tpu.memory_space<vmem>>, vector<1x8x222xf32>
    %224 = vector.shape_cast %223 : vector<1x8x222xf32> to vector<8x222xf32>
    %c48_342 = arith.constant 48 : index
    %c1554_343 = arith.constant 1554 : index
    %225 = vector.load %arg11[%c48_342, %c1554_343] : memref<72x1776xf32, #tpu.memory_space<vmem>>, vector<8x222xf32>
    tpu.vector_store %arg11[%c48_342, %c1554_343], %224 {strides = array<i32>} : memref<72x1776xf32, #tpu.memory_space<vmem>>, vector<8x222xf32>,
    %c7_344 = arith.constant 7 : index
    %c0_345 = arith.constant 0 : index
    %c33_346 = arith.constant 33 : index
    %226 = vector.load %arg0[%c7_344, %c0_345, %c33_346] : memref<8x8x256xf32, #tpu.memory_space<vmem>>, vector<1x8x222xf32>
    %227 = vector.shape_cast %226 : vector<1x8x222xf32> to vector<8x222xf32>
    %c56_347 = arith.constant 56 : index
    %c1554_348 = arith.constant 1554 : index
    %228 = vector.load %arg11[%c56_347, %c1554_348] : memref<72x1776xf32, #tpu.memory_space<vmem>>, vector<8x222xf32>
    tpu.vector_store %arg11[%c56_347, %c1554_348], %227 {strides = array<i32>} : memref<72x1776xf32, #tpu.memory_space<vmem>>, vector<8x222xf32>,
    %c7_349 = arith.constant 7 : index
    %c0_350 = arith.constant 0 : index
    %c34_351 = arith.constant 34 : index
    %229 = vector.load %arg0[%c7_349, %c0_350, %c34_351] : memref<8x8x256xf32, #tpu.memory_space<vmem>>, vector<1x8x222xf32>
    %230 = vector.shape_cast %229 : vector<1x8x222xf32> to vector<8x222xf32>
    %c64_352 = arith.constant 64 : index
    %c1554_353 = arith.constant 1554 : index
    %231 = vector.load %arg11[%c64_352, %c1554_353] : memref<72x1776xf32, #tpu.memory_space<vmem>>, vector<8x222xf32>
    tpu.vector_store %arg11[%c64_352, %c1554_353], %230 {strides = array<i32>} : memref<72x1776xf32, #tpu.memory_space<vmem>>, vector<8x222xf32>,
    %c0_354 = arith.constant 0 : index
    %c0_355 = arith.constant 0 : index
    %232 = vector.load %arg1[%c0_354, %c0_355] : memref<8x72xf32, #tpu.memory_space<vmem>>, vector<8x72xf32>
    %c0_356 = arith.constant 0 : index
    %c0_357 = arith.constant 0 : index
    %233 = vector.load %arg11[%c0_356, %c0_357] : memref<72x1776xf32, #tpu.memory_space<vmem>>, vector<72x1776xf32>
    %cst = arith.constant dense<0.000000e+00> : vector<8x1776xf32>
    %234 = tpu.matmul %232, %233, %cst {dimension_numbers = #tpu.dot_dimension_numbers<[1], [0], [0], [1], [0, 0, 1, 1], [], []>} : vector<8x72xf32>, vector<72x1776xf32>, vector<8x1776xf32> -> vector<8x1776xf32>
    %c0_358 = arith.constant 0 : index
    %c0_359 = arith.constant 0 : index
    %235 = vector.load %arg2[%c0_358, %c0_359] : memref<8x1xf32, #tpu.memory_space<vmem>>, vector<8x1xf32>
    %236 = vector.broadcast %235 : vector<8x1xf32> to vector<8x1776xf32>
    %237 = arith.addf %234, %236 : vector<8x1776xf32>
    %cst_360 = arith.constant 0.000000e+00 : f32
    %238 = vector.broadcast %cst_360 : f32 to vector<8x1776xf32>
    %239 = arith.maximumf %237, %238 : vector<8x1776xf32>
    %c0_361 = arith.constant 0 : index
    %c0_362 = arith.constant 0 : index
    %240 = vector.load %arg12[%c0_361, %c0_362] : memref<8x1776xf32, #tpu.memory_space<vmem>>, vector<8x1776xf32>
    tpu.vector_store %arg12[%c0_361, %c0_362], %239 {strides = array<i32>} : memref<8x1776xf32, #tpu.memory_space<vmem>>, vector<8x1776xf32>,
    %c0_363 = arith.constant 0 : index
    %c0_364 = arith.constant 0 : index
    %241 = vector.load %arg12[%c0_363, %c0_364] : memref<8x1776xf32, #tpu.memory_space<vmem>>, vector<8x188xf32>
    %c0_365 = arith.constant 0 : index
    %c0_366 = arith.constant 0 : index
    %242 = vector.load %arg13[%c0_365, %c0_366] : memref<72x1504xf32, #tpu.memory_space<vmem>>, vector<8x188xf32>
    tpu.vector_store %arg13[%c0_365, %c0_366], %241 {strides = array<i32>} : memref<72x1504xf32, #tpu.memory_space<vmem>>, vector<8x188xf32>,
    %c0_367 = arith.constant 0 : index
    %c1_368 = arith.constant 1 : index
    %243 = vector.load %arg12[%c0_367, %c1_368] : memref<8x1776xf32, #tpu.memory_space<vmem>>, vector<8x188xf32>
    %c8_369 = arith.constant 8 : index
    %c0_370 = arith.constant 0 : index
    %244 = vector.load %arg13[%c8_369, %c0_370] : memref<72x1504xf32, #tpu.memory_space<vmem>>, vector<8x188xf32>
    tpu.vector_store %arg13[%c8_369, %c0_370], %243 {strides = array<i32>} : memref<72x1504xf32, #tpu.memory_space<vmem>>, vector<8x188xf32>,
    %c0_371 = arith.constant 0 : index
    %c2_372 = arith.constant 2 : index
    %245 = vector.load %arg12[%c0_371, %c2_372] : memref<8x1776xf32, #tpu.memory_space<vmem>>, vector<8x188xf32>
    %c16_373 = arith.constant 16 : index
    %c0_374 = arith.constant 0 : index
    %246 = vector.load %arg13[%c16_373, %c0_374] : memref<72x1504xf32, #tpu.memory_space<vmem>>, vector<8x188xf32>
    tpu.vector_store %arg13[%c16_373, %c0_374], %245 {strides = array<i32>} : memref<72x1504xf32, #tpu.memory_space<vmem>>, vector<8x188xf32>,
    %c0_375 = arith.constant 0 : index
    %c16_376 = arith.constant 16 : index
    %247 = vector.load %arg12[%c0_375, %c16_376] : memref<8x1776xf32, #tpu.memory_space<vmem>>, vector<8x188xf32>
    %c24_377 = arith.constant 24 : index
    %c0_378 = arith.constant 0 : index
    %248 = vector.load %arg13[%c24_377, %c0_378] : memref<72x1504xf32, #tpu.memory_space<vmem>>, vector<8x188xf32>
    tpu.vector_store %arg13[%c24_377, %c0_378], %247 {strides = array<i32>} : memref<72x1504xf32, #tpu.memory_space<vmem>>, vector<8x188xf32>,
    %c0_379 = arith.constant 0 : index
    %c17_380 = arith.constant 17 : index
    %249 = vector.load %arg12[%c0_379, %c17_380] : memref<8x1776xf32, #tpu.memory_space<vmem>>, vector<8x188xf32>
    %c32_381 = arith.constant 32 : index
    %c0_382 = arith.constant 0 : index
    %250 = vector.load %arg13[%c32_381, %c0_382] : memref<72x1504xf32, #tpu.memory_space<vmem>>, vector<8x188xf32>
    tpu.vector_store %arg13[%c32_381, %c0_382], %249 {strides = array<i32>} : memref<72x1504xf32, #tpu.memory_space<vmem>>, vector<8x188xf32>,
    %c0_383 = arith.constant 0 : index
    %c18_384 = arith.constant 18 : index
    %251 = vector.load %arg12[%c0_383, %c18_384] : memref<8x1776xf32, #tpu.memory_space<vmem>>, vector<8x188xf32>
    %c40_385 = arith.constant 40 : index
    %c0_386 = arith.constant 0 : index
    %252 = vector.load %arg13[%c40_385, %c0_386] : memref<72x1504xf32, #tpu.memory_space<vmem>>, vector<8x188xf32>
    tpu.vector_store %arg13[%c40_385, %c0_386], %251 {strides = array<i32>} : memref<72x1504xf32, #tpu.memory_space<vmem>>, vector<8x188xf32>,
    %c0_387 = arith.constant 0 : index
    %c32_388 = arith.constant 32 : index
    %253 = vector.load %arg12[%c0_387, %c32_388] : memref<8x1776xf32, #tpu.memory_space<vmem>>, vector<8x188xf32>
    %c48_389 = arith.constant 48 : index
    %c0_390 = arith.constant 0 : index
    %254 = vector.load %arg13[%c48_389, %c0_390] : memref<72x1504xf32, #tpu.memory_space<vmem>>, vector<8x188xf32>
    tpu.vector_store %arg13[%c48_389, %c0_390], %253 {strides = array<i32>} : memref<72x1504xf32, #tpu.memory_space<vmem>>, vector<8x188xf32>,
    %c0_391 = arith.constant 0 : index
    %c33_392 = arith.constant 33 : index
    %255 = vector.load %arg12[%c0_391, %c33_392] : memref<8x1776xf32, #tpu.memory_space<vmem>>, vector<8x188xf32>
    %c56_393 = arith.constant 56 : index
    %c0_394 = arith.constant 0 : index
    %256 = vector.load %arg13[%c56_393, %c0_394] : memref<72x1504xf32, #tpu.memory_space<vmem>>, vector<8x188xf32>
    tpu.vector_store %arg13[%c56_393, %c0_394], %255 {strides = array<i32>} : memref<72x1504xf32, #tpu.memory_space<vmem>>, vector<8x188xf32>,
    %c0_395 = arith.constant 0 : index
    %c34_396 = arith.constant 34 : index
    %257 = vector.load %arg12[%c0_395, %c34_396] : memref<8x1776xf32, #tpu.memory_space<vmem>>, vector<8x188xf32>
    %c64_397 = arith.constant 64 : index
    %c0_398 = arith.constant 0 : index
    %258 = vector.load %arg13[%c64_397, %c0_398] : memref<72x1504xf32, #tpu.memory_space<vmem>>, vector<8x188xf32>
    tpu.vector_store %arg13[%c64_397, %c0_398], %257 {strides = array<i32>} : memref<72x1504xf32, #tpu.memory_space<vmem>>, vector<8x188xf32>,
    %c0_399 = arith.constant 0 : index
    %c222_400 = arith.constant 222 : index
    %259 = vector.load %arg12[%c0_399, %c222_400] : memref<8x1776xf32, #tpu.memory_space<vmem>>, vector<8x188xf32>
    %c0_401 = arith.constant 0 : index
    %c188 = arith.constant 188 : index
    %260 = vector.load %arg13[%c0_401, %c188] : memref<72x1504xf32, #tpu.memory_space<vmem>>, vector<8x188xf32>
    tpu.vector_store %arg13[%c0_401, %c188], %259 {strides = array<i32>} : memref<72x1504xf32, #tpu.memory_space<vmem>>, vector<8x188xf32>,
    %c0_402 = arith.constant 0 : index
    %c223 = arith.constant 223 : index
    %261 = vector.load %arg12[%c0_402, %c223] : memref<8x1776xf32, #tpu.memory_space<vmem>>, vector<8x188xf32>
    %c8_403 = arith.constant 8 : index
    %c188_404 = arith.constant 188 : index
    %262 = vector.load %arg13[%c8_403, %c188_404] : memref<72x1504xf32, #tpu.memory_space<vmem>>, vector<8x188xf32>
    tpu.vector_store %arg13[%c8_403, %c188_404], %261 {strides = array<i32>} : memref<72x1504xf32, #tpu.memory_space<vmem>>, vector<8x188xf32>,
    %c0_405 = arith.constant 0 : index
    %c224 = arith.constant 224 : index
    %263 = vector.load %arg12[%c0_405, %c224] : memref<8x1776xf32, #tpu.memory_space<vmem>>, vector<8x188xf32>
    %c16_406 = arith.constant 16 : index
    %c188_407 = arith.constant 188 : index
    %264 = vector.load %arg13[%c16_406, %c188_407] : memref<72x1504xf32, #tpu.memory_space<vmem>>, vector<8x188xf32>
    tpu.vector_store %arg13[%c16_406, %c188_407], %263 {strides = array<i32>} : memref<72x1504xf32, #tpu.memory_space<vmem>>, vector<8x188xf32>,
    %c0_408 = arith.constant 0 : index
    %c238 = arith.constant 238 : index
    %265 = vector.load %arg12[%c0_408, %c238] : memref<8x1776xf32, #tpu.memory_space<vmem>>, vector<8x188xf32>
    %c24_409 = arith.constant 24 : index
    %c188_410 = arith.constant 188 : index
    %266 = vector.load %arg13[%c24_409, %c188_410] : memref<72x1504xf32, #tpu.memory_space<vmem>>, vector<8x188xf32>
    tpu.vector_store %arg13[%c24_409, %c188_410], %265 {strides = array<i32>} : memref<72x1504xf32, #tpu.memory_space<vmem>>, vector<8x188xf32>,
    %c0_411 = arith.constant 0 : index
    %c239 = arith.constant 239 : index
    %267 = vector.load %arg12[%c0_411, %c239] : memref<8x1776xf32, #tpu.memory_space<vmem>>, vector<8x188xf32>
    %c32_412 = arith.constant 32 : index
    %c188_413 = arith.constant 188 : index
    %268 = vector.load %arg13[%c32_412, %c188_413] : memref<72x1504xf32, #tpu.memory_space<vmem>>, vector<8x188xf32>
    tpu.vector_store %arg13[%c32_412, %c188_413], %267 {strides = array<i32>} : memref<72x1504xf32, #tpu.memory_space<vmem>>, vector<8x188xf32>,
    %c0_414 = arith.constant 0 : index
    %c240 = arith.constant 240 : index
    %269 = vector.load %arg12[%c0_414, %c240] : memref<8x1776xf32, #tpu.memory_space<vmem>>, vector<8x188xf32>
    %c40_415 = arith.constant 40 : index
    %c188_416 = arith.constant 188 : index
    %270 = vector.load %arg13[%c40_415, %c188_416] : memref<72x1504xf32, #tpu.memory_space<vmem>>, vector<8x188xf32>
    tpu.vector_store %arg13[%c40_415, %c188_416], %269 {strides = array<i32>} : memref<72x1504xf32, #tpu.memory_space<vmem>>, vector<8x188xf32>,
    %c0_417 = arith.constant 0 : index
    %c254 = arith.constant 254 : index
    %271 = vector.load %arg12[%c0_417, %c254] : memref<8x1776xf32, #tpu.memory_space<vmem>>, vector<8x188xf32>
    %c48_418 = arith.constant 48 : index
    %c188_419 = arith.constant 188 : index
    %272 = vector.load %arg13[%c48_418, %c188_419] : memref<72x1504xf32, #tpu.memory_space<vmem>>, vector<8x188xf32>
    tpu.vector_store %arg13[%c48_418, %c188_419], %271 {strides = array<i32>} : memref<72x1504xf32, #tpu.memory_space<vmem>>, vector<8x188xf32>,
    %c0_420 = arith.constant 0 : index
    %c255 = arith.constant 255 : index
    %273 = vector.load %arg12[%c0_420, %c255] : memref<8x1776xf32, #tpu.memory_space<vmem>>, vector<8x188xf32>
    %c56_421 = arith.constant 56 : index
    %c188_422 = arith.constant 188 : index
    %274 = vector.load %arg13[%c56_421, %c188_422] : memref<72x1504xf32, #tpu.memory_space<vmem>>, vector<8x188xf32>
    tpu.vector_store %arg13[%c56_421, %c188_422], %273 {strides = array<i32>} : memref<72x1504xf32, #tpu.memory_space<vmem>>, vector<8x188xf32>,
    %c0_423 = arith.constant 0 : index
    %c256 = arith.constant 256 : index
    %275 = vector.load %arg12[%c0_423, %c256] : memref<8x1776xf32, #tpu.memory_space<vmem>>, vector<8x188xf32>
    %c64_424 = arith.constant 64 : index
    %c188_425 = arith.constant 188 : index
    %276 = vector.load %arg13[%c64_424, %c188_425] : memref<72x1504xf32, #tpu.memory_space<vmem>>, vector<8x188xf32>
    tpu.vector_store %arg13[%c64_424, %c188_425], %275 {strides = array<i32>} : memref<72x1504xf32, #tpu.memory_space<vmem>>, vector<8x188xf32>,
    %c0_426 = arith.constant 0 : index
    %c444_427 = arith.constant 444 : index
    %277 = vector.load %arg12[%c0_426, %c444_427] : memref<8x1776xf32, #tpu.memory_space<vmem>>, vector<8x188xf32>
    %c0_428 = arith.constant 0 : index
    %c376 = arith.constant 376 : index
    %278 = vector.load %arg13[%c0_428, %c376] : memref<72x1504xf32, #tpu.memory_space<vmem>>, vector<8x188xf32>
    tpu.vector_store %arg13[%c0_428, %c376], %277 {strides = array<i32>} : memref<72x1504xf32, #tpu.memory_space<vmem>>, vector<8x188xf32>,
    %c0_429 = arith.constant 0 : index
    %c445 = arith.constant 445 : index
    %279 = vector.load %arg12[%c0_429, %c445] : memref<8x1776xf32, #tpu.memory_space<vmem>>, vector<8x188xf32>
    %c8_430 = arith.constant 8 : index
    %c376_431 = arith.constant 376 : index
    %280 = vector.load %arg13[%c8_430, %c376_431] : memref<72x1504xf32, #tpu.memory_space<vmem>>, vector<8x188xf32>
    tpu.vector_store %arg13[%c8_430, %c376_431], %279 {strides = array<i32>} : memref<72x1504xf32, #tpu.memory_space<vmem>>, vector<8x188xf32>,
    %c0_432 = arith.constant 0 : index
    %c446 = arith.constant 446 : index
    %281 = vector.load %arg12[%c0_432, %c446] : memref<8x1776xf32, #tpu.memory_space<vmem>>, vector<8x188xf32>
    %c16_433 = arith.constant 16 : index
    %c376_434 = arith.constant 376 : index
    %282 = vector.load %arg13[%c16_433, %c376_434] : memref<72x1504xf32, #tpu.memory_space<vmem>>, vector<8x188xf32>
    tpu.vector_store %arg13[%c16_433, %c376_434], %281 {strides = array<i32>} : memref<72x1504xf32, #tpu.memory_space<vmem>>, vector<8x188xf32>,
    %c0_435 = arith.constant 0 : index
    %c460 = arith.constant 460 : index
    %283 = vector.load %arg12[%c0_435, %c460] : memref<8x1776xf32, #tpu.memory_space<vmem>>, vector<8x188xf32>
    %c24_436 = arith.constant 24 : index
    %c376_437 = arith.constant 376 : index
    %284 = vector.load %arg13[%c24_436, %c376_437] : memref<72x1504xf32, #tpu.memory_space<vmem>>, vector<8x188xf32>
    tpu.vector_store %arg13[%c24_436, %c376_437], %283 {strides = array<i32>} : memref<72x1504xf32, #tpu.memory_space<vmem>>, vector<8x188xf32>,
    %c0_438 = arith.constant 0 : index
    %c461 = arith.constant 461 : index
    %285 = vector.load %arg12[%c0_438, %c461] : memref<8x1776xf32, #tpu.memory_space<vmem>>, vector<8x188xf32>
    %c32_439 = arith.constant 32 : index
    %c376_440 = arith.constant 376 : index
    %286 = vector.load %arg13[%c32_439, %c376_440] : memref<72x1504xf32, #tpu.memory_space<vmem>>, vector<8x188xf32>
    tpu.vector_store %arg13[%c32_439, %c376_440], %285 {strides = array<i32>} : memref<72x1504xf32, #tpu.memory_space<vmem>>, vector<8x188xf32>,
    %c0_441 = arith.constant 0 : index
    %c462 = arith.constant 462 : index
    %287 = vector.load %arg12[%c0_441, %c462] : memref<8x1776xf32, #tpu.memory_space<vmem>>, vector<8x188xf32>
    %c40_442 = arith.constant 40 : index
    %c376_443 = arith.constant 376 : index
    %288 = vector.load %arg13[%c40_442, %c376_443] : memref<72x1504xf32, #tpu.memory_space<vmem>>, vector<8x188xf32>
    tpu.vector_store %arg13[%c40_442, %c376_443], %287 {strides = array<i32>} : memref<72x1504xf32, #tpu.memory_space<vmem>>, vector<8x188xf32>,
    %c0_444 = arith.constant 0 : index
    %c476 = arith.constant 476 : index
    %289 = vector.load %arg12[%c0_444, %c476] : memref<8x1776xf32, #tpu.memory_space<vmem>>, vector<8x188xf32>
    %c48_445 = arith.constant 48 : index
    %c376_446 = arith.constant 376 : index
    %290 = vector.load %arg13[%c48_445, %c376_446] : memref<72x1504xf32, #tpu.memory_space<vmem>>, vector<8x188xf32>
    tpu.vector_store %arg13[%c48_445, %c376_446], %289 {strides = array<i32>} : memref<72x1504xf32, #tpu.memory_space<vmem>>, vector<8x188xf32>,
    %c0_447 = arith.constant 0 : index
    %c477 = arith.constant 477 : index
    %291 = vector.load %arg12[%c0_447, %c477] : memref<8x1776xf32, #tpu.memory_space<vmem>>, vector<8x188xf32>
    %c56_448 = arith.constant 56 : index
    %c376_449 = arith.constant 376 : index
    %292 = vector.load %arg13[%c56_448, %c376_449] : memref<72x1504xf32, #tpu.memory_space<vmem>>, vector<8x188xf32>
    tpu.vector_store %arg13[%c56_448, %c376_449], %291 {strides = array<i32>} : memref<72x1504xf32, #tpu.memory_space<vmem>>, vector<8x188xf32>,
    %c0_450 = arith.constant 0 : index
    %c478 = arith.constant 478 : index
    %293 = vector.load %arg12[%c0_450, %c478] : memref<8x1776xf32, #tpu.memory_space<vmem>>, vector<8x188xf32>
    %c64_451 = arith.constant 64 : index
    %c376_452 = arith.constant 376 : index
    %294 = vector.load %arg13[%c64_451, %c376_452] : memref<72x1504xf32, #tpu.memory_space<vmem>>, vector<8x188xf32>
    tpu.vector_store %arg13[%c64_451, %c376_452], %293 {strides = array<i32>} : memref<72x1504xf32, #tpu.memory_space<vmem>>, vector<8x188xf32>,
    %c0_453 = arith.constant 0 : index
    %c666_454 = arith.constant 666 : index
    %295 = vector.load %arg12[%c0_453, %c666_454] : memref<8x1776xf32, #tpu.memory_space<vmem>>, vector<8x188xf32>
    %c0_455 = arith.constant 0 : index
    %c564 = arith.constant 564 : index
    %296 = vector.load %arg13[%c0_455, %c564] : memref<72x1504xf32, #tpu.memory_space<vmem>>, vector<8x188xf32>
    tpu.vector_store %arg13[%c0_455, %c564], %295 {strides = array<i32>} : memref<72x1504xf32, #tpu.memory_space<vmem>>, vector<8x188xf32>,
    %c0_456 = arith.constant 0 : index
    %c667 = arith.constant 667 : index
    %297 = vector.load %arg12[%c0_456, %c667] : memref<8x1776xf32, #tpu.memory_space<vmem>>, vector<8x188xf32>
    %c8_457 = arith.constant 8 : index
    %c564_458 = arith.constant 564 : index
    %298 = vector.load %arg13[%c8_457, %c564_458] : memref<72x1504xf32, #tpu.memory_space<vmem>>, vector<8x188xf32>
    tpu.vector_store %arg13[%c8_457, %c564_458], %297 {strides = array<i32>} : memref<72x1504xf32, #tpu.memory_space<vmem>>, vector<8x188xf32>,
    %c0_459 = arith.constant 0 : index
    %c668 = arith.constant 668 : index
    %299 = vector.load %arg12[%c0_459, %c668] : memref<8x1776xf32, #tpu.memory_space<vmem>>, vector<8x188xf32>
    %c16_460 = arith.constant 16 : index
    %c564_461 = arith.constant 564 : index
    %300 = vector.load %arg13[%c16_460, %c564_461] : memref<72x1504xf32, #tpu.memory_space<vmem>>, vector<8x188xf32>
    tpu.vector_store %arg13[%c16_460, %c564_461], %299 {strides = array<i32>} : memref<72x1504xf32, #tpu.memory_space<vmem>>, vector<8x188xf32>,
    %c0_462 = arith.constant 0 : index
    %c682 = arith.constant 682 : index
    %301 = vector.load %arg12[%c0_462, %c682] : memref<8x1776xf32, #tpu.memory_space<vmem>>, vector<8x188xf32>
    %c24_463 = arith.constant 24 : index
    %c564_464 = arith.constant 564 : index
    %302 = vector.load %arg13[%c24_463, %c564_464] : memref<72x1504xf32, #tpu.memory_space<vmem>>, vector<8x188xf32>
    tpu.vector_store %arg13[%c24_463, %c564_464], %301 {strides = array<i32>} : memref<72x1504xf32, #tpu.memory_space<vmem>>, vector<8x188xf32>,
    %c0_465 = arith.constant 0 : index
    %c683 = arith.constant 683 : index
    %303 = vector.load %arg12[%c0_465, %c683] : memref<8x1776xf32, #tpu.memory_space<vmem>>, vector<8x188xf32>
    %c32_466 = arith.constant 32 : index
    %c564_467 = arith.constant 564 : index
    %304 = vector.load %arg13[%c32_466, %c564_467] : memref<72x1504xf32, #tpu.memory_space<vmem>>, vector<8x188xf32>
    tpu.vector_store %arg13[%c32_466, %c564_467], %303 {strides = array<i32>} : memref<72x1504xf32, #tpu.memory_space<vmem>>, vector<8x188xf32>,
    %c0_468 = arith.constant 0 : index
    %c684 = arith.constant 684 : index
    %305 = vector.load %arg12[%c0_468, %c684] : memref<8x1776xf32, #tpu.memory_space<vmem>>, vector<8x188xf32>
    %c40_469 = arith.constant 40 : index
    %c564_470 = arith.constant 564 : index
    %306 = vector.load %arg13[%c40_469, %c564_470] : memref<72x1504xf32, #tpu.memory_space<vmem>>, vector<8x188xf32>
    tpu.vector_store %arg13[%c40_469, %c564_470], %305 {strides = array<i32>} : memref<72x1504xf32, #tpu.memory_space<vmem>>, vector<8x188xf32>,
    %c0_471 = arith.constant 0 : index
    %c698 = arith.constant 698 : index
    %307 = vector.load %arg12[%c0_471, %c698] : memref<8x1776xf32, #tpu.memory_space<vmem>>, vector<8x188xf32>
    %c48_472 = arith.constant 48 : index
    %c564_473 = arith.constant 564 : index
    %308 = vector.load %arg13[%c48_472, %c564_473] : memref<72x1504xf32, #tpu.memory_space<vmem>>, vector<8x188xf32>
    tpu.vector_store %arg13[%c48_472, %c564_473], %307 {strides = array<i32>} : memref<72x1504xf32, #tpu.memory_space<vmem>>, vector<8x188xf32>,
    %c0_474 = arith.constant 0 : index
    %c699 = arith.constant 699 : index
    %309 = vector.load %arg12[%c0_474, %c699] : memref<8x1776xf32, #tpu.memory_space<vmem>>, vector<8x188xf32>
    %c56_475 = arith.constant 56 : index
    %c564_476 = arith.constant 564 : index
    %310 = vector.load %arg13[%c56_475, %c564_476] : memref<72x1504xf32, #tpu.memory_space<vmem>>, vector<8x188xf32>
    tpu.vector_store %arg13[%c56_475, %c564_476], %309 {strides = array<i32>} : memref<72x1504xf32, #tpu.memory_space<vmem>>, vector<8x188xf32>,
    %c0_477 = arith.constant 0 : index
    %c700 = arith.constant 700 : index
    %311 = vector.load %arg12[%c0_477, %c700] : memref<8x1776xf32, #tpu.memory_space<vmem>>, vector<8x188xf32>
    %c64_478 = arith.constant 64 : index
    %c564_479 = arith.constant 564 : index
    %312 = vector.load %arg13[%c64_478, %c564_479] : memref<72x1504xf32, #tpu.memory_space<vmem>>, vector<8x188xf32>
    tpu.vector_store %arg13[%c64_478, %c564_479], %311 {strides = array<i32>} : memref<72x1504xf32, #tpu.memory_space<vmem>>, vector<8x188xf32>,
    %c0_480 = arith.constant 0 : index
    %c888_481 = arith.constant 888 : index
    %313 = vector.load %arg12[%c0_480, %c888_481] : memref<8x1776xf32, #tpu.memory_space<vmem>>, vector<8x188xf32>
    %c0_482 = arith.constant 0 : index
    %c752 = arith.constant 752 : index
    %314 = vector.load %arg13[%c0_482, %c752] : memref<72x1504xf32, #tpu.memory_space<vmem>>, vector<8x188xf32>
    tpu.vector_store %arg13[%c0_482, %c752], %313 {strides = array<i32>} : memref<72x1504xf32, #tpu.memory_space<vmem>>, vector<8x188xf32>,
    %c0_483 = arith.constant 0 : index
    %c889 = arith.constant 889 : index
    %315 = vector.load %arg12[%c0_483, %c889] : memref<8x1776xf32, #tpu.memory_space<vmem>>, vector<8x188xf32>
    %c8_484 = arith.constant 8 : index
    %c752_485 = arith.constant 752 : index
    %316 = vector.load %arg13[%c8_484, %c752_485] : memref<72x1504xf32, #tpu.memory_space<vmem>>, vector<8x188xf32>
    tpu.vector_store %arg13[%c8_484, %c752_485], %315 {strides = array<i32>} : memref<72x1504xf32, #tpu.memory_space<vmem>>, vector<8x188xf32>,
    %c0_486 = arith.constant 0 : index
    %c890 = arith.constant 890 : index
    %317 = vector.load %arg12[%c0_486, %c890] : memref<8x1776xf32, #tpu.memory_space<vmem>>, vector<8x188xf32>
    %c16_487 = arith.constant 16 : index
    %c752_488 = arith.constant 752 : index
    %318 = vector.load %arg13[%c16_487, %c752_488] : memref<72x1504xf32, #tpu.memory_space<vmem>>, vector<8x188xf32>
    tpu.vector_store %arg13[%c16_487, %c752_488], %317 {strides = array<i32>} : memref<72x1504xf32, #tpu.memory_space<vmem>>, vector<8x188xf32>,
    %c0_489 = arith.constant 0 : index
    %c904 = arith.constant 904 : index
    %319 = vector.load %arg12[%c0_489, %c904] : memref<8x1776xf32, #tpu.memory_space<vmem>>, vector<8x188xf32>
    %c24_490 = arith.constant 24 : index
    %c752_491 = arith.constant 752 : index
    %320 = vector.load %arg13[%c24_490, %c752_491] : memref<72x1504xf32, #tpu.memory_space<vmem>>, vector<8x188xf32>
    tpu.vector_store %arg13[%c24_490, %c752_491], %319 {strides = array<i32>} : memref<72x1504xf32, #tpu.memory_space<vmem>>, vector<8x188xf32>,
    %c0_492 = arith.constant 0 : index
    %c905 = arith.constant 905 : index
    %321 = vector.load %arg12[%c0_492, %c905] : memref<8x1776xf32, #tpu.memory_space<vmem>>, vector<8x188xf32>
    %c32_493 = arith.constant 32 : index
    %c752_494 = arith.constant 752 : index
    %322 = vector.load %arg13[%c32_493, %c752_494] : memref<72x1504xf32, #tpu.memory_space<vmem>>, vector<8x188xf32>
    tpu.vector_store %arg13[%c32_493, %c752_494], %321 {strides = array<i32>} : memref<72x1504xf32, #tpu.memory_space<vmem>>, vector<8x188xf32>,
    %c0_495 = arith.constant 0 : index
    %c906 = arith.constant 906 : index
    %323 = vector.load %arg12[%c0_495, %c906] : memref<8x1776xf32, #tpu.memory_space<vmem>>, vector<8x188xf32>
    %c40_496 = arith.constant 40 : index
    %c752_497 = arith.constant 752 : index
    %324 = vector.load %arg13[%c40_496, %c752_497] : memref<72x1504xf32, #tpu.memory_space<vmem>>, vector<8x188xf32>
    tpu.vector_store %arg13[%c40_496, %c752_497], %323 {strides = array<i32>} : memref<72x1504xf32, #tpu.memory_space<vmem>>, vector<8x188xf32>,
    %c0_498 = arith.constant 0 : index
    %c920 = arith.constant 920 : index
    %325 = vector.load %arg12[%c0_498, %c920] : memref<8x1776xf32, #tpu.memory_space<vmem>>, vector<8x188xf32>
    %c48_499 = arith.constant 48 : index
    %c752_500 = arith.constant 752 : index
    %326 = vector.load %arg13[%c48_499, %c752_500] : memref<72x1504xf32, #tpu.memory_space<vmem>>, vector<8x188xf32>
    tpu.vector_store %arg13[%c48_499, %c752_500], %325 {strides = array<i32>} : memref<72x1504xf32, #tpu.memory_space<vmem>>, vector<8x188xf32>,
    %c0_501 = arith.constant 0 : index
    %c921 = arith.constant 921 : index
    %327 = vector.load %arg12[%c0_501, %c921] : memref<8x1776xf32, #tpu.memory_space<vmem>>, vector<8x188xf32>
    %c56_502 = arith.constant 56 : index
    %c752_503 = arith.constant 752 : index
    %328 = vector.load %arg13[%c56_502, %c752_503] : memref<72x1504xf32, #tpu.memory_space<vmem>>, vector<8x188xf32>
    tpu.vector_store %arg13[%c56_502, %c752_503], %327 {strides = array<i32>} : memref<72x1504xf32, #tpu.memory_space<vmem>>, vector<8x188xf32>,
    %c0_504 = arith.constant 0 : index
    %c922 = arith.constant 922 : index
    %329 = vector.load %arg12[%c0_504, %c922] : memref<8x1776xf32, #tpu.memory_space<vmem>>, vector<8x188xf32>
    %c64_505 = arith.constant 64 : index
    %c752_506 = arith.constant 752 : index
    %330 = vector.load %arg13[%c64_505, %c752_506] : memref<72x1504xf32, #tpu.memory_space<vmem>>, vector<8x188xf32>
    tpu.vector_store %arg13[%c64_505, %c752_506], %329 {strides = array<i32>} : memref<72x1504xf32, #tpu.memory_space<vmem>>, vector<8x188xf32>,
    %c0_507 = arith.constant 0 : index
    %c1110_508 = arith.constant 1110 : index
    %331 = vector.load %arg12[%c0_507, %c1110_508] : memref<8x1776xf32, #tpu.memory_space<vmem>>, vector<8x188xf32>
    %c0_509 = arith.constant 0 : index
    %c940 = arith.constant 940 : index
    %332 = vector.load %arg13[%c0_509, %c940] : memref<72x1504xf32, #tpu.memory_space<vmem>>, vector<8x188xf32>
    tpu.vector_store %arg13[%c0_509, %c940], %331 {strides = array<i32>} : memref<72x1504xf32, #tpu.memory_space<vmem>>, vector<8x188xf32>,
    %c0_510 = arith.constant 0 : index
    %c1111 = arith.constant 1111 : index
    %333 = vector.load %arg12[%c0_510, %c1111] : memref<8x1776xf32, #tpu.memory_space<vmem>>, vector<8x188xf32>
    %c8_511 = arith.constant 8 : index
    %c940_512 = arith.constant 940 : index
    %334 = vector.load %arg13[%c8_511, %c940_512] : memref<72x1504xf32, #tpu.memory_space<vmem>>, vector<8x188xf32>
    tpu.vector_store %arg13[%c8_511, %c940_512], %333 {strides = array<i32>} : memref<72x1504xf32, #tpu.memory_space<vmem>>, vector<8x188xf32>,
    %c0_513 = arith.constant 0 : index
    %c1112 = arith.constant 1112 : index
    %335 = vector.load %arg12[%c0_513, %c1112] : memref<8x1776xf32, #tpu.memory_space<vmem>>, vector<8x188xf32>
    %c16_514 = arith.constant 16 : index
    %c940_515 = arith.constant 940 : index
    %336 = vector.load %arg13[%c16_514, %c940_515] : memref<72x1504xf32, #tpu.memory_space<vmem>>, vector<8x188xf32>
    tpu.vector_store %arg13[%c16_514, %c940_515], %335 {strides = array<i32>} : memref<72x1504xf32, #tpu.memory_space<vmem>>, vector<8x188xf32>,
    %c0_516 = arith.constant 0 : index
    %c1126 = arith.constant 1126 : index
    %337 = vector.load %arg12[%c0_516, %c1126] : memref<8x1776xf32, #tpu.memory_space<vmem>>, vector<8x188xf32>
    %c24_517 = arith.constant 24 : index
    %c940_518 = arith.constant 940 : index
    %338 = vector.load %arg13[%c24_517, %c940_518] : memref<72x1504xf32, #tpu.memory_space<vmem>>, vector<8x188xf32>
    tpu.vector_store %arg13[%c24_517, %c940_518], %337 {strides = array<i32>} : memref<72x1504xf32, #tpu.memory_space<vmem>>, vector<8x188xf32>,
    %c0_519 = arith.constant 0 : index
    %c1127 = arith.constant 1127 : index
    %339 = vector.load %arg12[%c0_519, %c1127] : memref<8x1776xf32, #tpu.memory_space<vmem>>, vector<8x188xf32>
    %c32_520 = arith.constant 32 : index
    %c940_521 = arith.constant 940 : index
    %340 = vector.load %arg13[%c32_520, %c940_521] : memref<72x1504xf32, #tpu.memory_space<vmem>>, vector<8x188xf32>
    tpu.vector_store %arg13[%c32_520, %c940_521], %339 {strides = array<i32>} : memref<72x1504xf32, #tpu.memory_space<vmem>>, vector<8x188xf32>,
    %c0_522 = arith.constant 0 : index
    %c1128 = arith.constant 1128 : index
    %341 = vector.load %arg12[%c0_522, %c1128] : memref<8x1776xf32, #tpu.memory_space<vmem>>, vector<8x188xf32>
    %c40_523 = arith.constant 40 : index
    %c940_524 = arith.constant 940 : index
    %342 = vector.load %arg13[%c40_523, %c940_524] : memref<72x1504xf32, #tpu.memory_space<vmem>>, vector<8x188xf32>
    tpu.vector_store %arg13[%c40_523, %c940_524], %341 {strides = array<i32>} : memref<72x1504xf32, #tpu.memory_space<vmem>>, vector<8x188xf32>,
    %c0_525 = arith.constant 0 : index
    %c1142 = arith.constant 1142 : index
    %343 = vector.load %arg12[%c0_525, %c1142] : memref<8x1776xf32, #tpu.memory_space<vmem>>, vector<8x188xf32>
    %c48_526 = arith.constant 48 : index
    %c940_527 = arith.constant 940 : index
    %344 = vector.load %arg13[%c48_526, %c940_527] : memref<72x1504xf32, #tpu.memory_space<vmem>>, vector<8x188xf32>
    tpu.vector_store %arg13[%c48_526, %c940_527], %343 {strides = array<i32>} : memref<72x1504xf32, #tpu.memory_space<vmem>>, vector<8x188xf32>,
    %c0_528 = arith.constant 0 : index
    %c1143 = arith.constant 1143 : index
    %345 = vector.load %arg12[%c0_528, %c1143] : memref<8x1776xf32, #tpu.memory_space<vmem>>, vector<8x188xf32>
    %c56_529 = arith.constant 56 : index
    %c940_530 = arith.constant 940 : index
    %346 = vector.load %arg13[%c56_529, %c940_530] : memref<72x1504xf32, #tpu.memory_space<vmem>>, vector<8x188xf32>
    tpu.vector_store %arg13[%c56_529, %c940_530], %345 {strides = array<i32>} : memref<72x1504xf32, #tpu.memory_space<vmem>>, vector<8x188xf32>,
    %c0_531 = arith.constant 0 : index
    %c1144 = arith.constant 1144 : index
    %347 = vector.load %arg12[%c0_531, %c1144] : memref<8x1776xf32, #tpu.memory_space<vmem>>, vector<8x188xf32>
    %c64_532 = arith.constant 64 : index
    %c940_533 = arith.constant 940 : index
    %348 = vector.load %arg13[%c64_532, %c940_533] : memref<72x1504xf32, #tpu.memory_space<vmem>>, vector<8x188xf32>
    tpu.vector_store %arg13[%c64_532, %c940_533], %347 {strides = array<i32>} : memref<72x1504xf32, #tpu.memory_space<vmem>>, vector<8x188xf32>,
    %c0_534 = arith.constant 0 : index
    %c1332_535 = arith.constant 1332 : index
    %349 = vector.load %arg12[%c0_534, %c1332_535] : memref<8x1776xf32, #tpu.memory_space<vmem>>, vector<8x188xf32>
    %c0_536 = arith.constant 0 : index
    %c1128_537 = arith.constant 1128 : index
    %350 = vector.load %arg13[%c0_536, %c1128_537] : memref<72x1504xf32, #tpu.memory_space<vmem>>, vector<8x188xf32>
    tpu.vector_store %arg13[%c0_536, %c1128_537], %349 {strides = array<i32>} : memref<72x1504xf32, #tpu.memory_space<vmem>>, vector<8x188xf32>,
    %c0_538 = arith.constant 0 : index
    %c1333 = arith.constant 1333 : index
    %351 = vector.load %arg12[%c0_538, %c1333] : memref<8x1776xf32, #tpu.memory_space<vmem>>, vector<8x188xf32>
    %c8_539 = arith.constant 8 : index
    %c1128_540 = arith.constant 1128 : index
    %352 = vector.load %arg13[%c8_539, %c1128_540] : memref<72x1504xf32, #tpu.memory_space<vmem>>, vector<8x188xf32>
    tpu.vector_store %arg13[%c8_539, %c1128_540], %351 {strides = array<i32>} : memref<72x1504xf32, #tpu.memory_space<vmem>>, vector<8x188xf32>,
    %c0_541 = arith.constant 0 : index
    %c1334 = arith.constant 1334 : index
    %353 = vector.load %arg12[%c0_541, %c1334] : memref<8x1776xf32, #tpu.memory_space<vmem>>, vector<8x188xf32>
    %c16_542 = arith.constant 16 : index
    %c1128_543 = arith.constant 1128 : index
    %354 = vector.load %arg13[%c16_542, %c1128_543] : memref<72x1504xf32, #tpu.memory_space<vmem>>, vector<8x188xf32>
    tpu.vector_store %arg13[%c16_542, %c1128_543], %353 {strides = array<i32>} : memref<72x1504xf32, #tpu.memory_space<vmem>>, vector<8x188xf32>,
    %c0_544 = arith.constant 0 : index
    %c1348 = arith.constant 1348 : index
    %355 = vector.load %arg12[%c0_544, %c1348] : memref<8x1776xf32, #tpu.memory_space<vmem>>, vector<8x188xf32>
    %c24_545 = arith.constant 24 : index
    %c1128_546 = arith.constant 1128 : index
    %356 = vector.load %arg13[%c24_545, %c1128_546] : memref<72x1504xf32, #tpu.memory_space<vmem>>, vector<8x188xf32>
    tpu.vector_store %arg13[%c24_545, %c1128_546], %355 {strides = array<i32>} : memref<72x1504xf32, #tpu.memory_space<vmem>>, vector<8x188xf32>,
    %c0_547 = arith.constant 0 : index
    %c1349 = arith.constant 1349 : index
    %357 = vector.load %arg12[%c0_547, %c1349] : memref<8x1776xf32, #tpu.memory_space<vmem>>, vector<8x188xf32>
    %c32_548 = arith.constant 32 : index
    %c1128_549 = arith.constant 1128 : index
    %358 = vector.load %arg13[%c32_548, %c1128_549] : memref<72x1504xf32, #tpu.memory_space<vmem>>, vector<8x188xf32>
    tpu.vector_store %arg13[%c32_548, %c1128_549], %357 {strides = array<i32>} : memref<72x1504xf32, #tpu.memory_space<vmem>>, vector<8x188xf32>,
    %c0_550 = arith.constant 0 : index
    %c1350 = arith.constant 1350 : index
    %359 = vector.load %arg12[%c0_550, %c1350] : memref<8x1776xf32, #tpu.memory_space<vmem>>, vector<8x188xf32>
    %c40_551 = arith.constant 40 : index
    %c1128_552 = arith.constant 1128 : index
    %360 = vector.load %arg13[%c40_551, %c1128_552] : memref<72x1504xf32, #tpu.memory_space<vmem>>, vector<8x188xf32>
    tpu.vector_store %arg13[%c40_551, %c1128_552], %359 {strides = array<i32>} : memref<72x1504xf32, #tpu.memory_space<vmem>>, vector<8x188xf32>,
    %c0_553 = arith.constant 0 : index
    %c1364 = arith.constant 1364 : index
    %361 = vector.load %arg12[%c0_553, %c1364] : memref<8x1776xf32, #tpu.memory_space<vmem>>, vector<8x188xf32>
    %c48_554 = arith.constant 48 : index
    %c1128_555 = arith.constant 1128 : index
    %362 = vector.load %arg13[%c48_554, %c1128_555] : memref<72x1504xf32, #tpu.memory_space<vmem>>, vector<8x188xf32>
    tpu.vector_store %arg13[%c48_554, %c1128_555], %361 {strides = array<i32>} : memref<72x1504xf32, #tpu.memory_space<vmem>>, vector<8x188xf32>,
    %c0_556 = arith.constant 0 : index
    %c1365 = arith.constant 1365 : index
    %363 = vector.load %arg12[%c0_556, %c1365] : memref<8x1776xf32, #tpu.memory_space<vmem>>, vector<8x188xf32>
    %c56_557 = arith.constant 56 : index
    %c1128_558 = arith.constant 1128 : index
    %364 = vector.load %arg13[%c56_557, %c1128_558] : memref<72x1504xf32, #tpu.memory_space<vmem>>, vector<8x188xf32>
    tpu.vector_store %arg13[%c56_557, %c1128_558], %363 {strides = array<i32>} : memref<72x1504xf32, #tpu.memory_space<vmem>>, vector<8x188xf32>,
    %c0_559 = arith.constant 0 : index
    %c1366 = arith.constant 1366 : index
    %365 = vector.load %arg12[%c0_559, %c1366] : memref<8x1776xf32, #tpu.memory_space<vmem>>, vector<8x188xf32>
    %c64_560 = arith.constant 64 : index
    %c1128_561 = arith.constant 1128 : index
    %366 = vector.load %arg13[%c64_560, %c1128_561] : memref<72x1504xf32, #tpu.memory_space<vmem>>, vector<8x188xf32>
    tpu.vector_store %arg13[%c64_560, %c1128_561], %365 {strides = array<i32>} : memref<72x1504xf32, #tpu.memory_space<vmem>>, vector<8x188xf32>,
    %c0_562 = arith.constant 0 : index
    %c1554_563 = arith.constant 1554 : index
    %367 = vector.load %arg12[%c0_562, %c1554_563] : memref<8x1776xf32, #tpu.memory_space<vmem>>, vector<8x188xf32>
    %c0_564 = arith.constant 0 : index
    %c1316 = arith.constant 1316 : index
    %368 = vector.load %arg13[%c0_564, %c1316] : memref<72x1504xf32, #tpu.memory_space<vmem>>, vector<8x188xf32>
    tpu.vector_store %arg13[%c0_564, %c1316], %367 {strides = array<i32>} : memref<72x1504xf32, #tpu.memory_space<vmem>>, vector<8x188xf32>,
    %c0_565 = arith.constant 0 : index
    %c1555 = arith.constant 1555 : index
    %369 = vector.load %arg12[%c0_565, %c1555] : memref<8x1776xf32, #tpu.memory_space<vmem>>, vector<8x188xf32>
    %c8_566 = arith.constant 8 : index
    %c1316_567 = arith.constant 1316 : index
    %370 = vector.load %arg13[%c8_566, %c1316_567] : memref<72x1504xf32, #tpu.memory_space<vmem>>, vector<8x188xf32>
    tpu.vector_store %arg13[%c8_566, %c1316_567], %369 {strides = array<i32>} : memref<72x1504xf32, #tpu.memory_space<vmem>>, vector<8x188xf32>,
    %c0_568 = arith.constant 0 : index
    %c1556 = arith.constant 1556 : index
    %371 = vector.load %arg12[%c0_568, %c1556] : memref<8x1776xf32, #tpu.memory_space<vmem>>, vector<8x188xf32>
    %c16_569 = arith.constant 16 : index
    %c1316_570 = arith.constant 1316 : index
    %372 = vector.load %arg13[%c16_569, %c1316_570] : memref<72x1504xf32, #tpu.memory_space<vmem>>, vector<8x188xf32>
    tpu.vector_store %arg13[%c16_569, %c1316_570], %371 {strides = array<i32>} : memref<72x1504xf32, #tpu.memory_space<vmem>>, vector<8x188xf32>,
    %c0_571 = arith.constant 0 : index
    %c1570 = arith.constant 1570 : index
    %373 = vector.load %arg12[%c0_571, %c1570] : memref<8x1776xf32, #tpu.memory_space<vmem>>, vector<8x188xf32>
    %c24_572 = arith.constant 24 : index
    %c1316_573 = arith.constant 1316 : index
    %374 = vector.load %arg13[%c24_572, %c1316_573] : memref<72x1504xf32, #tpu.memory_space<vmem>>, vector<8x188xf32>
    tpu.vector_store %arg13[%c24_572, %c1316_573], %373 {strides = array<i32>} : memref<72x1504xf32, #tpu.memory_space<vmem>>, vector<8x188xf32>,
    %c0_574 = arith.constant 0 : index
    %c1571 = arith.constant 1571 : index
    %375 = vector.load %arg12[%c0_574, %c1571] : memref<8x1776xf32, #tpu.memory_space<vmem>>, vector<8x188xf32>
    %c32_575 = arith.constant 32 : index
    %c1316_576 = arith.constant 1316 : index
    %376 = vector.load %arg13[%c32_575, %c1316_576] : memref<72x1504xf32, #tpu.memory_space<vmem>>, vector<8x188xf32>
    tpu.vector_store %arg13[%c32_575, %c1316_576], %375 {strides = array<i32>} : memref<72x1504xf32, #tpu.memory_space<vmem>>, vector<8x188xf32>,
    %c0_577 = arith.constant 0 : index
    %c1572 = arith.constant 1572 : index
    %377 = vector.load %arg12[%c0_577, %c1572] : memref<8x1776xf32, #tpu.memory_space<vmem>>, vector<8x188xf32>
    %c40_578 = arith.constant 40 : index
    %c1316_579 = arith.constant 1316 : index
    %378 = vector.load %arg13[%c40_578, %c1316_579] : memref<72x1504xf32, #tpu.memory_space<vmem>>, vector<8x188xf32>
    tpu.vector_store %arg13[%c40_578, %c1316_579], %377 {strides = array<i32>} : memref<72x1504xf32, #tpu.memory_space<vmem>>, vector<8x188xf32>,
    %c0_580 = arith.constant 0 : index
    %c1586 = arith.constant 1586 : index
    %379 = vector.load %arg12[%c0_580, %c1586] : memref<8x1776xf32, #tpu.memory_space<vmem>>, vector<8x188xf32>
    %c48_581 = arith.constant 48 : index
    %c1316_582 = arith.constant 1316 : index
    %380 = vector.load %arg13[%c48_581, %c1316_582] : memref<72x1504xf32, #tpu.memory_space<vmem>>, vector<8x188xf32>
    tpu.vector_store %arg13[%c48_581, %c1316_582], %379 {strides = array<i32>} : memref<72x1504xf32, #tpu.memory_space<vmem>>, vector<8x188xf32>,
    %c0_583 = arith.constant 0 : index
    %c1587 = arith.constant 1587 : index
    %381 = vector.load %arg12[%c0_583, %c1587] : memref<8x1776xf32, #tpu.memory_space<vmem>>, vector<8x188xf32>
    %c56_584 = arith.constant 56 : index
    %c1316_585 = arith.constant 1316 : index
    %382 = vector.load %arg13[%c56_584, %c1316_585] : memref<72x1504xf32, #tpu.memory_space<vmem>>, vector<8x188xf32>
    tpu.vector_store %arg13[%c56_584, %c1316_585], %381 {strides = array<i32>} : memref<72x1504xf32, #tpu.memory_space<vmem>>, vector<8x188xf32>,
    %c0_586 = arith.constant 0 : index
    %c1588 = arith.constant 1588 : index
    %383 = vector.load %arg12[%c0_586, %c1588] : memref<8x1776xf32, #tpu.memory_space<vmem>>, vector<8x188xf32>
    %c64_587 = arith.constant 64 : index
    %c1316_588 = arith.constant 1316 : index
    %384 = vector.load %arg13[%c64_587, %c1316_588] : memref<72x1504xf32, #tpu.memory_space<vmem>>, vector<8x188xf32>
    tpu.vector_store %arg13[%c64_587, %c1316_588], %383 {strides = array<i32>} : memref<72x1504xf32, #tpu.memory_space<vmem>>, vector<8x188xf32>,
    %c0_589 = arith.constant 0 : index
    %c0_590 = arith.constant 0 : index
    %385 = vector.load %arg3[%c0_589, %c0_590] : memref<16x72xf32, #tpu.memory_space<vmem>>, vector<16x72xf32>
    %c0_591 = arith.constant 0 : index
    %c0_592 = arith.constant 0 : index
    %386 = vector.load %arg13[%c0_591, %c0_592] : memref<72x1504xf32, #tpu.memory_space<vmem>>, vector<72x1504xf32>
    %cst_593 = arith.constant dense<0.000000e+00> : vector<16x1504xf32>
    %387 = tpu.matmul %385, %386, %cst_593 {dimension_numbers = #tpu.dot_dimension_numbers<[1], [0], [0], [1], [0, 0, 1, 1], [], []>} : vector<16x72xf32>, vector<72x1504xf32>, vector<16x1504xf32> -> vector<16x1504xf32>
    %c0_594 = arith.constant 0 : index
    %c0_595 = arith.constant 0 : index
    %388 = vector.load %arg4[%c0_594, %c0_595] : memref<16x1xf32, #tpu.memory_space<vmem>>, vector<16x1xf32>
    %389 = vector.broadcast %388 : vector<16x1xf32> to vector<16x1504xf32>
    %390 = arith.addf %387, %389 : vector<16x1504xf32>
    %cst_596 = arith.constant 0.000000e+00 : f32
    %391 = vector.broadcast %cst_596 : f32 to vector<16x1504xf32>
    %392 = arith.maximumf %390, %391 : vector<16x1504xf32>
    %c0_597 = arith.constant 0 : index
    %c0_598 = arith.constant 0 : index
    %393 = vector.load %arg14[%c0_597, %c0_598] : memref<16x1504xf32, #tpu.memory_space<vmem>>, vector<16x1504xf32>
    tpu.vector_store %arg14[%c0_597, %c0_598], %392 {strides = array<i32>} : memref<16x1504xf32, #tpu.memory_space<vmem>>, vector<16x1504xf32>,
    %c0_599 = arith.constant 0 : index
    %c0_600 = arith.constant 0 : index
    %394 = vector.load %arg14[%c0_599, %c0_600] : memref<16x1504xf32, #tpu.memory_space<vmem>>, vector<16x12xf32>
    %c0_601 = arith.constant 0 : index
    %c0_602 = arith.constant 0 : index
    %395 = vector.load %arg15[%c0_601, %c0_602] : memref<128x144xf32, #tpu.memory_space<vmem>>, vector<16x12xf32>
    tpu.vector_store %arg15[%c0_601, %c0_602], %394 {strides = array<i32>} : memref<128x144xf32, #tpu.memory_space<vmem>>, vector<16x12xf32>,
    %c0_603 = arith.constant 0 : index
    %c16_604 = arith.constant 16 : index
    %396 = vector.load %arg14[%c0_603, %c16_604] : memref<16x1504xf32, #tpu.memory_space<vmem>>, vector<16x12xf32>
    %c0_605 = arith.constant 0 : index
    %c12 = arith.constant 12 : index
    %397 = vector.load %arg15[%c0_605, %c12] : memref<128x144xf32, #tpu.memory_space<vmem>>, vector<16x12xf32>
    tpu.vector_store %arg15[%c0_605, %c12], %396 {strides = array<i32>} : memref<128x144xf32, #tpu.memory_space<vmem>>, vector<16x12xf32>,
    %c0_606 = arith.constant 0 : index
    %c32_607 = arith.constant 32 : index
    %398 = vector.load %arg14[%c0_606, %c32_607] : memref<16x1504xf32, #tpu.memory_space<vmem>>, vector<16x12xf32>
    %c0_608 = arith.constant 0 : index
    %c24_609 = arith.constant 24 : index
    %399 = vector.load %arg15[%c0_608, %c24_609] : memref<128x144xf32, #tpu.memory_space<vmem>>, vector<16x12xf32>
    tpu.vector_store %arg15[%c0_608, %c24_609], %398 {strides = array<i32>} : memref<128x144xf32, #tpu.memory_space<vmem>>, vector<16x12xf32>,
    %c0_610 = arith.constant 0 : index
    %c48_611 = arith.constant 48 : index
    %400 = vector.load %arg14[%c0_610, %c48_611] : memref<16x1504xf32, #tpu.memory_space<vmem>>, vector<16x12xf32>
    %c0_612 = arith.constant 0 : index
    %c36 = arith.constant 36 : index
    %401 = vector.load %arg15[%c0_612, %c36] : memref<128x144xf32, #tpu.memory_space<vmem>>, vector<16x12xf32>
    tpu.vector_store %arg15[%c0_612, %c36], %400 {strides = array<i32>} : memref<128x144xf32, #tpu.memory_space<vmem>>, vector<16x12xf32>,
    %c0_613 = arith.constant 0 : index
    %c64_614 = arith.constant 64 : index
    %402 = vector.load %arg14[%c0_613, %c64_614] : memref<16x1504xf32, #tpu.memory_space<vmem>>, vector<16x12xf32>
    %c0_615 = arith.constant 0 : index
    %c48_616 = arith.constant 48 : index
    %403 = vector.load %arg15[%c0_615, %c48_616] : memref<128x144xf32, #tpu.memory_space<vmem>>, vector<16x12xf32>
    tpu.vector_store %arg15[%c0_615, %c48_616], %402 {strides = array<i32>} : memref<128x144xf32, #tpu.memory_space<vmem>>, vector<16x12xf32>,
    %c0_617 = arith.constant 0 : index
    %c80 = arith.constant 80 : index
    %404 = vector.load %arg14[%c0_617, %c80] : memref<16x1504xf32, #tpu.memory_space<vmem>>, vector<16x12xf32>
    %c0_618 = arith.constant 0 : index
    %c60 = arith.constant 60 : index
    %405 = vector.load %arg15[%c0_618, %c60] : memref<128x144xf32, #tpu.memory_space<vmem>>, vector<16x12xf32>
    tpu.vector_store %arg15[%c0_618, %c60], %404 {strides = array<i32>} : memref<128x144xf32, #tpu.memory_space<vmem>>, vector<16x12xf32>,
    %c0_619 = arith.constant 0 : index
    %c96 = arith.constant 96 : index
    %406 = vector.load %arg14[%c0_619, %c96] : memref<16x1504xf32, #tpu.memory_space<vmem>>, vector<16x12xf32>
    %c0_620 = arith.constant 0 : index
    %c72 = arith.constant 72 : index
    %407 = vector.load %arg15[%c0_620, %c72] : memref<128x144xf32, #tpu.memory_space<vmem>>, vector<16x12xf32>
    tpu.vector_store %arg15[%c0_620, %c72], %406 {strides = array<i32>} : memref<128x144xf32, #tpu.memory_space<vmem>>, vector<16x12xf32>,
    %c0_621 = arith.constant 0 : index
    %c112 = arith.constant 112 : index
    %408 = vector.load %arg14[%c0_621, %c112] : memref<16x1504xf32, #tpu.memory_space<vmem>>, vector<16x12xf32>
    %c0_622 = arith.constant 0 : index
    %c84 = arith.constant 84 : index
    %409 = vector.load %arg15[%c0_622, %c84] : memref<128x144xf32, #tpu.memory_space<vmem>>, vector<16x12xf32>
    tpu.vector_store %arg15[%c0_622, %c84], %408 {strides = array<i32>} : memref<128x144xf32, #tpu.memory_space<vmem>>, vector<16x12xf32>,
    %c0_623 = arith.constant 0 : index
    %c128 = arith.constant 128 : index
    %410 = vector.load %arg14[%c0_623, %c128] : memref<16x1504xf32, #tpu.memory_space<vmem>>, vector<16x12xf32>
    %c0_624 = arith.constant 0 : index
    %c96_625 = arith.constant 96 : index
    %411 = vector.load %arg15[%c0_624, %c96_625] : memref<128x144xf32, #tpu.memory_space<vmem>>, vector<16x12xf32>
    tpu.vector_store %arg15[%c0_624, %c96_625], %410 {strides = array<i32>} : memref<128x144xf32, #tpu.memory_space<vmem>>, vector<16x12xf32>,
    %c0_626 = arith.constant 0 : index
    %c144 = arith.constant 144 : index
    %412 = vector.load %arg14[%c0_626, %c144] : memref<16x1504xf32, #tpu.memory_space<vmem>>, vector<16x12xf32>
    %c0_627 = arith.constant 0 : index
    %c108 = arith.constant 108 : index
    %413 = vector.load %arg15[%c0_627, %c108] : memref<128x144xf32, #tpu.memory_space<vmem>>, vector<16x12xf32>
    tpu.vector_store %arg15[%c0_627, %c108], %412 {strides = array<i32>} : memref<128x144xf32, #tpu.memory_space<vmem>>, vector<16x12xf32>,
    %c0_628 = arith.constant 0 : index
    %c160 = arith.constant 160 : index
    %414 = vector.load %arg14[%c0_628, %c160] : memref<16x1504xf32, #tpu.memory_space<vmem>>, vector<16x12xf32>
    %c0_629 = arith.constant 0 : index
    %c120 = arith.constant 120 : index
    %415 = vector.load %arg15[%c0_629, %c120] : memref<128x144xf32, #tpu.memory_space<vmem>>, vector<16x12xf32>
    tpu.vector_store %arg15[%c0_629, %c120], %414 {strides = array<i32>} : memref<128x144xf32, #tpu.memory_space<vmem>>, vector<16x12xf32>,
    %c0_630 = arith.constant 0 : index
    %c176 = arith.constant 176 : index
    %416 = vector.load %arg14[%c0_630, %c176] : memref<16x1504xf32, #tpu.memory_space<vmem>>, vector<16x12xf32>
    %c0_631 = arith.constant 0 : index
    %c132 = arith.constant 132 : index
    %417 = vector.load %arg15[%c0_631, %c132] : memref<128x144xf32, #tpu.memory_space<vmem>>, vector<16x12xf32>
    tpu.vector_store %arg15[%c0_631, %c132], %416 {strides = array<i32>} : memref<128x144xf32, #tpu.memory_space<vmem>>, vector<16x12xf32>,
    %c0_632 = arith.constant 0 : index
    %c188_633 = arith.constant 188 : index
    %418 = vector.load %arg14[%c0_632, %c188_633] : memref<16x1504xf32, #tpu.memory_space<vmem>>, vector<16x12xf32>
    %c16_634 = arith.constant 16 : index
    %c0_635 = arith.constant 0 : index
    %419 = vector.load %arg15[%c16_634, %c0_635] : memref<128x144xf32, #tpu.memory_space<vmem>>, vector<16x12xf32>
    tpu.vector_store %arg15[%c16_634, %c0_635], %418 {strides = array<i32>} : memref<128x144xf32, #tpu.memory_space<vmem>>, vector<16x12xf32>,
    %c0_636 = arith.constant 0 : index
    %c204 = arith.constant 204 : index
    %420 = vector.load %arg14[%c0_636, %c204] : memref<16x1504xf32, #tpu.memory_space<vmem>>, vector<16x12xf32>
    %c16_637 = arith.constant 16 : index
    %c12_638 = arith.constant 12 : index
    %421 = vector.load %arg15[%c16_637, %c12_638] : memref<128x144xf32, #tpu.memory_space<vmem>>, vector<16x12xf32>
    tpu.vector_store %arg15[%c16_637, %c12_638], %420 {strides = array<i32>} : memref<128x144xf32, #tpu.memory_space<vmem>>, vector<16x12xf32>,
    %c0_639 = arith.constant 0 : index
    %c220 = arith.constant 220 : index
    %422 = vector.load %arg14[%c0_639, %c220] : memref<16x1504xf32, #tpu.memory_space<vmem>>, vector<16x12xf32>
    %c16_640 = arith.constant 16 : index
    %c24_641 = arith.constant 24 : index
    %423 = vector.load %arg15[%c16_640, %c24_641] : memref<128x144xf32, #tpu.memory_space<vmem>>, vector<16x12xf32>
    tpu.vector_store %arg15[%c16_640, %c24_641], %422 {strides = array<i32>} : memref<128x144xf32, #tpu.memory_space<vmem>>, vector<16x12xf32>,
    %c0_642 = arith.constant 0 : index
    %c236 = arith.constant 236 : index
    %424 = vector.load %arg14[%c0_642, %c236] : memref<16x1504xf32, #tpu.memory_space<vmem>>, vector<16x12xf32>
    %c16_643 = arith.constant 16 : index
    %c36_644 = arith.constant 36 : index
    %425 = vector.load %arg15[%c16_643, %c36_644] : memref<128x144xf32, #tpu.memory_space<vmem>>, vector<16x12xf32>
    tpu.vector_store %arg15[%c16_643, %c36_644], %424 {strides = array<i32>} : memref<128x144xf32, #tpu.memory_space<vmem>>, vector<16x12xf32>,
    %c0_645 = arith.constant 0 : index
    %c252 = arith.constant 252 : index
    %426 = vector.load %arg14[%c0_645, %c252] : memref<16x1504xf32, #tpu.memory_space<vmem>>, vector<16x12xf32>
    %c16_646 = arith.constant 16 : index
    %c48_647 = arith.constant 48 : index
    %427 = vector.load %arg15[%c16_646, %c48_647] : memref<128x144xf32, #tpu.memory_space<vmem>>, vector<16x12xf32>
    tpu.vector_store %arg15[%c16_646, %c48_647], %426 {strides = array<i32>} : memref<128x144xf32, #tpu.memory_space<vmem>>, vector<16x12xf32>,
    %c0_648 = arith.constant 0 : index
    %c268 = arith.constant 268 : index
    %428 = vector.load %arg14[%c0_648, %c268] : memref<16x1504xf32, #tpu.memory_space<vmem>>, vector<16x12xf32>
    %c16_649 = arith.constant 16 : index
    %c60_650 = arith.constant 60 : index
    %429 = vector.load %arg15[%c16_649, %c60_650] : memref<128x144xf32, #tpu.memory_space<vmem>>, vector<16x12xf32>
    tpu.vector_store %arg15[%c16_649, %c60_650], %428 {strides = array<i32>} : memref<128x144xf32, #tpu.memory_space<vmem>>, vector<16x12xf32>,
    %c0_651 = arith.constant 0 : index
    %c284 = arith.constant 284 : index
    %430 = vector.load %arg14[%c0_651, %c284] : memref<16x1504xf32, #tpu.memory_space<vmem>>, vector<16x12xf32>
    %c16_652 = arith.constant 16 : index
    %c72_653 = arith.constant 72 : index
    %431 = vector.load %arg15[%c16_652, %c72_653] : memref<128x144xf32, #tpu.memory_space<vmem>>, vector<16x12xf32>
    tpu.vector_store %arg15[%c16_652, %c72_653], %430 {strides = array<i32>} : memref<128x144xf32, #tpu.memory_space<vmem>>, vector<16x12xf32>,
    %c0_654 = arith.constant 0 : index
    %c300 = arith.constant 300 : index
    %432 = vector.load %arg14[%c0_654, %c300] : memref<16x1504xf32, #tpu.memory_space<vmem>>, vector<16x12xf32>
    %c16_655 = arith.constant 16 : index
    %c84_656 = arith.constant 84 : index
    %433 = vector.load %arg15[%c16_655, %c84_656] : memref<128x144xf32, #tpu.memory_space<vmem>>, vector<16x12xf32>
    tpu.vector_store %arg15[%c16_655, %c84_656], %432 {strides = array<i32>} : memref<128x144xf32, #tpu.memory_space<vmem>>, vector<16x12xf32>,
    %c0_657 = arith.constant 0 : index
    %c316 = arith.constant 316 : index
    %434 = vector.load %arg14[%c0_657, %c316] : memref<16x1504xf32, #tpu.memory_space<vmem>>, vector<16x12xf32>
    %c16_658 = arith.constant 16 : index
    %c96_659 = arith.constant 96 : index
    %435 = vector.load %arg15[%c16_658, %c96_659] : memref<128x144xf32, #tpu.memory_space<vmem>>, vector<16x12xf32>
    tpu.vector_store %arg15[%c16_658, %c96_659], %434 {strides = array<i32>} : memref<128x144xf32, #tpu.memory_space<vmem>>, vector<16x12xf32>,
    %c0_660 = arith.constant 0 : index
    %c332 = arith.constant 332 : index
    %436 = vector.load %arg14[%c0_660, %c332] : memref<16x1504xf32, #tpu.memory_space<vmem>>, vector<16x12xf32>
    %c16_661 = arith.constant 16 : index
    %c108_662 = arith.constant 108 : index
    %437 = vector.load %arg15[%c16_661, %c108_662] : memref<128x144xf32, #tpu.memory_space<vmem>>, vector<16x12xf32>
    tpu.vector_store %arg15[%c16_661, %c108_662], %436 {strides = array<i32>} : memref<128x144xf32, #tpu.memory_space<vmem>>, vector<16x12xf32>,
    %c0_663 = arith.constant 0 : index
    %c348 = arith.constant 348 : index
    %438 = vector.load %arg14[%c0_663, %c348] : memref<16x1504xf32, #tpu.memory_space<vmem>>, vector<16x12xf32>
    %c16_664 = arith.constant 16 : index
    %c120_665 = arith.constant 120 : index
    %439 = vector.load %arg15[%c16_664, %c120_665] : memref<128x144xf32, #tpu.memory_space<vmem>>, vector<16x12xf32>
    tpu.vector_store %arg15[%c16_664, %c120_665], %438 {strides = array<i32>} : memref<128x144xf32, #tpu.memory_space<vmem>>, vector<16x12xf32>,
    %c0_666 = arith.constant 0 : index
    %c364 = arith.constant 364 : index
    %440 = vector.load %arg14[%c0_666, %c364] : memref<16x1504xf32, #tpu.memory_space<vmem>>, vector<16x12xf32>
    %c16_667 = arith.constant 16 : index
    %c132_668 = arith.constant 132 : index
    %441 = vector.load %arg15[%c16_667, %c132_668] : memref<128x144xf32, #tpu.memory_space<vmem>>, vector<16x12xf32>
    tpu.vector_store %arg15[%c16_667, %c132_668], %440 {strides = array<i32>} : memref<128x144xf32, #tpu.memory_space<vmem>>, vector<16x12xf32>,
    %c0_669 = arith.constant 0 : index
    %c376_670 = arith.constant 376 : index
    %442 = vector.load %arg14[%c0_669, %c376_670] : memref<16x1504xf32, #tpu.memory_space<vmem>>, vector<16x12xf32>
    %c32_671 = arith.constant 32 : index
    %c0_672 = arith.constant 0 : index
    %443 = vector.load %arg15[%c32_671, %c0_672] : memref<128x144xf32, #tpu.memory_space<vmem>>, vector<16x12xf32>
    tpu.vector_store %arg15[%c32_671, %c0_672], %442 {strides = array<i32>} : memref<128x144xf32, #tpu.memory_space<vmem>>, vector<16x12xf32>,
    %c0_673 = arith.constant 0 : index
    %c392 = arith.constant 392 : index
    %444 = vector.load %arg14[%c0_673, %c392] : memref<16x1504xf32, #tpu.memory_space<vmem>>, vector<16x12xf32>
    %c32_674 = arith.constant 32 : index
    %c12_675 = arith.constant 12 : index
    %445 = vector.load %arg15[%c32_674, %c12_675] : memref<128x144xf32, #tpu.memory_space<vmem>>, vector<16x12xf32>
    tpu.vector_store %arg15[%c32_674, %c12_675], %444 {strides = array<i32>} : memref<128x144xf32, #tpu.memory_space<vmem>>, vector<16x12xf32>,
    %c0_676 = arith.constant 0 : index
    %c408 = arith.constant 408 : index
    %446 = vector.load %arg14[%c0_676, %c408] : memref<16x1504xf32, #tpu.memory_space<vmem>>, vector<16x12xf32>
    %c32_677 = arith.constant 32 : index
    %c24_678 = arith.constant 24 : index
    %447 = vector.load %arg15[%c32_677, %c24_678] : memref<128x144xf32, #tpu.memory_space<vmem>>, vector<16x12xf32>
    tpu.vector_store %arg15[%c32_677, %c24_678], %446 {strides = array<i32>} : memref<128x144xf32, #tpu.memory_space<vmem>>, vector<16x12xf32>,
    %c0_679 = arith.constant 0 : index
    %c424 = arith.constant 424 : index
    %448 = vector.load %arg14[%c0_679, %c424] : memref<16x1504xf32, #tpu.memory_space<vmem>>, vector<16x12xf32>
    %c32_680 = arith.constant 32 : index
    %c36_681 = arith.constant 36 : index
    %449 = vector.load %arg15[%c32_680, %c36_681] : memref<128x144xf32, #tpu.memory_space<vmem>>, vector<16x12xf32>
    tpu.vector_store %arg15[%c32_680, %c36_681], %448 {strides = array<i32>} : memref<128x144xf32, #tpu.memory_space<vmem>>, vector<16x12xf32>,
    %c0_682 = arith.constant 0 : index
    %c440 = arith.constant 440 : index
    %450 = vector.load %arg14[%c0_682, %c440] : memref<16x1504xf32, #tpu.memory_space<vmem>>, vector<16x12xf32>
    %c32_683 = arith.constant 32 : index
    %c48_684 = arith.constant 48 : index
    %451 = vector.load %arg15[%c32_683, %c48_684] : memref<128x144xf32, #tpu.memory_space<vmem>>, vector<16x12xf32>
    tpu.vector_store %arg15[%c32_683, %c48_684], %450 {strides = array<i32>} : memref<128x144xf32, #tpu.memory_space<vmem>>, vector<16x12xf32>,
    %c0_685 = arith.constant 0 : index
    %c456 = arith.constant 456 : index
    %452 = vector.load %arg14[%c0_685, %c456] : memref<16x1504xf32, #tpu.memory_space<vmem>>, vector<16x12xf32>
    %c32_686 = arith.constant 32 : index
    %c60_687 = arith.constant 60 : index
    %453 = vector.load %arg15[%c32_686, %c60_687] : memref<128x144xf32, #tpu.memory_space<vmem>>, vector<16x12xf32>
    tpu.vector_store %arg15[%c32_686, %c60_687], %452 {strides = array<i32>} : memref<128x144xf32, #tpu.memory_space<vmem>>, vector<16x12xf32>,
    %c0_688 = arith.constant 0 : index
    %c472 = arith.constant 472 : index
    %454 = vector.load %arg14[%c0_688, %c472] : memref<16x1504xf32, #tpu.memory_space<vmem>>, vector<16x12xf32>
    %c32_689 = arith.constant 32 : index
    %c72_690 = arith.constant 72 : index
    %455 = vector.load %arg15[%c32_689, %c72_690] : memref<128x144xf32, #tpu.memory_space<vmem>>, vector<16x12xf32>
    tpu.vector_store %arg15[%c32_689, %c72_690], %454 {strides = array<i32>} : memref<128x144xf32, #tpu.memory_space<vmem>>, vector<16x12xf32>,
    %c0_691 = arith.constant 0 : index
    %c488 = arith.constant 488 : index
    %456 = vector.load %arg14[%c0_691, %c488] : memref<16x1504xf32, #tpu.memory_space<vmem>>, vector<16x12xf32>
    %c32_692 = arith.constant 32 : index
    %c84_693 = arith.constant 84 : index
    %457 = vector.load %arg15[%c32_692, %c84_693] : memref<128x144xf32, #tpu.memory_space<vmem>>, vector<16x12xf32>
    tpu.vector_store %arg15[%c32_692, %c84_693], %456 {strides = array<i32>} : memref<128x144xf32, #tpu.memory_space<vmem>>, vector<16x12xf32>,
    %c0_694 = arith.constant 0 : index
    %c504 = arith.constant 504 : index
    %458 = vector.load %arg14[%c0_694, %c504] : memref<16x1504xf32, #tpu.memory_space<vmem>>, vector<16x12xf32>
    %c32_695 = arith.constant 32 : index
    %c96_696 = arith.constant 96 : index
    %459 = vector.load %arg15[%c32_695, %c96_696] : memref<128x144xf32, #tpu.memory_space<vmem>>, vector<16x12xf32>
    tpu.vector_store %arg15[%c32_695, %c96_696], %458 {strides = array<i32>} : memref<128x144xf32, #tpu.memory_space<vmem>>, vector<16x12xf32>,
    %c0_697 = arith.constant 0 : index
    %c520 = arith.constant 520 : index
    %460 = vector.load %arg14[%c0_697, %c520] : memref<16x1504xf32, #tpu.memory_space<vmem>>, vector<16x12xf32>
    %c32_698 = arith.constant 32 : index
    %c108_699 = arith.constant 108 : index
    %461 = vector.load %arg15[%c32_698, %c108_699] : memref<128x144xf32, #tpu.memory_space<vmem>>, vector<16x12xf32>
    tpu.vector_store %arg15[%c32_698, %c108_699], %460 {strides = array<i32>} : memref<128x144xf32, #tpu.memory_space<vmem>>, vector<16x12xf32>,
    %c0_700 = arith.constant 0 : index
    %c536 = arith.constant 536 : index
    %462 = vector.load %arg14[%c0_700, %c536] : memref<16x1504xf32, #tpu.memory_space<vmem>>, vector<16x12xf32>
    %c32_701 = arith.constant 32 : index
    %c120_702 = arith.constant 120 : index
    %463 = vector.load %arg15[%c32_701, %c120_702] : memref<128x144xf32, #tpu.memory_space<vmem>>, vector<16x12xf32>
    tpu.vector_store %arg15[%c32_701, %c120_702], %462 {strides = array<i32>} : memref<128x144xf32, #tpu.memory_space<vmem>>, vector<16x12xf32>,
    %c0_703 = arith.constant 0 : index
    %c552 = arith.constant 552 : index
    %464 = vector.load %arg14[%c0_703, %c552] : memref<16x1504xf32, #tpu.memory_space<vmem>>, vector<16x12xf32>
    %c32_704 = arith.constant 32 : index
    %c132_705 = arith.constant 132 : index
    %465 = vector.load %arg15[%c32_704, %c132_705] : memref<128x144xf32, #tpu.memory_space<vmem>>, vector<16x12xf32>
    tpu.vector_store %arg15[%c32_704, %c132_705], %464 {strides = array<i32>} : memref<128x144xf32, #tpu.memory_space<vmem>>, vector<16x12xf32>,
    %c0_706 = arith.constant 0 : index
    %c564_707 = arith.constant 564 : index
    %466 = vector.load %arg14[%c0_706, %c564_707] : memref<16x1504xf32, #tpu.memory_space<vmem>>, vector<16x12xf32>
    %c48_708 = arith.constant 48 : index
    %c0_709 = arith.constant 0 : index
    %467 = vector.load %arg15[%c48_708, %c0_709] : memref<128x144xf32, #tpu.memory_space<vmem>>, vector<16x12xf32>
    tpu.vector_store %arg15[%c48_708, %c0_709], %466 {strides = array<i32>} : memref<128x144xf32, #tpu.memory_space<vmem>>, vector<16x12xf32>,
    %c0_710 = arith.constant 0 : index
    %c580 = arith.constant 580 : index
    %468 = vector.load %arg14[%c0_710, %c580] : memref<16x1504xf32, #tpu.memory_space<vmem>>, vector<16x12xf32>
    %c48_711 = arith.constant 48 : index
    %c12_712 = arith.constant 12 : index
    %469 = vector.load %arg15[%c48_711, %c12_712] : memref<128x144xf32, #tpu.memory_space<vmem>>, vector<16x12xf32>
    tpu.vector_store %arg15[%c48_711, %c12_712], %468 {strides = array<i32>} : memref<128x144xf32, #tpu.memory_space<vmem>>, vector<16x12xf32>,
    %c0_713 = arith.constant 0 : index
    %c596 = arith.constant 596 : index
    %470 = vector.load %arg14[%c0_713, %c596] : memref<16x1504xf32, #tpu.memory_space<vmem>>, vector<16x12xf32>
    %c48_714 = arith.constant 48 : index
    %c24_715 = arith.constant 24 : index
    %471 = vector.load %arg15[%c48_714, %c24_715] : memref<128x144xf32, #tpu.memory_space<vmem>>, vector<16x12xf32>
    tpu.vector_store %arg15[%c48_714, %c24_715], %470 {strides = array<i32>} : memref<128x144xf32, #tpu.memory_space<vmem>>, vector<16x12xf32>,
    %c0_716 = arith.constant 0 : index
    %c612 = arith.constant 612 : index
    %472 = vector.load %arg14[%c0_716, %c612] : memref<16x1504xf32, #tpu.memory_space<vmem>>, vector<16x12xf32>
    %c48_717 = arith.constant 48 : index
    %c36_718 = arith.constant 36 : index
    %473 = vector.load %arg15[%c48_717, %c36_718] : memref<128x144xf32, #tpu.memory_space<vmem>>, vector<16x12xf32>
    tpu.vector_store %arg15[%c48_717, %c36_718], %472 {strides = array<i32>} : memref<128x144xf32, #tpu.memory_space<vmem>>, vector<16x12xf32>,
    %c0_719 = arith.constant 0 : index
    %c628 = arith.constant 628 : index
    %474 = vector.load %arg14[%c0_719, %c628] : memref<16x1504xf32, #tpu.memory_space<vmem>>, vector<16x12xf32>
    %c48_720 = arith.constant 48 : index
    %c48_721 = arith.constant 48 : index
    %475 = vector.load %arg15[%c48_720, %c48_721] : memref<128x144xf32, #tpu.memory_space<vmem>>, vector<16x12xf32>
    tpu.vector_store %arg15[%c48_720, %c48_721], %474 {strides = array<i32>} : memref<128x144xf32, #tpu.memory_space<vmem>>, vector<16x12xf32>,
    %c0_722 = arith.constant 0 : index
    %c644 = arith.constant 644 : index
    %476 = vector.load %arg14[%c0_722, %c644] : memref<16x1504xf32, #tpu.memory_space<vmem>>, vector<16x12xf32>
    %c48_723 = arith.constant 48 : index
    %c60_724 = arith.constant 60 : index
    %477 = vector.load %arg15[%c48_723, %c60_724] : memref<128x144xf32, #tpu.memory_space<vmem>>, vector<16x12xf32>
    tpu.vector_store %arg15[%c48_723, %c60_724], %476 {strides = array<i32>} : memref<128x144xf32, #tpu.memory_space<vmem>>, vector<16x12xf32>,
    %c0_725 = arith.constant 0 : index
    %c660 = arith.constant 660 : index
    %478 = vector.load %arg14[%c0_725, %c660] : memref<16x1504xf32, #tpu.memory_space<vmem>>, vector<16x12xf32>
    %c48_726 = arith.constant 48 : index
    %c72_727 = arith.constant 72 : index
    %479 = vector.load %arg15[%c48_726, %c72_727] : memref<128x144xf32, #tpu.memory_space<vmem>>, vector<16x12xf32>
    tpu.vector_store %arg15[%c48_726, %c72_727], %478 {strides = array<i32>} : memref<128x144xf32, #tpu.memory_space<vmem>>, vector<16x12xf32>,
    %c0_728 = arith.constant 0 : index
    %c676 = arith.constant 676 : index
    %480 = vector.load %arg14[%c0_728, %c676] : memref<16x1504xf32, #tpu.memory_space<vmem>>, vector<16x12xf32>
    %c48_729 = arith.constant 48 : index
    %c84_730 = arith.constant 84 : index
    %481 = vector.load %arg15[%c48_729, %c84_730] : memref<128x144xf32, #tpu.memory_space<vmem>>, vector<16x12xf32>
    tpu.vector_store %arg15[%c48_729, %c84_730], %480 {strides = array<i32>} : memref<128x144xf32, #tpu.memory_space<vmem>>, vector<16x12xf32>,
    %c0_731 = arith.constant 0 : index
    %c692 = arith.constant 692 : index
    %482 = vector.load %arg14[%c0_731, %c692] : memref<16x1504xf32, #tpu.memory_space<vmem>>, vector<16x12xf32>
    %c48_732 = arith.constant 48 : index
    %c96_733 = arith.constant 96 : index
    %483 = vector.load %arg15[%c48_732, %c96_733] : memref<128x144xf32, #tpu.memory_space<vmem>>, vector<16x12xf32>
    tpu.vector_store %arg15[%c48_732, %c96_733], %482 {strides = array<i32>} : memref<128x144xf32, #tpu.memory_space<vmem>>, vector<16x12xf32>,
    %c0_734 = arith.constant 0 : index
    %c708 = arith.constant 708 : index
    %484 = vector.load %arg14[%c0_734, %c708] : memref<16x1504xf32, #tpu.memory_space<vmem>>, vector<16x12xf32>
    %c48_735 = arith.constant 48 : index
    %c108_736 = arith.constant 108 : index
    %485 = vector.load %arg15[%c48_735, %c108_736] : memref<128x144xf32, #tpu.memory_space<vmem>>, vector<16x12xf32>
    tpu.vector_store %arg15[%c48_735, %c108_736], %484 {strides = array<i32>} : memref<128x144xf32, #tpu.memory_space<vmem>>, vector<16x12xf32>,
    %c0_737 = arith.constant 0 : index
    %c724 = arith.constant 724 : index
    %486 = vector.load %arg14[%c0_737, %c724] : memref<16x1504xf32, #tpu.memory_space<vmem>>, vector<16x12xf32>
    %c48_738 = arith.constant 48 : index
    %c120_739 = arith.constant 120 : index
    %487 = vector.load %arg15[%c48_738, %c120_739] : memref<128x144xf32, #tpu.memory_space<vmem>>, vector<16x12xf32>
    tpu.vector_store %arg15[%c48_738, %c120_739], %486 {strides = array<i32>} : memref<128x144xf32, #tpu.memory_space<vmem>>, vector<16x12xf32>,
    %c0_740 = arith.constant 0 : index
    %c740 = arith.constant 740 : index
    %488 = vector.load %arg14[%c0_740, %c740] : memref<16x1504xf32, #tpu.memory_space<vmem>>, vector<16x12xf32>
    %c48_741 = arith.constant 48 : index
    %c132_742 = arith.constant 132 : index
    %489 = vector.load %arg15[%c48_741, %c132_742] : memref<128x144xf32, #tpu.memory_space<vmem>>, vector<16x12xf32>
    tpu.vector_store %arg15[%c48_741, %c132_742], %488 {strides = array<i32>} : memref<128x144xf32, #tpu.memory_space<vmem>>, vector<16x12xf32>,
    %c0_743 = arith.constant 0 : index
    %c752_744 = arith.constant 752 : index
    %490 = vector.load %arg14[%c0_743, %c752_744] : memref<16x1504xf32, #tpu.memory_space<vmem>>, vector<16x12xf32>
    %c64_745 = arith.constant 64 : index
    %c0_746 = arith.constant 0 : index
    %491 = vector.load %arg15[%c64_745, %c0_746] : memref<128x144xf32, #tpu.memory_space<vmem>>, vector<16x12xf32>
    tpu.vector_store %arg15[%c64_745, %c0_746], %490 {strides = array<i32>} : memref<128x144xf32, #tpu.memory_space<vmem>>, vector<16x12xf32>,
    %c0_747 = arith.constant 0 : index
    %c768 = arith.constant 768 : index
    %492 = vector.load %arg14[%c0_747, %c768] : memref<16x1504xf32, #tpu.memory_space<vmem>>, vector<16x12xf32>
    %c64_748 = arith.constant 64 : index
    %c12_749 = arith.constant 12 : index
    %493 = vector.load %arg15[%c64_748, %c12_749] : memref<128x144xf32, #tpu.memory_space<vmem>>, vector<16x12xf32>
    tpu.vector_store %arg15[%c64_748, %c12_749], %492 {strides = array<i32>} : memref<128x144xf32, #tpu.memory_space<vmem>>, vector<16x12xf32>,
    %c0_750 = arith.constant 0 : index
    %c784 = arith.constant 784 : index
    %494 = vector.load %arg14[%c0_750, %c784] : memref<16x1504xf32, #tpu.memory_space<vmem>>, vector<16x12xf32>
    %c64_751 = arith.constant 64 : index
    %c24_752 = arith.constant 24 : index
    %495 = vector.load %arg15[%c64_751, %c24_752] : memref<128x144xf32, #tpu.memory_space<vmem>>, vector<16x12xf32>
    tpu.vector_store %arg15[%c64_751, %c24_752], %494 {strides = array<i32>} : memref<128x144xf32, #tpu.memory_space<vmem>>, vector<16x12xf32>,
    %c0_753 = arith.constant 0 : index
    %c800 = arith.constant 800 : index
    %496 = vector.load %arg14[%c0_753, %c800] : memref<16x1504xf32, #tpu.memory_space<vmem>>, vector<16x12xf32>
    %c64_754 = arith.constant 64 : index
    %c36_755 = arith.constant 36 : index
    %497 = vector.load %arg15[%c64_754, %c36_755] : memref<128x144xf32, #tpu.memory_space<vmem>>, vector<16x12xf32>
    tpu.vector_store %arg15[%c64_754, %c36_755], %496 {strides = array<i32>} : memref<128x144xf32, #tpu.memory_space<vmem>>, vector<16x12xf32>,
    %c0_756 = arith.constant 0 : index
    %c816 = arith.constant 816 : index
    %498 = vector.load %arg14[%c0_756, %c816] : memref<16x1504xf32, #tpu.memory_space<vmem>>, vector<16x12xf32>
    %c64_757 = arith.constant 64 : index
    %c48_758 = arith.constant 48 : index
    %499 = vector.load %arg15[%c64_757, %c48_758] : memref<128x144xf32, #tpu.memory_space<vmem>>, vector<16x12xf32>
    tpu.vector_store %arg15[%c64_757, %c48_758], %498 {strides = array<i32>} : memref<128x144xf32, #tpu.memory_space<vmem>>, vector<16x12xf32>,
    %c0_759 = arith.constant 0 : index
    %c832 = arith.constant 832 : index
    %500 = vector.load %arg14[%c0_759, %c832] : memref<16x1504xf32, #tpu.memory_space<vmem>>, vector<16x12xf32>
    %c64_760 = arith.constant 64 : index
    %c60_761 = arith.constant 60 : index
    %501 = vector.load %arg15[%c64_760, %c60_761] : memref<128x144xf32, #tpu.memory_space<vmem>>, vector<16x12xf32>
    tpu.vector_store %arg15[%c64_760, %c60_761], %500 {strides = array<i32>} : memref<128x144xf32, #tpu.memory_space<vmem>>, vector<16x12xf32>,
    %c0_762 = arith.constant 0 : index
    %c848 = arith.constant 848 : index
    %502 = vector.load %arg14[%c0_762, %c848] : memref<16x1504xf32, #tpu.memory_space<vmem>>, vector<16x12xf32>
    %c64_763 = arith.constant 64 : index
    %c72_764 = arith.constant 72 : index
    %503 = vector.load %arg15[%c64_763, %c72_764] : memref<128x144xf32, #tpu.memory_space<vmem>>, vector<16x12xf32>
    tpu.vector_store %arg15[%c64_763, %c72_764], %502 {strides = array<i32>} : memref<128x144xf32, #tpu.memory_space<vmem>>, vector<16x12xf32>,
    %c0_765 = arith.constant 0 : index
    %c864 = arith.constant 864 : index
    %504 = vector.load %arg14[%c0_765, %c864] : memref<16x1504xf32, #tpu.memory_space<vmem>>, vector<16x12xf32>
    %c64_766 = arith.constant 64 : index
    %c84_767 = arith.constant 84 : index
    %505 = vector.load %arg15[%c64_766, %c84_767] : memref<128x144xf32, #tpu.memory_space<vmem>>, vector<16x12xf32>
    tpu.vector_store %arg15[%c64_766, %c84_767], %504 {strides = array<i32>} : memref<128x144xf32, #tpu.memory_space<vmem>>, vector<16x12xf32>,
    %c0_768 = arith.constant 0 : index
    %c880 = arith.constant 880 : index
    %506 = vector.load %arg14[%c0_768, %c880] : memref<16x1504xf32, #tpu.memory_space<vmem>>, vector<16x12xf32>
    %c64_769 = arith.constant 64 : index
    %c96_770 = arith.constant 96 : index
    %507 = vector.load %arg15[%c64_769, %c96_770] : memref<128x144xf32, #tpu.memory_space<vmem>>, vector<16x12xf32>
    tpu.vector_store %arg15[%c64_769, %c96_770], %506 {strides = array<i32>} : memref<128x144xf32, #tpu.memory_space<vmem>>, vector<16x12xf32>,
    %c0_771 = arith.constant 0 : index
    %c896 = arith.constant 896 : index
    %508 = vector.load %arg14[%c0_771, %c896] : memref<16x1504xf32, #tpu.memory_space<vmem>>, vector<16x12xf32>
    %c64_772 = arith.constant 64 : index
    %c108_773 = arith.constant 108 : index
    %509 = vector.load %arg15[%c64_772, %c108_773] : memref<128x144xf32, #tpu.memory_space<vmem>>, vector<16x12xf32>
    tpu.vector_store %arg15[%c64_772, %c108_773], %508 {strides = array<i32>} : memref<128x144xf32, #tpu.memory_space<vmem>>, vector<16x12xf32>,
    %c0_774 = arith.constant 0 : index
    %c912 = arith.constant 912 : index
    %510 = vector.load %arg14[%c0_774, %c912] : memref<16x1504xf32, #tpu.memory_space<vmem>>, vector<16x12xf32>
    %c64_775 = arith.constant 64 : index
    %c120_776 = arith.constant 120 : index
    %511 = vector.load %arg15[%c64_775, %c120_776] : memref<128x144xf32, #tpu.memory_space<vmem>>, vector<16x12xf32>
    tpu.vector_store %arg15[%c64_775, %c120_776], %510 {strides = array<i32>} : memref<128x144xf32, #tpu.memory_space<vmem>>, vector<16x12xf32>,
    %c0_777 = arith.constant 0 : index
    %c928 = arith.constant 928 : index
    %512 = vector.load %arg14[%c0_777, %c928] : memref<16x1504xf32, #tpu.memory_space<vmem>>, vector<16x12xf32>
    %c64_778 = arith.constant 64 : index
    %c132_779 = arith.constant 132 : index
    %513 = vector.load %arg15[%c64_778, %c132_779] : memref<128x144xf32, #tpu.memory_space<vmem>>, vector<16x12xf32>
    tpu.vector_store %arg15[%c64_778, %c132_779], %512 {strides = array<i32>} : memref<128x144xf32, #tpu.memory_space<vmem>>, vector<16x12xf32>,
    %c0_780 = arith.constant 0 : index
    %c940_781 = arith.constant 940 : index
    %514 = vector.load %arg14[%c0_780, %c940_781] : memref<16x1504xf32, #tpu.memory_space<vmem>>, vector<16x12xf32>
    %c80_782 = arith.constant 80 : index
    %c0_783 = arith.constant 0 : index
    %515 = vector.load %arg15[%c80_782, %c0_783] : memref<128x144xf32, #tpu.memory_space<vmem>>, vector<16x12xf32>
    tpu.vector_store %arg15[%c80_782, %c0_783], %514 {strides = array<i32>} : memref<128x144xf32, #tpu.memory_space<vmem>>, vector<16x12xf32>,
    %c0_784 = arith.constant 0 : index
    %c956 = arith.constant 956 : index
    %516 = vector.load %arg14[%c0_784, %c956] : memref<16x1504xf32, #tpu.memory_space<vmem>>, vector<16x12xf32>
    %c80_785 = arith.constant 80 : index
    %c12_786 = arith.constant 12 : index
    %517 = vector.load %arg15[%c80_785, %c12_786] : memref<128x144xf32, #tpu.memory_space<vmem>>, vector<16x12xf32>
    tpu.vector_store %arg15[%c80_785, %c12_786], %516 {strides = array<i32>} : memref<128x144xf32, #tpu.memory_space<vmem>>, vector<16x12xf32>,
    %c0_787 = arith.constant 0 : index
    %c972 = arith.constant 972 : index
    %518 = vector.load %arg14[%c0_787, %c972] : memref<16x1504xf32, #tpu.memory_space<vmem>>, vector<16x12xf32>
    %c80_788 = arith.constant 80 : index
    %c24_789 = arith.constant 24 : index
    %519 = vector.load %arg15[%c80_788, %c24_789] : memref<128x144xf32, #tpu.memory_space<vmem>>, vector<16x12xf32>
    tpu.vector_store %arg15[%c80_788, %c24_789], %518 {strides = array<i32>} : memref<128x144xf32, #tpu.memory_space<vmem>>, vector<16x12xf32>,
    %c0_790 = arith.constant 0 : index
    %c988 = arith.constant 988 : index
    %520 = vector.load %arg14[%c0_790, %c988] : memref<16x1504xf32, #tpu.memory_space<vmem>>, vector<16x12xf32>
    %c80_791 = arith.constant 80 : index
    %c36_792 = arith.constant 36 : index
    %521 = vector.load %arg15[%c80_791, %c36_792] : memref<128x144xf32, #tpu.memory_space<vmem>>, vector<16x12xf32>
    tpu.vector_store %arg15[%c80_791, %c36_792], %520 {strides = array<i32>} : memref<128x144xf32, #tpu.memory_space<vmem>>, vector<16x12xf32>,
    %c0_793 = arith.constant 0 : index
    %c1004 = arith.constant 1004 : index
    %522 = vector.load %arg14[%c0_793, %c1004] : memref<16x1504xf32, #tpu.memory_space<vmem>>, vector<16x12xf32>
    %c80_794 = arith.constant 80 : index
    %c48_795 = arith.constant 48 : index
    %523 = vector.load %arg15[%c80_794, %c48_795] : memref<128x144xf32, #tpu.memory_space<vmem>>, vector<16x12xf32>
    tpu.vector_store %arg15[%c80_794, %c48_795], %522 {strides = array<i32>} : memref<128x144xf32, #tpu.memory_space<vmem>>, vector<16x12xf32>,
    %c0_796 = arith.constant 0 : index
    %c1020 = arith.constant 1020 : index
    %524 = vector.load %arg14[%c0_796, %c1020] : memref<16x1504xf32, #tpu.memory_space<vmem>>, vector<16x12xf32>
    %c80_797 = arith.constant 80 : index
    %c60_798 = arith.constant 60 : index
    %525 = vector.load %arg15[%c80_797, %c60_798] : memref<128x144xf32, #tpu.memory_space<vmem>>, vector<16x12xf32>
    tpu.vector_store %arg15[%c80_797, %c60_798], %524 {strides = array<i32>} : memref<128x144xf32, #tpu.memory_space<vmem>>, vector<16x12xf32>,
    %c0_799 = arith.constant 0 : index
    %c1036 = arith.constant 1036 : index
    %526 = vector.load %arg14[%c0_799, %c1036] : memref<16x1504xf32, #tpu.memory_space<vmem>>, vector<16x12xf32>
    %c80_800 = arith.constant 80 : index
    %c72_801 = arith.constant 72 : index
    %527 = vector.load %arg15[%c80_800, %c72_801] : memref<128x144xf32, #tpu.memory_space<vmem>>, vector<16x12xf32>
    tpu.vector_store %arg15[%c80_800, %c72_801], %526 {strides = array<i32>} : memref<128x144xf32, #tpu.memory_space<vmem>>, vector<16x12xf32>,
    %c0_802 = arith.constant 0 : index
    %c1052 = arith.constant 1052 : index
    %528 = vector.load %arg14[%c0_802, %c1052] : memref<16x1504xf32, #tpu.memory_space<vmem>>, vector<16x12xf32>
    %c80_803 = arith.constant 80 : index
    %c84_804 = arith.constant 84 : index
    %529 = vector.load %arg15[%c80_803, %c84_804] : memref<128x144xf32, #tpu.memory_space<vmem>>, vector<16x12xf32>
    tpu.vector_store %arg15[%c80_803, %c84_804], %528 {strides = array<i32>} : memref<128x144xf32, #tpu.memory_space<vmem>>, vector<16x12xf32>,
    %c0_805 = arith.constant 0 : index
    %c1068 = arith.constant 1068 : index
    %530 = vector.load %arg14[%c0_805, %c1068] : memref<16x1504xf32, #tpu.memory_space<vmem>>, vector<16x12xf32>
    %c80_806 = arith.constant 80 : index
    %c96_807 = arith.constant 96 : index
    %531 = vector.load %arg15[%c80_806, %c96_807] : memref<128x144xf32, #tpu.memory_space<vmem>>, vector<16x12xf32>
    tpu.vector_store %arg15[%c80_806, %c96_807], %530 {strides = array<i32>} : memref<128x144xf32, #tpu.memory_space<vmem>>, vector<16x12xf32>,
    %c0_808 = arith.constant 0 : index
    %c1084 = arith.constant 1084 : index
    %532 = vector.load %arg14[%c0_808, %c1084] : memref<16x1504xf32, #tpu.memory_space<vmem>>, vector<16x12xf32>
    %c80_809 = arith.constant 80 : index
    %c108_810 = arith.constant 108 : index
    %533 = vector.load %arg15[%c80_809, %c108_810] : memref<128x144xf32, #tpu.memory_space<vmem>>, vector<16x12xf32>
    tpu.vector_store %arg15[%c80_809, %c108_810], %532 {strides = array<i32>} : memref<128x144xf32, #tpu.memory_space<vmem>>, vector<16x12xf32>,
    %c0_811 = arith.constant 0 : index
    %c1100 = arith.constant 1100 : index
    %534 = vector.load %arg14[%c0_811, %c1100] : memref<16x1504xf32, #tpu.memory_space<vmem>>, vector<16x12xf32>
    %c80_812 = arith.constant 80 : index
    %c120_813 = arith.constant 120 : index
    %535 = vector.load %arg15[%c80_812, %c120_813] : memref<128x144xf32, #tpu.memory_space<vmem>>, vector<16x12xf32>
    tpu.vector_store %arg15[%c80_812, %c120_813], %534 {strides = array<i32>} : memref<128x144xf32, #tpu.memory_space<vmem>>, vector<16x12xf32>,
    %c0_814 = arith.constant 0 : index
    %c1116 = arith.constant 1116 : index
    %536 = vector.load %arg14[%c0_814, %c1116] : memref<16x1504xf32, #tpu.memory_space<vmem>>, vector<16x12xf32>
    %c80_815 = arith.constant 80 : index
    %c132_816 = arith.constant 132 : index
    %537 = vector.load %arg15[%c80_815, %c132_816] : memref<128x144xf32, #tpu.memory_space<vmem>>, vector<16x12xf32>
    tpu.vector_store %arg15[%c80_815, %c132_816], %536 {strides = array<i32>} : memref<128x144xf32, #tpu.memory_space<vmem>>, vector<16x12xf32>,
    %c0_817 = arith.constant 0 : index
    %c1128_818 = arith.constant 1128 : index
    %538 = vector.load %arg14[%c0_817, %c1128_818] : memref<16x1504xf32, #tpu.memory_space<vmem>>, vector<16x12xf32>
    %c96_819 = arith.constant 96 : index
    %c0_820 = arith.constant 0 : index
    %539 = vector.load %arg15[%c96_819, %c0_820] : memref<128x144xf32, #tpu.memory_space<vmem>>, vector<16x12xf32>
    tpu.vector_store %arg15[%c96_819, %c0_820], %538 {strides = array<i32>} : memref<128x144xf32, #tpu.memory_space<vmem>>, vector<16x12xf32>,
    %c0_821 = arith.constant 0 : index
    %c1144_822 = arith.constant 1144 : index
    %540 = vector.load %arg14[%c0_821, %c1144_822] : memref<16x1504xf32, #tpu.memory_space<vmem>>, vector<16x12xf32>
    %c96_823 = arith.constant 96 : index
    %c12_824 = arith.constant 12 : index
    %541 = vector.load %arg15[%c96_823, %c12_824] : memref<128x144xf32, #tpu.memory_space<vmem>>, vector<16x12xf32>
    tpu.vector_store %arg15[%c96_823, %c12_824], %540 {strides = array<i32>} : memref<128x144xf32, #tpu.memory_space<vmem>>, vector<16x12xf32>,
    %c0_825 = arith.constant 0 : index
    %c1160 = arith.constant 1160 : index
    %542 = vector.load %arg14[%c0_825, %c1160] : memref<16x1504xf32, #tpu.memory_space<vmem>>, vector<16x12xf32>
    %c96_826 = arith.constant 96 : index
    %c24_827 = arith.constant 24 : index
    %543 = vector.load %arg15[%c96_826, %c24_827] : memref<128x144xf32, #tpu.memory_space<vmem>>, vector<16x12xf32>
    tpu.vector_store %arg15[%c96_826, %c24_827], %542 {strides = array<i32>} : memref<128x144xf32, #tpu.memory_space<vmem>>, vector<16x12xf32>,
    %c0_828 = arith.constant 0 : index
    %c1176 = arith.constant 1176 : index
    %544 = vector.load %arg14[%c0_828, %c1176] : memref<16x1504xf32, #tpu.memory_space<vmem>>, vector<16x12xf32>
    %c96_829 = arith.constant 96 : index
    %c36_830 = arith.constant 36 : index
    %545 = vector.load %arg15[%c96_829, %c36_830] : memref<128x144xf32, #tpu.memory_space<vmem>>, vector<16x12xf32>
    tpu.vector_store %arg15[%c96_829, %c36_830], %544 {strides = array<i32>} : memref<128x144xf32, #tpu.memory_space<vmem>>, vector<16x12xf32>,
    %c0_831 = arith.constant 0 : index
    %c1192 = arith.constant 1192 : index
    %546 = vector.load %arg14[%c0_831, %c1192] : memref<16x1504xf32, #tpu.memory_space<vmem>>, vector<16x12xf32>
    %c96_832 = arith.constant 96 : index
    %c48_833 = arith.constant 48 : index
    %547 = vector.load %arg15[%c96_832, %c48_833] : memref<128x144xf32, #tpu.memory_space<vmem>>, vector<16x12xf32>
    tpu.vector_store %arg15[%c96_832, %c48_833], %546 {strides = array<i32>} : memref<128x144xf32, #tpu.memory_space<vmem>>, vector<16x12xf32>,
    %c0_834 = arith.constant 0 : index
    %c1208 = arith.constant 1208 : index
    %548 = vector.load %arg14[%c0_834, %c1208] : memref<16x1504xf32, #tpu.memory_space<vmem>>, vector<16x12xf32>
    %c96_835 = arith.constant 96 : index
    %c60_836 = arith.constant 60 : index
    %549 = vector.load %arg15[%c96_835, %c60_836] : memref<128x144xf32, #tpu.memory_space<vmem>>, vector<16x12xf32>
    tpu.vector_store %arg15[%c96_835, %c60_836], %548 {strides = array<i32>} : memref<128x144xf32, #tpu.memory_space<vmem>>, vector<16x12xf32>,
    %c0_837 = arith.constant 0 : index
    %c1224 = arith.constant 1224 : index
    %550 = vector.load %arg14[%c0_837, %c1224] : memref<16x1504xf32, #tpu.memory_space<vmem>>, vector<16x12xf32>
    %c96_838 = arith.constant 96 : index
    %c72_839 = arith.constant 72 : index
    %551 = vector.load %arg15[%c96_838, %c72_839] : memref<128x144xf32, #tpu.memory_space<vmem>>, vector<16x12xf32>
    tpu.vector_store %arg15[%c96_838, %c72_839], %550 {strides = array<i32>} : memref<128x144xf32, #tpu.memory_space<vmem>>, vector<16x12xf32>,
    %c0_840 = arith.constant 0 : index
    %c1240 = arith.constant 1240 : index
    %552 = vector.load %arg14[%c0_840, %c1240] : memref<16x1504xf32, #tpu.memory_space<vmem>>, vector<16x12xf32>
    %c96_841 = arith.constant 96 : index
    %c84_842 = arith.constant 84 : index
    %553 = vector.load %arg15[%c96_841, %c84_842] : memref<128x144xf32, #tpu.memory_space<vmem>>, vector<16x12xf32>
    tpu.vector_store %arg15[%c96_841, %c84_842], %552 {strides = array<i32>} : memref<128x144xf32, #tpu.memory_space<vmem>>, vector<16x12xf32>,
    %c0_843 = arith.constant 0 : index
    %c1256 = arith.constant 1256 : index
    %554 = vector.load %arg14[%c0_843, %c1256] : memref<16x1504xf32, #tpu.memory_space<vmem>>, vector<16x12xf32>
    %c96_844 = arith.constant 96 : index
    %c96_845 = arith.constant 96 : index
    %555 = vector.load %arg15[%c96_844, %c96_845] : memref<128x144xf32, #tpu.memory_space<vmem>>, vector<16x12xf32>
    tpu.vector_store %arg15[%c96_844, %c96_845], %554 {strides = array<i32>} : memref<128x144xf32, #tpu.memory_space<vmem>>, vector<16x12xf32>,
    %c0_846 = arith.constant 0 : index
    %c1272 = arith.constant 1272 : index
    %556 = vector.load %arg14[%c0_846, %c1272] : memref<16x1504xf32, #tpu.memory_space<vmem>>, vector<16x12xf32>
    %c96_847 = arith.constant 96 : index
    %c108_848 = arith.constant 108 : index
    %557 = vector.load %arg15[%c96_847, %c108_848] : memref<128x144xf32, #tpu.memory_space<vmem>>, vector<16x12xf32>
    tpu.vector_store %arg15[%c96_847, %c108_848], %556 {strides = array<i32>} : memref<128x144xf32, #tpu.memory_space<vmem>>, vector<16x12xf32>,
    %c0_849 = arith.constant 0 : index
    %c1288 = arith.constant 1288 : index
    %558 = vector.load %arg14[%c0_849, %c1288] : memref<16x1504xf32, #tpu.memory_space<vmem>>, vector<16x12xf32>
    %c96_850 = arith.constant 96 : index
    %c120_851 = arith.constant 120 : index
    %559 = vector.load %arg15[%c96_850, %c120_851] : memref<128x144xf32, #tpu.memory_space<vmem>>, vector<16x12xf32>
    tpu.vector_store %arg15[%c96_850, %c120_851], %558 {strides = array<i32>} : memref<128x144xf32, #tpu.memory_space<vmem>>, vector<16x12xf32>,
    %c0_852 = arith.constant 0 : index
    %c1304 = arith.constant 1304 : index
    %560 = vector.load %arg14[%c0_852, %c1304] : memref<16x1504xf32, #tpu.memory_space<vmem>>, vector<16x12xf32>
    %c96_853 = arith.constant 96 : index
    %c132_854 = arith.constant 132 : index
    %561 = vector.load %arg15[%c96_853, %c132_854] : memref<128x144xf32, #tpu.memory_space<vmem>>, vector<16x12xf32>
    tpu.vector_store %arg15[%c96_853, %c132_854], %560 {strides = array<i32>} : memref<128x144xf32, #tpu.memory_space<vmem>>, vector<16x12xf32>,
    %c0_855 = arith.constant 0 : index
    %c1316_856 = arith.constant 1316 : index
    %562 = vector.load %arg14[%c0_855, %c1316_856] : memref<16x1504xf32, #tpu.memory_space<vmem>>, vector<16x12xf32>
    %c112_857 = arith.constant 112 : index
    %c0_858 = arith.constant 0 : index
    %563 = vector.load %arg15[%c112_857, %c0_858] : memref<128x144xf32, #tpu.memory_space<vmem>>, vector<16x12xf32>
    tpu.vector_store %arg15[%c112_857, %c0_858], %562 {strides = array<i32>} : memref<128x144xf32, #tpu.memory_space<vmem>>, vector<16x12xf32>,
    %c0_859 = arith.constant 0 : index
    %c1332_860 = arith.constant 1332 : index
    %564 = vector.load %arg14[%c0_859, %c1332_860] : memref<16x1504xf32, #tpu.memory_space<vmem>>, vector<16x12xf32>
    %c112_861 = arith.constant 112 : index
    %c12_862 = arith.constant 12 : index
    %565 = vector.load %arg15[%c112_861, %c12_862] : memref<128x144xf32, #tpu.memory_space<vmem>>, vector<16x12xf32>
    tpu.vector_store %arg15[%c112_861, %c12_862], %564 {strides = array<i32>} : memref<128x144xf32, #tpu.memory_space<vmem>>, vector<16x12xf32>,
    %c0_863 = arith.constant 0 : index
    %c1348_864 = arith.constant 1348 : index
    %566 = vector.load %arg14[%c0_863, %c1348_864] : memref<16x1504xf32, #tpu.memory_space<vmem>>, vector<16x12xf32>
    %c112_865 = arith.constant 112 : index
    %c24_866 = arith.constant 24 : index
    %567 = vector.load %arg15[%c112_865, %c24_866] : memref<128x144xf32, #tpu.memory_space<vmem>>, vector<16x12xf32>
    tpu.vector_store %arg15[%c112_865, %c24_866], %566 {strides = array<i32>} : memref<128x144xf32, #tpu.memory_space<vmem>>, vector<16x12xf32>,
    %c0_867 = arith.constant 0 : index
    %c1364_868 = arith.constant 1364 : index
    %568 = vector.load %arg14[%c0_867, %c1364_868] : memref<16x1504xf32, #tpu.memory_space<vmem>>, vector<16x12xf32>
    %c112_869 = arith.constant 112 : index
    %c36_870 = arith.constant 36 : index
    %569 = vector.load %arg15[%c112_869, %c36_870] : memref<128x144xf32, #tpu.memory_space<vmem>>, vector<16x12xf32>
    tpu.vector_store %arg15[%c112_869, %c36_870], %568 {strides = array<i32>} : memref<128x144xf32, #tpu.memory_space<vmem>>, vector<16x12xf32>,
    %c0_871 = arith.constant 0 : index
    %c1380 = arith.constant 1380 : index
    %570 = vector.load %arg14[%c0_871, %c1380] : memref<16x1504xf32, #tpu.memory_space<vmem>>, vector<16x12xf32>
    %c112_872 = arith.constant 112 : index
    %c48_873 = arith.constant 48 : index
    %571 = vector.load %arg15[%c112_872, %c48_873] : memref<128x144xf32, #tpu.memory_space<vmem>>, vector<16x12xf32>
    tpu.vector_store %arg15[%c112_872, %c48_873], %570 {strides = array<i32>} : memref<128x144xf32, #tpu.memory_space<vmem>>, vector<16x12xf32>,
    %c0_874 = arith.constant 0 : index
    %c1396 = arith.constant 1396 : index
    %572 = vector.load %arg14[%c0_874, %c1396] : memref<16x1504xf32, #tpu.memory_space<vmem>>, vector<16x12xf32>
    %c112_875 = arith.constant 112 : index
    %c60_876 = arith.constant 60 : index
    %573 = vector.load %arg15[%c112_875, %c60_876] : memref<128x144xf32, #tpu.memory_space<vmem>>, vector<16x12xf32>
    tpu.vector_store %arg15[%c112_875, %c60_876], %572 {strides = array<i32>} : memref<128x144xf32, #tpu.memory_space<vmem>>, vector<16x12xf32>,
    %c0_877 = arith.constant 0 : index
    %c1412 = arith.constant 1412 : index
    %574 = vector.load %arg14[%c0_877, %c1412] : memref<16x1504xf32, #tpu.memory_space<vmem>>, vector<16x12xf32>
    %c112_878 = arith.constant 112 : index
    %c72_879 = arith.constant 72 : index
    %575 = vector.load %arg15[%c112_878, %c72_879] : memref<128x144xf32, #tpu.memory_space<vmem>>, vector<16x12xf32>
    tpu.vector_store %arg15[%c112_878, %c72_879], %574 {strides = array<i32>} : memref<128x144xf32, #tpu.memory_space<vmem>>, vector<16x12xf32>,
    %c0_880 = arith.constant 0 : index
    %c1428 = arith.constant 1428 : index
    %576 = vector.load %arg14[%c0_880, %c1428] : memref<16x1504xf32, #tpu.memory_space<vmem>>, vector<16x12xf32>
    %c112_881 = arith.constant 112 : index
    %c84_882 = arith.constant 84 : index
    %577 = vector.load %arg15[%c112_881, %c84_882] : memref<128x144xf32, #tpu.memory_space<vmem>>, vector<16x12xf32>
    tpu.vector_store %arg15[%c112_881, %c84_882], %576 {strides = array<i32>} : memref<128x144xf32, #tpu.memory_space<vmem>>, vector<16x12xf32>,
    %c0_883 = arith.constant 0 : index
    %c1444 = arith.constant 1444 : index
    %578 = vector.load %arg14[%c0_883, %c1444] : memref<16x1504xf32, #tpu.memory_space<vmem>>, vector<16x12xf32>
    %c112_884 = arith.constant 112 : index
    %c96_885 = arith.constant 96 : index
    %579 = vector.load %arg15[%c112_884, %c96_885] : memref<128x144xf32, #tpu.memory_space<vmem>>, vector<16x12xf32>
    tpu.vector_store %arg15[%c112_884, %c96_885], %578 {strides = array<i32>} : memref<128x144xf32, #tpu.memory_space<vmem>>, vector<16x12xf32>,
    %c0_886 = arith.constant 0 : index
    %c1460 = arith.constant 1460 : index
    %580 = vector.load %arg14[%c0_886, %c1460] : memref<16x1504xf32, #tpu.memory_space<vmem>>, vector<16x12xf32>
    %c112_887 = arith.constant 112 : index
    %c108_888 = arith.constant 108 : index
    %581 = vector.load %arg15[%c112_887, %c108_888] : memref<128x144xf32, #tpu.memory_space<vmem>>, vector<16x12xf32>
    tpu.vector_store %arg15[%c112_887, %c108_888], %580 {strides = array<i32>} : memref<128x144xf32, #tpu.memory_space<vmem>>, vector<16x12xf32>,
    %c0_889 = arith.constant 0 : index
    %c1476 = arith.constant 1476 : index
    %582 = vector.load %arg14[%c0_889, %c1476] : memref<16x1504xf32, #tpu.memory_space<vmem>>, vector<16x12xf32>
    %c112_890 = arith.constant 112 : index
    %c120_891 = arith.constant 120 : index
    %583 = vector.load %arg15[%c112_890, %c120_891] : memref<128x144xf32, #tpu.memory_space<vmem>>, vector<16x12xf32>
    tpu.vector_store %arg15[%c112_890, %c120_891], %582 {strides = array<i32>} : memref<128x144xf32, #tpu.memory_space<vmem>>, vector<16x12xf32>,
    %c0_892 = arith.constant 0 : index
    %c1492 = arith.constant 1492 : index
    %584 = vector.load %arg14[%c0_892, %c1492] : memref<16x1504xf32, #tpu.memory_space<vmem>>, vector<16x12xf32>
    %c112_893 = arith.constant 112 : index
    %c132_894 = arith.constant 132 : index
    %585 = vector.load %arg15[%c112_893, %c132_894] : memref<128x144xf32, #tpu.memory_space<vmem>>, vector<16x12xf32>
    tpu.vector_store %arg15[%c112_893, %c132_894], %584 {strides = array<i32>} : memref<128x144xf32, #tpu.memory_space<vmem>>, vector<16x12xf32>,
    %c0_895 = arith.constant 0 : index
    %c0_896 = arith.constant 0 : index
    %586 = vector.load %arg5[%c0_895, %c0_896] : memref<128x128xf32, #tpu.memory_space<vmem>>, vector<128x128xf32>
    %c0_897 = arith.constant 0 : index
    %c0_898 = arith.constant 0 : index
    %587 = vector.load %arg15[%c0_897, %c0_898] : memref<128x144xf32, #tpu.memory_space<vmem>>, vector<128x144xf32>
    %cst_899 = arith.constant dense<0.000000e+00> : vector<128x144xf32>
    %588 = tpu.matmul %586, %587, %cst_899 {dimension_numbers = #tpu.dot_dimension_numbers<[1], [0], [0], [1], [0, 0, 1, 1], [], []>} : vector<128x128xf32>, vector<128x144xf32>, vector<128x144xf32> -> vector<128x144xf32>
    %589 = arith.truncf %588 : vector<128x144xf32> to vector<128x144xbf16>
    %c0_900 = arith.constant 0 : index
    %c0_901 = arith.constant 0 : index
    %590 = vector.load %arg16[%c0_900, %c0_901] : memref<128x144xbf16, #tpu.memory_space<vmem>>, vector<128x144xbf16>
    tpu.vector_store %arg16[%c0_900, %c0_901], %589 {strides = array<i32>} : memref<128x144xbf16, #tpu.memory_space<vmem>>, vector<128x144xbf16>,
    %cst_902 = arith.constant 0.000000e+00 : f32
    %591 = vector.broadcast %cst_902 : f32 to vector<8x512xf32>
    %c0_903 = arith.constant 0 : index
    %c0_904 = arith.constant 0 : index
    %592 = vector.load %arg7[%c0_903, %c0_904] : memref<1x512xf32, #tpu.memory_space<vmem>>, vector<1x512xf32>
    %593 = vector.broadcast %592 : vector<1x512xf32> to vector<8x512xf32>
    %594 = arith.addf %591, %593 : vector<8x512xf32>
    %c0_i32_905 = arith.constant 0 : i32
    %c0_i32_906 = arith.constant 0 : i32
    %c0_i32_907 = arith.constant 0 : i32
    %c0_i32_908 = arith.constant 0 : i32
    %595 = tpu.memref_slice %arg6[%c0_i32_906, %c0_i32_907, %c0_i32_908] : memref<16x144x512xbf16, #tpu.memory_space<any>> -> memref<4x144x512xbf16, #tpu.memory_space<any>>
    %c0_i32_909 = arith.constant 0 : i32
    %c0_i32_910 = arith.constant 0 : i32
    %c0_i32_911 = arith.constant 0 : i32
    %596 = tpu.memref_slice %arg17[%c0_i32_909, %c0_i32_910, %c0_i32_911] : memref<16x144x512xbf16, #tpu.memory_space<vmem>> -> memref<4x144x512xbf16, #tpu.memory_space<vmem>>
    %597 = tpu.memref_slice %arg18[%c0_i32_905] : memref<4x!tpu.dma_semaphore, #tpu.memory_space<semaphore_mem>> -> memref<1x!tpu.dma_semaphore, #tpu.memory_space<semaphore_mem>>
    %598 = tpu.memref_squeeze %597 : memref<1x!tpu.dma_semaphore, #tpu.memory_space<semaphore_mem>> -> memref<!tpu.dma_semaphore, #tpu.memory_space<semaphore_mem>>
    tpu.wait_dma2 semaphore(%598 : memref<!tpu.dma_semaphore, #tpu.memory_space<semaphore_mem>>) src(%595 : memref<4x144x512xbf16, #tpu.memory_space<any>>) dst(%596 : memref<4x144x512xbf16, #tpu.memory_space<vmem>>)
    %c0_912 = arith.constant 0 : index
    %c0_913 = arith.constant 0 : index
    %599 = vector.load %arg16[%c0_912, %c0_913] : memref<128x144xbf16, #tpu.memory_space<vmem>>, vector<8x144xbf16>
    %c0_914 = arith.constant 0 : index
    %c0_915 = arith.constant 0 : index
    %c0_916 = arith.constant 0 : index
    %600 = vector.load %arg17[%c0_914, %c0_915, %c0_916] : memref<16x144x512xbf16, #tpu.memory_space<vmem>>, vector<1x144x512xbf16>
    %601 = vector.shape_cast %600 : vector<1x144x512xbf16> to vector<144x512xbf16>
    %cst_917 = arith.constant dense<0.000000e+00> : vector<8x512xf32>
    %602 = tpu.matmul %599, %601, %cst_917 {dimension_numbers = #tpu.dot_dimension_numbers<[1], [0], [0], [1], [0, 0, 1, 1], [], []>} : vector<8x144xbf16>, vector<144x512xbf16>, vector<8x512xf32> -> vector<8x512xf32>
    %603 = arith.addf %594, %602 : vector<8x512xf32>
    %c8_918 = arith.constant 8 : index
    %c0_919 = arith.constant 0 : index
    %604 = vector.load %arg16[%c8_918, %c0_919] : memref<128x144xbf16, #tpu.memory_space<vmem>>, vector<8x144xbf16>
    %c1_920 = arith.constant 1 : index
    %c0_921 = arith.constant 0 : index
    %c0_922 = arith.constant 0 : index
    %605 = vector.load %arg17[%c1_920, %c0_921, %c0_922] : memref<16x144x512xbf16, #tpu.memory_space<vmem>>, vector<1x144x512xbf16>
    %606 = vector.shape_cast %605 : vector<1x144x512xbf16> to vector<144x512xbf16>
    %cst_923 = arith.constant dense<0.000000e+00> : vector<8x512xf32>
    %607 = tpu.matmul %604, %606, %cst_923 {dimension_numbers = #tpu.dot_dimension_numbers<[1], [0], [0], [1], [0, 0, 1, 1], [], []>} : vector<8x144xbf16>, vector<144x512xbf16>, vector<8x512xf32> -> vector<8x512xf32>
    %608 = arith.addf %603, %607 : vector<8x512xf32>
    %c16_924 = arith.constant 16 : index
    %c0_925 = arith.constant 0 : index
    %609 = vector.load %arg16[%c16_924, %c0_925] : memref<128x144xbf16, #tpu.memory_space<vmem>>, vector<8x144xbf16>
    %c2_926 = arith.constant 2 : index
    %c0_927 = arith.constant 0 : index
    %c0_928 = arith.constant 0 : index
    %610 = vector.load %arg17[%c2_926, %c0_927, %c0_928] : memref<16x144x512xbf16, #tpu.memory_space<vmem>>, vector<1x144x512xbf16>
    %611 = vector.shape_cast %610 : vector<1x144x512xbf16> to vector<144x512xbf16>
    %cst_929 = arith.constant dense<0.000000e+00> : vector<8x512xf32>
    %612 = tpu.matmul %609, %611, %cst_929 {dimension_numbers = #tpu.dot_dimension_numbers<[1], [0], [0], [1], [0, 0, 1, 1], [], []>} : vector<8x144xbf16>, vector<144x512xbf16>, vector<8x512xf32> -> vector<8x512xf32>
    %613 = arith.addf %608, %612 : vector<8x512xf32>
    %c24_930 = arith.constant 24 : index
    %c0_931 = arith.constant 0 : index
    %614 = vector.load %arg16[%c24_930, %c0_931] : memref<128x144xbf16, #tpu.memory_space<vmem>>, vector<8x144xbf16>
    %c3_932 = arith.constant 3 : index
    %c0_933 = arith.constant 0 : index
    %c0_934 = arith.constant 0 : index
    %615 = vector.load %arg17[%c3_932, %c0_933, %c0_934] : memref<16x144x512xbf16, #tpu.memory_space<vmem>>, vector<1x144x512xbf16>
    %616 = vector.shape_cast %615 : vector<1x144x512xbf16> to vector<144x512xbf16>
    %cst_935 = arith.constant dense<0.000000e+00> : vector<8x512xf32>
    %617 = tpu.matmul %614, %616, %cst_935 {dimension_numbers = #tpu.dot_dimension_numbers<[1], [0], [0], [1], [0, 0, 1, 1], [], []>} : vector<8x144xbf16>, vector<144x512xbf16>, vector<8x512xf32> -> vector<8x512xf32>
    %618 = arith.addf %613, %617 : vector<8x512xf32>
    %c1_i32_936 = arith.constant 1 : i32
    %c4_i32_937 = arith.constant 4 : i32
    %c0_i32_938 = arith.constant 0 : i32
    %c0_i32_939 = arith.constant 0 : i32
    %619 = tpu.memref_slice %arg6[%c4_i32_937, %c0_i32_938, %c0_i32_939] : memref<16x144x512xbf16, #tpu.memory_space<any>> -> memref<4x144x512xbf16, #tpu.memory_space<any>>
    %c4_i32_940 = arith.constant 4 : i32
    %c0_i32_941 = arith.constant 0 : i32
    %c0_i32_942 = arith.constant 0 : i32
    %620 = tpu.memref_slice %arg17[%c4_i32_940, %c0_i32_941, %c0_i32_942] : memref<16x144x512xbf16, #tpu.memory_space<vmem>> -> memref<4x144x512xbf16, #tpu.memory_space<vmem>>
    %621 = tpu.memref_slice %arg18[%c1_i32_936] : memref<4x!tpu.dma_semaphore, #tpu.memory_space<semaphore_mem>> -> memref<1x!tpu.dma_semaphore, #tpu.memory_space<semaphore_mem>>
    %622 = tpu.memref_squeeze %621 : memref<1x!tpu.dma_semaphore, #tpu.memory_space<semaphore_mem>> -> memref<!tpu.dma_semaphore, #tpu.memory_space<semaphore_mem>>
    tpu.wait_dma2 semaphore(%622 : memref<!tpu.dma_semaphore, #tpu.memory_space<semaphore_mem>>) src(%619 : memref<4x144x512xbf16, #tpu.memory_space<any>>) dst(%620 : memref<4x144x512xbf16, #tpu.memory_space<vmem>>)
    %c32_943 = arith.constant 32 : index
    %c0_944 = arith.constant 0 : index
    %623 = vector.load %arg16[%c32_943, %c0_944] : memref<128x144xbf16, #tpu.memory_space<vmem>>, vector<8x144xbf16>
    %c4_945 = arith.constant 4 : index
    %c0_946 = arith.constant 0 : index
    %c0_947 = arith.constant 0 : index
    %624 = vector.load %arg17[%c4_945, %c0_946, %c0_947] : memref<16x144x512xbf16, #tpu.memory_space<vmem>>, vector<1x144x512xbf16>
    %625 = vector.shape_cast %624 : vector<1x144x512xbf16> to vector<144x512xbf16>
    %cst_948 = arith.constant dense<0.000000e+00> : vector<8x512xf32>
    %626 = tpu.matmul %623, %625, %cst_948 {dimension_numbers = #tpu.dot_dimension_numbers<[1], [0], [0], [1], [0, 0, 1, 1], [], []>} : vector<8x144xbf16>, vector<144x512xbf16>, vector<8x512xf32> -> vector<8x512xf32>
    %627 = arith.addf %618, %626 : vector<8x512xf32>
    %c40_949 = arith.constant 40 : index
    %c0_950 = arith.constant 0 : index
    %628 = vector.load %arg16[%c40_949, %c0_950] : memref<128x144xbf16, #tpu.memory_space<vmem>>, vector<8x144xbf16>
    %c5_951 = arith.constant 5 : index
    %c0_952 = arith.constant 0 : index
    %c0_953 = arith.constant 0 : index
    %629 = vector.load %arg17[%c5_951, %c0_952, %c0_953] : memref<16x144x512xbf16, #tpu.memory_space<vmem>>, vector<1x144x512xbf16>
    %630 = vector.shape_cast %629 : vector<1x144x512xbf16> to vector<144x512xbf16>
    %cst_954 = arith.constant dense<0.000000e+00> : vector<8x512xf32>
    %631 = tpu.matmul %628, %630, %cst_954 {dimension_numbers = #tpu.dot_dimension_numbers<[1], [0], [0], [1], [0, 0, 1, 1], [], []>} : vector<8x144xbf16>, vector<144x512xbf16>, vector<8x512xf32> -> vector<8x512xf32>
    %632 = arith.addf %627, %631 : vector<8x512xf32>
    %c48_955 = arith.constant 48 : index
    %c0_956 = arith.constant 0 : index
    %633 = vector.load %arg16[%c48_955, %c0_956] : memref<128x144xbf16, #tpu.memory_space<vmem>>, vector<8x144xbf16>
    %c6_957 = arith.constant 6 : index
    %c0_958 = arith.constant 0 : index
    %c0_959 = arith.constant 0 : index
    %634 = vector.load %arg17[%c6_957, %c0_958, %c0_959] : memref<16x144x512xbf16, #tpu.memory_space<vmem>>, vector<1x144x512xbf16>
    %635 = vector.shape_cast %634 : vector<1x144x512xbf16> to vector<144x512xbf16>
    %cst_960 = arith.constant dense<0.000000e+00> : vector<8x512xf32>
    %636 = tpu.matmul %633, %635, %cst_960 {dimension_numbers = #tpu.dot_dimension_numbers<[1], [0], [0], [1], [0, 0, 1, 1], [], []>} : vector<8x144xbf16>, vector<144x512xbf16>, vector<8x512xf32> -> vector<8x512xf32>
    %637 = arith.addf %632, %636 : vector<8x512xf32>
    %c56_961 = arith.constant 56 : index
    %c0_962 = arith.constant 0 : index
    %638 = vector.load %arg16[%c56_961, %c0_962] : memref<128x144xbf16, #tpu.memory_space<vmem>>, vector<8x144xbf16>
    %c7_963 = arith.constant 7 : index
    %c0_964 = arith.constant 0 : index
    %c0_965 = arith.constant 0 : index
    %639 = vector.load %arg17[%c7_963, %c0_964, %c0_965] : memref<16x144x512xbf16, #tpu.memory_space<vmem>>, vector<1x144x512xbf16>
    %640 = vector.shape_cast %639 : vector<1x144x512xbf16> to vector<144x512xbf16>
    %cst_966 = arith.constant dense<0.000000e+00> : vector<8x512xf32>
    %641 = tpu.matmul %638, %640, %cst_966 {dimension_numbers = #tpu.dot_dimension_numbers<[1], [0], [0], [1], [0, 0, 1, 1], [], []>} : vector<8x144xbf16>, vector<144x512xbf16>, vector<8x512xf32> -> vector<8x512xf32>
    %642 = arith.addf %637, %641 : vector<8x512xf32>
    %c2_i32_967 = arith.constant 2 : i32
    %c8_i32_968 = arith.constant 8 : i32
    %c0_i32_969 = arith.constant 0 : i32
    %c0_i32_970 = arith.constant 0 : i32
    %643 = tpu.memref_slice %arg6[%c8_i32_968, %c0_i32_969, %c0_i32_970] : memref<16x144x512xbf16, #tpu.memory_space<any>> -> memref<4x144x512xbf16, #tpu.memory_space<any>>
    %c8_i32_971 = arith.constant 8 : i32
    %c0_i32_972 = arith.constant 0 : i32
    %c0_i32_973 = arith.constant 0 : i32
    %644 = tpu.memref_slice %arg17[%c8_i32_971, %c0_i32_972, %c0_i32_973] : memref<16x144x512xbf16, #tpu.memory_space<vmem>> -> memref<4x144x512xbf16, #tpu.memory_space<vmem>>
    %645 = tpu.memref_slice %arg18[%c2_i32_967] : memref<4x!tpu.dma_semaphore, #tpu.memory_space<semaphore_mem>> -> memref<1x!tpu.dma_semaphore, #tpu.memory_space<semaphore_mem>>
    %646 = tpu.memref_squeeze %645 : memref<1x!tpu.dma_semaphore, #tpu.memory_space<semaphore_mem>> -> memref<!tpu.dma_semaphore, #tpu.memory_space<semaphore_mem>>
    tpu.wait_dma2 semaphore(%646 : memref<!tpu.dma_semaphore, #tpu.memory_space<semaphore_mem>>) src(%643 : memref<4x144x512xbf16, #tpu.memory_space<any>>) dst(%644 : memref<4x144x512xbf16, #tpu.memory_space<vmem>>)
    %c64_974 = arith.constant 64 : index
    %c0_975 = arith.constant 0 : index
    %647 = vector.load %arg16[%c64_974, %c0_975] : memref<128x144xbf16, #tpu.memory_space<vmem>>, vector<8x144xbf16>
    %c8_976 = arith.constant 8 : index
    %c0_977 = arith.constant 0 : index
    %c0_978 = arith.constant 0 : index
    %648 = vector.load %arg17[%c8_976, %c0_977, %c0_978] : memref<16x144x512xbf16, #tpu.memory_space<vmem>>, vector<1x144x512xbf16>
    %649 = vector.shape_cast %648 : vector<1x144x512xbf16> to vector<144x512xbf16>
    %cst_979 = arith.constant dense<0.000000e+00> : vector<8x512xf32>
    %650 = tpu.matmul %647, %649, %cst_979 {dimension_numbers = #tpu.dot_dimension_numbers<[1], [0], [0], [1], [0, 0, 1, 1], [], []>} : vector<8x144xbf16>, vector<144x512xbf16>, vector<8x512xf32> -> vector<8x512xf32>
    %651 = arith.addf %642, %650 : vector<8x512xf32>
    %c72_980 = arith.constant 72 : index
    %c0_981 = arith.constant 0 : index
    %652 = vector.load %arg16[%c72_980, %c0_981] : memref<128x144xbf16, #tpu.memory_space<vmem>>, vector<8x144xbf16>
    %c9 = arith.constant 9 : index
    %c0_982 = arith.constant 0 : index
    %c0_983 = arith.constant 0 : index
    %653 = vector.load %arg17[%c9, %c0_982, %c0_983] : memref<16x144x512xbf16, #tpu.memory_space<vmem>>, vector<1x144x512xbf16>
    %654 = vector.shape_cast %653 : vector<1x144x512xbf16> to vector<144x512xbf16>
    %cst_984 = arith.constant dense<0.000000e+00> : vector<8x512xf32>
    %655 = tpu.matmul %652, %654, %cst_984 {dimension_numbers = #tpu.dot_dimension_numbers<[1], [0], [0], [1], [0, 0, 1, 1], [], []>} : vector<8x144xbf16>, vector<144x512xbf16>, vector<8x512xf32> -> vector<8x512xf32>
    %656 = arith.addf %651, %655 : vector<8x512xf32>
    %c80_985 = arith.constant 80 : index
    %c0_986 = arith.constant 0 : index
    %657 = vector.load %arg16[%c80_985, %c0_986] : memref<128x144xbf16, #tpu.memory_space<vmem>>, vector<8x144xbf16>
    %c10 = arith.constant 10 : index
    %c0_987 = arith.constant 0 : index
    %c0_988 = arith.constant 0 : index
    %658 = vector.load %arg17[%c10, %c0_987, %c0_988] : memref<16x144x512xbf16, #tpu.memory_space<vmem>>, vector<1x144x512xbf16>
    %659 = vector.shape_cast %658 : vector<1x144x512xbf16> to vector<144x512xbf16>
    %cst_989 = arith.constant dense<0.000000e+00> : vector<8x512xf32>
    %660 = tpu.matmul %657, %659, %cst_989 {dimension_numbers = #tpu.dot_dimension_numbers<[1], [0], [0], [1], [0, 0, 1, 1], [], []>} : vector<8x144xbf16>, vector<144x512xbf16>, vector<8x512xf32> -> vector<8x512xf32>
    %661 = arith.addf %656, %660 : vector<8x512xf32>
    %c88 = arith.constant 88 : index
    %c0_990 = arith.constant 0 : index
    %662 = vector.load %arg16[%c88, %c0_990] : memref<128x144xbf16, #tpu.memory_space<vmem>>, vector<8x144xbf16>
    %c11 = arith.constant 11 : index
    %c0_991 = arith.constant 0 : index
    %c0_992 = arith.constant 0 : index
    %663 = vector.load %arg17[%c11, %c0_991, %c0_992] : memref<16x144x512xbf16, #tpu.memory_space<vmem>>, vector<1x144x512xbf16>
    %664 = vector.shape_cast %663 : vector<1x144x512xbf16> to vector<144x512xbf16>
    %cst_993 = arith.constant dense<0.000000e+00> : vector<8x512xf32>
    %665 = tpu.matmul %662, %664, %cst_993 {dimension_numbers = #tpu.dot_dimension_numbers<[1], [0], [0], [1], [0, 0, 1, 1], [], []>} : vector<8x144xbf16>, vector<144x512xbf16>, vector<8x512xf32> -> vector<8x512xf32>
    %666 = arith.addf %661, %665 : vector<8x512xf32>
    %c3_i32_994 = arith.constant 3 : i32
    %c12_i32_995 = arith.constant 12 : i32
    %c0_i32_996 = arith.constant 0 : i32
    %c0_i32_997 = arith.constant 0 : i32
    %667 = tpu.memref_slice %arg6[%c12_i32_995, %c0_i32_996, %c0_i32_997] : memref<16x144x512xbf16, #tpu.memory_space<any>> -> memref<4x144x512xbf16, #tpu.memory_space<any>>
    %c12_i32_998 = arith.constant 12 : i32
    %c0_i32_999 = arith.constant 0 : i32
    %c0_i32_1000 = arith.constant 0 : i32
    %668 = tpu.memref_slice %arg17[%c12_i32_998, %c0_i32_999, %c0_i32_1000] : memref<16x144x512xbf16, #tpu.memory_space<vmem>> -> memref<4x144x512xbf16, #tpu.memory_space<vmem>>
    %669 = tpu.memref_slice %arg18[%c3_i32_994] : memref<4x!tpu.dma_semaphore, #tpu.memory_space<semaphore_mem>> -> memref<1x!tpu.dma_semaphore, #tpu.memory_space<semaphore_mem>>
    %670 = tpu.memref_squeeze %669 : memref<1x!tpu.dma_semaphore, #tpu.memory_space<semaphore_mem>> -> memref<!tpu.dma_semaphore, #tpu.memory_space<semaphore_mem>>
    tpu.wait_dma2 semaphore(%670 : memref<!tpu.dma_semaphore, #tpu.memory_space<semaphore_mem>>) src(%667 : memref<4x144x512xbf16, #tpu.memory_space<any>>) dst(%668 : memref<4x144x512xbf16, #tpu.memory_space<vmem>>)
    %c96_1001 = arith.constant 96 : index
    %c0_1002 = arith.constant 0 : index
    %671 = vector.load %arg16[%c96_1001, %c0_1002] : memref<128x144xbf16, #tpu.memory_space<vmem>>, vector<8x144xbf16>
    %c12_1003 = arith.constant 12 : index
    %c0_1004 = arith.constant 0 : index
    %c0_1005 = arith.constant 0 : index
    %672 = vector.load %arg17[%c12_1003, %c0_1004, %c0_1005] : memref<16x144x512xbf16, #tpu.memory_space<vmem>>, vector<1x144x512xbf16>
    %673 = vector.shape_cast %672 : vector<1x144x512xbf16> to vector<144x512xbf16>
    %cst_1006 = arith.constant dense<0.000000e+00> : vector<8x512xf32>
    %674 = tpu.matmul %671, %673, %cst_1006 {dimension_numbers = #tpu.dot_dimension_numbers<[1], [0], [0], [1], [0, 0, 1, 1], [], []>} : vector<8x144xbf16>, vector<144x512xbf16>, vector<8x512xf32> -> vector<8x512xf32>
    %675 = arith.addf %666, %674 : vector<8x512xf32>
    %c104 = arith.constant 104 : index
    %c0_1007 = arith.constant 0 : index
    %676 = vector.load %arg16[%c104, %c0_1007] : memref<128x144xbf16, #tpu.memory_space<vmem>>, vector<8x144xbf16>
    %c13 = arith.constant 13 : index
    %c0_1008 = arith.constant 0 : index
    %c0_1009 = arith.constant 0 : index
    %677 = vector.load %arg17[%c13, %c0_1008, %c0_1009] : memref<16x144x512xbf16, #tpu.memory_space<vmem>>, vector<1x144x512xbf16>
    %678 = vector.shape_cast %677 : vector<1x144x512xbf16> to vector<144x512xbf16>
    %cst_1010 = arith.constant dense<0.000000e+00> : vector<8x512xf32>
    %679 = tpu.matmul %676, %678, %cst_1010 {dimension_numbers = #tpu.dot_dimension_numbers<[1], [0], [0], [1], [0, 0, 1, 1], [], []>} : vector<8x144xbf16>, vector<144x512xbf16>, vector<8x512xf32> -> vector<8x512xf32>
    %680 = arith.addf %675, %679 : vector<8x512xf32>
    %c112_1011 = arith.constant 112 : index
    %c0_1012 = arith.constant 0 : index
    %681 = vector.load %arg16[%c112_1011, %c0_1012] : memref<128x144xbf16, #tpu.memory_space<vmem>>, vector<8x144xbf16>
    %c14 = arith.constant 14 : index
    %c0_1013 = arith.constant 0 : index
    %c0_1014 = arith.constant 0 : index
    %682 = vector.load %arg17[%c14, %c0_1013, %c0_1014] : memref<16x144x512xbf16, #tpu.memory_space<vmem>>, vector<1x144x512xbf16>
    %683 = vector.shape_cast %682 : vector<1x144x512xbf16> to vector<144x512xbf16>
    %cst_1015 = arith.constant dense<0.000000e+00> : vector<8x512xf32>
    %684 = tpu.matmul %681, %683, %cst_1015 {dimension_numbers = #tpu.dot_dimension_numbers<[1], [0], [0], [1], [0, 0, 1, 1], [], []>} : vector<8x144xbf16>, vector<144x512xbf16>, vector<8x512xf32> -> vector<8x512xf32>
    %685 = arith.addf %680, %684 : vector<8x512xf32>
    %c120_1016 = arith.constant 120 : index
    %c0_1017 = arith.constant 0 : index
    %686 = vector.load %arg16[%c120_1016, %c0_1017] : memref<128x144xbf16, #tpu.memory_space<vmem>>, vector<8x144xbf16>
    %c15 = arith.constant 15 : index
    %c0_1018 = arith.constant 0 : index
    %c0_1019 = arith.constant 0 : index
    %687 = vector.load %arg17[%c15, %c0_1018, %c0_1019] : memref<16x144x512xbf16, #tpu.memory_space<vmem>>, vector<1x144x512xbf16>
    %688 = vector.shape_cast %687 : vector<1x144x512xbf16> to vector<144x512xbf16>
    %cst_1020 = arith.constant dense<0.000000e+00> : vector<8x512xf32>
    %689 = tpu.matmul %686, %688, %cst_1020 {dimension_numbers = #tpu.dot_dimension_numbers<[1], [0], [0], [1], [0, 0, 1, 1], [], []>} : vector<8x144xbf16>, vector<144x512xbf16>, vector<8x512xf32> -> vector<8x512xf32>
    %690 = arith.addf %685, %689 : vector<8x512xf32>
    %cst_1021 = arith.constant 0.000000e+00 : f32
    %691 = vector.broadcast %cst_1021 : f32 to vector<8x512xf32>
    %692 = arith.maximumf %690, %691 : vector<8x512xf32>
    %c0_1022 = arith.constant 0 : index
    %c0_1023 = arith.constant 0 : index
    %693 = vector.load %arg8[%c0_1022, %c0_1023] : memref<4x512xf32, #tpu.memory_space<vmem>>, vector<4x512xf32>
    %cst_1024 = arith.constant dense<0.000000e+00> : vector<8x4xf32>
    %694 = tpu.matmul %692, %693, %cst_1024 {dimension_numbers = #tpu.dot_dimension_numbers<[1], [1], [0], [0], [0, 0, 1, 0], [], []>} : vector<8x512xf32>, vector<4x512xf32>, vector<8x4xf32> -> vector<8x4xf32>
    %c0_1025 = arith.constant 0 : index
    %c0_1026 = arith.constant 0 : index
    %695 = vector.load %arg9[%c0_1025, %c0_1026] : memref<1x4xf32, #tpu.memory_space<vmem>>, vector<1x4xf32>
    %696 = vector.broadcast %695 : vector<1x4xf32> to vector<8x4xf32>
    %697 = arith.addf %694, %696 : vector<8x4xf32>
    %c0_1027 = arith.constant 0 : index
    %c0_1028 = arith.constant 0 : index
    %698 = vector.load %arg10[%c0_1027, %c0_1028] : memref<8x4xf32, #tpu.memory_space<vmem>>, vector<8x4xf32>
    tpu.vector_store %arg10[%c0_1027, %c0_1028], %697 {strides = array<i32>} : memref<8x4xf32, #tpu.memory_space<vmem>>, vector<8x4xf32>,
    return
  }
}

</mosaic_0001>

<bundles_post_ra>
// kernel: forward.1
= control target key start
LH: loop header
LB: loop body
LE: loop exit
PB: predicated region body
PF: predicated region fallthrough
CT: control target
= control target key end

     0   :  { %15 = vsyncpa [#allocation11], 0  ;;  %s10927_s0 = inlined_call_operand.vmem [shape: f32[8,8,256], index: 0, kind: input, shape index: {}]   ;;  %s10928_s1 = inlined_call_operand.hbm [shape: f32[8,72], index: 1, kind: input, shape index: {}]   ;;  %s10929_s2 = inlined_call_operand.vmem [shape: f32[8,1], index: 2, kind: input, shape index: {}]   ;;  %s10930_s3 = inlined_call_operand.hbm [shape: f32[16,72], index: 3, kind: input, shape index: {}]   ;;  %s10931_s4 = inlined_call_operand.vmem [shape: f32[16,1], index: 4, kind: input, shape index: {}]   ;;  %s10932_s5 = inlined_call_operand.hbm [shape: f32[128,128], index: 5, kind: input, shape index: {}]   ;;  %s10933_s6 = inlined_call_operand.hbm [shape: bf16[16,144,512], index: 6, kind: input, shape index: {}]   ;;  %s10934_s7 = inlined_call_operand.hbm [shape: f32[1,512], index: 7, kind: input, shape index: {}]   ;;  %s10935_s8 = inlined_call_operand.hbm [shape: f32[4,512], index: 8, kind: input, shape index: {}]   ;;  %s10936_s9 = inlined_call_operand.hbm [shape: f32[1,4], index: 9, kind: input, shape index: {}]   ;;  %s10937_s10 = inlined_call_operand.vmem [shape: f32[8,4], index: 10, kind: output, shape index: {}]  }
   0x1   :  { %16 = vsyncpa [#allocation13], 0 }
   0x2   :  { %17 = vsyncpa [#allocation16], 0 }
   0x3   :  { %18 = vsyncpa [#allocation19], 0  ;;  %s8342_s13 = smov [#allocation12]   ;;  %s8194_s17 = scalar_lea.hbm %s10930_s3, 256 }
   0x4   :  { %s38_s14 = sshll.u32 %s8342_s13, 4  ;;  %p8195_p0 = scmp.ne.s32.totalorder %s10930_s3, %s8194_s17  ;;  %s39_s14 = int_to_ptr.vmem [resolvable:$true] %s38_s14 }
   0x5   :  { %p8198_p1 = scmp.lt.u32.totalorder %s8194_s17, %s10930_s3 }
   0x7   :  { %p8200_p2 = pnand %p8198_p1, %p8195_p0 }
   0x9   :  { %8203 = shalt.err (!%p8200_p2)
}
   0xa   :  { %s8204_s22 = scalar_lea.vmem %s39_s14, 256  ;;  %p8209_p4 = scmp.lt.s32.totalorder %s39_s14, %s39_s14 }
   0xb   :  { %p8205_p3 = scmp.ne.s32.totalorder %s39_s14, %s8204_s22  ;;  %p8210_p5 = scmp.lt.s32.totalorder %s8204_s22, %s8204_s22 }
   0xd   :  { %p8211_p6 = por %p8210_p5, %p8209_p4 }
   0xf   :  { %p8212_p7 = pnand %p8211_p6, %p8205_p3 }
  0x11   :  { %8215 = shalt.err (!%p8212_p7)
}
  0x12   :  { %s8343_s23 = smov 128   ;;  %s10998_s24 = smov 8  }
  0x13   :  { %44 = dma.hbm_to_vmem [thread:$0]  %s10930_s3, 256, %s39_s14, [#allocation13], %s8343_s23, %s8343_s23, %s10998_s24  }
  0x14   :  { %s8345_s27 = smov [#allocation15]   ;;  %s8346_s29 = smov [#allocation10]  }
  0x15   :  { %s65_s28 = sshll.u32 %s8345_s27, 4  ;;  %s27_s30 = sshll.u32 %s8346_s29, 4  ;;  %s66_s28 = int_to_ptr.vmem [resolvable:$true] %s65_s28  ;;  %s28_s30 = int_to_ptr.vmem [resolvable:$true] %s27_s30 }
  0x16   :  { %s8216_s13 = scalar_lea.hbm %s10934_s7, 64 }
  0x17   :  { %p8217_p8 = scmp.ne.s32.totalorder %s10934_s7, %s8216_s13  ;;  %p8220_p9 = scmp.lt.u32.totalorder %s8216_s13, %s10934_s7 }
  0x19   :  { %p8222_p10 = pnand %p8220_p9, %p8217_p8 }
  0x1b   :  { %8225 = shalt.err (!%p8222_p10)
}
  0x1c   :  { %s8226_s3 = scalar_lea.vmem %s66_s28, 64  ;;  %p8231_p12 = scmp.lt.s32.totalorder %s66_s28, %s66_s28 }
  0x1d   :  { %p8227_p11 = scmp.ne.s32.totalorder %s66_s28, %s8226_s3  ;;  %p8232_p13 = scmp.lt.s32.totalorder %s8226_s3, %s8226_s3 }
  0x1f   :  { %p8233_p0 = por %p8232_p13, %p8231_p12 }
  0x21   :  { %p8234_p1 = pnand %p8233_p0, %p8227_p11 }
  0x23   :  { %8237 = shalt.err (!%p8234_p1)
}
  0x24   :  { %68 = dma.hbm_to_vmem [thread:$0]  %s10934_s7, 64, %s66_s28, [#allocation16]  }
  0x25   :  { %s8238_s22 = scalar_lea.hbm %s10928_s1, 128 }
  0x26   :  { %p8239_p2 = scmp.ne.s32.totalorder %s10928_s1, %s8238_s22  ;;  %p8242_p3 = scmp.lt.u32.totalorder %s8238_s22, %s10928_s1 }
  0x28   :  { %p8244_p4 = pnand %p8242_p3, %p8239_p2 }
  0x2a   :  { %8247 = shalt.err (!%p8244_p4)
}
  0x2b   :  { %s8248_s11 = scalar_lea.vmem %s28_s30, 128  ;;  %p8253_p6 = scmp.lt.s32.totalorder %s28_s30, %s28_s30 }
  0x2c   :  { %p8249_p5 = scmp.ne.s32.totalorder %s28_s30, %s8248_s11  ;;  %p8254_p7 = scmp.lt.s32.totalorder %s8248_s11, %s8248_s11 }
  0x2e   :  { %p8255_p8 = por %p8254_p7, %p8253_p6 }
  0x30   :  { %p8256_p9 = pnand %p8255_p8, %p8249_p5 }
  0x32   :  { %8259 = shalt.err (!%p8256_p9)
}
  0x33   :  { %30 = dma.hbm_to_vmem [thread:$0]  %s10928_s1, 128, %s28_s30, [#allocation11]  }
  0x34   :  { %s8347_s12 = smov [#allocation14]   ;;  %s8348_s15 = smov [#allocation17]  }
  0x35   :  { %s52_s13 = sshll.u32 %s8347_s12, 4  ;;  %s75_s16 = sshll.u32 %s8348_s15, 4  ;;  %s53_s13 = int_to_ptr.vmem [resolvable:$true] %s52_s13  ;;  %s76_s16 = int_to_ptr.vmem [resolvable:$true] %s75_s16 }
  0x36   :  { %s8260_s3 = scalar_lea.hbm %s10932_s5, 2048 }
  0x37   :  { %p8261_p10 = scmp.ne.s32.totalorder %s10932_s5, %s8260_s3  ;;  %p8264_p11 = scmp.lt.u32.totalorder %s8260_s3, %s10932_s5 }
  0x39   :  { %p8266_p12 = pnand %p8264_p11, %p8261_p10 }
  0x3b   :  { %8269 = shalt.err (!%p8266_p12)
}
  0x3c   :  { %s8270_s1 = scalar_lea.vmem %s53_s13, 2048  ;;  %p8275_p0 = scmp.lt.s32.totalorder %s53_s13, %s53_s13 }
  0x3d   :  { %p8271_p13 = scmp.ne.s32.totalorder %s53_s13, %s8270_s1  ;;  %p8276_p1 = scmp.lt.s32.totalorder %s8270_s1, %s8270_s1 }
  0x3f   :  { %p8277_p2 = por %p8276_p1, %p8275_p0 }
  0x41   :  { %p8278_p3 = pnand %p8277_p2, %p8271_p13 }
  0x43   :  { %8281 = shalt.err (!%p8278_p3)
}
  0x44   :  { %58 = dma.hbm_to_vmem [thread:$0]  %s10932_s5, 2048, %s53_s13, [#allocation13], %s8343_s23, %s8343_s23, %s10998_s24  }
  0x45   :  { %s8282_s27 = scalar_lea.hbm %s10935_s8, 256 }
  0x46   :  { %p8283_p4 = scmp.ne.s32.totalorder %s10935_s8, %s8282_s27  ;;  %p8286_p5 = scmp.lt.u32.totalorder %s8282_s27, %s10935_s8 }
  0x48   :  { %p8288_p6 = pnand %p8286_p5, %p8283_p4 }
  0x4a   :  { %8291 = shalt.err (!%p8288_p6)
}
  0x4b   :  { %s8292_s12 = scalar_lea.vmem %s76_s16, 256  ;;  %p8297_p8 = scmp.lt.s32.totalorder %s76_s16, %s76_s16 }
  0x4c   :  { %p8293_p7 = scmp.ne.s32.totalorder %s76_s16, %s8292_s12  ;;  %p8298_p9 = scmp.lt.s32.totalorder %s8292_s12, %s8292_s12 }
  0x4e   :  { %p8299_p10 = por %p8298_p9, %p8297_p8 }
  0x50   :  { %p8300_p11 = pnand %p8299_p10, %p8293_p7 }
  0x52   :  { %8303 = shalt.err (!%p8300_p11)
}
  0x53   :  { %78 = dma.hbm_to_vmem [thread:$0]  %s10935_s8, 256, %s76_s16, [#allocation16]  }
  0x54   :  { %s8349_s15 = smov [#allocation18]   ;;  %s8304_s14 = scalar_lea.hbm %s10936_s9, 16 }
  0x55   :  { %s85_s17 = sshll.u32 %s8349_s15, 4  ;;  %p8305_p12 = scmp.ne.s32.totalorder %s10936_s9, %s8304_s14  ;;  %s86_s17 = int_to_ptr.vmem [resolvable:$true] %s85_s17 }
  0x56   :  { %p8308_p13 = scmp.lt.u32.totalorder %s8304_s14, %s10936_s9 }
  0x58   :  { %p8310_p0 = pnand %p8308_p13, %p8305_p12 }
  0x5a   :  { %8313 = shalt.err (!%p8310_p0)
}
  0x5b   :  { %s8314_s30 = scalar_lea.vmem %s86_s17, 16  ;;  %s8318_s8 = scalar_lea.vmem %s86_s17, 32 }
  0x5c   :  { %p8315_p1 = scmp.ne.s32.totalorder %s86_s17, %s8314_s30  ;;  %p8319_p2 = scmp.lt.s32.totalorder %s86_s17, %s86_s17 }
  0x5d   :  { %p8320_p3 = scmp.lt.s32.totalorder %s8318_s8, %s8314_s30 }
  0x5f   :  { %p8321_p4 = por %p8320_p3, %p8319_p2 }
  0x61   :  { %p8322_p5 = pnand %p8321_p4, %p8315_p1 }
  0x63   :  { %8325 = shalt.err (!%p8322_p5)
}
  0x64   :  { %88 = dma.hbm_to_vmem [thread:$0]  %s10936_s9, 16, %s86_s17, [#allocation19]  }
  0x65   :  { %8326 = dma.done.wait [#allocation11], 128  }
  0x66   :  { %8327 = vsyncadd [#allocation11], 4294967168 }
  0x67   :  { %8328 = dma.done.wait [#allocation13], 2304  }
  0x68   :  { %8329 = vsyncadd [#allocation13], 4294964992 }
  0x69   :  { %8330 = dma.done.wait [#allocation16], 320  }
  0x6a   :  { %8331 = vsyncadd [#allocation16], 4294966976 }
  0x6b   :  { %8332 = dma.done.wait [#allocation19], 16  }
  0x6c   :  { %8333 = vsyncadd [#allocation19], 4294967280  ;;  %s112_s25 = sld [smem:[#allocation0]]   ;;  %s8350_s26 = smov 512   ;;  %v5222_v0 = vlaneseq  ;;  %vm11014_vm0 = vcmask 769024   ;;  %v8383_v16 = vmov 0.0  }
  0x6d   :  { %124 = sst [smem:[#allocation21]] %s8350_s26  ;;  %s10938_s27 = smov 4   ;;  %1539 = vmatprep.mubr.f32.mxu1 %v8383_v16  ;;  %1681 = vmatprep.mubr.f32.mxu0 %v8383_v16  ;;  %vm11065_vm1 = vcmask 916480   ;;  %vm383_vm2 = vcmask 1048304   ;;  %vm267_vm3 = vcmask 1039360   ;;  %vm281_vm4 = vcmask 1031168  }
  0x6e   :  { %126 = sst [smem:[#allocation21 + $0x1]] %s8350_s26  ;;  %s10940_s29 = smov 64   ;;  %v5223_v1 = vshrl.u32 %v5222_v0, 7  ;;  %vm323_vm5 = vcmask 900096   ;;  %vm309_vm6 = vcmask 908288   ;;  %vm11018_vm7 = vcmask 777216  }
  0x6f   :  { %128 = sst [smem:[#allocation21 + $0x2]] %s10938_s27  ;;  %s8353_s9 = smov [#allocation8]   ;;  %vm337_vm8 = vcmask 785408   ;;  %v8403_v63 = vmov 0   ;;  %vm386_vm9 = vcmask 490496   ;;  %vm10980_vm10 = vcmask 760832  }
  0x70   :  { %130 = sst [smem:[#allocation21 + $0x3]] %s10940_s29  ;;  %s120_s11 = sshll.u32 %s8353_s9, 4  ;;  %v5224_v2 = vsub.s32 0, %v5223_v1  ;;  %v5228_v3 = vsub.s32 1, %v5223_v1  ;;  %v5232_v4 = vsub.s32 2, %v5223_v1  ;;  %v5236_v5 = vsub.s32 3, %v5223_v1  ;;  %8187 = vset.pattern.permute.xlu0 %v8403_v63  ;;  %8188 = vset.pattern.permute.xlu1 %v8403_v63  ;;  %s121_s11 = int_to_ptr.vmem [resolvable:$true] %s120_s11 }
  0x71   :  { %132 = sst [smem:[#allocation21 + $0x4]] %s8343_s23  ;;  %s11023_s7 = smov 2   ;;  %vm11035_vm11 = vcmask 1048032   ;;  %vm10977_vm12 = vcmask 752640   ;;  %vm11034_vm13 = vcmask 211968   ;;  %vm10974_vm14 = vcmask 637952  }
  0x72   :  { %134 = sst [smem:[#allocation21 + $0x5]] %s11023_s7  ;;  %s7536_s28 = sshll.u32 %s112_s25, 26  ;;  %vm1471_vm15 = vcmask 588800  }
  0x73   :  { %138 = sst [smem:[#allocation21 + $0x7]] %s10940_s29  ;;  %s8580_s12 = sadd.s32 134217728, %s7536_s28 }
  0x74   :  { %140 = sst [smem:[#allocation21 + $0x8]] %s10938_s27  ;;  %s8355_s5 = smov 256  }
  0x75   :  { %136 = sst [smem:[#allocation21 + $0x6]] %s8355_s5  ;;  %s8356_s13 = smov [#allocation9]  }
  0x76   :  { %s8357_s15 = smov [#allocation20]   ;;  %s8358_s3 = smov [#allocation8 + $0x480]  }
  0x77   :  { %142 = dma.general %s10933_s6, 18432, %s121_s11, %s8356_s13, %s8357_s15, [#allocation21], %s8580_s12, 0  }
  0x78   :  { %161 = sst [smem:[#allocation23]] %s8350_s26  ;;  %s157_s14 = sshll.u32 %s8358_s3, 4  ;;  %s158_s14 = int_to_ptr.vmem [resolvable:$true] %s157_s14 }
  0x79   :  { %163 = sst [smem:[#allocation23 + $0x1]] %s8350_s26  ;;  %s143_s21 = scalar_lea.hbm %s10933_s6, 18432 }
  0x7a   :  { %165 = sst [smem:[#allocation23 + $0x2]] %s10938_s27  ;;  %s8359_s1 = smov [#allocation9 + $0x1]  }
  0x7b   :  { %167 = sst [smem:[#allocation23 + $0x3]] %s10940_s29  ;;  %s8360_s30 = smov [#allocation22]  }
  0x7c   :  { %169 = sst [smem:[#allocation23 + $0x4]] %s8343_s23  ;;  %s8361_s8 = smov [#allocation8 + $0x900]  }
  0x7d   :  { %171 = sst [smem:[#allocation23 + $0x5]] %s11023_s7  ;;  %s194_s16 = sshll.u32 %s8361_s8, 4  ;;  %s195_s16 = int_to_ptr.vmem [resolvable:$true] %s194_s16 }
  0x7e   :  { %173 = sst [smem:[#allocation23 + $0x6]] %s8355_s5  ;;  %s180_s9 = scalar_lea.hbm %s10933_s6, 36864 }
  0x7f   :  { %175 = sst [smem:[#allocation23 + $0x7]] %s10940_s29  ;;  %s8362_s11 = smov [#allocation9 + $0x2]  }
  0x80   :  { %177 = sst [smem:[#allocation23 + $0x8]] %s10938_s27  ;;  %s8363_s28 = smov [#allocation24]  }
  0x81   :  { %179 = dma.general %s143_s21, 18432, %s158_s14, %s8359_s1, %s8360_s30, [#allocation23], %s8580_s12, 0  }
  0x82   :  { %198 = sst [smem:[#allocation25]] %s8350_s26  ;;  %s8364_s13 = smov [#allocation8 + $0xd80]  }
  0x83   :  { %200 = sst [smem:[#allocation25 + $0x1]] %s8350_s26  ;;  %s231_s15 = sshll.u32 %s8364_s13, 4  ;;  %s232_s15 = int_to_ptr.vmem [resolvable:$true] %s231_s15 }
  0x84   :  { %202 = sst [smem:[#allocation25 + $0x2]] %s10938_s27  ;;  %s217_s3 = scalar_lea.hbm %s10933_s6, 55296 }
  0x85   :  { %204 = sst [smem:[#allocation25 + $0x3]] %s10940_s29  ;;  %s8366_s14 = smov [#allocation26]  }
  0x86   :  { %206 = sst [smem:[#allocation25 + $0x4]] %s8343_s23  ;;  %s8368_s1 = smov 127  }
  0x87   :  { %208 = sst [smem:[#allocation25 + $0x5]] %s11023_s7  ;;  %s8369_s30 = smov 93  }
  0x88   :  { %210 = sst [smem:[#allocation25 + $0x6]] %s8355_s5  ;;  %s8370_s8 = smov 112  }
  0x89   :  { %212 = sst [smem:[#allocation25 + $0x7]] %s10940_s29  ;;  %s8372_s22 = smov 78  }
  0x8a   :  { %214 = sst [smem:[#allocation25 + $0x8]] %s10938_s27  ;;  %s8373_s25 = smov 92  }
  0x8b   :  { %216 = dma.general %s180_s9, 18432, %s195_s16, %s8362_s11, %s8363_s28, [#allocation25], %s8580_s12, 0  }
  0x8c   :  { %235 = sst [smem:[#allocation27]] %s8350_s26  ;;  %s8371_s16 = smov 126  }
  0x8d   :  { %237 = sst [smem:[#allocation27 + $0x1]] %s8350_s26  ;;  %s8365_s26 = smov [#allocation9 + $0x3]  }
  0x8e   :  { %239 = sst [smem:[#allocation27 + $0x2]] %s10938_s27  ;;  %s8374_s9 = smov 110  }
  0x8f   :  { %241 = sst [smem:[#allocation27 + $0x3]] %s10940_s29  ;;  %s8375_s11 = smov 111  }
  0x90   :  { %243 = sst [smem:[#allocation27 + $0x4]] %s8343_s23  ;;  %s8376_s28 = smov 76  }
  0x91   :  { %245 = sst [smem:[#allocation27 + $0x5]] %s11023_s7  ;;  %s8377_s13 = smov 77  }
  0x92   :  { %247 = sst [smem:[#allocation27 + $0x6]] %s8355_s5  ;;  %s8379_s17 = smov 96  }
  0x93   :  { %249 = sst [smem:[#allocation27 + $0x7]] %s10940_s29  ;;  %s10954_s18 = smov 61  }
  0x94   :  { %251 = sst [smem:[#allocation27 + $0x8]] %s10938_s27  ;;  %s8382_s19 = smov 60  }
  0x95   :  { %253 = dma.general %s217_s3, 18432, %s232_s15, %s8365_s26, %s8366_s14, [#allocation27], %s8580_s12, 0  }
  0x96   :  { %v5220_v6 = vld [vmem:[#allocation15] sm:$0xf]  ;;  %v7544_v7 = vld [vmem:[%s10927_s0 + $0x10] sm:$0xff]  ;;  %v260_v8 = vld [vmem:[%s10927_s0 + $0x8] sm:$0xff]  ;;  %s8367_s12 = smov 94   ;;  %s8378_s15 = smov 95  }
  0x97   :  { %v8633_v9 = vrot.slane %v5220_v6, %v5224_v2  ;;  %v8635_v10 = vrot.slane %v5220_v6, %v5228_v3  ;;  %v8637_v11 = vrot.slane %v5220_v6, %v5232_v4  ;;  %v8639_v12 = vrot.slane %v5220_v6, %v5236_v5  ;;  %375 = vrot.lane.b32.xlu1 %v7544_v7, %s8367_s12  ;;  %v8645_v13 = vld [vmem:[%s10927_s0] sm:$0xff]  ;;  %s10948_s3 = smov 62   ;;  %v8679_v14 = vld [vmem:[%s10927_s0 + $0x18] sm:$0xff]  ;;  %s10946_s5 = smov 59   ;;  %v8705_v17 = vld [vmem:[%s10927_s0 + $0x28] sm:$0xff] }
  0x98   :  { %258 = vst.msk [vmem:[#allocation2 + $0x8] sm:$0xff] %vm11014_vm0, %v260_v8  ;;  %265 = vrot.lane.b32.xlu0 %v260_v8, %s8368_s1  ;;  %v8691_v15 = vld [vmem:[%s10927_s0 + $0x20] sm:$0xff]  ;;  %s10944_s26 = smov 58   ;;  %v8718_v18 = vld [vmem:[%s10927_s0 + $0x30] sm:$0xff]  ;;  %s8386_s23 = smov 26   ;;  %v8757_v19 = vld [vmem:[%s10927_s0 + $0x78] sm:$0xff] }
  0x99   :  { %s10942_s20 = smov 44   ;;  %s8388_s21 = smov 25   ;;  %1296 = vst.msk [vmem:[#allocation2 + $0x298] sm:$0xff] %vm11065_vm1, %v8757_v19  ;;  %v8774_v20 = vld [vmem:[%s10927_s0 + $0x38] sm:$0xff]  ;;  %v8801_v26 = vld [vmem:[%s10927_s0 + $0x48] sm:$0xff]  ;;  %v8806_v28 = vld [vmem:[%s10927_s0 + $0x40] sm:$0xff] }
  0x9a   :  { %s10950_s14 = smov 43   ;;  %s8390_s6 = smov 24   ;;  %v8866_v54 = vld [vmem:[%s10927_s0 + $0x58] sm:$0xff]  ;;  %v8871_v56 = vld [vmem:[%s10927_s0 + $0x50] sm:$0xff] }
  0x9b   :  { %392 = vrot.lane.b32.xlu1 %v7544_v7, %s8369_s30  ;;  %s10952_s27 = smov 42   ;;  %s8392_s29 = smov 10  }
  0x9c   :  { %263 = vrot.lane.b32.xlu0 %v8645_v13, %s8368_s1 }
  0x9f   :  { %293 = vrot.lane.b32.xlu1 %v260_v8, %s8370_s8 }
  0xa0   :  { %279 = vrot.lane.b32.xlu0 %v260_v8, %s8371_s16 }
  0xa3   :  { %291 = vrot.lane.b32.xlu1 %v8645_v13, %s8370_s8 }
  0xa4   :  { %277 = vrot.lane.b32.xlu0 %v8645_v13, %s8371_s16 }
  0xa7   :  { %424 = vrot.lane.b32.xlu1 %v7544_v7, %s8372_s22 }
  0xa8   :  { %408 = vrot.lane.b32.xlu0 %v7544_v7, %s8373_s25 }
  0xab   :  { %321 = vrot.lane.b32.xlu1 %v260_v8, %s8374_s9 }
  0xac   :  { %307 = vrot.lane.b32.xlu0 %v260_v8, %s8375_s11 }
  0xaf   :  { %319 = vrot.lane.b32.xlu1 %v8645_v13, %s8374_s9 }
  0xb0   :  { %305 = vrot.lane.b32.xlu0 %v8645_v13, %s8375_s11 }
  0xb3   :  { %456 = vrot.lane.b32.xlu1 %v7544_v7, %s8376_s28 }
  0xb4   :  { %440 = vrot.lane.b32.xlu0 %v7544_v7, %s8377_s13 }
  0xb7   :  { %349 = vrot.lane.b32.xlu1 %v260_v8, %s8378_s15 }
  0xb8   :  { %335 = vrot.lane.b32.xlu0 %v260_v8, %s8379_s17 }
  0xbb   :  { %347 = vrot.lane.b32.xlu1 %v8645_v13, %s8378_s15 }
  0xbc   :  { %333 = vrot.lane.b32.xlu0 %v8645_v13, %s8379_s17 }
  0xbf   :  { %488 = vrot.lane.b32.xlu1 %v7544_v7, %s10954_s18 }
  0xc0   :  { %472 = vrot.lane.b32.xlu0 %v7544_v7, %s10948_s3 }
  0xc3   :  { %377 = vrot.lane.b32.xlu1 %v8679_v14, %s8367_s12 }
  0xc4   :  { %363 = vrot.lane.b32.xlu0 %v260_v8, %s8367_s12 }
  0xc7   :  { %361 = vrot.lane.b32.xlu1 %v8645_v13, %s8367_s12 }
  0xc8   :  { %394 = vrot.lane.b32.xlu0 %v8679_v14, %s8369_s30 }
  0xcb   :  { %520 = vrot.lane.b32.xlu1 %v8691_v15, %s8382_s19 }
  0xcc   :  { %504 = vrot.lane.b32.xlu0 %v7544_v7, %s8382_s19 }
  0xcf   :  { %410 = vrot.lane.b32.xlu1 %v8679_v14, %s8373_s25 }
  0xd0   :  { %537 = vrot.lane.b32.xlu0 %v8691_v15, %s10946_s5 }
  0xd3   :  { %522 = vrot.lane.b32.xlu1 %v8705_v17, %s8382_s19 }
  0xd4   :  { %426 = vrot.lane.b32.xlu0 %v8679_v14, %s8372_s22 }
  0xd7   :  { %553 = vrot.lane.b32.xlu1 %v8691_v15, %s10944_s26 }
  0xd8   :  { %539 = vrot.lane.b32.xlu0 %v8705_v17, %s10946_s5  ;;  %s10972_s5 = smov 84  }
  0xdb   :  { %665 = vrot.lane.b32.xlu1 %v8718_v18, %s8386_s23 }
  0xdc   :  { %569 = vrot.lane.b32.xlu0 %v8691_v15, %s10942_s20 }
  0xdf   :  { %442 = vrot.lane.b32.xlu1 %v8679_v14, %s8377_s13 }
  0xe0   :  { %680 = vrot.lane.b32.xlu0 %v8718_v18, %s8388_s21 }
  0xe3   :  { %555 = vrot.lane.b32.xlu1 %v8705_v17, %s10944_s26  ;;  %s8394_s26 = smov 9  }
  0xe4   :  { %458 = vrot.lane.b32.xlu0 %v8679_v14, %s8376_s28 }
  0xe7   :  { %585 = vrot.lane.b32.xlu1 %v8691_v15, %s10950_s14 }
  0xe8   :  { %571 = vrot.lane.b32.xlu0 %v8705_v17, %s10942_s20  ;;  %s8393_s20 = smov 28  }
  0xeb   :  { %694 = vrot.lane.b32.xlu1 %v8718_v18, %s8390_s6 }
  0xec   :  { %601 = vrot.lane.b32.xlu0 %v8691_v15, %s10952_s27 }
  0xef   :  { %474 = vrot.lane.b32.xlu1 %v8679_v14, %s10948_s3  ;;  %s10964_s3 = smov 104  }
  0xf0   :  { %708 = vrot.lane.b32.xlu0 %v8718_v18, %s8392_s29 }
  0xf3   :  { %587 = vrot.lane.b32.xlu1 %v8705_v17, %s10950_s14  ;;  %s10960_s14 = smov 27  }
  0xf4   :  { %490 = vrot.lane.b32.xlu0 %v8679_v14, %s10954_s18  ;;  %s10958_s18 = smov 121  }
  0xf7   :  { %617 = vrot.lane.b32.xlu1 %v8691_v15, %s8393_s20 }
  0xf8   :  { %603 = vrot.lane.b32.xlu0 %v8705_v17, %s10952_s27  ;;  %s10956_s27 = smov 122  }
  0xfb   :  { %722 = vrot.lane.b32.xlu1 %v8718_v18, %s8394_s26 }
  0xfc   :  { %633 = vrot.lane.b32.xlu0 %v8691_v15, %s10960_s14 }
  0xff   :  { %619 = vrot.lane.b32.xlu1 %v8705_v17, %s8393_s20 }
 0x100   :  { %736 = vrot.lane.b32.xlu0 %v8718_v18, %s10998_s24 }
 0x103   :  { %750 = vrot.lane.b32.xlu1 %v8718_v18, %s10956_s27 }
 0x104   :  { %635 = vrot.lane.b32.xlu0 %v8705_v17, %s10960_s14  ;;  %s10968_s14 = smov 120  }
 0x107   :  { %764 = vrot.lane.b32.xlu1 %v8718_v18, %s10958_s18 }
 0x108   :  { %752 = vrot.lane.b32.xlu0 %v8774_v20, %s10956_s27  ;;  %s10966_s27 = smov 119  }
 0x109   :  { %v8780_v21 = vpop.permute.xlu1 %375 }
 0x10a   :  { %384 = vst.msk [vmem:[#allocation2 + $0x8] sm:$0xff] %vm383_vm2, %v8780_v21  ;;  %v266_v22 = vpop.permute.xlu0 %265 }
 0x10b   :  { %272 = vst.msk [vmem:[#allocation2 + $0x78] sm:$0xff] %vm11014_vm0, %v266_v22  ;;  %506 = vrot.lane.b32.xlu1 %v8679_v14, %s8382_s19 }
 0x10c   :  { %766 = vrot.lane.b32.xlu0 %v8774_v20, %s10958_s18  ;;  %s10962_s18 = smov 118  }
 0x10d   :  { %v8789_v23 = vpop.permute.xlu1 %392 }
 0x10e   :  { %401 = vst.msk [vmem:[#allocation2 + $0x78] sm:$0xff] %vm383_vm2, %v8789_v23  ;;  %v264_v24 = vpop.permute.xlu0 %263 }
 0x10f   :  { %v268_v25 = vsel %vm267_vm3, %v264_v24, %v266_v22  ;;  %682 = vrot.lane.b32.xlu1 %v8774_v20, %s8388_s21 }
 0x110   :  { %667 = vrot.lane.b32.xlu0 %v8774_v20, %s8386_s23  ;;  %v7728_v37 = vpack.c.bf16 %v268_v25, %v8645_v13 }
 0x111   :  { %v294_v27 = vpop.permute.xlu1 %293  ;;  %v1340_v31 = vld [vmem:[#allocation2 + $0x8] sm:$0xff] }
 0x112   :  { %300 = vst.msk [vmem:[#allocation2 + $0x158] sm:$0xff] %vm11014_vm0, %v294_v27  ;;  %v280_v29 = vpop.permute.xlu0 %279 }
 0x113   :  { %286 = vst.msk [vmem:[#allocation2 + $0xe8] sm:$0xff] %vm11014_vm0, %v280_v29  ;;  %794 = vrot.lane.b32.xlu1 %v8801_v26, %s10968_s14 }
 0x114   :  { %792 = vrot.lane.b32.xlu0 %v8806_v28, %s10968_s14 }
 0x115   :  { %v292_v30 = vpop.permute.xlu1 %291  ;;  %v1354_v32 = vld [vmem:[#allocation2 + $0x78] sm:$0xff] }
 0x116   :  { %v296_v33 = vsel %vm11065_vm1, %v292_v30, %v294_v27  ;;  %v278_v34 = vpop.permute.xlu0 %277  ;;  %v7726_v35 = vpack.c.bf16 %v1354_v32, %v1340_v31  ;;  %v8932_v31 = vld [vmem:[#allocation10] sm:$0xff] }
 0x117   :  { %v282_v36 = vsel %vm281_vm4, %v278_v34, %v280_v29  ;;  %811 = vrot.lane.b32.xlu1 %v8801_v26, %s10966_s27 }
 0x118   :  { %809 = vrot.lane.b32.xlu0 %v8806_v28, %s10966_s27  ;;  %7727 = vmatprep.subr.bf16.mxu1 %v7726_v35  ;;  %v7732_v49 = vpack.c.bf16 %v296_v33, %v282_v36  ;;  %s8404_s27 = smov 85  }
 0x119   :  { %v8821_v38 = vpop.permute.xlu1 %424  ;;  %7729 = vmatpush1.bf16.msra.mxu1 %v7728_v37 }
 0x11a   :  { %433 = vst.msk [vmem:[#allocation2 + $0x158] sm:$0xff] %vm383_vm2, %v8821_v38  ;;  %v8825_v39 = vpop.permute.xlu0 %408 }
 0x11b   :  { %417 = vst.msk [vmem:[#allocation2 + $0xe8] sm:$0xff] %vm383_vm2, %v8825_v39  ;;  %696 = vrot.lane.b32.xlu1 %v8774_v20, %s8390_s6 }
 0x11c   :  { %649 = vrot.lane.b32.xlu0 %v8691_v15, %s8386_s23 }
 0x11d   :  { %v322_v40 = vpop.permute.xlu1 %321 }
 0x11e   :  { %328 = vst.msk [vmem:[#allocation2 + $0x238] sm:$0xff] %vm11014_vm0, %v322_v40  ;;  %v308_v41 = vpop.permute.xlu0 %307 }
 0x11f   :  { %314 = vst.msk [vmem:[#allocation2 + $0x1c8] sm:$0xff] %vm11014_vm0, %v308_v41  ;;  %825 = vrot.lane.b32.xlu1 %v8806_v28, %s10962_s18 }
 0x120   :  { %710 = vrot.lane.b32.xlu0 %v8774_v20, %s8392_s29 }
 0x121   :  { %v320_v42 = vpop.permute.xlu1 %319  ;;  %v1382_v43 = vld [vmem:[#allocation2 + $0x158] sm:$0xff] }
 0x122   :  { %v324_v44 = vsel %vm323_vm5, %v320_v42, %v322_v40  ;;  %v306_v45 = vpop.permute.xlu0 %305  ;;  %v1368_v46 = vld [vmem:[#allocation2 + $0xe8] sm:$0xff] }
 0x123   :  { %v310_v47 = vsel %vm309_vm6, %v306_v45, %v308_v41  ;;  %841 = vrot.lane.b32.xlu1 %v8806_v28, %s10964_s3  ;;  %v7730_v48 = vpack.c.bf16 %v1382_v43, %v1368_v46 }
 0x124   :  { %827 = vrot.lane.b32.xlu0 %v8801_v26, %s10962_s18  ;;  %v7736_v0 = vpack.c.bf16 %v324_v44, %v310_v47  ;;  %s10970_s18 = smov 103  }
 0x125   :  { %7731 = vmatprep.subr.bf16.mxu1 %v7730_v48  ;;  %v8845_v50 = vpop.permute.xlu1 %456 }
 0x126   :  { %465 = vst.msk [vmem:[#allocation2 + $0x238] sm:$0xff] %vm383_vm2, %v8845_v50  ;;  %v8849_v51 = vpop.permute.xlu0 %440  ;;  %7733 = vmatpush1.bf16.msra.mxu1 %v7732_v49 }
 0x127   :  { %449 = vst.msk [vmem:[#allocation2 + $0x1c8] sm:$0xff] %vm383_vm2, %v8849_v51  ;;  %651 = vrot.lane.b32.xlu1 %v8705_v17, %s8386_s23 }
 0x128   :  { %843 = vrot.lane.b32.xlu0 %v8801_v26, %s10964_s3  ;;  %s10996_s3 = smov 102  }
 0x129   :  { %v350_v52 = vpop.permute.xlu1 %349 }
 0x12a   :  { %356 = vst.msk [vmem:[#allocation2 + $0x318] sm:$0xff] %vm11014_vm0, %v350_v52  ;;  %v336_v53 = vpop.permute.xlu0 %335 }
 0x12b   :  { %342 = vst.msk [vmem:[#allocation2 + $0x2a8] sm:$0xff] %vm11014_vm0, %v336_v53  ;;  %780 = vrot.lane.b32.xlu1 %v8774_v20, %s10968_s14 }
 0x12c   :  { %778 = vrot.lane.b32.xlu0 %v8718_v18, %s10968_s14  ;;  %s8402_s14 = smov 86  }
 0x12d   :  { %v348_v55 = vpop.permute.xlu1 %347  ;;  %v1410_v57 = vld [vmem:[#allocation2 + $0x238] sm:$0xff] }
 0x12e   :  { %v352_v58 = vsel %vm11018_vm7, %v348_v55, %v350_v52  ;;  %v334_v59 = vpop.permute.xlu0 %333  ;;  %v1396_v60 = vld [vmem:[#allocation2 + $0x1c8] sm:$0xff]  ;;  %vm11022_vm7 = vcmask 195584  }
 0x12f   :  { %v338_v61 = vsel %vm337_vm8, %v334_v59, %v336_v53  ;;  %939 = vrot.lane.b32.xlu1 %v8866_v54, %s8402_s14  ;;  %v7734_v62 = vpack.c.bf16 %v1410_v57, %v1396_v60 }
 0x130   :  { %937 = vrot.lane.b32.xlu0 %v8871_v56, %s8402_s14  ;;  %v7740_v18 = vpack.c.bf16 %v352_v58, %v338_v61 }
 0x131   :  { %7735 = vmatprep.subr.bf16.mxu1 %v7734_v62  ;;  %v8879_v1 = vpop.permute.xlu1 %488 }
 0x132   :  { %497 = vst.msk [vmem:[#allocation2 + $0x318] sm:$0xff] %vm383_vm2, %v8879_v1  ;;  %v8883_v2 = vpop.permute.xlu0 %472  ;;  %7737 = vmatpush1.bf16.msra.mxu1 %v7736_v0 }
 0x133   :  { %481 = vst.msk [vmem:[#allocation2 + $0x2a8] sm:$0xff] %vm383_vm2, %v8883_v2  ;;  %956 = vrot.lane.b32.xlu1 %v8866_v54, %s8404_s27 }
 0x134   :  { %954 = vrot.lane.b32.xlu0 %v8871_v56, %s8404_s27 }
 0x135   :  { %v378_v3 = vpop.permute.xlu1 %377 }
 0x136   :  { %v8893_v4 = vsel %vm11014_vm0, %v8780_v21, %v378_v3  ;;  %387 = vst.msk [vmem:[#allocation2 + $0x18] sm:$0xff] %vm386_vm9, %v378_v3  ;;  %v364_v5 = vpop.permute.xlu0 %363 }
 0x137   :  { %369 = vst.msk [vmem:[#allocation2 + $0x388] sm:$0xff] %vm11014_vm0, %v364_v5  ;;  %738 = vrot.lane.b32.xlu1 %v8774_v20, %s10998_s24  ;;  %s11009_s24 = smov 51  }
 0x138   :  { %724 = vrot.lane.b32.xlu0 %v8774_v20, %s8394_s26 }
 0x139   :  { %v362_v6 = vpop.permute.xlu1 %361  ;;  %v1438_v7 = vld [vmem:[#allocation2 + $0x318] sm:$0xff] }
 0x13a   :  { %v365_v8 = vsel %vm11014_vm0, %v362_v6, %v364_v5  ;;  %v395_v13 = vpop.permute.xlu0 %394  ;;  %v1424_v14 = vld [vmem:[#allocation2 + $0x2a8] sm:$0xff]  ;;  %v9024_v6 = vld [vmem:[%s10927_s0 + $0x60] sm:$0xff]  ;;  %vm11059_vm0 = vcmask 1048512  }
 0x13b   :  { %v397_v15 = vsel %vm10980_vm10, %v8789_v23, %v395_v13  ;;  %403 = vst.msk [vmem:[#allocation2 + $0x88] sm:$0xff] %vm386_vm9, %v395_v13  ;;  %859 = vrot.lane.b32.xlu1 %v8801_v26, %s10970_s18  ;;  %v7738_v17 = vpack.c.bf16 %v1438_v7, %v1424_v14  ;;  %vm10991_vm10 = vcmask 474112  }
 0x13c   :  { %857 = vrot.lane.b32.xlu0 %v8806_v28, %s10970_s18  ;;  %s10975_s18 = smov 70  }
 0x13d   :  { %7739 = vmatprep.subr.bf16.mxu1 %v7738_v17  ;;  %v521_v20 = vpop.permute.xlu1 %520 }
 0x13e   :  { %529 = vst.msk [vmem:[#allocation2 + $0x18] sm:$0xff] %vm11035_vm11, %v521_v20  ;;  %v8910_v21 = vpop.permute.xlu0 %504  ;;  %7741 = vmatpush1.bf16.msra.mxu1 %v7740_v18 }
 0x13f   :  { %512 = vst.msk [vmem:[#allocation2 + $0x388] sm:$0xff] %vm383_vm2, %v8910_v21  ;;  %875 = vrot.lane.b32.xlu1 %v8801_v26, %s10996_s3  ;;  %vm10981_vm2 = vcmask 482304  }
 0x140   :  { %873 = vrot.lane.b32.xlu0 %v8806_v28, %s10996_s3  ;;  %s11007_s3 = smov 50  }
 0x141   :  { %v411_v22 = vpop.permute.xlu1 %410 }
 0x142   :  { %v8920_v23 = vsel %vm10977_vm12, %v8825_v39, %v411_v22  ;;  %419 = vst.msk [vmem:[#allocation2 + $0xf8] sm:$0xff] %vm386_vm9, %v411_v22  ;;  %v538_v24 = vpop.permute.xlu0 %537  ;;  %v7744_v39 = vpack.c.bf16 %v397_v15, %v8893_v4  ;;  %vm10984_vm12 = vcmask 629760  }
 0x143   :  { %546 = vst.msk [vmem:[#allocation2 + $0x88] sm:$0xff] %vm11035_vm11, %v538_v24  ;;  %972 = vrot.lane.b32.xlu1 %v8866_v54, %s10972_s5 }
 0x144   :  { %970 = vrot.lane.b32.xlu0 %v8871_v56, %s10972_s5  ;;  %s10978_s5 = smov 88  }
 0x145   :  { %v523_v25 = vpop.permute.xlu1 %522  ;;  %v1342_v35 = vld [vmem:[#allocation2 + $0x18] sm:$0xff] }
 0x146   :  { %v8929_v27 = vsel %vm386_vm9, %v521_v20, %v523_v25  ;;  %532 = vst.msk [vmem:[#allocation2 + $0x28] sm:$0xff] %vm11034_vm13, %v523_v25  ;;  %v427_v29 = vpop.permute.xlu0 %426  ;;  %v1452_v30 = vld [vmem:[#allocation2 + $0x388] sm:$0xff] }
 0x147   :  { %v429_v32 = vsel %vm10974_vm14, %v8821_v38, %v427_v29  ;;  %435 = vst.msk [vmem:[#allocation2 + $0x168] sm:$0xff] %vm386_vm9, %v427_v29  ;;  %1491 = vmatprep.subr.mxu1 %v1452_v30  ;;  %988 = vrot.lane.b32.xlu1 %v8866_v54, %s10975_s18  ;;  %vm672_vm14 = vcmask 1047760  }
 0x148   :  { %986 = vrot.lane.b32.xlu0 %v8871_v56, %s10975_s18  ;;  %1492 = vmatpush1.msra.mxu1 %v365_v8  ;;  %s10982_s18 = smov 87   ;;  %v7748_v53 = vpack.c.bf16 %v429_v32, %v8920_v23 }
 0x149   :  { %v554_v33 = vpop.permute.xlu1 %553  ;;  %7670 = vmatmul.mubr.msk.f32.vlgmr.msra.gmra.mrb[0].mxu1 %vm1471_vm15, %v8932_v31 }
 0x14a   :  { %562 = vst.msk [vmem:[#allocation2 + $0xf8] sm:$0xff] %vm11035_vm11, %v554_v33  ;;  %v540_v34 = vpop.permute.xlu0 %539  ;;  %v1356_v36 = vld [vmem:[#allocation2 + $0x88] sm:$0xff]  ;;  %1610 = vmatprep.mubr.f32.mxu1 %v8383_v16 }
 0x14b   :  { %v542_v37 = vsel %vm10981_vm2, %v538_v24, %v540_v34  ;;  %548 = vst.msk [vmem:[#allocation2 + $0x98] sm:$0xff] %vm11034_vm13, %v540_v34  ;;  %891 = vrot.lane.b32.xlu1 %v8801_v26, %s10978_s5  ;;  %v7742_v38 = vpack.c.bf16 %v1356_v36, %v1342_v35  ;;  %vm10989_vm2 = vcmask 621568  }
 0x14c   :  { %889 = vrot.lane.b32.xlu0 %v8806_v28, %s10978_s5  ;;  %s10985_s5 = smov 69   ;;  %v7760_v61 = vpack.c.bf16 %v542_v37, %v8929_v27 }
 0x14d   :  { %7743 = vmatprep.subr.bf16.mxu1 %v7742_v38  ;;  %v8952_v40 = vpop.permute.xlu1 %665 }
 0x14e   :  { %673 = vst.msk [vmem:[#allocation2 + $0x28] sm:$0xff] %vm672_vm14, %v8952_v40  ;;  %v570_v41 = vpop.permute.xlu0 %569  ;;  %7745 = vmatpush1.bf16.msra.mxu1 %v7744_v39 }
 0x14f   :  { %578 = vst.msk [vmem:[#allocation2 + $0x168] sm:$0xff] %vm11035_vm11, %v570_v41  ;;  %907 = vrot.lane.b32.xlu1 %v8801_v26, %s10982_s18 }
 0x150   :  { %905 = vrot.lane.b32.xlu0 %v8806_v28, %s10982_s18  ;;  %s10987_s18 = smov 68  }
 0x151   :  { %v443_v42 = vpop.permute.xlu1 %442  ;;  %v1370_v48 = vld [vmem:[#allocation2 + $0xf8] sm:$0xff] }
 0x152   :  { %v8963_v43 = vsel %vm10984_vm12, %v8849_v51, %v443_v42  ;;  %451 = vst.msk [vmem:[#allocation2 + $0x1d8] sm:$0xff] %vm386_vm9, %v443_v42  ;;  %v8966_v44 = vpop.permute.xlu0 %680  ;;  %vm10990_vm12 = vcmask 359424   ;;  %v9079_v42 = vld [vmem:[%s10927_s0 + $0x70] sm:$0xff] }
 0x153   :  { %688 = vst.msk [vmem:[#allocation2 + $0x98] sm:$0xff] %vm672_vm14, %v8966_v44  ;;  %1004 = vrot.lane.b32.xlu1 %v8866_v54, %s10985_s5 }
 0x154   :  { %1002 = vrot.lane.b32.xlu0 %v8871_v56, %s10985_s5  ;;  %s10994_s5 = smov 54  }
 0x155   :  { %v556_v45 = vpop.permute.xlu1 %555 }
 0x156   :  { %v8975_v46 = vsel %vm10991_vm10, %v554_v33, %v556_v45  ;;  %564 = vst.msk [vmem:[#allocation2 + $0x108] sm:$0xff] %vm11034_vm13, %v556_v45  ;;  %v459_v47 = vpop.permute.xlu0 %458  ;;  %v1384_v49 = vld [vmem:[#allocation2 + $0x168] sm:$0xff]  ;;  %vm11001_vm10 = vcmask 498688  }
 0x157   :  { %v461_v51 = vsel %vm10989_vm2, %v8845_v50, %v459_v47  ;;  %467 = vst.msk [vmem:[#allocation2 + $0x248] sm:$0xff] %vm386_vm9, %v459_v47  ;;  %1020 = vrot.lane.b32.xlu1 %v8866_v54, %s10987_s18  ;;  %v7746_v52 = vpack.c.bf16 %v1384_v49, %v1370_v48  ;;  %v1344_v50 = vld [vmem:[#allocation2 + $0x28] sm:$0xff]  ;;  %vm11000_vm2 = vcmask 506880  }
 0x158   :  { %1018 = vrot.lane.b32.xlu0 %v8871_v56, %s10987_s18  ;;  %s10992_s18 = smov 53   ;;  %v7752_v15 = vpack.c.bf16 %v461_v51, %v8963_v43 }
 0x159   :  { %7747 = vmatprep.subr.bf16.mxu1 %v7746_v52  ;;  %v586_v55 = vpop.permute.xlu1 %585 }
 0x15a   :  { %594 = vst.msk [vmem:[#allocation2 + $0x1d8] sm:$0xff] %vm11035_vm11, %v586_v55  ;;  %v572_v57 = vpop.permute.xlu0 %571  ;;  %7749 = vmatpush1.bf16.msra.mxu1 %v7748_v53  ;;  %v1358_v58 = vld [vmem:[#allocation2 + $0x98] sm:$0xff] }
 0x15b   :  { %v574_v59 = vsel %vm10990_vm12, %v570_v41, %v572_v57  ;;  %580 = vst.msk [vmem:[#allocation2 + $0x178] sm:$0xff] %vm11034_vm13, %v572_v57  ;;  %1036 = vrot.lane.b32.xlu1 %v8866_v54, %s10994_s5  ;;  %v7758_v60 = vpack.c.bf16 %v1358_v58, %v1344_v50  ;;  %vm11004_vm12 = vcmask 351232  }
 0x15c   :  { %1034 = vrot.lane.b32.xlu0 %v8871_v56, %s10994_s5  ;;  %v7764_v24 = vpack.c.bf16 %v574_v59, %v8975_v46  ;;  %s11005_s5 = smov 36  }
 0x15d   :  { %7759 = vmatprep.subr.bf16.mxu0 %v7758_v60  ;;  %v8994_v62 = vpop.permute.xlu1 %694 }
 0x15e   :  { %702 = vst.msk [vmem:[#allocation2 + $0x108] sm:$0xff] %vm672_vm14, %v8994_v62  ;;  %7761 = vmatpush1.bf16.msra.mxu0 %v7760_v61  ;;  %v602_v63 = vpop.permute.xlu0 %601 }
 0x15f   :  { %610 = vst.msk [vmem:[#allocation2 + $0x248] sm:$0xff] %vm11035_vm11, %v602_v63  ;;  %1052 = vrot.lane.b32.xlu1 %v8866_v54, %s10992_s18 }
 0x160   :  { %1050 = vrot.lane.b32.xlu0 %v8871_v56, %s10992_s18  ;;  %s8415_s18 = smov 52  }
 0x161   :  { %v475_v0 = vpop.permute.xlu1 %474  ;;  %v1398_v8 = vld [vmem:[#allocation2 + $0x1d8] sm:$0xff] }
 0x162   :  { %v9005_v3 = vsel %vm11000_vm2, %v8883_v2, %v475_v0  ;;  %483 = vst.msk [vmem:[#allocation2 + $0x2b8] sm:$0xff] %vm386_vm9, %v475_v0  ;;  %v9008_v4 = vpop.permute.xlu0 %708  ;;  %v9019_v2 = vld [vmem:[%s10927_s0 + $0x68] sm:$0xff]  ;;  %vm11002_vm2 = vcmask 343040   ;;  %s8420_s0 = smov 17  }
 0x163   :  { %716 = vst.msk [vmem:[#allocation2 + $0x178] sm:$0xff] %vm672_vm14, %v9008_v4  ;;  %923 = vrot.lane.b32.xlu1 %v8801_v26, %s8402_s14 }
 0x164   :  { %921 = vrot.lane.b32.xlu0 %v8806_v28, %s8402_s14 }
 0x165   :  { %v588_v5 = vpop.permute.xlu1 %587 }
 0x166   :  { %v9027_v7 = vsel %vm11004_vm12, %v586_v55, %v588_v5  ;;  %596 = vst.msk [vmem:[#allocation2 + $0x1e8] sm:$0xff] %vm11034_vm13, %v588_v5  ;;  %v491_v26 = vpop.permute.xlu0 %490  ;;  %v1412_v28 = vld [vmem:[#allocation2 + $0x248] sm:$0xff]  ;;  %vm11012_vm12 = vcmask 998400  }
 0x167   :  { %v493_v13 = vsel %vm11001_vm10, %v8879_v1, %v491_v26  ;;  %499 = vst.msk [vmem:[#allocation2 + $0x328] sm:$0xff] %vm386_vm9, %v491_v26  ;;  %1084 = vrot.lane.b32.xlu1 %v9019_v2, %s8415_s18  ;;  %v7750_v14 = vpack.c.bf16 %v1412_v28, %v1398_v8  ;;  %v1372_v1 = vld [vmem:[#allocation2 + $0x108] sm:$0xff]  ;;  %vm11003_vm10 = vcmask 228352  }
 0x168   :  { %1082 = vrot.lane.b32.xlu0 %v9024_v6, %s8415_s18  ;;  %v7756_v39 = vpack.c.bf16 %v493_v13, %v9005_v3 }
 0x169   :  { %7751 = vmatprep.subr.bf16.mxu1 %v7750_v14  ;;  %v618_v17 = vpop.permute.xlu1 %617 }
 0x16a   :  { %626 = vst.msk [vmem:[#allocation2 + $0x2b8] sm:$0xff] %vm11035_vm11, %v618_v17  ;;  %v604_v18 = vpop.permute.xlu0 %603  ;;  %7753 = vmatpush1.bf16.msra.mxu1 %v7752_v15  ;;  %v1386_v20 = vld [vmem:[#allocation2 + $0x178] sm:$0xff] }
 0x16b   :  { %v606_v22 = vsel %vm11002_vm2, %v602_v63, %v604_v18  ;;  %612 = vst.msk [vmem:[#allocation2 + $0x258] sm:$0xff] %vm11034_vm13, %v604_v18  ;;  %1101 = vrot.lane.b32.xlu1 %v9019_v2, %s11009_s24  ;;  %v7762_v23 = vpack.c.bf16 %v1386_v20, %v1372_v1  ;;  %vm11011_vm2 = vcmask 220160  }
 0x16c   :  { %1099 = vrot.lane.b32.xlu0 %v9024_v6, %s11009_s24  ;;  %s8419_s24 = smov 18   ;;  %v7768_v47 = vpack.c.bf16 %v606_v22, %v9027_v7 }
 0x16d   :  { %7763 = vmatprep.subr.bf16.mxu0 %v7762_v23  ;;  %v9046_v25 = vpop.permute.xlu1 %722 }
 0x16e   :  { %730 = vst.msk [vmem:[#allocation2 + $0x1e8] sm:$0xff] %vm672_vm14, %v9046_v25  ;;  %7765 = vmatpush1.bf16.msra.mxu0 %v7764_v24  ;;  %v634_v27 = vpop.permute.xlu0 %633 }
 0x16f   :  { %642 = vst.msk [vmem:[#allocation2 + $0x328] sm:$0xff] %vm11035_vm11, %v634_v27  ;;  %1117 = vrot.lane.b32.xlu1 %v9019_v2, %s11007_s3 }
 0x170   :  { %1115 = vrot.lane.b32.xlu0 %v9024_v6, %s11007_s3  ;;  %s11016_s3 = smov 35  }
 0x171   :  { %v620_v29 = vpop.permute.xlu1 %619  ;;  %v1426_v35 = vld [vmem:[#allocation2 + $0x2b8] sm:$0xff] }
 0x172   :  { %v9056_v30 = vsel %vm11003_vm10, %v618_v17, %v620_v29  ;;  %628 = vst.msk [vmem:[#allocation2 + $0x2c8] sm:$0xff] %vm11034_vm13, %v620_v29  ;;  %v9059_v32 = vpop.permute.xlu0 %736  ;;  %vm674_vm10 = vcmask 982016  }
 0x173   :  { %744 = vst.msk [vmem:[#allocation2 + $0x258] sm:$0xff] %vm672_vm14, %v9059_v32  ;;  %1133 = vrot.lane.b32.xlu1 %v9019_v2, %s11005_s5 }
 0x174   :  { %1131 = vrot.lane.b32.xlu0 %v9024_v6, %s11005_s5  ;;  %s8422_s5 = smov 34  }
 0x175   :  { %v751_v33 = vpop.permute.xlu1 %750  ;;  %v1400_v45 = vld [vmem:[#allocation2 + $0x1e8] sm:$0xff] }
 0x176   :  { %v636_v34 = vpop.permute.xlu0 %635  ;;  %v1440_v36 = vld [vmem:[#allocation2 + $0x328] sm:$0xff] }
 0x177   :  { %v9068_v37 = vsel %vm11011_vm2, %v634_v27, %v636_v34  ;;  %644 = vst.msk [vmem:[#allocation2 + $0x338] sm:$0xff] %vm11034_vm13, %v636_v34  ;;  %1068 = vrot.lane.b32.xlu1 %v8866_v54, %s8415_s18  ;;  %v7754_v38 = vpack.c.bf16 %v1440_v36, %v1426_v35  ;;  %vm11013_vm2 = vcmask 990208  }
 0x178   :  { %1066 = vrot.lane.b32.xlu0 %v8871_v56, %s8415_s18  ;;  %v7772_v63 = vpack.c.bf16 %v9068_v37, %v9056_v30 }
 0x179   :  { %7755 = vmatprep.subr.bf16.mxu1 %v7754_v38  ;;  %v765_v41 = vpop.permute.xlu1 %764 }
 0x17a   :  { %v753_v43 = vpop.permute.xlu0 %752  ;;  %7757 = vmatpush1.bf16.msra.mxu1 %v7756_v39  ;;  %v1414_v46 = vld [vmem:[#allocation2 + $0x258] sm:$0xff] }
 0x17b   :  { %v755_v54 = vsel %vm11012_vm12, %v751_v33, %v753_v43  ;;  %759 = vst.msk [vmem:[#allocation2 + $0x2d0] sm:$0xff] %vm674_vm10, %v753_v43  ;;  %1229 = vrot.lane.b32.xlu1 %v8757_v19, %s8419_s24  ;;  %v7766_v56 = vpack.c.bf16 %v1414_v46, %v1400_v45  ;;  %vm11015_vm12 = vcmask 203776  }
 0x17c   :  { %758 = vst.msk [vmem:[#allocation2 + $0x2c8] sm:$0xff] %vm672_vm14, %v755_v54  ;;  %1227 = vrot.lane.b32.xlu0 %v9079_v42, %s8419_s24 }
 0x17d   :  { %7767 = vmatprep.subr.bf16.mxu0 %v7766_v56  ;;  %v507_v48 = vpop.permute.xlu1 %506 }
 0x17e   :  { %v9091_v49 = vsel %vm386_vm9, %v8910_v21, %v507_v48  ;;  %514 = vst.msk [vmem:[#allocation2 + $0x398] sm:$0xff] %vm386_vm9, %v507_v48  ;;  %7769 = vmatpush1.bf16.msra.mxu0 %v7768_v47  ;;  %v767_v51 = vpop.permute.xlu0 %766 }
 0x17f   :  { %v769_v52 = vsel %vm11013_vm2, %v765_v41, %v767_v51  ;;  %773 = vst.msk [vmem:[#allocation2 + $0x340] sm:$0xff] %vm674_vm10, %v767_v51  ;;  %1243 = vrot.lane.b32.xlu1 %v8757_v19, %s8420_s0  ;;  %vm11053_vm2 = vcmask 703488   ;;  %v1465_v51 = vld [vmem:[%s10929_s2] sm:$0xff]  ;;  %s11066_s2 = smov 62  }
 0x180   :  { %772 = vst.msk [vmem:[#allocation2 + $0x338] sm:$0xff] %vm672_vm14, %v769_v52  ;;  %1241 = vrot.lane.b32.xlu0 %v9079_v42, %s8420_s0 }
 0x181   :  { %v683_v21 = vpop.permute.xlu1 %682 }
 0x182   :  { %v685_v53 = vsel %vm11015_vm12, %v8966_v44, %v683_v21  ;;  %v668_v55 = vpop.permute.xlu0 %667  ;;  %vm11019_vm12 = vcmask 973824  }
 0x183   :  { %689 = vst.msk [vmem:[#allocation2 + $0xa0] sm:$0xff] %vm674_vm10, %v685_v53  ;;  %v669_v57 = vsel %vm11034_vm13, %v8952_v40, %v668_v55  ;;  %1149 = vrot.lane.b32.xlu1 %v9019_v2, %s11016_s3  ;;  %v1428_v40 = vld [vmem:[#allocation2 + $0x2c8] sm:$0xff] }
 0x184   :  { %675 = vst.msk [vmem:[#allocation2 + $0x30] sm:$0xff] %vm674_vm10, %v669_v57  ;;  %1147 = vrot.lane.b32.xlu0 %v9024_v6, %s11016_s3  ;;  %s11020_s3 = smov 16  }
 0x185   :  { %v795_v50 = vpop.permute.xlu1 %794 }
 0x186   :  { %804 = vst.msk [vmem:[#allocation2 + $0x40] sm:$0xff] %vm11053_vm2, %v795_v50  ;;  %v793_v44 = vpop.permute.xlu0 %792 }
 0x187   :  { %v796_v58 = vsel %vm674_vm10, %v793_v44, %v795_v50  ;;  %801 = vst.msk [vmem:[#allocation2 + $0x30] sm:$0xff] %vm11059_vm0, %v793_v44  ;;  %1165 = vrot.lane.b32.xlu1 %v9019_v2, %s8422_s5  ;;  %v1442_v59 = vld [vmem:[#allocation2 + $0x338] sm:$0xff] }
 0x188   :  { %1163 = vrot.lane.b32.xlu0 %v9024_v6, %s8422_s5  ;;  %v7770_v60 = vpack.c.bf16 %v1442_v59, %v1428_v40 }
 0x189   :  { %v812_v61 = vpop.permute.xlu1 %811 }
 0x18a   :  { %820 = vst.msk [vmem:[#allocation2 + $0xb0] sm:$0xff] %vm11053_vm2, %v812_v61  ;;  %7771 = vmatprep.subr.bf16.mxu0 %v7770_v60  ;;  %v810_v0 = vpop.permute.xlu0 %809 }
 0x18b   :  { %v814_v3 = vsel %vm11019_vm12, %v810_v0, %v812_v61  ;;  %818 = vst.msk [vmem:[#allocation2 + $0xa0] sm:$0xff] %vm11059_vm0, %v810_v0  ;;  %7773 = vmatpush1.bf16.msra.mxu0 %v7772_v63  ;;  %1257 = vrot.lane.b32.xlu1 %v8757_v19, %s11020_s3  ;;  %vm11025_vm12 = vcmask 80896  }
 0x18c   :  { %1255 = vrot.lane.b32.xlu0 %v9079_v42, %s11020_s3  ;;  %s11032_s3 = smov 20  }
 0x18d   :  { %v697_v5 = vpop.permute.xlu1 %696 }
 0x18e   :  { %v699_v7 = vsel %vm11022_vm7, %v8994_v62, %v697_v5  ;;  %v650_v26 = vpop.permute.xlu0 %649  ;;  %vm11029_vm7 = vcmask 965632   ;;  %v1345_v1 = vld [vmem:[#allocation2 + $0x30] sm:$0xff] }
 0x18f   :  { %703 = vst.msk [vmem:[#allocation2 + $0x110] sm:$0xff] %vm674_vm10, %v699_v7  ;;  %1271 = vrot.lane.b32.xlu1 %v8757_v19, %s11023_s7 }
 0x190   :  { %657 = vst.msk [vmem:[#allocation2 + $0x398] sm:$0xff] %vm11035_vm11, %v650_v26  ;;  %1269 = vrot.lane.b32.xlu0 %v9079_v42, %s11023_s7  ;;  %s11026_s7 = smov 19   ;;  %vm11041_vm11 = vcmask 72704  }
 0x191   :  { %v826_v8 = vpop.permute.xlu1 %825 }
 0x192   :  { %834 = vst.msk [vmem:[#allocation2 + $0x110] sm:$0xff] %vm11059_vm0, %v826_v8  ;;  %v711_v28 = vpop.permute.xlu0 %710  ;;  %v1359_v14 = vld [vmem:[#allocation2 + $0xa0] sm:$0xff] }
 0x193   :  { %v713_v13 = vsel %vm11025_vm12, %v9008_v4, %v711_v28  ;;  %1181 = vrot.lane.b32.xlu1 %v9019_v2, %s11032_s3  ;;  %v7774_v4 = vpack.c.bf16 %v814_v3, %v796_v58  ;;  %vm11028_vm12 = vcmask 850944   ;;  %v7776_v20 = vpack.c.bf16 %v1359_v14, %v1345_v1 }
 0x194   :  { %717 = vst.msk [vmem:[#allocation2 + $0x180] sm:$0xff] %vm674_vm10, %v713_v13  ;;  %1179 = vrot.lane.b32.xlu0 %v9024_v6, %s11032_s3  ;;  %s11037_s3 = smov 113  }
 0x195   :  { %v842_v62 = vpop.permute.xlu1 %841 }
 0x196   :  { %850 = vst.msk [vmem:[#allocation2 + $0x180] sm:$0xff] %vm11059_vm0, %v842_v62  ;;  %v828_v15 = vpop.permute.xlu0 %827 }
 0x197   :  { %v1454_v17 = vld [vmem:[#allocation2 + $0x398] sm:$0xff]  ;;  %v830_v18 = vsel %vm11029_vm7, %v826_v8, %v828_v15  ;;  %836 = vst.msk [vmem:[#allocation2 + $0x120] sm:$0xff] %vm11053_vm2, %v828_v15  ;;  %1197 = vrot.lane.b32.xlu1 %v9019_v2, %s11026_s7  ;;  %vm945_vm7 = vcmask 1048240  }
 0x198   :  { %1562 = vmatprep.subr.mxu1 %v1454_v17  ;;  %1195 = vrot.lane.b32.xlu0 %v9024_v6, %s11026_s7  ;;  %s11030_s7 = smov 1  }
 0x199   :  { %1563 = vmatpush1.msra.mxu1 %v9091_v49  ;;  %v652_v22 = vpop.permute.xlu1 %651  ;;  %v1373_v33 = vld [vmem:[#allocation2 + $0x110] sm:$0xff] }
 0x19a   :  { %7671 = vmatmul.mubr.msk.f32.vlgmr.msra.gmra.mrb[2].mxu1 %vm1471_vm15, %v8932_v31  ;;  %7775 = vmatprep.subr.bf16.mxu1 %v7774_v4  ;;  %v653_v23 = vsel %vm11034_vm13, %v650_v26, %v652_v22  ;;  %659 = vst.msk [vmem:[#allocation2 + $0x3a8] sm:$0xff] %vm11034_vm13, %v652_v22  ;;  %v844_v24 = vpop.permute.xlu0 %843  ;;  %vm11036_vm13 = vcmask 64512  }
 0x19b   :  { %7777 = vmatpush1.bf16.msra.mxu1 %v7776_v20  ;;  %1752 = vmatprep.mubr.f32.mxu1 %v8383_v16  ;;  %v846_v27 = vsel %vm11028_vm12, %v842_v62, %v844_v24  ;;  %852 = vst.msk [vmem:[#allocation2 + $0x190] sm:$0xff] %vm11053_vm2, %v844_v24  ;;  %vm948_vm12 = vcmask 424960  }
 0x19c   :  { %1285 = vrot.lane.b32.xlu1 %v8757_v19, %s11030_s7  ;;  %1283 = vrot.lane.b32.xlu0 %v9079_v42, %s11030_s7  ;;  %v7778_v29 = vpack.c.bf16 %v846_v27, %v830_v18  ;;  %s11039_s7 = smov 114  }
 0x19d   :  { %v781_v30 = vpop.permute.xlu1 %780  ;;  %v1387_v34 = vld [vmem:[#allocation2 + $0x180] sm:$0xff] }
 0x19e   :  { %786 = vst.msk [vmem:[#allocation2 + $0x3b0] sm:$0xff] %vm674_vm10, %v781_v30  ;;  %v779_v35 = vpop.permute.xlu0 %778  ;;  %7779 = vmatprep.subr.bf16.mxu1 %v7778_v29  ;;  %v7780_v36 = vpack.c.bf16 %v1387_v34, %v1373_v33 }
 0x19f   :  { %v782_v37 = vsel %vm674_vm10, %v779_v35, %v781_v30 }
 0x1a0   :  { %1213 = vrot.lane.b32.xlu1 %v9019_v2, %s8419_s24  ;;  %785 = vst.msk [vmem:[#allocation2 + $0x3a8] sm:$0xff] %vm672_vm14, %v782_v37  ;;  %1211 = vrot.lane.b32.xlu0 %v9024_v6, %s8419_s24  ;;  %vm11042_vm14 = vcmask 695296  }
 0x1a1   :  { %7781 = vmatpush1.bf16.msra.mxu1 %v7780_v36  ;;  %v940_v38 = vpop.permute.xlu1 %939 }
 0x1a2   :  { %949 = vst.msk [vmem:[#allocation2 + $0x50] sm:$0xff] %vm948_vm12, %v940_v38  ;;  %v938_v39 = vpop.permute.xlu0 %937 }
 0x1a3   :  { %v941_v41 = vsel %vm11053_vm2, %v938_v39, %v940_v38  ;;  %946 = vst.msk [vmem:[#allocation2 + $0x40] sm:$0xff] %vm945_vm7, %v938_v39 }
 0x1a4   :  { %1303 = vrot.lane.b32.xlu1 %v8757_v19, %s11039_s7  ;;  %1301 = vrot.lane.b32.xlu0 %v9079_v42, %s11039_s7  ;;  %s11067_s7 = smov 61  }
 0x1a5   :  { %v957_v2 = vpop.permute.xlu1 %956 }
 0x1a6   :  { %965 = vst.msk [vmem:[#allocation2 + $0xc0] sm:$0xff] %vm948_vm12, %v957_v2  ;;  %v955_v6 = vpop.permute.xlu0 %954 }
 0x1a7   :  { %v959_v43 = vsel %vm11042_vm14, %v955_v6, %v957_v2  ;;  %963 = vst.msk [vmem:[#allocation2 + $0xb0] sm:$0xff] %vm945_vm7, %v955_v6  ;;  %v1456_v45 = vld [vmem:[#allocation2 + $0x3a8] sm:$0xff]  ;;  %vm11045_vm14 = vcmask 687104  }
 0x1a8   :  { %1317 = vrot.lane.b32.xlu1 %v8757_v19, %s11037_s3  ;;  %1315 = vrot.lane.b32.xlu0 %v9079_v42, %s11037_s3  ;;  %v7790_v46 = vpack.c.bf16 %v959_v43, %v941_v41  ;;  %s11073_s3 = smov 27  }
 0x1a9   :  { %1633 = vmatprep.subr.mxu0 %v1456_v45  ;;  %v739_v54 = vpop.permute.xlu1 %738 }
 0x1aa   :  { %1634 = vmatpush1.msra.mxu0 %v653_v23  ;;  %v741_v56 = vsel %vm11036_vm13, %v9059_v32, %v739_v54  ;;  %v725_v47 = vpop.permute.xlu0 %724  ;;  %vm11043_vm13 = vcmask 842752   ;;  %v1347_v32 = vld [vmem:[#allocation2 + $0x40] sm:$0xff] }
 0x1ab   :  { %7672 = vmatmul.mubr.msk.f32.vlgmr.msra.gmra.mrb[0].mxu0 %vm1471_vm15, %v8932_v31  ;;  %7791 = vmatprep.subr.bf16.mxu0 %v7790_v46  ;;  %745 = vst.msk [vmem:[#allocation2 + $0x260] sm:$0xff] %vm674_vm10, %v741_v56  ;;  %v727_v48 = vsel %vm11041_vm11, %v9046_v25, %v725_v47  ;;  %vm11044_vm11 = vcmask 834560  }
 0x1ac   :  { %1331 = vrot.lane.b32.xlu1 %v8757_v19, %s8370_s8  ;;  %1823 = vmatprep.mubr.f32.mxu0 %v8383_v16  ;;  %731 = vst.msk [vmem:[#allocation2 + $0x1f0] sm:$0xff] %vm674_vm10, %v727_v48 }
 0x1ad   :  { %1329 = vrot.lane.b32.xlu0 %v9079_v42, %s8370_s8  ;;  %v860_v49 = vpop.permute.xlu1 %859 }
 0x1ae   :  { %868 = vst.msk [vmem:[#allocation2 + $0x200] sm:$0xff] %vm11053_vm2, %v860_v49  ;;  %v858_v25 = vpop.permute.xlu0 %857  ;;  %v1361_v52 = vld [vmem:[#allocation2 + $0xb0] sm:$0xff] }
 0x1af   :  { %v862_v19 = vsel %vm11043_vm13, %v858_v25, %v860_v49  ;;  %866 = vst.msk [vmem:[#allocation2 + $0x1f0] sm:$0xff] %vm11059_vm0, %v858_v25  ;;  %v7792_v21 = vpack.c.bf16 %v1361_v52, %v1347_v32  ;;  %vm11046_vm13 = vcmask 572416  }
 0x1b1   :  { %1468 = vperm.xlu0 %8187, %v1465_v51   ;;  %v876_v53 = vpop.permute.xlu1 %875  ;;  %7793 = vmatpush1.bf16.msra.mxu0 %v7792_v21 }
 0x1b2   :  { %884 = vst.msk [vmem:[#allocation2 + $0x270] sm:$0xff] %vm11053_vm2, %v876_v53  ;;  %v874_v55 = vpop.permute.xlu0 %873 }
 0x1b3   :  { %v878_v57 = vsel %vm11044_vm11, %v874_v55, %v876_v53  ;;  %882 = vst.msk [vmem:[#allocation2 + $0x260] sm:$0xff] %vm11059_vm0, %v874_v55  ;;  %vm11047_vm11 = vcmask 719872  }
 0x1b4   :  { %v7782_v50 = vpack.c.bf16 %v878_v57, %v862_v19 }
 0x1b5   :  { %v973_v44 = vpop.permute.xlu1 %972 }
 0x1b6   :  { %981 = vst.msk [vmem:[#allocation2 + $0x130] sm:$0xff] %vm948_vm12, %v973_v44  ;;  %v971_v58 = vpop.permute.xlu0 %970  ;;  %7783 = vmatprep.subr.bf16.mxu1 %v7782_v50  ;;  %v1401_v59 = vld [vmem:[#allocation2 + $0x1f0] sm:$0xff] }
 0x1b7   :  { %v975_v40 = vsel %vm11045_vm14, %v971_v58, %v973_v44  ;;  %979 = vst.msk [vmem:[#allocation2 + $0x120] sm:$0xff] %vm945_vm7, %v971_v58  ;;  %vm11048_vm14 = vcmask 711680  }
 0x1b9   :  { %v989_v60 = vpop.permute.xlu1 %988 }
 0x1ba   :  { %997 = vst.msk [vmem:[#allocation2 + $0x1a0] sm:$0xff] %vm948_vm12, %v989_v60  ;;  %v987_v61 = vpop.permute.xlu0 %986  ;;  %v1415_v63 = vld [vmem:[#allocation2 + $0x260] sm:$0xff] }
 0x1bb   :  { %v991_v0 = vsel %vm11046_vm13, %v987_v61, %v989_v60  ;;  %995 = vst.msk [vmem:[#allocation2 + $0x190] sm:$0xff] %vm945_vm7, %v987_v61  ;;  %v7784_v3 = vpack.c.bf16 %v1415_v63, %v1401_v59  ;;  %vm11049_vm13 = vcmask 564224  }
 0x1bc   :  { %v7794_v5 = vpack.c.bf16 %v991_v0, %v975_v40 }
 0x1bd   :  { %v892_v7 = vpop.permute.xlu1 %891  ;;  %7785 = vmatpush1.bf16.msra.mxu1 %v7784_v3 }
 0x1be   :  { %900 = vst.msk [vmem:[#allocation2 + $0x2e0] sm:$0xff] %vm11053_vm2, %v892_v7  ;;  %v890_v26 = vpop.permute.xlu0 %889  ;;  %7795 = vmatprep.subr.bf16.mxu0 %v7794_v5  ;;  %v1375_v28 = vld [vmem:[#allocation2 + $0x120] sm:$0xff] }
 0x1bf   :  { %v894_v8 = vsel %vm11047_vm11, %v890_v26, %v892_v7  ;;  %898 = vst.msk [vmem:[#allocation2 + $0x2d0] sm:$0xff] %vm11059_vm0, %v890_v26  ;;  %vm11051_vm11 = vcmask 556032  }
 0x1c1   :  { %v908_v13 = vpop.permute.xlu1 %907 }
 0x1c2   :  { %916 = vst.msk [vmem:[#allocation2 + $0x350] sm:$0xff] %vm11053_vm2, %v908_v13  ;;  %v906_v62 = vpop.permute.xlu0 %905  ;;  %v1389_v14 = vld [vmem:[#allocation2 + $0x190] sm:$0xff] }
 0x1c3   :  { %v910_v15 = vsel %vm11048_vm14, %v906_v62, %v908_v13  ;;  %914 = vst.msk [vmem:[#allocation2 + $0x340] sm:$0xff] %vm11059_vm0, %v906_v62  ;;  %v7796_v17 = vpack.c.bf16 %v1389_v14, %v1375_v28  ;;  %vm11050_vm14 = vcmask 441344  }
 0x1c4   :  { %v7786_v18 = vpack.c.bf16 %v910_v15, %v894_v8 }
 0x1c5   :  { %v1005_v4 = vpop.permute.xlu1 %1004  ;;  %7797 = vmatpush1.bf16.msra.mxu0 %v7796_v17 }
 0x1c6   :  { %1013 = vst.msk [vmem:[#allocation2 + $0x210] sm:$0xff] %vm948_vm12, %v1005_v4  ;;  %v1003_v1 = vpop.permute.xlu0 %1002  ;;  %7787 = vmatprep.subr.bf16.mxu1 %v7786_v18  ;;  %v1429_v22 = vld [vmem:[#allocation2 + $0x2d0] sm:$0xff] }
 0x1c7   :  { %v1007_v20 = vsel %vm11049_vm13, %v1003_v1, %v1005_v4  ;;  %1011 = vst.msk [vmem:[#allocation2 + $0x200] sm:$0xff] %vm945_vm7, %v1003_v1  ;;  %vm11052_vm13 = vcmask 433152  }
 0x1c9   :  { %v1021_v23 = vpop.permute.xlu1 %1020 }
 0x1ca   :  { %1029 = vst.msk [vmem:[#allocation2 + $0x280] sm:$0xff] %vm948_vm12, %v1021_v23  ;;  %v1019_v24 = vpop.permute.xlu0 %1018  ;;  %v1443_v27 = vld [vmem:[#allocation2 + $0x340] sm:$0xff] }
 0x1cb   :  { %v1023_v29 = vsel %vm11051_vm11, %v1019_v24, %v1021_v23  ;;  %1027 = vst.msk [vmem:[#allocation2 + $0x270] sm:$0xff] %vm945_vm7, %v1019_v24  ;;  %v7788_v30 = vpack.c.bf16 %v1443_v27, %v1429_v22  ;;  %vm1090_vm11 = vcmask 1047968  }
 0x1cc   :  { %v7798_v33 = vpack.c.bf16 %v1023_v29, %v1007_v20 }
 0x1cd   :  { %v1037_v34 = vpop.permute.xlu1 %1036  ;;  %7789 = vmatpush1.bf16.msra.mxu1 %v7788_v30 }
 0x1ce   :  { %1045 = vst.msk [vmem:[#allocation2 + $0x2f0] sm:$0xff] %vm948_vm12, %v1037_v34  ;;  %v1035_v35 = vpop.permute.xlu0 %1034  ;;  %7799 = vmatprep.subr.bf16.mxu0 %v7798_v33  ;;  %v1403_v37 = vld [vmem:[#allocation2 + $0x200] sm:$0xff] }
 0x1cf   :  { %v1039_v36 = vsel %vm11050_vm14, %v1035_v35, %v1037_v34  ;;  %1043 = vst.msk [vmem:[#allocation2 + $0x2e0] sm:$0xff] %vm945_vm7, %v1035_v35  ;;  %vm1093_vm14 = vcmask 146432  }
 0x1d1   :  { %v1053_v38 = vpop.permute.xlu1 %1052 }
 0x1d2   :  { %1061 = vst.msk [vmem:[#allocation2 + $0x360] sm:$0xff] %vm948_vm12, %v1053_v38  ;;  %v1051_v39 = vpop.permute.xlu0 %1050  ;;  %v1417_v41 = vld [vmem:[#allocation2 + $0x270] sm:$0xff] }
 0x1d3   :  { %v1055_v2 = vsel %vm11052_vm13, %v1051_v39, %v1053_v38  ;;  %1059 = vst.msk [vmem:[#allocation2 + $0x350] sm:$0xff] %vm945_vm7, %v1051_v39  ;;  %v7800_v6 = vpack.c.bf16 %v1417_v41, %v1403_v37  ;;  %vm11054_vm13 = vcmask 416768  }
 0x1d4   :  { %v7802_v43 = vpack.c.bf16 %v1055_v2, %v1039_v36 }
 0x1d5   :  { %v924_v45 = vpop.permute.xlu1 %923  ;;  %7801 = vmatpush1.bf16.msra.mxu0 %v7800_v6 }
 0x1d6   :  { %931 = vst.msk [vmem:[#allocation2 + $0x3c0] sm:$0xff] %vm11053_vm2, %v924_v45  ;;  %v922_v46 = vpop.permute.xlu0 %921  ;;  %7803 = vmatprep.subr.bf16.mxu0 %v7802_v43  ;;  %v1431_v56 = vld [vmem:[#allocation2 + $0x2e0] sm:$0xff] }
 0x1d7   :  { %v925_v54 = vsel %vm11053_vm2, %v922_v46, %v924_v45  ;;  %929 = vst.msk [vmem:[#allocation2 + $0x3b0] sm:$0xff] %vm11059_vm0, %v922_v46  ;;  %vm11055_vm2 = vcmask 408576   ;;  %vm11062_vm0 = vcmask 15360  }
 0x1d8   :  { %1704 = vmatprep.subr.mxu1 %v925_v54 }
 0x1d9   :  { %v1085_v47 = vpop.permute.xlu1 %1084 }
 0x1da   :  { %1094 = vst.msk [vmem:[#allocation2 + $0x60] sm:$0xff] %vm1093_vm14, %v1085_v47  ;;  %v1083_v48 = vpop.permute.xlu0 %1082  ;;  %v1445_v32 = vld [vmem:[#allocation2 + $0x350] sm:$0xff] }
 0x1db   :  { %v1086_v49 = vsel %vm948_vm12, %v1083_v48, %v1085_v47  ;;  %1091 = vst.msk [vmem:[#allocation2 + $0x50] sm:$0xff] %vm1090_vm11, %v1083_v48  ;;  %v7804_v51 = vpack.c.bf16 %v1445_v32, %v1431_v56 }
 0x1dd   :  { %v1102_v25 = vpop.permute.xlu1 %1101  ;;  %7805 = vmatpush1.bf16.msra.mxu0 %v7804_v51 }
 0x1de   :  { %1110 = vst.msk [vmem:[#allocation2 + $0xd0] sm:$0xff] %vm1093_vm14, %v1102_v25  ;;  %v1100_v52 = vpop.permute.xlu0 %1099  ;;  %v1457_v19 = vld [vmem:[#allocation2 + $0x3b0] sm:$0xff] }
 0x1df   :  { %v1104_v21 = vsel %vm11054_vm13, %v1100_v52, %v1102_v25  ;;  %1108 = vst.msk [vmem:[#allocation2 + $0xc0] sm:$0xff] %vm1090_vm11, %v1100_v52  ;;  %1705 = vmatpush1.msra.mxu1 %v1457_v19  ;;  %vm11056_vm13 = vcmask 293888  }
 0x1e0   :  { %7673 = vmatmul.mubr.msk.f32.vlgmr.msra.gmra.mrb[4].mxu1 %vm1471_vm15, %v8932_v31  ;;  %v7806_v53 = vpack.c.bf16 %v1104_v21, %v1086_v49 }
 0x1e1   :  { %v1118_v55 = vpop.permute.xlu1 %1117  ;;  %1894 = vmatprep.mubr.f32.mxu1 %v8383_v16 }
 0x1e2   :  { %1126 = vst.msk [vmem:[#allocation2 + $0x140] sm:$0xff] %vm1093_vm14, %v1118_v55  ;;  %v1116_v57 = vpop.permute.xlu0 %1115  ;;  %7807 = vmatprep.subr.bf16.mxu1 %v7806_v53  ;;  %v1349_v44 = vld [vmem:[#allocation2 + $0x50] sm:$0xff] }
 0x1e3   :  { %v1120_v50 = vsel %vm11055_vm2, %v1116_v57, %v1118_v55  ;;  %1124 = vst.msk [vmem:[#allocation2 + $0x130] sm:$0xff] %vm1090_vm11, %v1116_v57  ;;  %vm1234_vm2 = vcmask 1047696  }
 0x1e5   :  { %v1134_v58 = vpop.permute.xlu1 %1133 }
 0x1e6   :  { %1142 = vst.msk [vmem:[#allocation2 + $0x1b0] sm:$0xff] %vm1093_vm14, %v1134_v58  ;;  %v1132_v40 = vpop.permute.xlu0 %1131  ;;  %v1363_v59 = vld [vmem:[#allocation2 + $0xc0] sm:$0xff] }
 0x1e7   :  { %v1136_v60 = vsel %vm11056_vm13, %v1132_v40, %v1134_v58  ;;  %1140 = vst.msk [vmem:[#allocation2 + $0x1a0] sm:$0xff] %vm1090_vm11, %v1132_v40  ;;  %v7808_v61 = vpack.c.bf16 %v1363_v59, %v1349_v44  ;;  %vm11057_vm13 = vcmask 138240  }
 0x1e8   :  { %v7810_v63 = vpack.c.bf16 %v1136_v60, %v1120_v50 }
 0x1e9   :  { %v1069_v0 = vpop.permute.xlu1 %1068  ;;  %7809 = vmatpush1.bf16.msra.mxu1 %v7808_v61 }
 0x1ea   :  { %1076 = vst.msk [vmem:[#allocation2 + $0x3d0] sm:$0xff] %vm948_vm12, %v1069_v0  ;;  %v1067_v3 = vpop.permute.xlu0 %1066  ;;  %7811 = vmatprep.subr.bf16.mxu1 %v7810_v63  ;;  %v1377_v7 = vld [vmem:[#allocation2 + $0x130] sm:$0xff] }
 0x1eb   :  { %v1070_v5 = vsel %vm948_vm12, %v1067_v3, %v1069_v0  ;;  %1074 = vst.msk [vmem:[#allocation2 + $0x3c0] sm:$0xff] %vm945_vm7, %v1067_v3  ;;  %vm11058_vm7 = vcmask 285696   ;;  %v1422_v0 = vld [vmem:[#allocation2 + $0x298] sm:$0xff] }
 0x1ec   :  { %1775 = vmatprep.subr.mxu0 %v1070_v5 }
 0x1ed   :  { %v1230_v26 = vpop.permute.xlu1 %1229 }
 0x1ee   :  { %v1228_v8 = vpop.permute.xlu0 %1227  ;;  %v1391_v28 = vld [vmem:[#allocation2 + $0x1a0] sm:$0xff] }
 0x1ef   :  { %v1231_v13 = vsel %vm1093_vm14, %v1228_v8, %v1230_v26  ;;  %1235 = vst.msk [vmem:[#allocation2 + $0x60] sm:$0xff] %vm1234_vm2, %v1228_v8  ;;  %v7812_v62 = vpack.c.bf16 %v1391_v28, %v1377_v7 }
 0x1f0   :  { %1236 = vst.msk [vmem:[#allocation2 + $0x68] sm:$0xff] %vm11065_vm1, %v1231_v13 }
 0x1f1   :  { %v1244_v14 = vpop.permute.xlu1 %1243  ;;  %7813 = vmatpush1.bf16.msra.mxu1 %v7812_v62 }
 0x1f2   :  { %v1242_v15 = vpop.permute.xlu0 %1241  ;;  %v1459_v17 = vld [vmem:[#allocation2 + $0x3c0] sm:$0xff] }
 0x1f3   :  { %v1246_v18 = vsel %vm11057_vm13, %v1242_v15, %v1244_v14  ;;  %1249 = vst.msk [vmem:[#allocation2 + $0xd0] sm:$0xff] %vm1234_vm2, %v1242_v15  ;;  %1776 = vmatpush1.msra.mxu0 %v1459_v17  ;;  %vm11060_vm13 = vcmask 277504   ;;  %v8189_v17 = vld [vmem:[#allocation10] sm:$0xff] }
 0x1f4   :  { %1250 = vst.msk [vmem:[#allocation2 + $0xd8] sm:$0xff] %vm11065_vm1, %v1246_v18  ;;  %7674 = vmatmul.mubr.msk.f32.vlgmr.msra.gmra.mrb[2].mxu0 %vm1471_vm15, %v8932_v31 }
 0x1f5   :  { %v1150_v4 = vpop.permute.xlu1 %1149  ;;  %1965 = vmatprep.mubr.f32.mxu0 %v8383_v16 }
 0x1f6   :  { %1158 = vst.msk [vmem:[#allocation2 + $0x220] sm:$0xff] %vm1093_vm14, %v1150_v4  ;;  %v1148_v1 = vpop.permute.xlu0 %1147  ;;  %v1351_v22 = vld [vmem:[#allocation2 + $0x60] sm:$0xff] }
 0x1f7   :  { %v1152_v20 = vsel %vm11058_vm7, %v1148_v1, %v1150_v4  ;;  %1156 = vst.msk [vmem:[#allocation2 + $0x210] sm:$0xff] %vm1090_vm11, %v1148_v1  ;;  %v1352_v24 = vld [vmem:[#allocation2 + $0x68] sm:$0xff]  ;;  %vm11061_vm7 = vcmask 130048  }
 0x1f9   :  { %v1166_v23 = vpop.permute.xlu1 %1165 }
 0x1fa   :  { %1174 = vst.msk [vmem:[#allocation2 + $0x290] sm:$0xff] %vm1093_vm14, %v1166_v23  ;;  %v1164_v27 = vpop.permute.xlu0 %1163  ;;  %v1365_v29 = vld [vmem:[#allocation2 + $0xd0] sm:$0xff] }
 0x1fb   :  { %1295 = vst.msk [vmem:[#allocation2 + $0x290] sm:$0xff] %vm1234_vm2, %v9079_v42  ;;  %v1168_v31 = vsel %vm11060_vm13, %v1164_v27, %v1166_v23  ;;  %v1366_v30 = vld [vmem:[#allocation2 + $0xd8] sm:$0xff]  ;;  %v7824_v33 = vpack.c.bf16 %v1365_v29, %v1351_v22  ;;  %vm1183_vm13 = vcmask 162816  }
 0x1fc   :  { %1172 = vst.msk [vmem:[#allocation2 + $0x280] sm:$0xff] %vm1090_vm11, %v1164_v27  ;;  %v7814_v34 = vpack.c.bf16 %v1168_v31, %v1152_v20  ;;  %v7822_v35 = vpack.c.bf16 %v1366_v30, %v1352_v24 }
 0x1fd   :  { %v1258_v36 = vpop.permute.xlu1 %1257 }
 0x1fe   :  { %v1256_v37 = vpop.permute.xlu0 %1255  ;;  %7815 = vmatprep.subr.bf16.mxu1 %v7814_v34  ;;  %7823 = vmatprep.subr.bf16.mxu0 %v7822_v35  ;;  %v1405_v42 = vld [vmem:[#allocation2 + $0x210] sm:$0xff] }
 0x1ff   :  { %v1260_v38 = vsel %vm11061_vm7, %v1256_v37, %v1258_v36  ;;  %1263 = vst.msk [vmem:[#allocation2 + $0x140] sm:$0xff] %vm1234_vm2, %v1256_v37  ;;  %7825 = vmatpush1.bf16.msra.mxu0 %v7824_v33  ;;  %vm11063_vm7 = vcmask 154624  }
 0x200   :  { %1264 = vst.msk [vmem:[#allocation2 + $0x148] sm:$0xff] %vm11065_vm1, %v1260_v38 }
 0x201   :  { %v1272_v39 = vpop.permute.xlu1 %1271 }
 0x202   :  { %v1270_v41 = vpop.permute.xlu0 %1269  ;;  %v1421_v61 = vld [vmem:[#allocation2 + $0x290] sm:$0xff] }
 0x203   :  { %v1419_v2 = vld [vmem:[#allocation2 + $0x280] sm:$0xff]  ;;  %v1274_v6 = vsel %vm11062_vm0, %v1270_v41, %v1272_v39  ;;  %1277 = vst.msk [vmem:[#allocation2 + $0x1b0] sm:$0xff] %vm1234_vm2, %v1270_v41  ;;  %vm11064_vm0 = vcmask 7168  }
 0x204   :  { %v7816_v43 = vpack.c.bf16 %v1419_v2, %v1405_v42  ;;  %1278 = vst.msk [vmem:[#allocation2 + $0x1b8] sm:$0xff] %vm11065_vm1, %v1274_v6 }
 0x205   :  { %v1182_v45 = vpop.permute.xlu1 %1181 }
 0x206   :  { %7817 = vmatpush1.bf16.msra.mxu1 %v7816_v43  ;;  %1190 = vst.msk [vmem:[#allocation2 + $0x300] sm:$0xff] %vm1093_vm14, %v1182_v45  ;;  %v1180_v46 = vpop.permute.xlu0 %1179  ;;  %v1379_v56 = vld [vmem:[#allocation2 + $0x140] sm:$0xff] }
 0x207   :  { %v1184_v54 = vsel %vm1183_vm13, %v1180_v46, %v1182_v45  ;;  %1188 = vst.msk [vmem:[#allocation2 + $0x2f0] sm:$0xff] %vm1090_vm11, %v1180_v46  ;;  %v1380_v48 = vld [vmem:[#allocation2 + $0x148] sm:$0xff] }
 0x209   :  { %v1198_v47 = vpop.permute.xlu1 %1197 }
 0x20a   :  { %1206 = vst.msk [vmem:[#allocation2 + $0x370] sm:$0xff] %vm1093_vm14, %v1198_v47  ;;  %v1196_v32 = vpop.permute.xlu0 %1195  ;;  %v1393_v49 = vld [vmem:[#allocation2 + $0x1b0] sm:$0xff] }
 0x20b   :  { %v1200_v51 = vsel %vm11063_vm7, %v1196_v32, %v1198_v47  ;;  %1204 = vst.msk [vmem:[#allocation2 + $0x360] sm:$0xff] %vm1090_vm11, %v1196_v32  ;;  %v1394_v25 = vld [vmem:[#allocation2 + $0x1b8] sm:$0xff]  ;;  %v7828_v52 = vpack.c.bf16 %v1393_v49, %v1379_v56  ;;  %vm1305_vm7 = vcmask 932864  }
 0x20c   :  { %v7818_v19 = vpack.c.bf16 %v1200_v51, %v1184_v54  ;;  %v7826_v21 = vpack.c.bf16 %v1394_v25, %v1380_v48 }
 0x20e   :  { %v1286_v53 = vpop.permute.xlu1 %1285  ;;  %v1284_v55 = vpop.permute.xlu0 %1283  ;;  %7819 = vmatprep.subr.bf16.mxu1 %v7818_v19  ;;  %7827 = vmatprep.subr.bf16.mxu0 %v7826_v21  ;;  %v1433_v50 = vld [vmem:[#allocation2 + $0x2f0] sm:$0xff] }
 0x20f   :  { %v1288_v57 = vsel %vm11064_vm0, %v1284_v55, %v1286_v53  ;;  %1291 = vst.msk [vmem:[#allocation2 + $0x220] sm:$0xff] %vm1234_vm2, %v1284_v55  ;;  %7829 = vmatpush1.bf16.msra.mxu0 %v7828_v52  ;;  %vm1319_vm0 = vcmask 924672  }
 0x210   :  { %1292 = vst.msk [vmem:[#allocation2 + $0x228] sm:$0xff] %vm11065_vm1, %v1288_v57 }
 0x212   :  { %v1214_v44 = vpop.permute.xlu1 %1213  ;;  %v1212_v58 = vpop.permute.xlu0 %1211  ;;  %v1447_v40 = vld [vmem:[#allocation2 + $0x360] sm:$0xff] }
 0x213   :  { %1221 = vst.msk [vmem:[#allocation2 + $0x3e0] sm:$0xff] %vm1093_vm14, %v1214_v44  ;;  %v1215_v59 = vsel %vm1093_vm14, %v1212_v58, %v1214_v44  ;;  %v7820_v60 = vpack.c.bf16 %v1447_v40, %v1433_v50 }
 0x214   :  { %1219 = vst.msk [vmem:[#allocation2 + $0x3d0] sm:$0xff] %vm1090_vm11, %v1212_v58 }
 0x215   :  { %7821 = vmatpush1.bf16.msra.mxu1 %v7820_v60 }
 0x216   :  { %v1304_v63 = vpop.permute.xlu1 %1303  ;;  %v1302_v3 = vpop.permute.xlu0 %1301  ;;  %1846 = vmatprep.subr.mxu1 %v1215_v59  ;;  %v1407_v5 = vld [vmem:[#allocation2 + $0x220] sm:$0xff] }
 0x217   :  { %1310 = vst.msk [vmem:[#allocation2 + $0x308] sm:$0xff] %vm11065_vm1, %v1304_v63  ;;  %v1306_v7 = vsel %vm1305_vm7, %v1302_v3, %v1304_v63  ;;  %v1408_v26 = vld [vmem:[#allocation2 + $0x228] sm:$0xff]  ;;  %v7832_v8 = vpack.c.bf16 %v1421_v61, %v1407_v5 }
 0x218   :  { %1309 = vst.msk [vmem:[#allocation2 + $0x300] sm:$0xff] %vm1234_vm2, %v1306_v7  ;;  %v7830_v28 = vpack.c.bf16 %v1422_v0, %v1408_v26 }
 0x21a   :  { %v1318_v13 = vpop.permute.xlu1 %1317  ;;  %v1316_v62 = vpop.permute.xlu0 %1315  ;;  %7831 = vmatprep.subr.bf16.mxu0 %v7830_v28 }
 0x21b   :  { %1324 = vst.msk [vmem:[#allocation2 + $0x378] sm:$0xff] %vm11065_vm1, %v1318_v13  ;;  %v1461_v14 = vld [vmem:[#allocation2 + $0x3d0] sm:$0xff]  ;;  %v1320_v15 = vsel %vm1319_vm0, %v1316_v62, %v1318_v13  ;;  %7833 = vmatpush1.bf16.msra.mxu0 %v7832_v8 }
 0x21c   :  { %1847 = vmatpush1.msra.mxu1 %v1461_v14  ;;  %1323 = vst.msk [vmem:[#allocation2 + $0x370] sm:$0xff] %vm1234_vm2, %v1320_v15  ;;  %v1541_v18 = vpop.f32.mrb[0].mxu1 }
 0x21d   :  { %7675 = vmatmul.mubr.msk.f32.vlgmr.msra.gmra.mrb[6].mxu1 %vm1471_vm15, %v8189_v17  ;;  %v1543_v1 = vpop.f32.mrb[1].mxu1 }
 0x21e   :  { %v1332_v4 = vpop.permute.xlu1 %1331  ;;  %3323 = vmatprep.mubr.f32.mxu1 %v8383_v16  ;;  %v1436_v23 = vld [vmem:[#allocation2 + $0x308] sm:$0xff] }
 0x21f   :  { %1337 = vst.msk [vmem:[#allocation2 + $0x3e8] sm:$0xff] %vm11065_vm1, %v1332_v4  ;;  %v1330_v20 = vpop.permute.xlu0 %1329  ;;  %v1435_v27 = vld [vmem:[#allocation2 + $0x300] sm:$0xff] }
 0x220   :  { %v1333_v22 = vsel %vm11065_vm1, %v1330_v20, %v1332_v4 }
 0x221   :  { %1336 = vst.msk [vmem:[#allocation2 + $0x3e0] sm:$0xff] %vm1234_vm2, %v1333_v22 }
 0x222   :  { %v1450_v24 = vld [vmem:[#allocation2 + $0x378] sm:$0xff] }
 0x223   :  { %v7834_v29 = vpack.c.bf16 %v1450_v24, %v1436_v23  ;;  %v1449_v31 = vld [vmem:[#allocation2 + $0x370] sm:$0xff] }
 0x224   :  { %v7836_v30 = vpack.c.bf16 %v1449_v31, %v1435_v27 }
 0x225   :  { %7835 = vmatprep.subr.bf16.mxu0 %v7834_v29 }
 0x226   :  { %v1464_v33 = vld [vmem:[#allocation2 + $0x3e8] sm:$0xff]  ;;  %7837 = vmatpush1.bf16.msra.mxu0 %v7836_v30 }
 0x227   :  { %1917 = vmatprep.subr.mxu0 %v1464_v33 }
 0x228   :  { %v1463_v34 = vld [vmem:[#allocation2 + $0x3e0] sm:$0xff] }
 0x22a   :  { %1918 = vmatpush1.msra.mxu0 %v1463_v34 }
 0x22b   :  { %7676 = vmatmul.mubr.msk.f32.vlgmr.msra.gmra.mrb[4].mxu0 %vm1471_vm15, %v8189_v17 }
 0x22c   :  { %3400 = vmatprep.mubr.f32.mxu0 %v8383_v16 }
 0x230   :  { %v9298_v35 = vpop.permute.xlu0 %1468 }
 0x231   :  { %v1542_v36 = vadd.f32 %v1541_v18, %v9298_v35  ;;  %v1544_v37 = vadd.f32 %v1543_v1, %v9298_v35 }
 0x233   :  { %v9302_v38 = vmax.f32 %v1542_v36, 0.0  ;;  %v1973_v42 = vmax.f32 %v1544_v37, 0.0 }
 0x235   :  { %2008 = vrot.lane.b32.xlu1 %v9302_v38, %s8368_s1  ;;  %2021 = vrot.lane.b32.xlu0 %v9302_v38, %s8371_s16  ;;  %2003 = vst.msk [vmem:[#allocation4 + $0x8] sm:$0xff] %vm386_vm9, %v1973_v42 }
 0x239   :  { %2010 = vrot.lane.b32.xlu1 %v1973_v42, %s8368_s1  ;;  %2034 = vrot.lane.b32.xlu0 %v9302_v38, %s8370_s8  ;;  %s11068_s1 = smov 59  }
 0x23d   :  { %2023 = vrot.lane.b32.xlu1 %v1973_v42, %s8371_s16  ;;  %2047 = vrot.lane.b32.xlu0 %v9302_v38, %s8375_s11  ;;  %s11069_s16 = smov 58  }
 0x241   :  { %2036 = vrot.lane.b32.xlu1 %v1973_v42, %s8370_s8  ;;  %2060 = vrot.lane.b32.xlu0 %v9302_v38, %s8374_s9 }
 0x245   :  { %2049 = vrot.lane.b32.xlu1 %v1973_v42, %s8375_s11  ;;  %2073 = vrot.lane.b32.xlu0 %v9302_v38, %s8379_s17  ;;  %s11071_s11 = smov 43  }
 0x249   :  { %2062 = vrot.lane.b32.xlu1 %v1973_v42, %s8374_s9  ;;  %2086 = vrot.lane.b32.xlu0 %v9302_v38, %s8378_s15  ;;  %s11070_s9 = smov 44  }
 0x24d   :  { %2075 = vrot.lane.b32.xlu1 %v1973_v42, %s8379_s17  ;;  %2099 = vrot.lane.b32.xlu0 %v9302_v38, %s8367_s12 }
 0x251   :  { %2088 = vrot.lane.b32.xlu1 %v1973_v42, %s8378_s15  ;;  %s11072_s15 = smov 42  }
 0x255   :  { %2114 = vrot.lane.b32.xlu1 %v1973_v42, %s8367_s12 }
 0x259   :  { %2132 = vrot.lane.b32.xlu1 %v1973_v42, %s8369_s30 }
 0x25d   :  { %2150 = vrot.lane.b32.xlu1 %v1973_v42, %s8373_s25 }
 0x261   :  { %2168 = vrot.lane.b32.xlu1 %v1973_v42, %s8372_s22 }
 0x265   :  { %2186 = vrot.lane.b32.xlu1 %v1973_v42, %s8377_s13 }
 0x269   :  { %2204 = vrot.lane.b32.xlu1 %v1973_v42, %s8376_s28 }
 0x26d   :  { %v1612_v39 = vpop.f32.mrb[2].mxu1  ;;  %2222 = vrot.lane.b32.xlu1 %v1973_v42, %s11066_s2 }
 0x26e   :  { %v1613_v41 = vadd.f32 %v1612_v39, %v9298_v35  ;;  %v1614_v2 = vpop.f32.mrb[3].mxu1 }
 0x26f   :  { %v1615_v6 = vadd.f32 %v1614_v2, %v9298_v35 }
 0x270   :  { %v9337_v43 = vmax.f32 %v1613_v41, 0.0 }
 0x271   :  { %v9339_v45 = vmax.f32 %v1615_v6, 0.0  ;;  %2240 = vrot.lane.b32.xlu1 %v1973_v42, %s11067_s7 }
 0x27e   :  { %v1683_v46 = vpop.f32.mrb[0].mxu0 }
 0x27f   :  { %v1684_v54 = vadd.f32 %v1683_v46, %v9298_v35  ;;  %v1685_v56 = vpop.f32.mrb[1].mxu0 }
 0x280   :  { %v1686_v47 = vadd.f32 %v1685_v56, %v9298_v35 }
 0x281   :  { %v9344_v48 = vmax.f32 %v1684_v54, 0.0 }
 0x282   :  { %v9346_v32 = vmax.f32 %v1686_v47, 0.0 }
 0x283   :  { %2271 = vrot.lane.b32.xlu0 %v9344_v48, %s8382_s19 }
 0x284   :  { %2434 = vrot.lane.b32.xlu1 %v9346_v32, %s8386_s23 }
 0x287   :  { %2286 = vrot.lane.b32.xlu0 %v9344_v48, %s11068_s1 }
 0x288   :  { %2447 = vrot.lane.b32.xlu1 %v9346_v32, %s8388_s21 }
 0x28b   :  { %2301 = vrot.lane.b32.xlu0 %v9344_v48, %s11069_s16 }
 0x28c   :  { %2101 = vrot.lane.b32.xlu1 %v1973_v42, %s8367_s12 }
 0x28f   :  { %2318 = vrot.lane.b32.xlu0 %v9344_v48, %s11070_s9 }
 0x290   :  { %2460 = vrot.lane.b32.xlu1 %v9346_v32, %s8390_s6 }
 0x293   :  { %2338 = vrot.lane.b32.xlu0 %v9344_v48, %s11071_s11 }
 0x294   :  { %2473 = vrot.lane.b32.xlu1 %v9346_v32, %s8392_s29 }
 0x297   :  { %2358 = vrot.lane.b32.xlu0 %v9344_v48, %s11072_s15 }
 0x298   :  { %2118 = vrot.lane.b32.xlu1 %v9339_v45, %s8367_s12 }
 0x29b   :  { %2378 = vrot.lane.b32.xlu0 %v9344_v48, %s8393_s20 }
 0x29c   :  { %2269 = vrot.lane.b32.xlu1 %v9339_v45, %s8382_s19 }
 0x29f   :  { %2398 = vrot.lane.b32.xlu0 %v9344_v48, %s11073_s3 }
 0x2a0   :  { %2284 = vrot.lane.b32.xlu1 %v9339_v45, %s11068_s1  ;;  %s11084_s1 = smov 121  }
 0x2a3   :  { %2116 = vrot.lane.b32.xlu0 %v9337_v43, %s8367_s12  ;;  %s11075_s12 = smov 120  }
 0x2a4   :  { %2154 = vrot.lane.b32.xlu1 %v9339_v45, %s8373_s25 }
 0x2a7   :  { %2134 = vrot.lane.b32.xlu0 %v9337_v43, %s8369_s30  ;;  %v2009_v49 = vpop.permute.xlu1 %2008  ;;  %v2022_v51 = vpop.permute.xlu0 %2021 }
 0x2a8   :  { %2299 = vrot.lane.b32.xlu1 %v9339_v45, %s11069_s16  ;;  %s11091_s16 = smov 87  }
 0x2ab   :  { %2152 = vrot.lane.b32.xlu0 %v9337_v43, %s8373_s25  ;;  %v2011_v25 = vpop.permute.xlu1 %2010  ;;  %v2035_v52 = vpop.permute.xlu0 %2034 }
 0x2ac   :  { %v9390_v19 = vsel %vm267_vm3, %v2009_v49, %v2011_v25  ;;  %2016 = vst.msk [vmem:[#allocation4 + $0x68] sm:$0xff] %vm386_vm9, %v2011_v25  ;;  %2316 = vrot.lane.b32.xlu1 %v9339_v45, %s11070_s9  ;;  %vm11074_vm3 = vcmask 777216  }
 0x2af   :  { %2170 = vrot.lane.b32.xlu0 %v9337_v43, %s8372_s22  ;;  %v2024_v21 = vpop.permute.xlu1 %2023  ;;  %v2048_v55 = vpop.permute.xlu0 %2047 }
 0x2b0   :  { %2029 = vst.msk [vmem:[#allocation4 + $0xc8] sm:$0xff] %vm386_vm9, %v2024_v21  ;;  %2190 = vrot.lane.b32.xlu1 %v9339_v45, %s8377_s13  ;;  %v9401_v53 = vsel %vm281_vm4, %v2022_v51, %v2024_v21  ;;  %vm11081_vm4 = vcmask 769024  }
 0x2b1   :  { %vm11087_vm2 = vmmov %vm11081_vm4 }
 0x2b3   :  { %2188 = vrot.lane.b32.xlu0 %v9337_v43, %s8377_s13  ;;  %v2037_v57 = vpop.permute.xlu1 %2036  ;;  %v1754_v50 = vpop.f32.mrb[4].mxu1  ;;  %s11078_s13 = smov 104  }
 0x2b4   :  { %2042 = vst.msk [vmem:[#allocation4 + $0x128] sm:$0xff] %vm386_vm9, %v2037_v57  ;;  %2336 = vrot.lane.b32.xlu1 %v9339_v45, %s11071_s11  ;;  %v9409_v44 = vsel %vm11065_vm1, %v2035_v52, %v2037_v57  ;;  %v1755_v58 = vadd.f32 %v1754_v50, %v9298_v35  ;;  %v1756_v40 = vpop.f32.mrb[5].mxu1  ;;  %v2061_v0 = vpop.permute.xlu0 %2060 }
 0x2b5   :  { %v7844_v59 = vpack.c.bf16 %v9409_v44, %v9401_v53  ;;  %v1757_v60 = vadd.f32 %v1756_v40, %v9298_v35 }
 0x2b6   :  { %v9415_v61 = vmax.f32 %v1755_v58, 0.0 }
 0x2b7   :  { %2206 = vrot.lane.b32.xlu0 %v9337_v43, %s8376_s28  ;;  %v2050_v63 = vpop.permute.xlu1 %2049  ;;  %v9419_v3 = vmax.f32 %v1757_v60, 0.0 }
 0x2b8   :  { %2055 = vst.msk [vmem:[#allocation4 + $0x188] sm:$0xff] %vm386_vm9, %v2050_v63  ;;  %2356 = vrot.lane.b32.xlu1 %v9339_v45, %s11072_s15  ;;  %v9425_v5 = vsel %vm309_vm6, %v2048_v55, %v2050_v63  ;;  %v2074_v8 = vpop.permute.xlu0 %2073  ;;  %vm11086_vm6 = vmmov %vm11081_vm4 }
 0x2bb   :  { %2224 = vrot.lane.b32.xlu0 %v9337_v43, %s11066_s2  ;;  %v2063_v7 = vpop.permute.xlu1 %2062 }
 0x2bc   :  { %2068 = vst.msk [vmem:[#allocation4 + $0x1e8] sm:$0xff] %vm386_vm9, %v2063_v7  ;;  %2226 = vrot.lane.b32.xlu1 %v9339_v45, %s11066_s2  ;;  %v9433_v26 = vsel %vm323_vm5, %v2061_v0, %v2063_v7  ;;  %v2087_v15 = vpop.permute.xlu0 %2086  ;;  %s11082_s2 = smov 84   ;;  %vm11085_vm5 = vcmask 482304  }
 0x2bd   :  { %v7848_v28 = vpack.c.bf16 %v9433_v26, %v9425_v5 }
 0x2bf   :  { %2242 = vrot.lane.b32.xlu0 %v9337_v43, %s11067_s7  ;;  %v2076_v13 = vpop.permute.xlu1 %2075 }
 0x2c0   :  { %2081 = vst.msk [vmem:[#allocation4 + $0x248] sm:$0xff] %vm386_vm9, %v2076_v13  ;;  %2376 = vrot.lane.b32.xlu1 %v9339_v45, %s8393_s20  ;;  %v9443_v62 = vsel %vm337_vm8, %v2074_v8, %v2076_v13  ;;  %v2100_v42 = vpop.permute.xlu0 %2099 }
 0x2c3   :  { %2256 = vrot.lane.b32.xlu0 %v9337_v43, %s8382_s19  ;;  %v2089_v14 = vpop.permute.xlu1 %2088 }
 0x2c4   :  { %2094 = vst.msk [vmem:[#allocation4 + $0x2a8] sm:$0xff] %vm386_vm9, %v2089_v14  ;;  %2396 = vrot.lane.b32.xlu1 %v9339_v45, %s11073_s3  ;;  %v9451_v17 = vsel %vm11074_vm3, %v2087_v15, %v2089_v14  ;;  %vm11088_vm3 = vcmask 1048032  }
 0x2c5   :  { %v7852_v18 = vpack.c.bf16 %v9451_v17, %v9443_v62 }
 0x2c7   :  { %2136 = vrot.lane.b32.xlu0 %v9339_v45, %s8369_s30  ;;  %v1825_v4 = vpop.f32.mrb[2].mxu0  ;;  %v9457_v1 = vpop.permute.xlu1 %2114  ;;  %s11076_s30 = smov 119  }
 0x2c8   :  { %2320 = vrot.lane.b32.xlu1 %v9346_v32, %s11070_s9  ;;  %v1826_v20 = vadd.f32 %v1825_v4, %v9298_v35  ;;  %v1827_v22 = vpop.f32.mrb[3].mxu0 }
 0x2c9   :  { %v1828_v23 = vadd.f32 %v1827_v22, %v9298_v35 }
 0x2ca   :  { %v9463_v24 = vmax.f32 %v1826_v20, 0.0 }
 0x2cb   :  { %2172 = vrot.lane.b32.xlu0 %v9339_v45, %s8372_s22  ;;  %v9467_v27 = vmax.f32 %v1828_v23, 0.0  ;;  %v9471_v29 = vpop.permute.xlu1 %2132  ;;  %s11077_s22 = smov 118  }
 0x2cc   :  { %2416 = vrot.lane.b32.xlu1 %v9339_v45, %s8386_s23 }
 0x2cf   :  { %2208 = vrot.lane.b32.xlu0 %v9339_v45, %s8376_s28  ;;  %v9479_v31 = vpop.permute.xlu1 %2150 }
 0x2d0   :  { %2555 = vrot.lane.b32.xlu1 %v9419_v3, %s11075_s12 }
 0x2d3   :  { %2244 = vrot.lane.b32.xlu0 %v9339_v45, %s11067_s7  ;;  %v9487_v30 = vpop.permute.xlu1 %2168  ;;  %s11083_s7 = smov 70  }
 0x2d4   :  { %2576 = vrot.lane.b32.xlu1 %v9419_v3, %s11076_s30 }
 0x2d7   :  { %2436 = vrot.lane.b32.xlu0 %v9415_v61, %s8386_s23  ;;  %v9495_v33 = vpop.permute.xlu1 %2186 }
 0x2d8   :  { %2596 = vrot.lane.b32.xlu1 %v9419_v3, %s11077_s22 }
 0x2db   :  { %2449 = vrot.lane.b32.xlu0 %v9415_v61, %s8388_s21  ;;  %v9503_v34 = vpop.permute.xlu1 %2204  ;;  %s11079_s21 = smov 8  }
 0x2dc   :  { %2557 = vrot.lane.b32.xlu1 %v9463_v24, %s11075_s12 }
 0x2df   :  { %2553 = vrot.lane.b32.xlu0 %v9415_v61, %s11075_s12  ;;  %v9511_v36 = vpop.permute.xlu1 %2222 }
 0x2e0   :  { %2612 = vrot.lane.b32.xlu1 %v9419_v3, %s11078_s13 }
 0x2e3   :  { %2574 = vrot.lane.b32.xlu0 %v9415_v61, %s11076_s30  ;;  %v9520_v2 = vpop.permute.xlu1 %2240 }
 0x2e4   :  { %2706 = vrot.lane.b32.xlu1 %v9467_v27, %s8402_s14 }
 0x2e7   :  { %2462 = vrot.lane.b32.xlu0 %v9415_v61, %s8390_s6 }
 0x2e8   :  { %2725 = vrot.lane.b32.xlu1 %v9467_v27, %s8404_s27 }
 0x2eb   :  { %2475 = vrot.lane.b32.xlu0 %v9415_v61, %s8392_s29  ;;  %s11080_s29 = smov 102  }
 0x2ec   :  { %2488 = vrot.lane.b32.xlu1 %v9415_v61, %s8394_s26 }
 0x2ef   :  { %2594 = vrot.lane.b32.xlu0 %v9415_v61, %s11077_s22 }
 0x2f0   :  { %v1896_v37 = vpop.f32.mrb[6].mxu1  ;;  %2501 = vrot.lane.b32.xlu1 %v9415_v61, %s11079_s21 }
 0x2f1   :  { %v1897_v39 = vadd.f32 %v1896_v37, %v9298_v35  ;;  %v1898_v41 = vpop.f32.mrb[7].mxu1 }
 0x2f2   :  { %v1899_v6 = vadd.f32 %v1898_v41, %v9298_v35 }
 0x2f3   :  { %v9523_v43 = vmax.f32 %v1897_v39, 0.0  ;;  %2258 = vrot.lane.b32.xlu0 %v9339_v45, %s8382_s19 }
 0x2f4   :  { %v9527_v46 = vmax.f32 %v1899_v6, 0.0  ;;  %2360 = vrot.lane.b32.xlu1 %v9346_v32, %s11072_s15  ;;  %s11101_s15 = smov 68  }
 0x2f5   :  { %1996 = vst [vmem:[#allocation3 + $0x50] sm:$0xff] %v9523_v43  ;;  %v2272_v54 = vpop.permute.xlu0 %2271 }
 0x2f6   :  { %1997 = vst [vmem:[#allocation3 + $0x58] sm:$0xff] %v9527_v46  ;;  %2279 = vst.msk [vmem:[#allocation4 + $0x20] sm:$0xff] %vm948_vm12, %v2272_v54  ;;  %v9534_v56 = vpop.permute.xlu1 %2434 }
 0x2f7   :  { %2441 = vst.msk [vmem:[#allocation4 + $0x20] sm:$0xff] %vm1090_vm11, %v9534_v56  ;;  %2418 = vrot.lane.b32.xlu0 %v9344_v48, %s8386_s23 }
 0x2f8   :  { %2614 = vrot.lane.b32.xlu1 %v9463_v24, %s11078_s13 }
 0x2f9   :  { %v2287_v45 = vpop.permute.xlu0 %2286 }
 0x2fa   :  { %2294 = vst.msk [vmem:[#allocation4 + $0x80] sm:$0xff] %vm948_vm12, %v2287_v45  ;;  %v9543_v47 = vpop.permute.xlu1 %2447 }
 0x2fb   :  { %2454 = vst.msk [vmem:[#allocation4 + $0x80] sm:$0xff] %vm1090_vm11, %v9543_v47  ;;  %2578 = vrot.lane.b32.xlu0 %v9463_v24, %s11076_s30  ;;  %s11110_s30 = smov 54  }
 0x2fc   :  { %2642 = vrot.lane.b32.xlu1 %v9419_v3, %s11080_s29 }
 0x2fd   :  { %v2302_v49 = vpop.permute.xlu0 %2301 }
 0x2fe   :  { %2309 = vst.msk [vmem:[#allocation4 + $0xe0] sm:$0xff] %vm948_vm12, %v2302_v49  ;;  %v2102_v48 = vpop.permute.xlu1 %2101  ;;  %v1967_v51 = vpop.f32.mrb[4].mxu0 }
 0x2ff   :  { %v9553_v25 = vsel %vm11081_vm4, %v2100_v42, %v2102_v48  ;;  %2107 = vst.msk [vmem:[#allocation4 + $0x308] sm:$0xff] %vm386_vm9, %v2102_v48  ;;  %2704 = vrot.lane.b32.xlu0 %v9463_v24, %s8402_s14  ;;  %v1968_v52 = vadd.f32 %v1967_v51, %v9298_v35  ;;  %v1969_v21 = vpop.f32.mrb[5].mxu0  ;;  %vm11090_vm4 = vcmask 1048512  }
 0x300   :  { %2743 = vrot.lane.b32.xlu1 %v9467_v27, %s11082_s2  ;;  %v1970_v55 = vadd.f32 %v1969_v21, %v9298_v35 }
 0x301   :  { %v9562_v57 = vpop.permute.xlu0 %2318  ;;  %v9564_v50 = vmax.f32 %v1968_v52, 0.0 }
 0x302   :  { %v9566_v58 = vpop.permute.xlu1 %2460  ;;  %v1985_v40 = vmax.f32 %v1970_v55, 0.0 }
 0x303   :  { %2467 = vst.msk [vmem:[#allocation4 + $0xe0] sm:$0xff] %vm1090_vm11, %v9566_v58  ;;  %2723 = vrot.lane.b32.xlu0 %v9463_v24, %s8404_s27  ;;  %1998 = vst [vmem:[#allocation3 + $0x60] sm:$0xff] %v9564_v50 }
 0x304   :  { %2761 = vrot.lane.b32.xlu1 %v9467_v27, %s11083_s7  ;;  %1999 = vst.msk [vmem:[#allocation3 + $0x68] sm:$0xff] %vm11065_vm1, %v1985_v40 }
 0x305   :  { %v9576_v35 = vpop.permute.xlu0 %2338 }
 0x306   :  { %v9578_v60 = vpop.permute.xlu1 %2473 }
 0x307   :  { %2486 = vrot.lane.b32.xlu0 %v9346_v32, %s8394_s26  ;;  %s11089_s26 = smov 103  }
 0x308   :  { %2400 = vrot.lane.b32.xlu1 %v9346_v32, %s11073_s3  ;;  %s11108_s3 = smov 122  }
 0x309   :  { %v9584_v63 = vpop.permute.xlu0 %2358 }
 0x30a   :  { %v2119_v0 = vpop.permute.xlu1 %2118 }
 0x30b   :  { %2499 = vrot.lane.b32.xlu0 %v9346_v32, %s11079_s21  ;;  %v9588_v7 = vld [vmem:[#allocation3 + $0x68] sm:$0xff] }
 0x30c   :  { %2527 = vrot.lane.b32.xlu1 %v9415_v61, %s11084_s1  ;;  %3091 = vst.msk [vmem:[#allocation4 + $0x238] sm:$0xff] %vm337_vm8, %v9588_v7 }
 0x30d   :  { %v9594_v8 = vpop.permute.xlu0 %2378 }
 0x30e   :  { %v2270_v13 = vpop.permute.xlu1 %2269 }
 0x30f   :  { %v2273_v14 = vsel %vm386_vm9, %v2270_v13, %v2272_v54  ;;  %2340 = vrot.lane.b32.xlu0 %v9346_v32, %s11071_s11  ;;  %s11095_s11 = smov 69  }
 0x310   :  { %2525 = vrot.lane.b32.xlu1 %v9346_v32, %s11084_s1  ;;  %s11136_s1 = smov 36  }
 0x311   :  { %v9601_v15 = vpop.permute.xlu0 %2398 }
 0x312   :  { %v9603_v4 = vpop.permute.xlu1 %2284 }
 0x313   :  { %v2288_v20 = vsel %vm11085_vm5, %v9603_v4, %v2287_v45  ;;  %2598 = vrot.lane.b32.xlu0 %v9463_v24, %s11077_s22  ;;  %vm11092_vm5 = vcmask 760832   ;;  %s11114_s22 = smov 53  }
 0x314   :  { %2644 = vrot.lane.b32.xlu1 %v9463_v24, %s11080_s29  ;;  %v7854_v22 = vpack.c.bf16 %v2288_v20, %v2273_v14  ;;  %s11122_s29 = smov 88  }
 0x315   :  { %v2117_v23 = vpop.permute.xlu0 %2116 }
 0x316   :  { %v2120_v37 = vsel %vm11086_vm6, %v9457_v1, %v2117_v23  ;;  %v2121_v42 = vsel %vm11087_vm2, %v2117_v23, %v2119_v0  ;;  %v2155_v39 = vpop.permute.xlu1 %2154  ;;  %7855 = vmatprep.subr.bf16.mxu0 %v7854_v22  ;;  %vm11093_vm6 = vmmov %vm11088_vm3  ;;  %vm11094_vm2 = vcmask 474112  }
 0x317   :  { %2124 = vst.msk [vmem:[#allocation4 + $0x8] sm:$0xff] %vm11088_vm3, %v2120_v37  ;;  %2627 = vrot.lane.b32.xlu0 %v9419_v3, %s11089_s26  ;;  %vm11096_vm3 = vcmask 752640  }
 0x318   :  { %2125 = vst.msk [vmem:[#allocation4 + $0x10] sm:$0xff] %vm674_vm10, %v2121_v42  ;;  %2672 = vrot.lane.b32.xlu1 %v9419_v3, %s11091_s16 }
 0x319   :  { %2277 = vst.msk [vmem:[#allocation4 + $0x10] sm:$0xff] %vm11090_vm4, %v2270_v13  ;;  %v9621_v41 = vpop.permute.xlu0 %2134  ;;  %vm11097_vm4 = vmmov %vm11096_vm3  ;;  %v7840_v13 = vpack.c.bf16 %v9390_v19, %v9302_v38 }
 0x31a   :  { %v2138_v1 = vsel %vm11092_vm5, %v9471_v29, %v9621_v41  ;;  %v2300_v6 = vpop.permute.xlu1 %2299  ;;  %vm11098_vm5 = vmmov %vm11093_vm6 }
 0x31b   :  { %2142 = vst.msk [vmem:[#allocation4 + $0x68] sm:$0xff] %vm11093_vm6, %v2138_v1  ;;  %v9628_v54 = vsel %vm11094_vm2, %v2300_v6, %v2302_v49  ;;  %2741 = vrot.lane.b32.xlu0 %v9463_v24, %s11082_s2  ;;  %vm11099_vm6 = vcmask 359424   ;;  %vm11100_vm2 = vcmask 1048512  }
 0x31c   :  { %2779 = vrot.lane.b32.xlu1 %v9467_v27, %s11095_s11 }
 0x31d   :  { %v2153_v45 = vpop.permute.xlu0 %2152 }
 0x31e   :  { %v2156_v48 = vsel %vm11096_vm3, %v9479_v31, %v2153_v45  ;;  %v2157_v51 = vsel %vm11097_vm4, %v2153_v45, %v2155_v39  ;;  %v9637_v52 = vpop.permute.xlu1 %2316  ;;  %vm11102_vm3 = vcmask 637952   ;;  %v3134_v55 = vld [vmem:[#allocation4 + $0x8] sm:$0xff]  ;;  %vm11103_vm4 = vmmov %vm11098_vm5 }
 0x31f   :  { %2160 = vst.msk [vmem:[#allocation4 + $0xc8] sm:$0xff] %vm11098_vm5, %v2156_v48  ;;  %v9644_v29 = vsel %vm11099_vm6, %v9637_v52, %v9562_v57  ;;  %2759 = vrot.lane.b32.xlu0 %v9463_v24, %s11083_s7  ;;  %vm11104_vm5 = vcmask 629760  }
 0x320   :  { %2161 = vst.msk [vmem:[#allocation4 + $0xd0] sm:$0xff] %vm674_vm10, %v2157_v51  ;;  %2797 = vrot.lane.b32.xlu1 %v9467_v27, %s11101_s15  ;;  %vm11105_vm6 = vmmov %vm11104_vm5  ;;  %v3135_v17 = vld [vmem:[#allocation4 + $0x10] sm:$0xff] }
 0x321   :  { %2307 = vst.msk [vmem:[#allocation4 + $0xd0] sm:$0xff] %vm11100_vm2, %v2300_v6  ;;  %v9651_v31 = vpop.permute.xlu0 %2170  ;;  %vm11106_vm2 = vmmov %vm11103_vm4 }
 0x322   :  { %v2174_v49 = vsel %vm11102_vm3, %v9487_v30, %v9651_v31  ;;  %v2191_v21 = vpop.permute.xlu1 %2190  ;;  %v3146_v40 = vld [vmem:[#allocation4 + $0x68] sm:$0xff]  ;;  %vm11107_vm3 = vcmask 351232  }
 0x323   :  { %2178 = vst.msk [vmem:[#allocation4 + $0x128] sm:$0xff] %vm11103_vm4, %v2174_v49  ;;  %2380 = vrot.lane.b32.xlu0 %v9346_v32, %s8393_s20  ;;  %v7838_v0 = vpack.c.bf16 %v3146_v40, %v3134_v55  ;;  %vm11109_vm4 = vcmask 1048512  }
 0x324   :  { %2674 = vrot.lane.b32.xlu1 %v9463_v24, %s11091_s16  ;;  %s11150_s16 = smov 2  }
 0x325   :  { %v2189_v14 = vpop.permute.xlu0 %2188  ;;  %7839 = vmatprep.subr.bf16.mxu1 %v7838_v0 }
 0x326   :  { %v2192_v30 = vsel %vm11104_vm5, %v9495_v33, %v2189_v14  ;;  %v2193_v20 = vsel %vm11105_vm6, %v2189_v14, %v2191_v21  ;;  %v2337_v22 = vpop.permute.xlu1 %2336  ;;  %7841 = vmatpush1.bf16.msra.mxu1 %v7840_v13  ;;  %vm11111_vm5 = vcmask 621568   ;;  %v3158_v37 = vld [vmem:[#allocation4 + $0xc8] sm:$0xff]  ;;  %vm11112_vm6 = vmmov %vm11106_vm2 }
 0x327   :  { %2196 = vst.msk [vmem:[#allocation4 + $0x188] sm:$0xff] %vm11106_vm2, %v2192_v30  ;;  %v9670_v23 = vsel %vm11107_vm3, %v2337_v22, %v9576_v35  ;;  %2514 = vrot.lane.b32.xlu0 %v9415_v61, %s11108_s3  ;;  %vm11113_vm2 = vcmask 343040   ;;  %vm11115_vm3 = vcmask 506880  }
 0x328   :  { %2197 = vst.msk [vmem:[#allocation4 + $0x190] sm:$0xff] %vm674_vm10, %v2193_v20  ;;  %2815 = vrot.lane.b32.xlu1 %v9467_v27, %s11110_s30 }
 0x329   :  { %2347 = vst.msk [vmem:[#allocation4 + $0x190] sm:$0xff] %vm11109_vm4, %v2337_v22  ;;  %v9677_v38 = vpop.permute.xlu0 %2206  ;;  %vm11116_vm4 = vmmov %vm11112_vm6 }
 0x32a   :  { %v2210_v19 = vsel %vm11111_vm5, %v9503_v34, %v9677_v38  ;;  %v9682_v33 = vpop.permute.xlu1 %2356  ;;  %v3170_v42 = vld [vmem:[#allocation4 + $0x128] sm:$0xff]  ;;  %vm11117_vm5 = vmmov %vm11115_vm3 }
 0x32b   :  { %2214 = vst.msk [vmem:[#allocation4 + $0x1e8] sm:$0xff] %vm11112_vm6, %v2210_v19  ;;  %v9688_v39 = vsel %vm11113_vm2, %v9682_v33, %v9584_v63  ;;  %2512 = vrot.lane.b32.xlu0 %v9346_v32, %s11108_s3  ;;  %v7842_v1 = vpack.c.bf16 %v3170_v42, %v3158_v37  ;;  %vm11118_vm6 = vcmask 498688   ;;  %vm11119_vm2 = vmmov %vm11116_vm4  ;;  %s11168_s3 = smov 114  }
 0x32c   :  { %2833 = vrot.lane.b32.xlu1 %v9467_v27, %s11114_s22 }
 0x32d   :  { %v2225_v6 = vpop.permute.xlu0 %2224  ;;  %7843 = vmatprep.subr.bf16.mxu1 %v7842_v1  ;;  %v7862_v1 = vpack.c.bf16 %v9688_v39, %v9670_v23 }
 0x32e   :  { %v2228_v34 = vsel %vm11115_vm3, %v9511_v36, %v2225_v6  ;;  %v2227_v45 = vpop.permute.xlu1 %2226  ;;  %7845 = vmatpush1.bf16.msra.mxu1 %v7844_v59  ;;  %v3182_v21 = vld [vmem:[#allocation4 + $0x188] sm:$0xff]  ;;  %vm11120_vm3 = vcmask 228352  }
 0x32f   :  { %2232 = vst.msk [vmem:[#allocation4 + $0x248] sm:$0xff] %vm11116_vm4, %v2228_v34  ;;  %v2229_v48 = vsel %vm11117_vm5, %v2225_v6, %v2227_v45  ;;  %2629 = vrot.lane.b32.xlu0 %v9463_v24, %s11089_s26  ;;  %vm11121_vm4 = vcmask 1048512   ;;  %vm11123_vm5 = vmmov %vm11119_vm2  ;;  %s11146_s26 = smov 16  }
 0x330   :  { %2233 = vst.msk [vmem:[#allocation4 + $0x250] sm:$0xff] %vm674_vm10, %v2229_v48  ;;  %2540 = vrot.lane.b32.xlu1 %v9415_v61, %s11075_s12  ;;  %v3183_v45 = vld [vmem:[#allocation4 + $0x190] sm:$0xff] }
 0x331   :  { %v2243_v51 = vpop.permute.xlu0 %2242 }
 0x332   :  { %v2246_v36 = vsel %vm11118_vm6, %v9520_v2, %v2243_v51  ;;  %v2377_v49 = vpop.permute.xlu1 %2376  ;;  %v3194_v53 = vld [vmem:[#allocation4 + $0x1e8] sm:$0xff]  ;;  %vm11124_vm6 = vcmask 220160  }
 0x333   :  { %2250 = vst.msk [vmem:[#allocation4 + $0x2a8] sm:$0xff] %vm11119_vm2, %v2246_v36  ;;  %v9711_v44 = vsel %vm11120_vm3, %v2377_v49, %v9594_v8  ;;  %2657 = vrot.lane.b32.xlu0 %v9419_v3, %s11122_s29  ;;  %v7846_v59 = vpack.c.bf16 %v3194_v53, %v3182_v21  ;;  %vm11125_vm2 = vcmask 760832   ;;  %vm11126_vm3 = vcmask 359424  }
 0x334   :  { %2387 = vst.msk [vmem:[#allocation4 + $0x250] sm:$0xff] %vm11121_vm4, %v2377_v49  ;;  %2727 = vrot.lane.b32.xlu1 %v9523_v43, %s8404_s27  ;;  %s11127_s27 = smov 51  }
 0x335   :  { %v9718_v61 = vpop.permute.xlu0 %2256  ;;  %7847 = vmatprep.subr.bf16.mxu1 %v7846_v59 }
 0x336   :  { %2263 = vst.msk [vmem:[#allocation4 + $0x308] sm:$0xff] %vm11123_vm5, %v9718_v61  ;;  %v2397_v2 = vpop.permute.xlu1 %2396  ;;  %7849 = vmatpush1.bf16.msra.mxu1 %v7848_v28  ;;  %v3206_v14 = vld [vmem:[#allocation4 + $0x248] sm:$0xff]  ;;  %vm11128_vm5 = vcmask 637952  }
 0x337   :  { %v9727_v55 = vsel %vm11124_vm6, %v2397_v2, %v9601_v15  ;;  %2777 = vrot.lane.b32.xlu0 %v9463_v24, %s11095_s11  ;;  %vm11129_vm6 = vmmov %vm11121_vm4 }
 0x338   :  { %2867 = vrot.lane.b32.xlu1 %v9527_v46, %s8415_s18 }
 0x339   :  { %v2137_v40 = vpop.permute.xlu0 %2136 }
 0x33a   :  { %v2139_v0 = vsel %vm11125_vm2, %v9621_v41, %v2137_v40  ;;  %v2321_v13 = vpop.permute.xlu1 %2320  ;;  %v3218_v30 = vld [vmem:[#allocation4 + $0x2a8] sm:$0xff]  ;;  %vm11130_vm2 = vcmask 621568  }
 0x33b   :  { %2143 = vst.msk [vmem:[#allocation4 + $0x70] sm:$0xff] %vm674_vm10, %v2139_v0  ;;  %v2323_v5 = vsel %vm11126_vm3, %v9562_v57, %v2321_v13  ;;  %2795 = vrot.lane.b32.xlu0 %v9463_v24, %s11101_s15  ;;  %v7850_v26 = vpack.c.bf16 %v3218_v30, %v3206_v14  ;;  %vm11131_vm3 = vmmov %vm11121_vm4  ;;  %v3207_v21 = vld [vmem:[#allocation4 + $0x250] sm:$0xff] }
 0x33c   :  { %2292 = vst.msk [vmem:[#allocation4 + $0x70] sm:$0xff] %vm11121_vm4, %v9603_v4  ;;  %2883 = vrot.lane.b32.xlu1 %v9527_v46, %s11127_s27  ;;  %v9761_v4 = vld [vmem:[#allocation12] sm:$0xff]  ;;  %vm11132_vm4 = vcmask 498688  }
 0x33d   :  { %2329 = vst.msk [vmem:[#allocation4 + $0x140] sm:$0xff] %vm948_vm12, %v2323_v5  ;;  %v2173_v28 = vpop.permute.xlu0 %2172  ;;  %7851 = vmatprep.subr.bf16.mxu1 %v7850_v26  ;;  %v3230_v41 = vld [vmem:[#allocation4 + $0x308] sm:$0xff]  ;;  %v3149_v26 = vld [vmem:[#allocation4 + $0x80] sm:$0xff] }
 0x33e   :  { %2480 = vst.msk [vmem:[#allocation4 + $0x140] sm:$0xff] %vm1090_vm11, %v9578_v60  ;;  %v2175_v57 = vsel %vm11128_vm5, %v9651_v31, %v2173_v28  ;;  %v9749_v20 = vpop.permute.xlu1 %2416  ;;  %7853 = vmatpush1.bf16.msra.mxu1 %v7852_v18  ;;  %vm11133_vm5 = vmmov %vm11131_vm3 }
 0x33f   :  { %2179 = vst.msk [vmem:[#allocation4 + $0x130] sm:$0xff] %vm674_vm10, %v2175_v57  ;;  %2659 = vrot.lane.b32.xlu0 %v9463_v24, %s11122_s29  ;;  %3275 = vmatprep.subr.mxu1 %v3230_v41 }
 0x340   :  { %2327 = vst.msk [vmem:[#allocation4 + $0x130] sm:$0xff] %vm11129_vm6, %v9637_v52  ;;  %2687 = vrot.lane.b32.xlu1 %v9419_v3, %s8402_s14  ;;  %v7858_v52 = vpack.c.bf16 %v9644_v29, %v9628_v54  ;;  %vm11135_vm6 = vcmask 211968  }
 0x341   :  { %v2209_v31 = vpop.permute.xlu0 %2208 }
 0x342   :  { %v2211_v22 = vsel %vm11130_vm2, %v9677_v38, %v2209_v31  ;;  %v2556_v62 = vpop.permute.xlu1 %2555  ;;  %3276 = vmatpush1.msra.mxu1 %v9553_v25  ;;  %v9778_v38 = vld [vmem:[#allocation12 + $0x8] sm:$0xff]  ;;  %vm11137_vm2 = vcmask 203776  }
 0x343   :  { %2215 = vst.msk [vmem:[#allocation4 + $0x1f0] sm:$0xff] %vm674_vm10, %v2211_v22  ;;  %2813 = vrot.lane.b32.xlu0 %v9463_v24, %s11110_s30  ;;  %v3147_v18 = vld [vmem:[#allocation4 + $0x70] sm:$0xff]  ;;  %7677 = vmatmul.mubr.msk.f32.vlgmr.msra.gmra.mrb[8].mxu1 %vm1471_vm15, %v9761_v4  ;;  %v3137_v22 = vld [vmem:[#allocation4 + $0x20] sm:$0xff] }
 0x344   :  { %2367 = vst.msk [vmem:[#allocation4 + $0x1f0] sm:$0xff] %vm11131_vm3, %v9682_v33  ;;  %2763 = vrot.lane.b32.xlu1 %v9523_v43, %s11083_s7  ;;  %v7856_v3 = vpack.c.bf16 %v3147_v18, %v3135_v17  ;;  %3329 = vmatprep.mubr.f32.mxu1 %v8383_v16  ;;  %v3159_v33 = vld [vmem:[#allocation4 + $0xd0] sm:$0xff]  ;;  %s11134_s7 = smov 50   ;;  %vm11138_vm3 = vcmask 359424  }
 0x345   :  { %v2245_v25 = vpop.permute.xlu0 %2244 }
 0x346   :  { %v2247_v19 = vsel %vm11132_vm4, %v2243_v51, %v2245_v25  ;;  %7857 = vmatpush1.bf16.msra.mxu0 %v7856_v3  ;;  %v9781_v37 = vpop.permute.xlu1 %2576  ;;  %v7866_v51 = vpack.c.bf16 %v9727_v55, %v9711_v44  ;;  %vm2564_vm4 = vcmask 1048448  }
 0x347   :  { %2251 = vst.msk [vmem:[#allocation4 + $0x2b0] sm:$0xff] %vm674_vm10, %v2247_v19  ;;  %2831 = vrot.lane.b32.xlu0 %v9463_v24, %s11114_s22  ;;  %7859 = vmatprep.subr.bf16.mxu0 %v7858_v52  ;;  %v3171_v42 = vld [vmem:[#allocation4 + $0x130] sm:$0xff] }
 0x348   :  { %2407 = vst.msk [vmem:[#allocation4 + $0x2b0] sm:$0xff] %vm11133_vm5, %v2397_v2  ;;  %2898 = vrot.lane.b32.xlu1 %v9527_v46, %s11134_s7  ;;  %v7860_v54 = vpack.c.bf16 %v3171_v42, %v3159_v33  ;;  %7678 = vmatmul.mubr.msk.f32.gmra.mrb[10].mxu1 %vm1471_vm15, %v9778_v38  ;;  %vm11139_vm5 = vcmask 973824  }
 0x349   :  { %v2437_v29 = vpop.permute.xlu0 %2436  ;;  %3477 = vmatprep.mubr.f32.mxu1 %v8383_v16 }
 0x34a   :  { %v2438_v6 = vsel %vm11135_vm6, %v9534_v56, %v2437_v29  ;;  %7861 = vmatpush1.bf16.msra.mxu0 %v7860_v54  ;;  %v9796_v34 = vpop.permute.xlu1 %2596  ;;  %vm11140_vm6 = vcmask 195584  }
 0x34b   :  { %2442 = vst.msk [vmem:[#allocation4 + $0x28] sm:$0xff] %vm11065_vm1, %v2438_v6  ;;  %2420 = vrot.lane.b32.xlu0 %v9346_v32, %s8386_s23  ;;  %7863 = vmatprep.subr.bf16.mxu0 %v7862_v1  ;;  %v3195_v48 = vld [vmem:[#allocation4 + $0x1f0] sm:$0xff]  ;;  %s11142_s23 = smov 35   ;;  %v3161_v6 = vld [vmem:[#allocation4 + $0xe0] sm:$0xff] }
 0x34c   :  { %2913 = vrot.lane.b32.xlu1 %v9527_v46, %s11136_s1  ;;  %v7864_v23 = vpack.c.bf16 %v3195_v48, %v3183_v45 }
 0x34d   :  { %v2450_v39 = vpop.permute.xlu0 %2449 }
 0x34e   :  { %v2451_v56 = vsel %vm11137_vm2, %v9543_v47, %v2450_v39  ;;  %7865 = vmatpush1.bf16.msra.mxu0 %v7864_v23  ;;  %v2558_v36 = vpop.permute.xlu1 %2557  ;;  %vm11141_vm2 = vcmask 80896  }
 0x34f   :  { %2455 = vst.msk [vmem:[#allocation4 + $0x88] sm:$0xff] %vm11065_vm1, %v2451_v56  ;;  %v9809_v49 = vsel %vm674_vm10, %v2556_v62, %v2558_v36  ;;  %2708 = vrot.lane.b32.xlu0 %v9523_v43, %s8402_s14  ;;  %7867 = vmatprep.subr.bf16.mxu0 %v7866_v51  ;;  %v3219_v53 = vld [vmem:[#allocation4 + $0x2b0] sm:$0xff] }
 0x350   :  { %2567 = vst.msk [vmem:[#allocation4 + $0x38] sm:$0xff] %vm11138_vm3, %v2558_v36  ;;  %2849 = vrot.lane.b32.xlu1 %v9463_v24, %s8415_s18  ;;  %v7868_v47 = vpack.c.bf16 %v3219_v53, %v3207_v21  ;;  %vm11143_vm3 = vcmask 965632  }
 0x351   :  { %v2554_v44 = vpop.permute.xlu0 %2553 }
 0x352   :  { %v2559_v59 = vsel %vm674_vm10, %v2554_v44, %v2556_v62  ;;  %7869 = vmatpush1.bf16.msra.mxu0 %v7868_v47  ;;  %v2613_v2 = vpop.permute.xlu1 %2612 }
 0x353   :  { %2565 = vst.msk [vmem:[#allocation4 + $0x28] sm:$0xff] %vm2564_vm4, %v2559_v59  ;;  %2865 = vrot.lane.b32.xlu0 %v9523_v43, %s8415_s18 }
 0x354   :  { %3026 = vrot.lane.b32.xlu1 %v9564_v50, %s8419_s24 }
 0x355   :  { %v2575_v55 = vpop.permute.xlu0 %2574 }
 0x356   :  { %v2580_v40 = vsel %vm11139_vm5, %v2575_v55, %v9781_v37  ;;  %v9824_v0 = vpop.permute.xlu1 %2706  ;;  %vm11144_vm5 = vcmask 343040  }
 0x357   :  { %2585 = vst.msk [vmem:[#allocation4 + $0x88] sm:$0xff] %vm2564_vm4, %v2580_v40  ;;  %2881 = vrot.lane.b32.xlu0 %v9523_v43, %s11127_s27  ;;  %s11225_s27 = smov 4  }
 0x358   :  { %3040 = vrot.lane.b32.xlu1 %v9564_v50, %s8420_s0 }
 0x359   :  { %v2463_v13 = vpop.permute.xlu0 %2462 }
 0x35a   :  { %v2464_v14 = vsel %vm11140_vm6, %v9566_v58, %v2463_v13  ;;  %v9833_v30 = vpop.permute.xlu1 %2725  ;;  %v3138_v57 = vld [vmem:[#allocation4 + $0x28] sm:$0xff]  ;;  %vm11145_vm6 = vcmask 1048512  }
 0x35b   :  { %2468 = vst.msk [vmem:[#allocation4 + $0xe8] sm:$0xff] %vm11065_vm1, %v2464_v14  ;;  %2538 = vrot.lane.b32.xlu0 %v9346_v32, %s11075_s12  ;;  %v7872_v32 = vpack.c.bf16 %v3149_v26, %v3137_v22 }
 0x35c   :  { %2781 = vrot.lane.b32.xlu1 %v9523_v43, %s11095_s11  ;;  %s11156_s11 = smov 19  }
 0x35d   :  { %v2476_v5 = vpop.permute.xlu0 %2475 }
 0x35e   :  { %v2477_v28 = vsel %vm11141_vm2, %v9578_v60, %v2476_v5  ;;  %v9842_v41 = vpop.permute.xlu1 %2488  ;;  %v3150_v31 = vld [vmem:[#allocation4 + $0x88] sm:$0xff]  ;;  %vm11148_vm2 = vcmask 850944  }
 0x35f   :  { %2481 = vst.msk [vmem:[#allocation4 + $0x148] sm:$0xff] %vm11065_vm1, %v2477_v28  ;;  %2745 = vrot.lane.b32.xlu0 %v9523_v43, %s11082_s2  ;;  %v7870_v58 = vpack.c.bf16 %v3150_v31, %v3138_v57 }
 0x360   :  { %2620 = vst.msk [vmem:[#allocation4 + $0x148] sm:$0xff] %vm2564_vm4, %v2613_v2  ;;  %2928 = vrot.lane.b32.xlu1 %v9523_v43, %s11142_s23 }
 0x361   :  { %v2595_v62 = vpop.permute.xlu0 %2594  ;;  %7871 = vmatprep.subr.bf16.mxu1 %v7870_v58 }
 0x362   :  { %v2600_v60 = vsel %vm11143_vm3, %v2595_v62, %v9796_v34  ;;  %v9852_v17 = vpop.permute.xlu1 %2501  ;;  %7873 = vmatpush1.bf16.msra.mxu1 %v7872_v32  ;;  %vm11149_vm3 = vcmask 359424  }
 0x363   :  { %2605 = vst.msk [vmem:[#allocation4 + $0xe8] sm:$0xff] %vm2564_vm4, %v2600_v60  ;;  %2896 = vrot.lane.b32.xlu0 %v9523_v43, %s11134_s7  ;;  %s8430_s7 = smov 116  }
 0x364   :  { %2948 = vrot.lane.b32.xlu1 %v9523_v43, %s8422_s5 }
 0x365   :  { %v2259_v18 = vpop.permute.xlu0 %2258 }
 0x366   :  { %v2260_v3 = vsel %vm386_vm9, %v9718_v61, %v2259_v18  ;;  %v2361_v25 = vpop.permute.xlu1 %2360  ;;  %v3173_v61 = vld [vmem:[#allocation4 + $0x140] sm:$0xff]  ;;  %vm11147_vm9 = vcmask 211968  }
 0x367   :  { %2264 = vst.msk [vmem:[#allocation4 + $0x310] sm:$0xff] %vm674_vm10, %v2260_v3  ;;  %v2363_v52 = vsel %vm11144_vm5, %v9584_v63, %v2361_v25  ;;  %2911 = vrot.lane.b32.xlu0 %v9523_v43, %s11136_s1  ;;  %v3174_v54 = vld [vmem:[#allocation4 + $0x148] sm:$0xff]  ;;  %v7876_v45 = vpack.c.bf16 %v3173_v61, %v3161_v6  ;;  %vm11151_vm5 = vcmask 973824  }
 0x368   :  { %2427 = vst.msk [vmem:[#allocation4 + $0x310] sm:$0xff] %vm11145_vm6, %v9749_v20  ;;  %3053 = vrot.lane.b32.xlu1 %v9564_v50, %s11146_s26  ;;  %vm11152_vm6 = vmmov %vm11149_vm3 }
 0x369   :  { %2369 = vst.msk [vmem:[#allocation4 + $0x200] sm:$0xff] %vm948_vm12, %v2363_v52  ;;  %v9871_v19 = vpop.permute.xlu0 %2418 }
 0x36a   :  { %v2422_v33 = vsel %vm11147_vm9, %v9749_v20, %v9871_v19  ;;  %v2615_v42 = vpop.permute.xlu1 %2614  ;;  %v3162_v63 = vld [vmem:[#allocation4 + $0xe8] sm:$0xff]  ;;  %vm2714_vm9 = vcmask 1047904  }
 0x36b   :  { %v9877_v29 = vsel %vm11148_vm2, %v2613_v2, %v2615_v42  ;;  %2622 = vst.msk [vmem:[#allocation4 + $0x158] sm:$0xff] %vm11149_vm3, %v2615_v42  ;;  %2689 = vrot.lane.b32.xlu0 %v9463_v24, %s8402_s14  ;;  %v7874_v1 = vpack.c.bf16 %v3174_v54, %v3162_v63  ;;  %3352 = vmatprep.subr.mxu0 %v2422_v33  ;;  %vm11153_vm2 = vcmask 703488   ;;  %s11154_s14 = smov 20   ;;  %vm11155_vm3 = vcmask 695296  }
 0x36c   :  { %3066 = vrot.lane.b32.xlu1 %v9564_v50, %s11150_s16 }
 0x36d   :  { %v2579_v48 = vpop.permute.xlu0 %2578  ;;  %7875 = vmatprep.subr.bf16.mxu1 %v7874_v1  ;;  %v2983_v1 = vld [vmem:[#allocation3 + $0x58] sm:$0xff] }
 0x36e   :  { %v2581_v20 = vsel %vm11151_vm5, %v9781_v37, %v2579_v48  ;;  %2587 = vst.msk [vmem:[#allocation4 + $0x98] sm:$0xff] %vm11152_vm6, %v2579_v48  ;;  %v2643_v23 = vpop.permute.xlu1 %2642  ;;  %7877 = vmatpush1.bf16.msra.mxu1 %v7876_v45  ;;  %vm11157_vm5 = vcmask 72704   ;;  %vm11158_vm6 = vcmask 220160  }
 0x36f   :  { %2851 = vrot.lane.b32.xlu0 %v9467_v27, %s8415_s18  ;;  %v3231_v24 = vld [vmem:[#allocation4 + $0x310] sm:$0xff]  ;;  %v7888_v14 = vpack.c.bf16 %v2581_v20, %v9809_v49 }
 0x370   :  { %2817 = vrot.lane.b32.xlu1 %v9523_v43, %s11110_s30  ;;  %3353 = vmatpush1.msra.mxu0 %v3231_v24  ;;  %s11170_s30 = smov 113  }
 0x371   :  { %v2705_v39 = vpop.permute.xlu0 %2704  ;;  %7679 = vmatmul.mubr.msk.f32.vlgmr.msra.gmra.mrb[6].mxu0 %vm1471_vm15, %v9761_v4 }
 0x372   :  { %v2710_v37 = vsel %vm11153_vm2, %v2705_v39, %v9824_v0  ;;  %v9895_v51 = vpop.permute.xlu1 %2743  ;;  %3406 = vmatprep.mubr.f32.mxu0 %v8383_v16  ;;  %vm11159_vm2 = vcmask 64512  }
 0x373   :  { %2715 = vst.msk [vmem:[#allocation4 + $0x38] sm:$0xff] %vm2714_vm9, %v2710_v37  ;;  %3028 = vrot.lane.b32.xlu0 %v9588_v7, %s8419_s24 }
 0x374   :  { %2968 = vrot.lane.b32.xlu1 %v9523_v43, %s11154_s14 }
 0x375   :  { %v2724_v27 = vpop.permute.xlu0 %2723  ;;  %7680 = vmatmul.mubr.msk.f32.gmra.mrb[8].mxu0 %vm1471_vm15, %v9778_v38 }
 0x376   :  { %v2729_v56 = vsel %vm11155_vm3, %v2724_v27, %v9833_v30  ;;  %v9907_v36 = vpop.permute.xlu1 %2761  ;;  %3554 = vmatprep.mubr.f32.mxu0 %v8383_v16  ;;  %vm11161_vm3 = vcmask 351232   ;;  %v3076_v27 = vld [vmem:[#allocation3 + $0x68] sm:$0xff] }
 0x377   :  { %2733 = vst.msk [vmem:[#allocation4 + $0x98] sm:$0xff] %vm2714_vm9, %v2729_v56  ;;  %3042 = vrot.lane.b32.xlu0 %v9588_v7, %s8420_s0  ;;  %s11160_s0 = smov 1  }
 0x378   :  { %2988 = vrot.lane.b32.xlu1 %v9523_v43, %s11156_s11 }
 0x379   :  { %v2487_v21 = vpop.permute.xlu0 %2486 }
 0x37a   :  { %v2490_v53 = vsel %vm11157_vm5, %v2487_v21, %v9842_v41  ;;  %v2401_v47 = vpop.permute.xlu1 %2400  ;;  %v3140_v40 = vld [vmem:[#allocation4 + $0x38] sm:$0xff]  ;;  %vm11162_vm5 = vcmask 990208  }
 0x37b   :  { %2494 = vst.msk [vmem:[#allocation4 + $0x1a8] sm:$0xff] %vm11065_vm1, %v2490_v53  ;;  %v2403_v44 = vsel %vm11158_vm6, %v9601_v15, %v2401_v47  ;;  %2799 = vrot.lane.b32.xlu0 %v9523_v43, %s11101_s15  ;;  %vm11163_vm6 = vcmask 965632  }
 0x37c   :  { %2409 = vst.msk [vmem:[#allocation4 + $0x2c0] sm:$0xff] %vm948_vm12, %v2403_v44  ;;  %2932 = vrot.lane.b32.xlu1 %v9564_v50, %s11142_s23  ;;  %v3002_v44 = vld [vmem:[#allocation3 + $0x50] sm:$0xff] }
 0x37d   :  { %v2500_v59 = vpop.permute.xlu0 %2499 }
 0x37e   :  { %v2503_v2 = vsel %vm11159_vm2, %v2500_v59, %v9852_v17  ;;  %2506 = vst.msk [vmem:[#allocation4 + $0x200] sm:$0xff] %vm1090_vm11, %v2500_v59  ;;  %v2528_v55 = vpop.permute.xlu1 %2527  ;;  %v3152_v13 = vld [vmem:[#allocation4 + $0x98] sm:$0xff]  ;;  %vm11164_vm2 = vcmask 359424  }
 0x37f   :  { %2507 = vst.msk [vmem:[#allocation4 + $0x208] sm:$0xff] %vm11065_vm1, %v2503_v2  ;;  %2533 = vst.msk [vmem:[#allocation4 + $0x2c8] sm:$0xff] %vm11065_vm1, %v2528_v55  ;;  %2930 = vrot.lane.b32.xlu0 %v9527_v46, %s11142_s23  ;;  %v7886_v15 = vpack.c.bf16 %v3152_v13, %v3140_v40  ;;  %s8431_s23 = smov 108  }
 0x380   :  { %2650 = vst.msk [vmem:[#allocation4 + $0x208] sm:$0xff] %vm2564_vm4, %v2643_v23  ;;  %3079 = vrot.lane.b32.xlu1 %v9564_v50, %s11160_s0 }
 0x381   :  { %v2341_v5 = vpop.permute.xlu0 %2340  ;;  %7887 = vmatprep.subr.bf16.mxu0 %v7886_v15 }
 0x382   :  { %v2343_v26 = vsel %vm11161_vm3, %v9576_v35, %v2341_v5  ;;  %7889 = vmatpush1.bf16.msra.mxu0 %v7888_v14  ;;  %v2526_v28 = vpop.permute.xlu1 %2525  ;;  %vm11165_vm3 = vcmask 834560  }
 0x383   :  { %2349 = vst.msk [vmem:[#allocation4 + $0x1a0] sm:$0xff] %vm948_vm12, %v2343_v26  ;;  %v2529_v41 = vsel %vm11162_vm5, %v2526_v28, %v2528_v55  ;;  %2950 = vrot.lane.b32.xlu0 %v9527_v46, %s8422_s5  ;;  %vm11166_vm5 = vmmov %vm11164_vm2 }
 0x384   :  { %2493 = vst.msk [vmem:[#allocation4 + $0x1a0] sm:$0xff] %vm1090_vm11, %v2487_v21  ;;  %2532 = vst.msk [vmem:[#allocation4 + $0x2c0] sm:$0xff] %vm1090_vm11, %v2529_v41  ;;  %2972 = vrot.lane.b32.xlu1 %v9564_v50, %s11154_s14 }
 0x385   :  { %v2599_v49 = vpop.permute.xlu0 %2598  ;;  %v3197_v33 = vld [vmem:[#allocation4 + $0x200] sm:$0xff] }
 0x386   :  { %v2601_v35 = vsel %vm11163_vm6, %v9796_v34, %v2599_v49  ;;  %2607 = vst.msk [vmem:[#allocation4 + $0xf8] sm:$0xff] %vm11164_vm2, %v2599_v49  ;;  %v2645_v57 = vpop.permute.xlu1 %2644  ;;  %vm11167_vm6 = vcmask 687104   ;;  %vm11169_vm2 = vcmask 572416  }
 0x387   :  { %v9950_v31 = vsel %vm11165_vm3, %v2643_v23, %v2645_v57  ;;  %2652 = vst.msk [vmem:[#allocation4 + $0x218] sm:$0xff] %vm11166_vm5, %v2645_v57  ;;  %3055 = vrot.lane.b32.xlu0 %v9588_v7, %s11146_s26  ;;  %v3198_v3 = vld [vmem:[#allocation4 + $0x208] sm:$0xff]  ;;  %vm11171_vm3 = vcmask 228352   ;;  %vm11172_vm5 = vcmask 711680   ;;  %v7892_v23 = vpack.c.bf16 %v9877_v29, %v2601_v35  ;;  %v10009_v29 = vld [vmem:[#allocation3 + $0x60] sm:$0xff] }
 0x388   :  { %2853 = vrot.lane.b32.xlu1 %v9523_v43, %s8415_s18 }
 0x389   :  { %v2628_v58 = vpop.permute.xlu0 %2627 }
 0x38a   :  { %2635 = vst.msk [vmem:[#allocation4 + $0x1a8] sm:$0xff] %vm2564_vm4, %v2628_v58  ;;  %v2673_v22 = vpop.permute.xlu1 %2672 }
 0x38b   :  { %2680 = vst.msk [vmem:[#allocation4 + $0x2c8] sm:$0xff] %vm2564_vm4, %v2673_v22  ;;  %3068 = vrot.lane.b32.xlu0 %v9588_v7, %s11150_s16  ;;  %v3185_v60 = vld [vmem:[#allocation4 + $0x1a0] sm:$0xff]  ;;  %s8432_s16 = smov 100  }
 0x38c   :  { %3010 = vrot.lane.b32.xlu1 %v9527_v46, %s8419_s24  ;;  %v3221_v41 = vld [vmem:[#allocation4 + $0x2c0] sm:$0xff] }
 0x38d   :  { %v2742_v34 = vpop.permute.xlu0 %2741 }
 0x38e   :  { %v2747_v32 = vsel %vm11167_vm6, %v2742_v34, %v9895_v51  ;;  %v9965_v62 = vpop.permute.xlu1 %2779  ;;  %vm11173_vm6 = vcmask 359424  }
 0x38f   :  { %2751 = vst.msk [vmem:[#allocation4 + $0xf8] sm:$0xff] %vm2714_vm9, %v2747_v32  ;;  %2835 = vrot.lane.b32.xlu0 %v9523_v43, %s11114_s22  ;;  %v7880_v43 = vpack.c.bf16 %v3197_v33, %v3185_v60  ;;  %s8436_s22 = smov 32  }
 0x390   :  { %3098 = vrot.lane.b32.xlu1 %v9588_v7, %s11168_s3 }
 0x391   :  { %v2760_v17 = vpop.permute.xlu0 %2759  ;;  %v3186_v18 = vld [vmem:[#allocation4 + $0x1a8] sm:$0xff] }
 0x392   :  { %v2765_v25 = vsel %vm11169_vm2, %v2760_v17, %v9907_v36  ;;  %v9974_v52 = vpop.permute.xlu1 %2797  ;;  %v7878_v61 = vpack.c.bf16 %v3198_v3, %v3186_v18  ;;  %vm11174_vm2 = vcmask 998400   ;;  %v3222_v14 = vld [vmem:[#allocation4 + $0x2c8] sm:$0xff] }
 0x393   :  { %2769 = vst.msk [vmem:[#allocation4 + $0x158] sm:$0xff] %vm2714_vm9, %v2765_v25  ;;  %2970 = vrot.lane.b32.xlu0 %v9527_v46, %s11154_s14 }
 0x394   :  { %3111 = vrot.lane.b32.xlu1 %v9588_v7, %s11170_s30  ;;  %7879 = vmatprep.subr.bf16.mxu1 %v7878_v61  ;;  %v3241_v7 = vld [vmem:[%s10931_s4] sm:$0xff]  ;;  %v3242_v61 = vld [vmem:[%s10931_s4 + $0x8] sm:$0xff]  ;;  %s8429_s4 = smov 124  }
 0x395   :  { %v2381_v42 = vpop.permute.xlu0 %2380  ;;  %7881 = vmatpush1.bf16.msra.mxu1 %v7880_v43 }
 0x396   :  { %v2383_v63 = vsel %vm11171_vm3, %v9594_v8, %v2381_v42  ;;  %v2675_v54 = vpop.permute.xlu1 %2674  ;;  %v3164_v45 = vld [vmem:[#allocation4 + $0xf8] sm:$0xff]  ;;  %vm11175_vm3 = vcmask 842752  }
 0x397   :  { %2389 = vst.msk [vmem:[#allocation4 + $0x260] sm:$0xff] %vm948_vm12, %v2383_v63  ;;  %v9985_v6 = vsel %vm11172_vm5, %v2673_v22, %v2675_v54  ;;  %2990 = vrot.lane.b32.xlu0 %v2983_v1, %s11156_s11  ;;  %vm11176_vm5 = vmmov %vm11173_vm6 }
 0x398   :  { %2682 = vst.msk [vmem:[#allocation4 + $0x2d8] sm:$0xff] %vm11173_vm6, %v2675_v54  ;;  %3122 = vrot.lane.b32.xlu1 %v9564_v50, %s8370_s8  ;;  %vm11177_vm6 = vcmask 695296  }
 0x399   :  { %v2515_v46 = vpop.permute.xlu0 %2514 }
 0x39a   :  { %2520 = vst.msk [vmem:[#allocation4 + $0x268] sm:$0xff] %vm11065_vm1, %v2515_v46  ;;  %v9995_v8 = vpop.permute.xlu1 %2815  ;;  %v3176_v48 = vld [vmem:[#allocation4 + $0x158] sm:$0xff] }
 0x39b   :  { %2952 = vrot.lane.b32.xlu0 %v9564_v50, %s8422_s5  ;;  %v7890_v20 = vpack.c.bf16 %v3176_v48, %v3164_v45 }
 0x39c   :  { %3245 = vperm.xlu1 %8188, %v3241_v7  }
 0x39d   :  { %v2513_v24 = vpop.permute.xlu0 %2512  ;;  %7891 = vmatprep.subr.bf16.mxu0 %v7890_v20 }
 0x39e   :  { %v2516_v39 = vsel %vm11174_vm2, %v2513_v24, %v2515_v46  ;;  %7893 = vmatpush1.bf16.msra.mxu0 %v7892_v23  ;;  %v10001_v37 = vpop.permute.xlu1 %2833  ;;  %vm11178_vm2 = vcmask 850944  }
 0x39f   :  { %2519 = vst.msk [vmem:[#allocation4 + $0x260] sm:$0xff] %vm1090_vm11, %v2516_v39  ;;  %3081 = vrot.lane.b32.xlu0 %v3076_v27, %s11160_s0  ;;  %s8433_s0 = smov 56  }
 0x3a1   :  { %v2630_v56 = vpop.permute.xlu0 %2629 }
 0x3a2   :  { %v2631_v21 = vsel %vm11175_vm3, %v2628_v58, %v2630_v56  ;;  %2637 = vst.msk [vmem:[#allocation4 + $0x1b8] sm:$0xff] %vm11176_vm5, %v2630_v56  ;;  %v10007_v50 = vpop.permute.xlu1 %2540  ;;  %vm11179_vm3 = vcmask 564224   ;;  %vm11180_vm5 = vcmask 293888  }
 0x3a3   :  { %2546 = vst.msk [vmem:[#allocation4 + $0x328] sm:$0xff] %vm11065_vm1, %v10007_v50  ;;  %2992 = vrot.lane.b32.xlu0 %v10009_v29, %s11156_s11  ;;  %v7896_v25 = vpack.c.bf16 %v9950_v31, %v2631_v21  ;;  %s11224_s11 = smov 64  }
 0x3a5   :  { %v2658_v53 = vpop.permute.xlu0 %2657 }
 0x3a6   :  { %2665 = vst.msk [vmem:[#allocation4 + $0x268] sm:$0xff] %vm2564_vm4, %v2658_v53  ;;  %v2728_v47 = vpop.permute.xlu1 %2727  ;;  %v3209_v13 = vld [vmem:[#allocation4 + $0x260] sm:$0xff] }
 0x3a7   :  { %v2730_v59 = vsel %vm11177_vm6, %v9833_v30, %v2728_v47  ;;  %3008 = vrot.lane.b32.xlu0 %v3002_v44, %s8419_s24  ;;  %vm11181_vm6 = vcmask 556032   ;;  %v7884_v49 = vpack.c.bf16 %v3221_v41, %v3209_v13 }
 0x3a8   :  { %2734 = vst.msk [vmem:[#allocation4 + $0xa0] sm:$0xff] %vm11178_vm2, %v2730_v59  ;;  %vm11182_vm2 = vmmov %vm11180_vm5 }
 0x3a9   :  { %v2778_v2 = vpop.permute.xlu0 %2777 }
 0x3aa   :  { %v2783_v55 = vsel %vm11179_vm3, %v2778_v2, %v9965_v62  ;;  %v10022_v40 = vpop.permute.xlu1 %2867  ;;  %vm11183_vm3 = vcmask 719872  }
 0x3ab   :  { %2787 = vst.msk [vmem:[#allocation4 + $0x1b8] sm:$0xff] %vm2714_vm9, %v2783_v55  ;;  %3096 = vrot.lane.b32.xlu0 %v10009_v29, %s11168_s3  ;;  %s8434_s3 = smov 48  }
 0x3ac   :  { %2876 = vst.msk [vmem:[#allocation4 + $0x50] sm:$0xff] %vm11180_vm5, %v10022_v40  ;;  %vm11184_vm5 = vcmask 359424  }
 0x3ad   :  { %v2796_v30 = vpop.permute.xlu0 %2795  ;;  %v3210_v15 = vld [vmem:[#allocation4 + $0x268] sm:$0xff] }
 0x3ae   :  { %v2801_v5 = vsel %vm11181_vm6, %v2796_v30, %v9974_v52  ;;  %v2884_v26 = vpop.permute.xlu1 %2883  ;;  %v7882_v28 = vpack.c.bf16 %v3222_v14, %v3210_v15  ;;  %vm11185_vm6 = vcmask 441344  }
 0x3af   :  { %2805 = vst.msk [vmem:[#allocation4 + $0x218] sm:$0xff] %vm2714_vm9, %v2801_v5  ;;  %3109 = vrot.lane.b32.xlu0 %v10009_v29, %s11170_s30  ;;  %s8435_s30 = smov 40  }
 0x3b0   :  { %2891 = vst.msk [vmem:[#allocation4 + $0xb0] sm:$0xff] %vm11182_vm2, %v2884_v26  ;;  %7883 = vmatprep.subr.bf16.mxu1 %v7882_v28  ;;  %vm11186_vm2 = vcmask 572416  }
 0x3b1   :  { %v2660_v35 = vpop.permute.xlu0 %2659  ;;  %7885 = vmatpush1.bf16.msra.mxu1 %v7884_v49 }
 0x3b2   :  { %v2661_v57 = vsel %vm11183_vm3, %v2658_v53, %v2660_v35  ;;  %2667 = vst.msk [vmem:[#allocation4 + $0x278] sm:$0xff] %vm11184_vm5, %v2660_v35  ;;  %v10037_v58 = vpop.permute.xlu1 %2687  ;;  %v3188_v60 = vld [vmem:[#allocation4 + $0x1b8] sm:$0xff]  ;;  %vm11187_vm3 = vcmask 850944   ;;  %vm11189_vm5 = vcmask 293888  }
 0x3b3   :  { %2695 = vst.msk [vmem:[#allocation4 + $0x328] sm:$0xff] %vm2564_vm4, %v10037_v58  ;;  %3012 = vrot.lane.b32.xlu0 %v10009_v29, %s8419_s24  ;;  %vm11188_vm4 = vcmask 433152   ;;  %v7900_v23 = vpack.c.bf16 %v9985_v6, %v2661_v57  ;;  %s8438_s24 = smov 12  }
 0x3b5   :  { %v2814_v22 = vpop.permute.xlu0 %2813 }
 0x3b6   :  { %v2819_v34 = vsel %vm11185_vm6, %v2814_v22, %v9995_v8  ;;  %v2764_v32 = vpop.permute.xlu1 %2763  ;;  %v3200_v17 = vld [vmem:[#allocation4 + $0x218] sm:$0xff]  ;;  %vm11190_vm6 = vcmask 211968  }
 0x3b7   :  { %2823 = vst.msk [vmem:[#allocation4 + $0x278] sm:$0xff] %vm2714_vm9, %v2819_v34  ;;  %v2766_v18 = vsel %vm11186_vm2, %v9907_v36, %v2764_v32  ;;  %3124 = vrot.lane.b32.xlu0 %v3076_v27, %s8370_s8  ;;  %v7894_v3 = vpack.c.bf16 %v3200_v17, %v3188_v60  ;;  %vm11191_vm2 = vmmov %vm11189_vm5 }
 0x3b8   :  { %2770 = vst.msk [vmem:[#allocation4 + $0x160] sm:$0xff] %vm11187_vm3, %v2766_v18  ;;  %vm11192_vm3 = vcmask 703488  }
 0x3b9   :  { %v2832_v33 = vpop.permute.xlu0 %2831  ;;  %7895 = vmatprep.subr.bf16.mxu0 %v7894_v3 }
 0x3ba   :  { %v2837_v43 = vsel %vm11188_vm4, %v2832_v33, %v10001_v37  ;;  %7897 = vmatpush1.bf16.msra.mxu0 %v7896_v25  ;;  %v2899_v42 = vpop.permute.xlu1 %2898  ;;  %v3234_v63 = vld [vmem:[#allocation4 + $0x328] sm:$0xff]  ;;  %vm11193_vm4 = vcmask 850944  }
 0x3bb   :  { %2841 = vst.msk [vmem:[#allocation4 + $0x2d8] sm:$0xff] %vm2714_vm9, %v2837_v43  ;;  %3250 = vperm.xlu0 %8187, %v3242_v61   ;;  %3429 = vmatprep.subr.mxu1 %v3234_v63  ;;  %vm11197_vm1 = vmmov %vm11193_vm4 }
 0x3bc   :  { %2906 = vst.msk [vmem:[#allocation4 + $0x110] sm:$0xff] %vm11189_vm5, %v2899_v42  ;;  %vm2873_vm5 = vcmask 1048384  }
 0x3bd   :  { %v2421_v36 = vpop.permute.xlu0 %2420 }
 0x3be   :  { %v2423_v31 = vsel %vm11190_vm6, %v9871_v19, %v2421_v36  ;;  %v2914_v54 = vpop.permute.xlu1 %2913  ;;  %v3212_v45 = vld [vmem:[#allocation4 + $0x278] sm:$0xff]  ;;  %vm3033_vm6 = vcmask 1047840  }
 0x3bf   :  { %2429 = vst.msk [vmem:[#allocation4 + $0x320] sm:$0xff] %vm948_vm12, %v2423_v31 }
 0x3c0   :  { %2921 = vst.msk [vmem:[#allocation4 + $0x170] sm:$0xff] %vm11191_vm2, %v2914_v54  ;;  %vm11194_vm2 = vcmask 416768  }
 0x3c1   :  { %v2709_v1 = vpop.permute.xlu0 %2708 }
 0x3c2   :  { %v2711_v46 = vsel %vm11192_vm3, %v9824_v0, %v2709_v1  ;;  %v10064_v7 = vpop.permute.xlu1 %2849  ;;  %v3224_v48 = vld [vmem:[#allocation4 + $0x2d8] sm:$0xff]  ;;  %vm11195_vm3 = vcmask 564224  }
 0x3c3   :  { %2716 = vst.msk [vmem:[#allocation4 + $0x40] sm:$0xff] %vm11193_vm4, %v2711_v46  ;;  %v7898_v20 = vpack.c.bf16 %v3224_v48, %v3212_v45 }
 0x3c5   :  { %v2866_v19 = vpop.permute.xlu0 %2865  ;;  %7899 = vmatprep.subr.bf16.mxu0 %v7898_v20 }
 0x3c6   :  { %v2869_v24 = vsel %vm948_vm12, %v2866_v19, %v10022_v40  ;;  %2874 = vst.msk [vmem:[#allocation4 + $0x40] sm:$0xff] %vm2873_vm5, %v2866_v19  ;;  %7901 = vmatpush1.bf16.msra.mxu0 %v7900_v23  ;;  %v3027_v0 = vpop.permute.xlu1 %3026 }
 0x3c7   :  { %3034 = vst.msk [vmem:[#allocation4 + $0x50] sm:$0xff] %vm3033_vm6, %v3027_v0 }
 0x3c9   :  { %v2882_v39 = vpop.permute.xlu0 %2881 }
 0x3ca   :  { %v2885_v27 = vsel %vm11194_vm2, %v2882_v39, %v2884_v26  ;;  %2889 = vst.msk [vmem:[#allocation4 + $0xa0] sm:$0xff] %vm2873_vm5, %v2882_v39  ;;  %v3041_v56 = vpop.permute.xlu1 %3040  ;;  %vm11196_vm2 = vcmask 687104  }
 0x3cb   :  { %3047 = vst.msk [vmem:[#allocation4 + $0xb0] sm:$0xff] %vm3033_vm6, %v3041_v56  ;;  %v7902_v30 = vpack.c.bf16 %v2885_v27, %v2869_v24 }
 0x3cd   :  { %v2539_v6 = vpop.permute.xlu0 %2538  ;;  %v3141_v15 = vld [vmem:[#allocation4 + $0x40] sm:$0xff] }
 0x3ce   :  { %v2542_v21 = vsel %vm674_vm10, %v2539_v6, %v10007_v50  ;;  %v2782_v53 = vpop.permute.xlu1 %2781  ;;  %vm11198_vm10 = vcmask 408576   ;;  %v3143_v48 = vld [vmem:[#allocation4 + $0x50] sm:$0xff] }
 0x3cf   :  { %2545 = vst.msk [vmem:[#allocation4 + $0x320] sm:$0xff] %vm1090_vm11, %v2542_v21  ;;  %v2784_v47 = vsel %vm11195_vm3, %v9965_v62, %v2782_v53  ;;  %vm11200_vm11 = vcmask 703488   ;;  %vm11201_vm3 = vcmask 359424  }
 0x3d0   :  { %2788 = vst.msk [vmem:[#allocation4 + $0x1c0] sm:$0xff] %vm11193_vm4, %v2784_v47  ;;  %vm11202_vm4 = vcmask 441344  }
 0x3d1   :  { %v2746_v44 = vpop.permute.xlu0 %2745  ;;  %v3153_v50 = vld [vmem:[#allocation4 + $0xa0] sm:$0xff] }
 0x3d2   :  { %v2748_v59 = vsel %vm11196_vm2, %v9895_v51, %v2746_v44  ;;  %v10083_v2 = vpop.permute.xlu1 %2928  ;;  %v7904_v51 = vpack.c.bf16 %v3153_v50, %v3141_v15  ;;  %vm11203_vm2 = vcmask 850944  }
 0x3d3   :  { %2752 = vst.msk [vmem:[#allocation4 + $0x100] sm:$0xff] %vm11197_vm1, %v2748_v59  ;;  %vm11199_vm1 = vcmask 293888  }
 0x3d4   :  { %2939 = vst.msk [vmem:[#allocation4 + $0x1c0] sm:$0xff] %vm2873_vm5, %v10083_v2 }
 0x3d5   :  { %v2897_v55 = vpop.permute.xlu0 %2896 }
 0x3d6   :  { %v2900_v40 = vsel %vm11198_vm10, %v2897_v55, %v2899_v42  ;;  %2904 = vst.msk [vmem:[#allocation4 + $0x100] sm:$0xff] %vm2873_vm5, %v2897_v55  ;;  %v10090_v62 = vpop.permute.xlu1 %2948  ;;  %v3233_v13 = vld [vmem:[#allocation4 + $0x320] sm:$0xff]  ;;  %vm11204_vm10 = vcmask 138240  }
 0x3d7   :  { %3430 = vmatpush1.msra.mxu1 %v3233_v13 }
 0x3d8   :  { %7681 = vmatmul.mubr.msk.f32.vlgmr.msra.gmra.mrb[12].mxu1 %vm1471_vm15, %v9761_v4  ;;  %7903 = vmatprep.subr.bf16.mxu1 %v7902_v30 }
 0x3d9   :  { %v2912_v14 = vpop.permute.xlu0 %2911  ;;  %7905 = vmatpush1.bf16.msra.mxu1 %v7904_v51  ;;  %3483 = vmatprep.mubr.f32.mxu1 %v8383_v16 }
 0x3da   :  { %v2915_v5 = vsel %vm11199_vm1, %v2912_v14, %v2914_v54  ;;  %2919 = vst.msk [vmem:[#allocation4 + $0x160] sm:$0xff] %vm2873_vm5, %v2912_v14  ;;  %v10097_v26 = vpop.permute.xlu1 %3053  ;;  %vm11206_vm1 = vmmov %vm11203_vm2  ;;  %v3155_v54 = vld [vmem:[#allocation4 + $0xb0] sm:$0xff] }
 0x3db   :  { %3060 = vst.msk [vmem:[#allocation4 + $0x110] sm:$0xff] %vm3033_vm6, %v10097_v26  ;;  %v7906_v28 = vpack.c.bf16 %v2915_v5, %v2900_v40 }
 0x3dc   :  { %7682 = vmatmul.mubr.msk.f32.gmra.mrb[14].mxu1 %vm1471_vm15, %v9778_v38 }
 0x3dd   :  { %v2690_v41 = vpop.permute.xlu0 %2689  ;;  %7907 = vmatprep.subr.bf16.mxu1 %v7906_v28  ;;  %3631 = vmatprep.mubr.f32.mxu1 %v8383_v16  ;;  %v3165_v22 = vld [vmem:[#allocation4 + $0x100] sm:$0xff] }
 0x3de   :  { %v2691_v49 = vsel %vm11200_vm11, %v10037_v58, %v2690_v41  ;;  %2697 = vst.msk [vmem:[#allocation4 + $0x338] sm:$0xff] %vm11201_vm3, %v2690_v41  ;;  %v10107_v35 = vpop.permute.xlu1 %3066  ;;  %vm11207_vm11 = vcmask 285696  }
 0x3df   :  { %3073 = vst.msk [vmem:[#allocation4 + $0x170] sm:$0xff] %vm3033_vm6, %v10107_v35  ;;  %vm11208_vm3 = vmmov %vm11207_vm11 }
 0x3e1   :  { %v2852_v57 = vpop.permute.xlu0 %2851  ;;  %v3177_v34 = vld [vmem:[#allocation4 + $0x160] sm:$0xff] }
 0x3e2   :  { %v2855_v32 = vsel %vm948_vm12, %v10064_v7, %v2852_v57  ;;  %v2818_v60 = vpop.permute.xlu1 %2817  ;;  %v7908_v17 = vpack.c.bf16 %v3177_v34, %v3165_v22  ;;  %v3167_v5 = vld [vmem:[#allocation4 + $0x110] sm:$0xff] }
 0x3e3   :  { %2859 = vst.msk [vmem:[#allocation4 + $0x338] sm:$0xff] %vm2714_vm9, %v2855_v32  ;;  %v2820_v58 = vsel %vm11202_vm4, %v9995_v8, %v2818_v60  ;;  %vm11205_vm9 = vcmask 556032   ;;  %vm11209_vm4 = vcmask 293888  }
 0x3e4   :  { %2824 = vst.msk [vmem:[#allocation4 + $0x280] sm:$0xff] %vm11203_vm2, %v2820_v58  ;;  %7909 = vmatpush1.bf16.msra.mxu1 %v7908_v17  ;;  %vm11210_vm2 = vcmask 277504  }
 0x3e5   :  { %v3029_v18 = vpop.permute.xlu0 %3028 }
 0x3e6   :  { %v3030_v3 = vsel %vm1093_vm14, %v3027_v0, %v3029_v18  ;;  %v2969_v25 = vpop.permute.xlu1 %2968  ;;  %v3189_v0 = vld [vmem:[#allocation4 + $0x1c0] sm:$0xff] }
 0x3e7   :  { %3035 = vst.msk [vmem:[#allocation4 + $0x58] sm:$0xff] %vm337_vm8, %v3030_v3 }
 0x3e8   :  { %2979 = vst.msk [vmem:[#allocation4 + $0x280] sm:$0xff] %vm2873_vm5, %v2969_v25 }
 0x3e9   :  { %v3043_v61 = vpop.permute.xlu0 %3042 }
 0x3ea   :  { %v3044_v33 = vsel %vm11204_vm10, %v3041_v56, %v3043_v61  ;;  %v10121_v43 = vpop.permute.xlu1 %2988  ;;  %v3236_v42 = vld [vmem:[#allocation4 + $0x338] sm:$0xff]  ;;  %vm11211_vm10 = vcmask 130048  }
 0x3eb   :  { %3048 = vst.msk [vmem:[#allocation4 + $0xb8] sm:$0xff] %vm337_vm8, %v3044_v33  ;;  %3506 = vmatprep.subr.mxu0 %v3236_v42 }
 0x3ec   :  { %3507 = vmatpush1.msra.mxu0 %v2691_v49 }
 0x3ed   :  { %v2800_v8 = vpop.permute.xlu0 %2799  ;;  %7683 = vmatmul.mubr.msk.f32.vlgmr.msra.gmra.mrb[10].mxu0 %vm1471_vm15, %v9761_v4 }
 0x3ee   :  { %v2802_v63 = vsel %vm11205_vm9, %v9974_v52, %v2800_v8  ;;  %v2933_v36 = vpop.permute.xlu1 %2932  ;;  %3560 = vmatprep.mubr.f32.mxu0 %v8383_v16  ;;  %v3144_v52 = vld [vmem:[#allocation4 + $0x58] sm:$0xff]  ;;  %vm11212_vm9 = vmmov %vm11206_vm1 }
 0x3ef   :  { %2806 = vst.msk [vmem:[#allocation4 + $0x220] sm:$0xff] %vm11206_vm1, %v2802_v63  ;;  %vm11213_vm1 = vcmask 15360   ;;  %v3204_v8 = vld [vmem:[#allocation4 + $0x238] sm:$0xff] }
 0x3f0   :  { %2959 = vst.msk [vmem:[#allocation4 + $0x220] sm:$0xff] %vm2873_vm5, %v10090_v62 }
 0x3f1   :  { %v2931_v31 = vpop.permute.xlu0 %2930  ;;  %7684 = vmatmul.mubr.msk.f32.gmra.mrb[12].mxu0 %vm1471_vm15, %v9778_v38  ;;  %v7920_v38 = vpack.c.bf16 %v3155_v54, %v3143_v48 }
 0x3f2   :  { %v2934_v1 = vsel %vm11207_vm11, %v10083_v2, %v2931_v31  ;;  %v2935_v4 = vsel %vm11208_vm3, %v2931_v31, %v2933_v36  ;;  %v10137_v46 = vpop.permute.xlu1 %3079  ;;  %v3156_v7 = vld [vmem:[#allocation4 + $0xb8] sm:$0xff]  ;;  %3708 = vmatprep.mubr.f32.mxu0 %v8383_v16  ;;  %vm11214_vm11 = vcmask 433152   ;;  %vm11215_vm3 = vmmov %vm11212_vm9 }
 0x3f3   :  { %2941 = vst.msk [vmem:[#allocation4 + $0x1d0] sm:$0xff] %vm11209_vm4, %v2935_v4  ;;  %v7918_v45 = vpack.c.bf16 %v3156_v7, %v3144_v52 }
 0x3f4   :  { %3086 = vst.msk [vmem:[#allocation4 + $0x1d0] sm:$0xff] %vm3033_vm6, %v10137_v46 }
 0x3f5   :  { %v2951_v20 = vpop.permute.xlu0 %2950  ;;  %7919 = vmatprep.subr.bf16.mxu0 %v7918_v45 }
 0x3f6   :  { %v2954_v23 = vsel %vm11210_vm2, %v10090_v62, %v2951_v20  ;;  %7921 = vmatpush1.bf16.msra.mxu0 %v7920_v38  ;;  %v2973_v19 = vpop.permute.xlu1 %2972  ;;  %v3179_v62 = vld [vmem:[#allocation4 + $0x170] sm:$0xff]  ;;  %vm11216_vm2 = vcmask 154624  }
 0x3f7   :  { %v7910_v24 = vpack.c.bf16 %v2954_v23, %v2934_v1  ;;  %v3201_v39 = vld [vmem:[#allocation4 + $0x220] sm:$0xff] }
 0x3f8   :  { %v7912_v27 = vpack.c.bf16 %v3201_v39, %v3189_v0 }
 0x3f9   :  { %v3056_v56 = vpop.permute.xlu0 %3055  ;;  %7911 = vmatprep.subr.bf16.mxu1 %v7910_v24 }
 0x3fa   :  { %v3057_v6 = vsel %vm11211_vm10, %v10097_v26, %v3056_v56  ;;  %v2854_v21 = vpop.permute.xlu1 %2853  ;;  %7913 = vmatpush1.bf16.msra.mxu1 %v7912_v27  ;;  %v7924_v26 = vpack.c.bf16 %v3179_v62, %v3167_v5  ;;  %vm11217_vm10 = vcmask 277504   ;;  %v8190_v27 = vld [vmem:[#allocation12] sm:$0xff] }
 0x3fb   :  { %3061 = vst.msk [vmem:[#allocation4 + $0x118] sm:$0xff] %vm337_vm8, %v3057_v6  ;;  %v2856_v53 = vsel %vm948_vm12, %v2852_v57, %v2854_v21  ;;  %v3191_v54 = vld [vmem:[#allocation4 + $0x1d0] sm:$0xff] }
 0x3fc   :  { %2860 = vst.msk [vmem:[#allocation4 + $0x340] sm:$0xff] %vm11212_vm9, %v2856_v53  ;;  %vm11218_vm9 = vmmov %vm11209_vm4  ;;  %v8191_v21 = vld [vmem:[#allocation12 + $0x8] sm:$0xff] }
 0x3fd   :  { %v3069_v47 = vpop.permute.xlu0 %3068 }
 0x3fe   :  { %v3070_v44 = vsel %vm11213_vm1, %v10107_v35, %v3069_v47  ;;  %v10152_v59 = vpop.permute.xlu1 %3010  ;;  %v3213_v35 = vld [vmem:[#allocation4 + $0x280] sm:$0xff]  ;;  %vm11219_vm1 = vcmask 7168  }
 0x3ff   :  { %3074 = vst.msk [vmem:[#allocation4 + $0x178] sm:$0xff] %vm337_vm8, %v3070_v44 }
 0x401   :  { %v2836_v2 = vpop.permute.xlu0 %2835 }
 0x402   :  { %v2838_v50 = vsel %vm11214_vm11, %v10001_v37, %v2836_v2  ;;  %v3099_v55 = vpop.permute.xlu1 %3098  ;;  %v3168_v51 = vld [vmem:[#allocation4 + $0x118] sm:$0xff]  ;;  %vm11220_vm11 = vmmov %vm11216_vm2 }
 0x403   :  { %2842 = vst.msk [vmem:[#allocation4 + $0x2e0] sm:$0xff] %vm11215_vm3, %v2838_v50  ;;  %vm11221_vm3 = vmmov %vm11209_vm4 }
 0x404   :  { %3104 = vst.msk [vmem:[#allocation4 + $0x298] sm:$0xff] %vm337_vm8, %v3099_v55 }
 0x405   :  { %2999 = vst.msk [vmem:[#allocation4 + $0x2e0] sm:$0xff] %vm2873_vm5, %v10121_v43  ;;  %v2971_v40 = vpop.permute.xlu0 %2970 }
 0x406   :  { %v2974_v13 = vsel %vm1183_vm13, %v2969_v25, %v2971_v40  ;;  %v2975_v30 = vsel %vm1183_vm13, %v2971_v40, %v2973_v19  ;;  %v10163_v15 = vpop.permute.xlu1 %3111  ;;  %v3180_v14 = vld [vmem:[#allocation4 + $0x178] sm:$0xff] }
 0x407   :  { %2981 = vst.msk [vmem:[#allocation4 + $0x290] sm:$0xff] %vm11209_vm4, %v2975_v30  ;;  %v7922_v37 = vpack.c.bf16 %v3180_v14, %v3168_v51  ;;  %vm3823_vm4 = vcmask 490880  }
 0x408   :  { %3117 = vst.msk [vmem:[#allocation4 + $0x2f8] sm:$0xff] %vm337_vm8, %v10163_v15 }
 0x409   :  { %v2991_v28 = vpop.permute.xlu0 %2990  ;;  %7923 = vmatprep.subr.bf16.mxu0 %v7922_v37 }
 0x40a   :  { %v2994_v41 = vsel %vm11216_vm2, %v10121_v43, %v2991_v28  ;;  %7925 = vmatpush1.bf16.msra.mxu0 %v7924_v26  ;;  %v3123_v25 = vpop.permute.xlu1 %3122  ;;  %vm3836_vm2 = vcmask 589280  }
 0x40b   :  { %v7914_v49 = vpack.c.bf16 %v2994_v41, %v2974_v13  ;;  %v3216_v52 = vld [vmem:[#allocation4 + $0x298] sm:$0xff] }
 0x40c   :  { %v3225_v57 = vld [vmem:[#allocation4 + $0x2e0] sm:$0xff] }
 0x40d   :  { %v7916_v22 = vpack.c.bf16 %v3225_v57, %v3213_v35  ;;  %v2953_v34 = vpop.permute.xlu0 %2952  ;;  %7915 = vmatprep.subr.bf16.mxu1 %v7914_v49 }
 0x40e   :  { %v2955_v32 = vsel %vm11217_vm10, %v2951_v20, %v2953_v34  ;;  %vm3849_vm10 = vcmask 687680  }
 0x40f   :  { %7917 = vmatpush1.bf16.msra.mxu1 %v7916_v22  ;;  %2961 = vst.msk [vmem:[#allocation4 + $0x230] sm:$0xff] %vm11218_vm9, %v2955_v32  ;;  %v3228_v63 = vld [vmem:[#allocation4 + $0x2f8] sm:$0xff]  ;;  %vm3862_vm9 = vcmask 786080  }
 0x410   :  { %3090 = vst.msk [vmem:[#allocation4 + $0x230] sm:$0xff] %vm3033_vm6, %v10009_v29  ;;  %v7930_v38 = vpack.c.bf16 %v3228_v63, %v3216_v52 }
 0x411   :  { %v3082_v60 = vpop.permute.xlu0 %3081 }
 0x412   :  { %v3083_v17 = vsel %vm11219_vm1, %v10137_v46, %v3082_v60  ;;  %vm11226_vm1 = vcmask 64512  }
 0x413   :  { %3087 = vst.msk [vmem:[#allocation4 + $0x1d8] sm:$0xff] %vm337_vm8, %v3083_v17 }
 0x415   :  { %v2993_v58 = vpop.permute.xlu0 %2992 }
 0x416   :  { %v2995_v18 = vsel %vm11220_vm11, %v2991_v28, %v2993_v58  ;;  %v3325_v3 = vpop.f32.mrb[8].mxu1  ;;  %vm3875_vm11 = vcmask 884480  }
 0x417   :  { %3001 = vst.msk [vmem:[#allocation4 + $0x2f0] sm:$0xff] %vm11221_vm3, %v2995_v18  ;;  %v3327_v61 = vpop.f32.mrb[9].mxu1  ;;  %v3203_v43 = vld [vmem:[#allocation4 + $0x230] sm:$0xff] }
 0x418   :  { %v7928_v46 = vpack.c.bf16 %v3203_v43, %v3191_v54 }
 0x419   :  { %v3009_v33 = vpop.permute.xlu0 %3008 }
 0x41a   :  { %v3014_v42 = vsel %vm1093_vm14, %v3009_v33, %v10152_v59  ;;  %3019 = vst.msk [vmem:[#allocation4 + $0x340] sm:$0xff] %vm2873_vm5, %v3009_v33  ;;  %v3192_v29 = vld [vmem:[#allocation4 + $0x1d8] sm:$0xff]  ;;  %vm3771_vm5 = vcmask 97280  }
 0x41b   :  { %v10182_v36 = vpop.permute.xlu1 %3245  ;;  %v7926_v31 = vpack.c.bf16 %v3204_v8, %v3192_v29  ;;  %3583 = vmatprep.subr.mxu1 %v3014_v42  ;;  %v3331_v1 = vpop.f32.mrb[10].mxu1 }
 0x41c   :  { %v3326_v4 = vadd.f32 %v3325_v3, %v10182_v36  ;;  %v3328_v7 = vadd.f32 %v3327_v61, %v10182_v36  ;;  %v3333_v45 = vpop.f32.mrb[11].mxu1 }
 0x41d   :  { %v3097_v48 = vpop.permute.xlu0 %3096  ;;  %7927 = vmatprep.subr.bf16.mxu0 %v7926_v31 }
 0x41e   :  { %v3721_v20 = vmax.f32 %v3326_v4, 0.0  ;;  %v3100_v23 = vsel %vm1305_vm7, %v3097_v48, %v3099_v55  ;;  %7929 = vmatpush1.bf16.msra.mxu0 %v7928_v46  ;;  %v10187_v19 = vmax.f32 %v3328_v7, 0.0  ;;  %vm11222_vm7 = vmmov %vm11221_vm3  ;;  %vm3902_vm3 = vcmask 31744  }
 0x41f   :  { %3103 = vst.msk [vmem:[#allocation4 + $0x290] sm:$0xff] %vm3033_vm6, %v3100_v23  ;;  %7931 = vmatprep.subr.bf16.mxu0 %v7930_v38 }
 0x420   :  { %3778 = vrot.lane.b32.xlu1 %v3721_v20, %s8429_s4  ;;  %3772 = vst.msk [vmem:[#allocation6] sm:$0xff] %vm3771_vm5, %v3721_v20 }
 0x421   :  { %v3110_v24 = vpop.permute.xlu0 %3109  ;;  %v3237_v0 = vld [vmem:[#allocation4 + $0x340] sm:$0xff] }
 0x422   :  { %v3113_v39 = vsel %vm1319_vm0, %v3110_v24, %v10163_v15  ;;  %3584 = vmatpush1.msra.mxu1 %v3237_v0  ;;  %vm11223_vm0 = vcmask 916480  }
 0x423   :  { %3116 = vst.msk [vmem:[#allocation4 + $0x2f0] sm:$0xff] %vm3033_vm6, %v3113_v39  ;;  %7685 = vmatmul.mubr.msk.f32.vlgmr.msra.gmra.mrb[16].mxu1 %vm1471_vm15, %v8190_v27 }
 0x424   :  { %3637 = vmatprep.mubr.f32.mxu1 %v8383_v16  ;;  %3791 = vrot.lane.b32.xlu1 %v3721_v20, %s11075_s12 }
 0x425   :  { %v3013_v56 = vpop.permute.xlu0 %3012 }
 0x426   :  { %v3015_v6 = vsel %vm1093_vm14, %v10152_v59, %v3013_v56  ;;  %v3215_v44 = vld [vmem:[#allocation4 + $0x290] sm:$0xff]  ;;  %vm3797_vm14 = vcmask 294080  }
 0x427   :  { %3021 = vst.msk [vmem:[#allocation4 + $0x350] sm:$0xff] %vm11222_vm7, %v3015_v6  ;;  %7686 = vmatmul.mubr.msk.f32.gmra.mrb[18].mxu1 %vm1471_vm15, %v8191_v21  ;;  %vm3888_vm7 = vcmask 982880  }
 0x428   :  { %3804 = vrot.lane.b32.xlu1 %v3721_v20, %s8430_s7  ;;  %5091 = vmatprep.mubr.f32.mxu1 %v8383_v16 }
 0x429   :  { %v3125_v53 = vpop.permute.xlu0 %3124 }
 0x42a   :  { %v3126_v47 = vsel %vm11223_vm0, %v3123_v25, %v3125_v53  ;;  %3130 = vst.msk [vmem:[#allocation4 + $0x358] sm:$0xff] %vm337_vm8, %v3125_v53  ;;  %v3227_v2 = vld [vmem:[#allocation4 + $0x2f0] sm:$0xff]  ;;  %vm11227_vm0 = vcmask 1048512  }
 0x42b   :  { %3129 = vst.msk [vmem:[#allocation4 + $0x350] sm:$0xff] %vm3033_vm6, %v3126_v47  ;;  %v7932_v59 = vpack.c.bf16 %v3227_v2, %v3215_v44  ;;  %vm3810_vm6 = vcmask 392480  }
 0x42c   :  { %3817 = vrot.lane.b32.xlu1 %v3721_v20, %s8370_s8 }
 0x42d   :  { %7933 = vmatpush1.bf16.msra.mxu0 %v7932_v59 }
 0x430   :  { %3830 = vrot.lane.b32.xlu1 %v3721_v20, %s8431_s23 }
 0x431   :  { %v3240_v50 = vld [vmem:[#allocation4 + $0x358] sm:$0xff] }
 0x432   :  { %3660 = vmatprep.subr.mxu0 %v3240_v50  ;;  %v3239_v55 = vld [vmem:[#allocation4 + $0x350] sm:$0xff] }
 0x433   :  { %3661 = vmatpush1.msra.mxu0 %v3239_v55 }
 0x434   :  { %7687 = vmatmul.mubr.msk.f32.vlgmr.msra.gmra.mrb[14].mxu0 %vm1471_vm15, %v8190_v27  ;;  %3843 = vrot.lane.b32.xlu1 %v3721_v20, %s11078_s13 }
 0x435   :  { %3714 = vmatprep.mubr.f32.mxu0 %v8383_v16 }
 0x438   :  { %7688 = vmatmul.mubr.msk.f32.gmra.mrb[16].mxu0 %vm1471_vm15, %v8191_v21  ;;  %3856 = vrot.lane.b32.xlu1 %v3721_v20, %s8432_s16  ;;  %vm3784_vm15 = vcmask 195680  }
 0x43a   :  { %v10214_v40 = vpop.permute.xlu0 %3250 }
 0x43b   :  { %v3334_v62 = vadd.f32 %v3333_v45, %v10214_v40  ;;  %v3332_v13 = vadd.f32 %v3331_v1, %v10214_v40 }
 0x43c   :  { %3923 = vrot.lane.b32.xlu1 %v10187_v19, %s11101_s15 }
 0x43d   :  { %v10220_v30 = vmax.f32 %v3334_v62, 0.0  ;;  %v3733_v15 = vmax.f32 %v3332_v13, 0.0 }
 0x43f   :  { %3773 = vst.msk [vmem:[#allocation6 + $0x10] sm:$0xff] %vm3771_vm5, %v3733_v15 }
 0x440   :  { %3935 = vrot.lane.b32.xlu1 %v10187_v19, %s11224_s11 }
 0x444   :  { %v3402_v51 = vpop.f32.mrb[6].mxu0  ;;  %3947 = vrot.lane.b32.xlu1 %v10187_v19, %s8382_s19 }
 0x445   :  { %v3403_v14 = vadd.f32 %v3402_v51, %v10182_v36  ;;  %v3404_v37 = vpop.f32.mrb[7].mxu0 }
 0x446   :  { %v3405_v5 = vadd.f32 %v3404_v37, %v10182_v36 }
 0x447   :  { %v3723_v26 = vmax.f32 %v3403_v14, 0.0 }
 0x448   :  { %v10229_v28 = vmax.f32 %v3405_v5, 0.0  ;;  %v3408_v41 = vpop.f32.mrb[8].mxu0  ;;  %3959 = vrot.lane.b32.xlu1 %v10187_v19, %s8433_s0 }
 0x449   :  { %v3409_v49 = vadd.f32 %v3408_v41, %v10214_v40  ;;  %v3410_v35 = vpop.f32.mrb[9].mxu0  ;;  %3977 = vrot.lane.b32.xlu0 %v3723_v26, %s8415_s18 }
 0x44a   :  { %v3411_v57 = vadd.f32 %v3410_v35, %v10214_v40 }
 0x44b   :  { %v10236_v22 = vmax.f32 %v3409_v49, 0.0 }
 0x44c   :  { %v10238_v34 = vmax.f32 %v3411_v57, 0.0  ;;  %3975 = vrot.lane.b32.xlu1 %v10187_v19, %s8415_s18 }
 0x44d   :  { %4085 = vrot.lane.b32.xlu0 %v10229_v28, %s11079_s21 }
 0x450   :  { %4083 = vrot.lane.b32.xlu1 %v3723_v26, %s11079_s21 }
 0x451   :  { %3780 = vrot.lane.b32.xlu0 %v3733_v15, %s8429_s4 }
 0x454   :  { %3869 = vrot.lane.b32.xlu1 %v10187_v19, %s8379_s17 }
 0x455   :  { %3793 = vrot.lane.b32.xlu0 %v3733_v15, %s11075_s12 }
 0x458   :  { %3895 = vrot.lane.b32.xlu1 %v10187_v19, %s11122_s29 }
 0x459   :  { %3806 = vrot.lane.b32.xlu0 %v3733_v15, %s8430_s7 }
 0x45c   :  { %3882 = vrot.lane.b32.xlu1 %v10187_v19, %s8373_s25 }
 0x45d   :  { %3819 = vrot.lane.b32.xlu0 %v3733_v15, %s8370_s8 }
 0x460   :  { %3910 = vrot.lane.b32.xlu1 %v10187_v19, %s11082_s2 }
 0x461   :  { %3832 = vrot.lane.b32.xlu0 %v3733_v15, %s8431_s23 }
 0x464   :  { %3993 = vrot.lane.b32.xlu1 %v3723_v26, %s8434_s3 }
 0x465   :  { %3845 = vrot.lane.b32.xlu0 %v3733_v15, %s11078_s13 }
 0x468   :  { %4005 = vrot.lane.b32.xlu1 %v3723_v26, %s11070_s9 }
 0x469   :  { %3858 = vrot.lane.b32.xlu0 %v3733_v15, %s8432_s16 }
 0x46c   :  { %4017 = vrot.lane.b32.xlu1 %v3723_v26, %s8435_s30 }
 0x46d   :  { %3925 = vrot.lane.b32.xlu0 %v10220_v30, %s11101_s15 }
 0x470   :  { %4029 = vrot.lane.b32.xlu1 %v3723_v26, %s11136_s1 }
 0x471   :  { %3937 = vrot.lane.b32.xlu0 %v10220_v30, %s11224_s11 }
 0x474   :  { %4053 = vrot.lane.b32.xlu1 %v3723_v26, %s8393_s20 }
 0x475   :  { %3949 = vrot.lane.b32.xlu0 %v10220_v30, %s8382_s19 }
 0x478   :  { %4041 = vrot.lane.b32.xlu1 %v3723_v26, %s8436_s22 }
 0x479   :  { %3961 = vrot.lane.b32.xlu0 %v10220_v30, %s8433_s0 }
 0x47c   :  { %4067 = vrot.lane.b32.xlu1 %v3723_v26, %s8390_s6 }
 0x47d   :  { %3981 = vrot.lane.b32.xlu0 %v10236_v22, %s8415_s18 }
 0x480   :  { %4101 = vrot.lane.b32.xlu1 %v10229_v28, %s11225_s27 }
 0x481   :  { %3871 = vrot.lane.b32.xlu0 %v10220_v30, %s8379_s17 }
 0x484   :  { %4117 = vrot.lane.b32.xlu1 %v10229_v28, %s8429_s4 }
 0x485   :  { %3897 = vrot.lane.b32.xlu0 %v10220_v30, %s11122_s29 }
 0x488   :  { %4129 = vrot.lane.b32.xlu1 %v10229_v28, %s11075_s12 }
 0x489   :  { %3884 = vrot.lane.b32.xlu0 %v10220_v30, %s8373_s25 }
 0x48c   :  { %4141 = vrot.lane.b32.xlu1 %v10229_v28, %s8430_s7 }
 0x48d   :  { %3912 = vrot.lane.b32.xlu0 %v10220_v30, %s11082_s2 }
 0x490   :  { %4153 = vrot.lane.b32.xlu1 %v10229_v28, %s8370_s8 }
 0x491   :  { %3995 = vrot.lane.b32.xlu0 %v10236_v22, %s8434_s3 }
 0x492   :  { %v3779_v32 = vpop.permute.xlu1 %3778 }
 0x493   :  { %3785 = vst.msk [vmem:[#allocation6] sm:$0xff] %vm3784_vm15, %v3779_v32 }
 0x494   :  { %4165 = vrot.lane.b32.xlu1 %v10229_v28, %s8431_s23 }
 0x495   :  { %4007 = vrot.lane.b32.xlu0 %v10236_v22, %s11070_s9 }
 0x496   :  { %v3792_v60 = vpop.permute.xlu1 %3791 }
 0x497   :  { %3798 = vst.msk [vmem:[#allocation6] sm:$0xff] %vm3797_vm14, %v3792_v60 }
 0x498   :  { %4181 = vrot.lane.b32.xlu1 %v10229_v28, %s11078_s13 }
 0x499   :  { %4019 = vrot.lane.b32.xlu0 %v10236_v22, %s8435_s30 }
 0x49a   :  { %v3805_v17 = vpop.permute.xlu1 %3804 }
 0x49b   :  { %3811 = vst.msk [vmem:[#allocation6] sm:$0xff] %vm3810_vm6, %v3805_v17 }
 0x49c   :  { %3979 = vrot.lane.b32.xlu1 %v10220_v30, %s8415_s18 }
 0x49d   :  { %4031 = vrot.lane.b32.xlu0 %v10236_v22, %s11136_s1 }
 0x49e   :  { %v3818_v58 = vpop.permute.xlu1 %3817 }
 0x49f   :  { %3824 = vst.msk [vmem:[#allocation6] sm:$0xff] %vm3823_vm4, %v3818_v58 }
 0x4a0   :  { %4087 = vrot.lane.b32.xlu1 %v10236_v22, %s11079_s21 }
 0x4a1   :  { %4055 = vrot.lane.b32.xlu0 %v10236_v22, %s8393_s20  ;;  %s8437_s20 = smov 72  }
 0x4a2   :  { %v3831_v18 = vpop.permute.xlu1 %3830 }
 0x4a3   :  { %3837 = vst.msk [vmem:[#allocation6] sm:$0xff] %vm3836_vm2, %v3831_v18 }
 0x4a4   :  { %4185 = vrot.lane.b32.xlu1 %v10238_v34, %s11078_s13 }
 0x4a5   :  { %4043 = vrot.lane.b32.xlu0 %v10236_v22, %s8436_s22 }
 0x4a6   :  { %v3844_v3 = vpop.permute.xlu1 %3843 }
 0x4a7   :  { %3850 = vst.msk [vmem:[#allocation6] sm:$0xff] %vm3849_vm10, %v3844_v3 }
 0x4a9   :  { %4069 = vrot.lane.b32.xlu0 %v10236_v22, %s8390_s6 }
 0x4aa   :  { %v3857_v25 = vpop.permute.xlu1 %3856 }
 0x4ab   :  { %v3479_v61 = vpop.f32.mrb[12].mxu1  ;;  %3863 = vst.msk [vmem:[#allocation6] sm:$0xff] %vm3862_vm9, %v3857_v25 }
 0x4ac   :  { %v3480_v33 = vadd.f32 %v3479_v61, %v10182_v36  ;;  %v3481_v43 = vpop.f32.mrb[13].mxu1 }
 0x4ad   :  { %v3482_v42 = vadd.f32 %v3481_v43, %v10182_v36  ;;  %4089 = vrot.lane.b32.xlu0 %v10238_v34, %s11079_s21 }
 0x4ae   :  { %v3725_v29 = vmax.f32 %v3480_v33, 0.0  ;;  %v3924_v8 = vpop.permute.xlu1 %3923 }
 0x4af   :  { %v10330_v63 = vmax.f32 %v3482_v42, 0.0  ;;  %v3485_v31 = vpop.f32.mrb[14].mxu1  ;;  %3929 = vst.msk [vmem:[#allocation6 + $0x20] sm:$0xff] %vm3771_vm5, %v3924_v8 }
 0x4b0   :  { %v3486_v54 = vadd.f32 %v3485_v31, %v10214_v40  ;;  %v3487_v1 = vpop.f32.mrb[15].mxu1  ;;  %4237 = vrot.lane.b32.xlu1 %v3725_v29, %s8376_s28 }
 0x4b1   :  { %v3488_v4 = vadd.f32 %v3487_v1, %v10214_v40  ;;  %4103 = vrot.lane.b32.xlu0 %v10238_v34, %s11225_s27 }
 0x4b2   :  { %v10338_v46 = vmax.f32 %v3486_v54, 0.0  ;;  %v3936_v52 = vpop.permute.xlu1 %3935 }
 0x4b3   :  { %v10340_v7 = vmax.f32 %v3488_v4, 0.0  ;;  %3941 = vst.msk [vmem:[#allocation6 + $0x20] sm:$0xff] %vm3784_vm15, %v3936_v52 }
 0x4b4   :  { %4249 = vrot.lane.b32.xlu1 %v3725_v29, %s8437_s20 }
 0x4b5   :  { %4119 = vrot.lane.b32.xlu0 %v10238_v34, %s8429_s4 }
 0x4b6   :  { %v3948_v45 = vpop.permute.xlu1 %3947 }
 0x4b7   :  { %3953 = vst.msk [vmem:[#allocation6 + $0x20] sm:$0xff] %vm3797_vm14, %v3948_v45 }
 0x4b8   :  { %4261 = vrot.lane.b32.xlu1 %v3725_v29, %s11101_s15 }
 0x4b9   :  { %4131 = vrot.lane.b32.xlu0 %v10238_v34, %s11075_s12 }
 0x4ba   :  { %v3960_v48 = vpop.permute.xlu1 %3959 }
 0x4bb   :  { %3965 = vst.msk [vmem:[#allocation6 + $0x20] sm:$0xff] %vm3810_vm6, %v3960_v48  ;;  %v3978_v38 = vpop.permute.xlu0 %3977 }
 0x4bc   :  { %4273 = vrot.lane.b32.xlu1 %v3725_v29, %s11224_s11 }
 0x4bd   :  { %4143 = vrot.lane.b32.xlu0 %v10238_v34, %s8430_s7 }
 0x4be   :  { %v3976_v20 = vpop.permute.xlu1 %3975 }
 0x4bf   :  { %v3983_v23 = vsel %vm948_vm12, %v3976_v20, %v3978_v38  ;;  %v4086_v19 = vpop.permute.xlu0 %4085 }
 0x4c0   :  { %v3556_v24 = vpop.f32.mrb[10].mxu0  ;;  %3987 = vst.msk [vmem:[#allocation6 + $0x20] sm:$0xff] %vm3823_vm4, %v3983_v23  ;;  %4211 = vrot.lane.b32.xlu1 %v3725_v29, %s8379_s17 }
 0x4c1   :  { %v3557_v0 = vadd.f32 %v3556_v24, %v10182_v36  ;;  %v3558_v39 = vpop.f32.mrb[11].mxu0  ;;  %4155 = vrot.lane.b32.xlu0 %v10238_v34, %s8370_s8 }
 0x4c2   :  { %v3559_v27 = vadd.f32 %v3558_v39, %v10182_v36  ;;  %v4084_v56 = vpop.permute.xlu1 %4083 }
 0x4c3   :  { %v10361_v6 = vmax.f32 %v3557_v0, 0.0  ;;  %v4091_v21 = vsel %vm11226_vm1, %v4084_v56, %v4086_v19  ;;  %v3781_v53 = vpop.permute.xlu0 %3780  ;;  %vm3916_vm1 = vcmask 130080  }
 0x4c4   :  { %v10364_v47 = vmax.f32 %v3559_v27, 0.0  ;;  %v3562_v44 = vpop.f32.mrb[12].mxu0  ;;  %4095 = vst.msk [vmem:[#allocation6 + $0x40] sm:$0xff] %vm3771_vm5, %v4091_v21  ;;  %4285 = vrot.lane.b32.xlu1 %v3725_v29, %s8382_s19 }
 0x4c5   :  { %3786 = vst.msk [vmem:[#allocation6 + $0x10] sm:$0xff] %vm3784_vm15, %v3781_v53  ;;  %v3563_v2 = vadd.f32 %v3562_v44, %v10214_v40  ;;  %v3564_v59 = vpop.f32.mrb[13].mxu0  ;;  %4167 = vrot.lane.b32.xlu0 %v10238_v34, %s8431_s23 }
 0x4c6   :  { %v3565_v50 = vadd.f32 %v3564_v59, %v10214_v40  ;;  %v3870_v55 = vpop.permute.xlu1 %3869 }
 0x4c7   :  { %v10373_v62 = vmax.f32 %v3563_v2, 0.0  ;;  %3876 = vst.msk [vmem:[#allocation6] sm:$0xff] %vm3875_vm11, %v3870_v55  ;;  %v3794_v13 = vpop.permute.xlu0 %3793 }
 0x4c8   :  { %v10376_v30 = vmax.f32 %v3565_v50, 0.0  ;;  %4199 = vrot.lane.b32.xlu1 %v3725_v29, %s8432_s16  ;;  %3799 = vst.msk [vmem:[#allocation6 + $0x10] sm:$0xff] %vm3797_vm14, %v3794_v13 }
 0x4c9   :  { %3763 = vst [vmem:[#allocation5 + $0x90] sm:$0xff] %v10373_v62  ;;  %4183 = vrot.lane.b32.xlu0 %v3725_v29, %s11078_s13 }
 0x4ca   :  { %v3896_v15 = vpop.permute.xlu1 %3895 }
 0x4cb   :  { %3903 = vst.msk [vmem:[#allocation6 + $0x8] sm:$0xff] %vm3902_vm3, %v3896_v15  ;;  %v3807_v51 = vpop.permute.xlu0 %3806 }
 0x4cc   :  { %4225 = vrot.lane.b32.xlu1 %v3725_v29, %s8373_s25  ;;  %3812 = vst.msk [vmem:[#allocation6 + $0x10] sm:$0xff] %vm3810_vm6, %v3807_v51 }
 0x4cd   :  { %4239 = vrot.lane.b32.xlu0 %v10338_v46, %s8376_s28 }
 0x4ce   :  { %v3883_v14 = vpop.permute.xlu1 %3882 }
 0x4cf   :  { %3889 = vst.msk [vmem:[#allocation6] sm:$0xff] %vm3888_vm7, %v3883_v14  ;;  %v3820_v37 = vpop.permute.xlu0 %3819 }
 0x4d0   :  { %3901 = vst.msk [vmem:[#allocation6] sm:$0xff] %vm11227_vm0, %v3896_v15  ;;  %4383 = vrot.lane.b32.xlu1 %v10330_v63, %s11146_s26 }
 0x4d1   :  { %3825 = vst.msk [vmem:[#allocation6 + $0x10] sm:$0xff] %vm3823_vm4, %v3820_v37  ;;  %4251 = vrot.lane.b32.xlu0 %v10338_v46, %s8437_s20 }
 0x4d2   :  { %v3911_v5 = vpop.permute.xlu1 %3910 }
 0x4d3   :  { %3917 = vst.msk [vmem:[#allocation6 + $0x8] sm:$0xff] %vm3916_vm1, %v3911_v5  ;;  %v3833_v26 = vpop.permute.xlu0 %3832 }
 0x4d4   :  { %4297 = vrot.lane.b32.xlu1 %v10330_v63, %s8433_s0  ;;  %3838 = vst.msk [vmem:[#allocation6 + $0x10] sm:$0xff] %vm3836_vm2, %v3833_v26 }
 0x4d5   :  { %4263 = vrot.lane.b32.xlu0 %v10338_v46, %s11101_s15 }
 0x4d6   :  { %v3994_v41 = vpop.permute.xlu1 %3993 }
 0x4d7   :  { %3999 = vst.msk [vmem:[#allocation6 + $0x20] sm:$0xff] %vm3836_vm2, %v3994_v41  ;;  %v3846_v49 = vpop.permute.xlu0 %3845  ;;  %v4995_v15 = vld [vmem:[#allocation6] sm:$0xff] }
 0x4d8   :  { %4395 = vrot.lane.b32.xlu1 %v10361_v6, %s8438_s24  ;;  %3851 = vst.msk [vmem:[#allocation6 + $0x10] sm:$0xff] %vm3849_vm10, %v3846_v49 }
 0x4d9   :  { %4187 = vrot.lane.b32.xlu0 %v10338_v46, %s11078_s13 }
 0x4da   :  { %v4006_v35 = vpop.permute.xlu1 %4005  ;;  %v4996_v2 = vld [vmem:[#allocation6 + $0x8] sm:$0xff] }
 0x4db   :  { %4011 = vst.msk [vmem:[#allocation6 + $0x20] sm:$0xff] %vm3849_vm10, %v4006_v35  ;;  %v3859_v57 = vpop.permute.xlu0 %3858 }
 0x4dc   :  { %4309 = vrot.lane.b32.xlu1 %v10330_v63, %s8415_s18  ;;  %3864 = vst.msk [vmem:[#allocation6 + $0x10] sm:$0xff] %vm3862_vm9, %v3859_v57 }
 0x4dd   :  { %4275 = vrot.lane.b32.xlu0 %v10338_v46, %s11224_s11 }
 0x4de   :  { %v4018_v22 = vpop.permute.xlu1 %4017 }
 0x4df   :  { %4023 = vst.msk [vmem:[#allocation6 + $0x20] sm:$0xff] %vm3862_vm9, %v4018_v22  ;;  %v3926_v32 = vpop.permute.xlu0 %3925 }
 0x4e0   :  { %4407 = vrot.lane.b32.xlu1 %v10361_v6, %s11079_s21  ;;  %3930 = vst.msk [vmem:[#allocation6 + $0x30] sm:$0xff] %vm3771_vm5, %v3926_v32 }
 0x4e1   :  { %4213 = vrot.lane.b32.xlu0 %v10338_v46, %s8379_s17  ;;  %s8439_s17 = smov 80  }
 0x4e2   :  { %v4030_v60 = vpop.permute.xlu1 %4029 }
 0x4e3   :  { %4035 = vst.msk [vmem:[#allocation6 + $0x20] sm:$0xff] %vm3875_vm11, %v4030_v60  ;;  %v3938_v17 = vpop.permute.xlu0 %3937 }
 0x4e4   :  { %4321 = vrot.lane.b32.xlu1 %v10330_v63, %s8434_s3  ;;  %3942 = vst.msk [vmem:[#allocation6 + $0x30] sm:$0xff] %vm3784_vm15, %v3938_v17 }
 0x4e5   :  { %4287 = vrot.lane.b32.xlu0 %v10338_v46, %s8382_s19 }
 0x4e6   :  { %v4054_v58 = vpop.permute.xlu1 %4053 }
 0x4e7   :  { %4060 = vst.msk [vmem:[#allocation6 + $0x28] sm:$0xff] %vm3902_vm3, %v4054_v58  ;;  %v3950_v18 = vpop.permute.xlu0 %3949 }
 0x4e8   :  { %4419 = vrot.lane.b32.xlu1 %v10361_v6, %s11225_s27  ;;  %3954 = vst.msk [vmem:[#allocation6 + $0x30] sm:$0xff] %vm3797_vm14, %v3950_v18 }
 0x4e9   :  { %4201 = vrot.lane.b32.xlu0 %v10338_v46, %s8432_s16 }
 0x4ea   :  { %v4042_v3 = vpop.permute.xlu1 %4041 }
 0x4eb   :  { %4047 = vst.msk [vmem:[#allocation6 + $0x20] sm:$0xff] %vm3888_vm7, %v4042_v3  ;;  %v3962_v25 = vpop.permute.xlu0 %3961 }
 0x4ec   :  { %4059 = vst.msk [vmem:[#allocation6 + $0x20] sm:$0xff] %vm11227_vm0, %v4054_v58  ;;  %4333 = vrot.lane.b32.xlu1 %v10330_v63, %s11070_s9 }
 0x4ed   :  { %3966 = vst.msk [vmem:[#allocation6 + $0x30] sm:$0xff] %vm3810_vm6, %v3962_v25  ;;  %4227 = vrot.lane.b32.xlu0 %v10338_v46, %s8373_s25 }
 0x4ee   :  { %v4068_v61 = vpop.permute.xlu1 %4067 }
 0x4ef   :  { %4073 = vst.msk [vmem:[#allocation6 + $0x28] sm:$0xff] %vm3916_vm1, %v4068_v61  ;;  %v10438_v33 = vpop.permute.xlu0 %3981 }
 0x4f0   :  { %4357 = vrot.lane.b32.xlu1 %v10330_v63, %s11136_s1 }
 0x4f1   :  { %4385 = vrot.lane.b32.xlu0 %v10340_v7, %s11146_s26 }
 0x4f2   :  { %v4102_v43 = vpop.permute.xlu1 %4101 }
 0x4f3   :  { %4107 = vst.msk [vmem:[#allocation6 + $0x40] sm:$0xff] %vm3784_vm15, %v4102_v43  ;;  %v3872_v42 = vpop.permute.xlu0 %3871 }
 0x4f4   :  { %4521 = vrot.lane.b32.xlu1 %v10364_v47, %s11082_s2  ;;  %4111 = vst.msk [vmem:[#allocation6 + $0x40] sm:$0xff] %vm3797_vm14, %v10229_v28 }
 0x4f5   :  { %3877 = vst.msk [vmem:[#allocation6 + $0x10] sm:$0xff] %vm3875_vm11, %v3872_v42  ;;  %4299 = vrot.lane.b32.xlu0 %v10340_v7, %s8433_s0 }
 0x4f6   :  { %v3633_v29 = vpop.f32.mrb[16].mxu1  ;;  %v4118_v8 = vpop.permute.xlu1 %4117 }
 0x4f7   :  { %v3634_v31 = vadd.f32 %v3633_v29, %v10182_v36  ;;  %v3635_v54 = vpop.f32.mrb[17].mxu1  ;;  %4123 = vst.msk [vmem:[#allocation6 + $0x40] sm:$0xff] %vm3810_vm6, %v4118_v8  ;;  %v3898_v1 = vpop.permute.xlu0 %3897 }
 0x4f8   :  { %v3636_v4 = vadd.f32 %v3635_v54, %v10182_v36  ;;  %4345 = vrot.lane.b32.xlu1 %v10330_v63, %s8435_s30  ;;  %3905 = vst.msk [vmem:[#allocation6 + $0x18] sm:$0xff] %vm3902_vm3, %v3898_v1 }
 0x4f9   :  { %v10458_v28 = vmax.f32 %v3634_v31, 0.0  ;;  %4397 = vrot.lane.b32.xlu0 %v10373_v62, %s8438_s24  ;;  %v5000_v31 = vld [vmem:[#allocation6 + $0x28] sm:$0xff] }
 0x4fa   :  { %v10462_v46 = vmax.f32 %v3636_v4, 0.0  ;;  %v3639_v52 = vpop.f32.mrb[18].mxu1  ;;  %v4130_v45 = vpop.permute.xlu1 %4129 }
 0x4fb   :  { %v3640_v48 = vadd.f32 %v3639_v52, %v10214_v40  ;;  %v3641_v38 = vpop.f32.mrb[19].mxu1  ;;  %4135 = vst.msk [vmem:[#allocation6 + $0x40] sm:$0xff] %vm3823_vm4, %v4130_v45  ;;  %v3885_v20 = vpop.permute.xlu0 %3884 }
 0x4fc   :  { %3754 = vst [vmem:[#allocation5 + $0x48] sm:$0xff] %v10462_v46  ;;  %v3642_v23 = vadd.f32 %v3641_v38, %v10214_v40  ;;  %4371 = vrot.lane.b32.xlu1 %v10330_v63, %s8436_s22  ;;  %3890 = vst.msk [vmem:[#allocation6 + $0x10] sm:$0xff] %vm3888_vm7, %v3885_v20 }
 0x4fd   :  { %v10471_v19 = vmax.f32 %v3640_v48, 0.0  ;;  %3904 = vst.msk [vmem:[#allocation6 + $0x10] sm:$0xff] %vm11227_vm0, %v3898_v1  ;;  %4311 = vrot.lane.b32.xlu0 %v10340_v7, %s8415_s18  ;;  %v4999_v1 = vld [vmem:[#allocation6 + $0x20] sm:$0xff] }
 0x4fe   :  { %v10476_v24 = vmax.f32 %v3642_v23, 0.0  ;;  %v4142_v0 = vpop.permute.xlu1 %4141 }
 0x4ff   :  { %4147 = vst.msk [vmem:[#allocation6 + $0x40] sm:$0xff] %vm3836_vm2, %v4142_v0  ;;  %v3913_v39 = vpop.permute.xlu0 %3912 }
 0x500   :  { %3766 = vst [vmem:[#allocation5 + $0xa8] sm:$0xff] %v10476_v24  ;;  %4435 = vrot.lane.b32.xlu1 %v10361_v6, %s8429_s4  ;;  %3918 = vst.msk [vmem:[#allocation6 + $0x18] sm:$0xff] %vm3916_vm1, %v3913_v39 }
 0x501   :  { %4409 = vrot.lane.b32.xlu0 %v10373_v62, %s11079_s21 }
 0x502   :  { %v4154_v63 = vpop.permute.xlu1 %4153 }
 0x503   :  { %4159 = vst.msk [vmem:[#allocation6 + $0x40] sm:$0xff] %vm3849_vm10, %v4154_v63  ;;  %v3996_v27 = vpop.permute.xlu0 %3995 }
 0x504   :  { %4533 = vrot.lane.b32.xlu1 %v10364_v47, %s8439_s17  ;;  %v4997_v21 = vld [vmem:[#allocation6 + $0x10] sm:$0xff] }
 0x505   :  { %4323 = vrot.lane.b32.xlu0 %v10340_v7, %s8434_s3  ;;  %v7936_v14 = vpack.c.bf16 %v4997_v21, %v4995_v15 }
 0x506   :  { %v4166_v56 = vpop.permute.xlu1 %4165 }
 0x507   :  { %v3710_v53 = vpop.f32.mrb[14].mxu0  ;;  %4171 = vst.msk [vmem:[#allocation6 + $0x40] sm:$0xff] %vm3862_vm9, %v4166_v56  ;;  %v4008_v44 = vpop.permute.xlu0 %4007  ;;  %v4998_v59 = vld [vmem:[#allocation6 + $0x18] sm:$0xff] }
 0x508   :  { %v3711_v50 = vadd.f32 %v3710_v53, %v10182_v36  ;;  %v3712_v55 = vpop.f32.mrb[15].mxu0  ;;  %4447 = vrot.lane.b32.xlu1 %v10361_v6, %s11075_s12  ;;  %v7934_v13 = vpack.c.bf16 %v4998_v59, %v4996_v2 }
 0x509   :  { %v3713_v51 = vadd.f32 %v3712_v55, %v10182_v36  ;;  %4421 = vrot.lane.b32.xlu0 %v10373_v62, %s11225_s27 }
 0x50a   :  { %v10497_v37 = vmax.f32 %v3711_v50, 0.0  ;;  %v10499_v5 = vpop.permute.xlu1 %4181  ;;  %7935 = vmatprep.subr.bf16.mxu1 %v7934_v13 }
 0x50b   :  { %v3732_v26 = vmax.f32 %v3713_v51, 0.0  ;;  %v3716_v41 = vpop.f32.mrb[16].mxu0  ;;  %v4020_v49 = vpop.permute.xlu0 %4019  ;;  %7937 = vmatpush1.bf16.msra.mxu1 %v7936_v14 }
 0x50c   :  { %v3717_v35 = vadd.f32 %v3716_v41, %v10214_v40  ;;  %v3718_v57 = vpop.f32.mrb[17].mxu0  ;;  %4545 = vrot.lane.b32.xlu1 %v10364_v47, %s8376_s28 }
 0x50d   :  { %3756 = vst.msk [vmem:[#allocation5 + $0x58] sm:$0xff] %vm337_vm8, %v3732_v26  ;;  %v3719_v36 = vadd.f32 %v3718_v57, %v10214_v40  ;;  %4335 = vrot.lane.b32.xlu0 %v10340_v7, %s11070_s9 }
 0x50e   :  { %v10508_v22 = vmax.f32 %v3717_v35, 0.0  ;;  %v3980_v32 = vpop.permute.xlu1 %3979 }
 0x50f   :  { %v3744_v60 = vmax.f32 %v3719_v36, 0.0  ;;  %v3984_v17 = vsel %vm948_vm12, %v3980_v32, %v10438_v33  ;;  %v4032_v58 = vpop.permute.xlu0 %4031  ;;  %vm11229_vm12 = vcmask 64512  }
 0x510   :  { %3988 = vst.msk [vmem:[#allocation6 + $0x30] sm:$0xff] %vm3823_vm4, %v3984_v17  ;;  %4459 = vrot.lane.b32.xlu1 %v10361_v6, %s8430_s7 }
 0x511   :  { %3768 = vst.msk [vmem:[#allocation5 + $0xb8] sm:$0xff] %vm337_vm8, %v3744_v60  ;;  %4359 = vrot.lane.b32.xlu0 %v10340_v7, %s11136_s1  ;;  %vm11228_vm8 = vmmov %vm11227_vm0  ;;  %vm11230_vm0 = vcmask 850944  }
 0x512   :  { %4000 = vst.msk [vmem:[#allocation6 + $0x30] sm:$0xff] %vm3836_vm2, %v3996_v27  ;;  %v4088_v3 = vpop.permute.xlu1 %4087 }
 0x513   :  { %4012 = vst.msk [vmem:[#allocation6 + $0x30] sm:$0xff] %vm3849_vm10, %v4008_v44  ;;  %v4056_v40 = vpop.permute.xlu0 %4055 }
 0x514   :  { %4024 = vst.msk [vmem:[#allocation6 + $0x30] sm:$0xff] %vm3862_vm9, %v4020_v49  ;;  %4557 = vrot.lane.b32.xlu1 %v10364_v47, %s8437_s20 }
 0x515   :  { %4036 = vst.msk [vmem:[#allocation6 + $0x30] sm:$0xff] %vm3875_vm11, %v4032_v58  ;;  %4523 = vrot.lane.b32.xlu0 %v10376_v30, %s11082_s2 }
 0x516   :  { %4062 = vst.msk [vmem:[#allocation6 + $0x38] sm:$0xff] %vm3902_vm3, %v4056_v40  ;;  %v10538_v61 = vpop.permute.xlu1 %4185 }
 0x517   :  { %v4044_v18 = vpop.permute.xlu0 %4043 }
 0x518   :  { %4471 = vrot.lane.b32.xlu1 %v10361_v6, %s8370_s8  ;;  %4048 = vst.msk [vmem:[#allocation6 + $0x30] sm:$0xff] %vm3888_vm7, %v4044_v18 }
 0x519   :  { %4061 = vst.msk [vmem:[#allocation6 + $0x30] sm:$0xff] %vm11228_vm8, %v4056_v40  ;;  %4347 = vrot.lane.b32.xlu0 %v10340_v7, %s8435_s30 }
 0x51b   :  { %v4070_v25 = vpop.permute.xlu0 %4069 }
 0x51c   :  { %4495 = vrot.lane.b32.xlu1 %v10364_v47, %s11078_s13  ;;  %4074 = vst.msk [vmem:[#allocation6 + $0x38] sm:$0xff] %vm3916_vm1, %v4070_v25 }
 0x51d   :  { %4373 = vrot.lane.b32.xlu0 %v10340_v7, %s8436_s22 }
 0x51f   :  { %v4090_v33 = vpop.permute.xlu0 %4089 }
 0x520   :  { %4569 = vrot.lane.b32.xlu1 %v10364_v47, %s11101_s15  ;;  %v4092_v43 = vsel %vm11229_vm12, %v4088_v3, %v4090_v33  ;;  %v5001_v29 = vld [vmem:[#allocation6 + $0x30] sm:$0xff]  ;;  %vm11231_vm12 = vmmov %vm11230_vm0 }
 0x521   :  { %4096 = vst.msk [vmem:[#allocation6 + $0x50] sm:$0xff] %vm3771_vm5, %v4092_v43  ;;  %4437 = vrot.lane.b32.xlu0 %v10373_v62, %s8429_s4  ;;  %v7940_v4 = vpack.c.bf16 %v5001_v29, %v4999_v1  ;;  %v4428_v1 = vld [vmem:[#allocation5 + $0x90] sm:$0xff] }
 0x522   :  { %v4238_v42 = vpop.permute.xlu1 %4237 }
 0x523   :  { %4243 = vst.msk [vmem:[#allocation6 + $0x60] sm:$0xff] %vm3771_vm5, %v4238_v42  ;;  %v4104_v8 = vpop.permute.xlu0 %4103  ;;  %v5002_v7 = vld [vmem:[#allocation6 + $0x38] sm:$0xff] }
 0x524   :  { %4585 = vrot.lane.b32.xlu1 %v10364_v47, %s11224_s11  ;;  %4108 = vst.msk [vmem:[#allocation6 + $0x50] sm:$0xff] %vm3784_vm15, %v4104_v8  ;;  %v7938_v54 = vpack.c.bf16 %v5002_v7, %v5000_v31 }
 0x525   :  { %4535 = vrot.lane.b32.xlu0 %v10376_v30, %s8439_s17  ;;  %4112 = vst.msk [vmem:[#allocation6 + $0x50] sm:$0xff] %vm3797_vm14, %v10238_v34 }
 0x526   :  { %v4250_v52 = vpop.permute.xlu1 %4249  ;;  %7939 = vmatprep.subr.bf16.mxu1 %v7938_v54 }
 0x527   :  { %4255 = vst.msk [vmem:[#allocation6 + $0x60] sm:$0xff] %vm3784_vm15, %v4250_v52  ;;  %v4120_v45 = vpop.permute.xlu0 %4119  ;;  %7941 = vmatpush1.bf16.msra.mxu1 %v7940_v4 }
 0x528   :  { %4589 = vrot.lane.b32.xlu1 %v10376_v30, %s11224_s11  ;;  %4124 = vst.msk [vmem:[#allocation6 + $0x50] sm:$0xff] %vm3810_vm6, %v4120_v45 }
 0x529   :  { %4449 = vrot.lane.b32.xlu0 %v10373_v62, %s11075_s12 }
 0x52a   :  { %v4262_v48 = vpop.permute.xlu1 %4261 }
 0x52b   :  { %4267 = vst.msk [vmem:[#allocation6 + $0x60] sm:$0xff] %vm3797_vm14, %v4262_v48  ;;  %v4132_v38 = vpop.permute.xlu0 %4131 }
 0x52c   :  { %4678 = vrot.lane.b32.xlu1 %v10458_v28, %s8390_s6  ;;  %4136 = vst.msk [vmem:[#allocation6 + $0x50] sm:$0xff] %vm3823_vm4, %v4132_v38 }
 0x52d   :  { %4547 = vrot.lane.b32.xlu0 %v10376_v30, %s8376_s28 }
 0x52e   :  { %v4274_v34 = vpop.permute.xlu1 %4273 }
 0x52f   :  { %4279 = vst.msk [vmem:[#allocation6 + $0x60] sm:$0xff] %vm3810_vm6, %v4274_v34  ;;  %v4144_v20 = vpop.permute.xlu0 %4143 }
 0x530   :  { %4694 = vrot.lane.b32.xlu1 %v10458_v28, %s11154_s14  ;;  %4148 = vst.msk [vmem:[#allocation6 + $0x50] sm:$0xff] %vm3836_vm2, %v4144_v20 }
 0x531   :  { %4461 = vrot.lane.b32.xlu0 %v10373_v62, %s8430_s7 }
 0x532   :  { %v4212_v23 = vpop.permute.xlu1 %4211 }
 0x533   :  { %4218 = vst.msk [vmem:[#allocation6 + $0x48] sm:$0xff] %vm3902_vm3, %v4212_v23  ;;  %v4156_v0 = vpop.permute.xlu0 %4155 }
 0x534   :  { %4698 = vrot.lane.b32.xlu1 %v10471_v19, %s11154_s14  ;;  %4160 = vst.msk [vmem:[#allocation6 + $0x50] sm:$0xff] %vm3849_vm10, %v4156_v0 }
 0x535   :  { %4559 = vrot.lane.b32.xlu0 %v10376_v30, %s8437_s20 }
 0x536   :  { %v4286_v39 = vpop.permute.xlu1 %4285 }
 0x537   :  { %4291 = vst.msk [vmem:[#allocation6 + $0x60] sm:$0xff] %vm3823_vm4, %v4286_v39  ;;  %v4168_v63 = vpop.permute.xlu0 %4167 }
 0x538   :  { %4483 = vrot.lane.b32.xlu1 %v10364_v47, %s8431_s23  ;;  %4172 = vst.msk [vmem:[#allocation6 + $0x50] sm:$0xff] %vm3862_vm9, %v4168_v63 }
 0x539   :  { %4473 = vrot.lane.b32.xlu0 %v10373_v62, %s8370_s8 }
 0x53a   :  { %v4200_v27 = vpop.permute.xlu1 %4199 }
 0x53b   :  { %v4184_v56 = vpop.permute.xlu0 %4183 }
 0x53c   :  { %4509 = vrot.lane.b32.xlu1 %v10364_v47, %s8432_s16  ;;  %v4189_v21 = vsel %vm11230_vm0, %v10499_v5, %v4184_v56  ;;  %vm11232_vm0 = vmmov %vm11228_vm8  ;;  %v4905_v56 = vld [vmem:[#allocation5 + $0x58] sm:$0xff] }
 0x53d   :  { %4193 = vst.msk [vmem:[#allocation6 + $0x40] sm:$0xff] %vm3875_vm11, %v4189_v21  ;;  %4497 = vrot.lane.b32.xlu0 %v10376_v30, %s11078_s13 }
 0x53e   :  { %v4226_v53 = vpop.permute.xlu1 %4225  ;;  %4205 = vst.msk [vmem:[#allocation6 + $0x40] sm:$0xff] %vm3888_vm7, %v4200_v27 }
 0x53f   :  { %4231 = vst.msk [vmem:[#allocation6 + $0x48] sm:$0xff] %vm3916_vm1, %v4226_v53  ;;  %v4240_v62 = vpop.permute.xlu0 %4239 }
 0x540   :  { %4217 = vst.msk [vmem:[#allocation6 + $0x40] sm:$0xff] %vm11228_vm8, %v4212_v23  ;;  %4604 = vrot.lane.b32.xlu1 %v10458_v28, %s8382_s19  ;;  %vm11233_vm8 = vmmov %vm11232_vm0 }
 0x541   :  { %4244 = vst.msk [vmem:[#allocation6 + $0x70] sm:$0xff] %vm3771_vm5, %v4240_v62  ;;  %4571 = vrot.lane.b32.xlu0 %v10376_v30, %s11101_s15 }
 0x542   :  { %v4384_v47 = vpop.permute.xlu1 %4383 }
 0x543   :  { %4389 = vst.msk [vmem:[#allocation6 + $0x80] sm:$0xff] %vm3771_vm5, %v4384_v47  ;;  %v4252_v44 = vpop.permute.xlu0 %4251 }
 0x544   :  { %4712 = vrot.lane.b32.xlu1 %v10462_v46, %s11146_s26  ;;  %4256 = vst.msk [vmem:[#allocation6 + $0x70] sm:$0xff] %vm3784_vm15, %v4252_v44 }
 0x545   :  { %4587 = vrot.lane.b32.xlu0 %v10458_v28, %s11224_s11 }
 0x546   :  { %v4298_v2 = vpop.permute.xlu1 %4297  ;;  %v5004_v58 = vld [vmem:[#allocation6 + $0x48] sm:$0xff] }
 0x547   :  { %4303 = vst.msk [vmem:[#allocation6 + $0x60] sm:$0xff] %vm3836_vm2, %v4298_v2  ;;  %v4264_v59 = vpop.permute.xlu0 %4263  ;;  %v5003_v3 = vld [vmem:[#allocation6 + $0x40] sm:$0xff] }
 0x548   :  { %4616 = vrot.lane.b32.xlu1 %v10458_v28, %s8433_s0  ;;  %4268 = vst.msk [vmem:[#allocation6 + $0x70] sm:$0xff] %vm3797_vm14, %v4264_v59 }
 0x549   :  { %4591 = vrot.lane.b32.xlu0 %v10471_v19, %s11224_s11 }
 0x54a   :  { %v4396_v50 = vpop.permute.xlu1 %4395 }
 0x54b   :  { %4401 = vst.msk [vmem:[#allocation6 + $0x80] sm:$0xff] %vm3784_vm15, %v4396_v50  ;;  %v4188_v55 = vpop.permute.xlu0 %4187 }
 0x54c   :  { %4724 = vrot.lane.b32.xlu1 %v10462_v46, %s8438_s24  ;;  %v4190_v13 = vsel %vm11231_vm12, %v10538_v61, %v4188_v55  ;;  %vm11234_vm12 = vmmov %vm11232_vm0 }
 0x54d   :  { %4194 = vst.msk [vmem:[#allocation6 + $0x50] sm:$0xff] %vm3875_vm11, %v4190_v13  ;;  %4680 = vrot.lane.b32.xlu0 %v10471_v19, %s8390_s6 }
 0x54e   :  { %v4310_v15 = vpop.permute.xlu1 %4309 }
 0x54f   :  { %4315 = vst.msk [vmem:[#allocation6 + $0x60] sm:$0xff] %vm3849_vm10, %v4310_v15  ;;  %v4276_v51 = vpop.permute.xlu0 %4275 }
 0x550   :  { %4628 = vrot.lane.b32.xlu1 %v10458_v28, %s8415_s18  ;;  %4280 = vst.msk [vmem:[#allocation6 + $0x70] sm:$0xff] %vm3810_vm6, %v4276_v51 }
 0x551   :  { %4696 = vrot.lane.b32.xlu0 %v10462_v46, %s11154_s14 }
 0x552   :  { %v4408_v14 = vpop.permute.xlu1 %4407 }
 0x553   :  { %4413 = vst.msk [vmem:[#allocation6 + $0x80] sm:$0xff] %vm3797_vm14, %v4408_v14  ;;  %v4214_v5 = vpop.permute.xlu0 %4213 }
 0x554   :  { %4652 = vrot.lane.b32.xlu1 %v10458_v28, %s11070_s9  ;;  %4220 = vst.msk [vmem:[#allocation6 + $0x58] sm:$0xff] %vm3902_vm3, %v4214_v5 }
 0x555   :  { %4700 = vrot.lane.b32.xlu0 %v10476_v24, %s11154_s14 }
 0x556   :  { %v4322_v26 = vpop.permute.xlu1 %4321 }
 0x557   :  { %4327 = vst.msk [vmem:[#allocation6 + $0x60] sm:$0xff] %vm3862_vm9, %v4322_v26  ;;  %v4288_v41 = vpop.permute.xlu0 %4287 }
 0x558   :  { %4736 = vrot.lane.b32.xlu1 %v10462_v46, %s11079_s21  ;;  %4292 = vst.msk [vmem:[#allocation6 + $0x70] sm:$0xff] %vm3823_vm4, %v4288_v41 }
 0x559   :  { %4485 = vrot.lane.b32.xlu0 %v10376_v30, %s8431_s23 }
 0x55a   :  { %v4420_v49 = vpop.permute.xlu1 %4419 }
 0x55b   :  { %4425 = vst.msk [vmem:[#allocation6 + $0x80] sm:$0xff] %vm3810_vm6, %v4420_v49  ;;  %v4202_v35 = vpop.permute.xlu0 %4201 }
 0x55c   :  { %4837 = vrot.lane.b32.xlu1 %v10497_v37, %s8373_s25  ;;  %4206 = vst.msk [vmem:[#allocation6 + $0x50] sm:$0xff] %vm3888_vm7, %v4202_v35 }
 0x55d   :  { %4429 = vst.msk [vmem:[#allocation6 + $0x80] sm:$0xff] %vm3823_vm4, %v10361_v6  ;;  %4511 = vrot.lane.b32.xlu0 %v10376_v30, %s8432_s16 }
 0x55e   :  { %4219 = vst.msk [vmem:[#allocation6 + $0x50] sm:$0xff] %vm11232_vm0, %v4214_v5  ;;  %v4334_v57 = vpop.permute.xlu1 %4333 }
 0x55f   :  { %4339 = vst.msk [vmem:[#allocation6 + $0x60] sm:$0xff] %vm3875_vm11, %v4334_v57  ;;  %v4228_v36 = vpop.permute.xlu0 %4227 }
 0x560   :  { %4640 = vrot.lane.b32.xlu1 %v10458_v28, %s8434_s3  ;;  %4232 = vst.msk [vmem:[#allocation6 + $0x58] sm:$0xff] %vm3916_vm1, %v4228_v36 }
 0x561   :  { %4606 = vrot.lane.b32.xlu0 %v10471_v19, %s8382_s19 }
 0x562   :  { %v4358_v32 = vpop.permute.xlu1 %4357 }
 0x563   :  { %4364 = vst.msk [vmem:[#allocation6 + $0x68] sm:$0xff] %vm3902_vm3, %v4358_v32  ;;  %v4386_v6 = vpop.permute.xlu0 %4385 }
 0x564   :  { %4666 = vrot.lane.b32.xlu1 %v10458_v28, %s8435_s30  ;;  %4390 = vst.msk [vmem:[#allocation6 + $0x90] sm:$0xff] %vm3771_vm5, %v4386_v6  ;;  %v4906_v6 = vld [vmem:[#allocation5 + $0xb8] sm:$0xff] }
 0x565   :  { %4714 = vrot.lane.b32.xlu0 %v10476_v24, %s11146_s26  ;;  %v5005_v60 = vld [vmem:[#allocation6 + $0x50] sm:$0xff] }
 0x566   :  { %v4522_v30 = vpop.permute.xlu1 %4521  ;;  %v7944_v28 = vpack.c.bf16 %v5005_v60, %v5003_v3 }
 0x567   :  { %4527 = vst.msk [vmem:[#allocation6 + $0xa0] sm:$0xff] %vm3771_vm5, %v4522_v30  ;;  %v4300_v17 = vpop.permute.xlu0 %4299  ;;  %v5006_v40 = vld [vmem:[#allocation6 + $0x58] sm:$0xff] }
 0x568   :  { %4748 = vrot.lane.b32.xlu1 %v10462_v46, %s11225_s27  ;;  %4304 = vst.msk [vmem:[#allocation6 + $0x70] sm:$0xff] %vm3836_vm2, %v4300_v17  ;;  %v7942_v18 = vpack.c.bf16 %v5006_v40, %v5004_v58 }
 0x569   :  { %4618 = vrot.lane.b32.xlu0 %v10471_v19, %s8433_s0 }
 0x56a   :  { %v4346_v25 = vpop.permute.xlu1 %4345  ;;  %7943 = vmatprep.subr.bf16.mxu1 %v7942_v18 }
 0x56b   :  { %4351 = vst.msk [vmem:[#allocation6 + $0x60] sm:$0xff] %vm3888_vm7, %v4346_v25  ;;  %v4398_v61 = vpop.permute.xlu0 %4397  ;;  %7945 = vmatpush1.bf16.msra.mxu1 %v7944_v28 }
 0x56c   :  { %4363 = vst.msk [vmem:[#allocation6 + $0x60] sm:$0xff] %vm11233_vm8, %v4358_v32  ;;  %4849 = vrot.lane.b32.xlu1 %v10497_v37, %s11122_s29  ;;  %vm4593_vm8 = vcmask 523264  }
 0x56d   :  { %4402 = vst.msk [vmem:[#allocation6 + $0x90] sm:$0xff] %vm3784_vm15, %v4398_v61  ;;  %4726 = vrot.lane.b32.xlu0 %v10476_v24, %s8438_s24 }
 0x56e   :  { %v4372_v33 = vpop.permute.xlu1 %4371 }
 0x56f   :  { %4377 = vst.msk [vmem:[#allocation6 + $0x68] sm:$0xff] %vm3916_vm1, %v4372_v33  ;;  %v4312_v43 = vpop.permute.xlu0 %4311 }
 0x570   :  { %4861 = vrot.lane.b32.xlu1 %v10497_v37, %s11082_s2  ;;  %4316 = vst.msk [vmem:[#allocation6 + $0x70] sm:$0xff] %vm3849_vm10, %v4312_v43 }
 0x571   :  { %4630 = vrot.lane.b32.xlu0 %v10471_v19, %s8415_s18 }
 0x572   :  { %v4436_v42 = vpop.permute.xlu1 %4435 }
 0x573   :  { %4441 = vst.msk [vmem:[#allocation6 + $0x80] sm:$0xff] %vm3836_vm2, %v4436_v42  ;;  %v4410_v29 = vpop.permute.xlu0 %4409  ;;  %v5007_v44 = vld [vmem:[#allocation6 + $0x60] sm:$0xff] }
 0x574   :  { %4764 = vrot.lane.b32.xlu1 %v10462_v46, %s8429_s4  ;;  %4414 = vst.msk [vmem:[#allocation6 + $0x90] sm:$0xff] %vm3797_vm14, %v4410_v29 }
 0x575   :  { %4654 = vrot.lane.b32.xlu0 %v10471_v19, %s11070_s9 }
 0x576   :  { %v4534_v8 = vpop.permute.xlu1 %4533  ;;  %v5008_v53 = vld [vmem:[#allocation6 + $0x68] sm:$0xff] }
 0x577   :  { %4539 = vst.msk [vmem:[#allocation6 + $0xa0] sm:$0xff] %vm3784_vm15, %v4534_v8  ;;  %v4324_v31 = vpop.permute.xlu0 %4323 }
 0x578   :  { %4873 = vrot.lane.b32.xlu1 %v10497_v37, %s8439_s17  ;;  %4328 = vst.msk [vmem:[#allocation6 + $0x70] sm:$0xff] %vm3862_vm9, %v4324_v31 }
 0x579   :  { %4738 = vrot.lane.b32.xlu0 %v10476_v24, %s11079_s21 }
 0x57a   :  { %v4448_v7 = vpop.permute.xlu1 %4447 }
 0x57b   :  { %4453 = vst.msk [vmem:[#allocation6 + $0x80] sm:$0xff] %vm3849_vm10, %v4448_v7  ;;  %v4422_v54 = vpop.permute.xlu0 %4421 }
 0x57c   :  { %4776 = vrot.lane.b32.xlu1 %v10462_v46, %s11075_s12  ;;  %4426 = vst.msk [vmem:[#allocation6 + $0x90] sm:$0xff] %vm3810_vm6, %v4422_v54 }
 0x57d   :  { %4839 = vrot.lane.b32.xlu0 %v10508_v22, %s8373_s25  ;;  %4430 = vst.msk [vmem:[#allocation6 + $0x90] sm:$0xff] %vm3823_vm4, %v4428_v1 }
 0x57e   :  { %v4546_v4 = vpop.permute.xlu1 %4545 }
 0x57f   :  { %4551 = vst.msk [vmem:[#allocation6 + $0xa0] sm:$0xff] %vm3797_vm14, %v4546_v4  ;;  %v4336_v52 = vpop.permute.xlu0 %4335 }
 0x580   :  { %4792 = vrot.lane.b32.xlu1 %v10462_v46, %s8430_s7  ;;  %4340 = vst.msk [vmem:[#allocation6 + $0x70] sm:$0xff] %vm3875_vm11, %v4336_v52 }
 0x581   :  { %4642 = vrot.lane.b32.xlu0 %v10471_v19, %s8434_s3 }
 0x582   :  { %v4460_v45 = vpop.permute.xlu1 %4459 }
 0x583   :  { %4465 = vst.msk [vmem:[#allocation6 + $0x80] sm:$0xff] %vm3862_vm9, %v4460_v45  ;;  %v4360_v48 = vpop.permute.xlu0 %4359 }
 0x584   :  { %4796 = vrot.lane.b32.xlu1 %v10476_v24, %s8430_s7  ;;  %4366 = vst.msk [vmem:[#allocation6 + $0x78] sm:$0xff] %vm3902_vm3, %v4360_v48 }
 0x585   :  { %4668 = vrot.lane.b32.xlu0 %v10471_v19, %s8435_s30 }
 0x586   :  { %v4558_v38 = vpop.permute.xlu1 %4557 }
 0x587   :  { %4563 = vst.msk [vmem:[#allocation6 + $0xa0] sm:$0xff] %vm3810_vm6, %v4558_v38  ;;  %v4524_v46 = vpop.permute.xlu0 %4523 }
 0x588   :  { %4811 = vrot.lane.b32.xlu1 %v10497_v37, %s8370_s8  ;;  %4528 = vst.msk [vmem:[#allocation6 + $0xb0] sm:$0xff] %vm3771_vm5, %v4524_v46 }
 0x589   :  { %4750 = vrot.lane.b32.xlu0 %v10476_v24, %s11225_s27 }
 0x58a   :  { %v4472_v34 = vpop.permute.xlu1 %4471 }
 0x58b   :  { %4477 = vst.msk [vmem:[#allocation6 + $0x80] sm:$0xff] %vm3875_vm11, %v4472_v34  ;;  %v4348_v20 = vpop.permute.xlu0 %4347 }
 0x58c   :  { %4885 = vrot.lane.b32.xlu1 %v10497_v37, %s8376_s28  ;;  %4352 = vst.msk [vmem:[#allocation6 + $0x70] sm:$0xff] %vm3888_vm7, %v4348_v20  ;;  %v4756_v20 = vld [vmem:[#allocation5 + $0x48] sm:$0xff] }
 0x58d   :  { %4365 = vst.msk [vmem:[#allocation6 + $0x70] sm:$0xff] %vm11234_vm12, %v4360_v48  ;;  %4851 = vrot.lane.b32.xlu0 %v10508_v22, %s11122_s29  ;;  %vm11235_vm12 = vmmov %vm11232_vm0 }
 0x58e   :  { %v4496_v19 = vpop.permute.xlu1 %4495 }
 0x58f   :  { %4502 = vst.msk [vmem:[#allocation6 + $0x88] sm:$0xff] %vm3902_vm3, %v4496_v19  ;;  %v4374_v23 = vpop.permute.xlu0 %4373 }
 0x590   :  { %4825 = vrot.lane.b32.xlu1 %v10497_v37, %s8431_s23  ;;  %4378 = vst.msk [vmem:[#allocation6 + $0x78] sm:$0xff] %vm3916_vm1, %v4374_v23 }
 0x591   :  { %4863 = vrot.lane.b32.xlu0 %v10508_v22, %s11082_s2 }
 0x592   :  { %v4570_v0 = vpop.permute.xlu1 %4569 }
 0x593   :  { %4575 = vst.msk [vmem:[#allocation6 + $0xa0] sm:$0xff] %vm3823_vm4, %v4570_v0  ;;  %v4438_v39 = vpop.permute.xlu0 %4437 }
 0x594   :  { %4897 = vrot.lane.b32.xlu1 %v10497_v37, %s8437_s20  ;;  %4442 = vst.msk [vmem:[#allocation6 + $0x90] sm:$0xff] %vm3836_vm2, %v4438_v39  ;;  %v5009_v27 = vld [vmem:[#allocation6 + $0x70] sm:$0xff] }
 0x595   :  { %4766 = vrot.lane.b32.xlu0 %v10476_v24, %s8429_s4  ;;  %v7948_v2 = vpack.c.bf16 %v5009_v27, %v5007_v44 }
 0x596   :  { %v4586_v63 = vpop.permute.xlu1 %4585 }
 0x597   :  { %v4536_v21 = vpop.permute.xlu0 %4535  ;;  %v5010_v62 = vld [vmem:[#allocation6 + $0x78] sm:$0xff] }
 0x598   :  { %4909 = vrot.lane.b32.xlu1 %v4905_v56, %s11101_s15  ;;  %4540 = vst.msk [vmem:[#allocation6 + $0xb0] sm:$0xff] %vm3784_vm15, %v4536_v21  ;;  %v7946_v47 = vpack.c.bf16 %v5010_v62, %v5008_v53 }
 0x599   :  { %4875 = vrot.lane.b32.xlu0 %v10508_v22, %s8439_s17 }
 0x59a   :  { %v4590_v59 = vpop.permute.xlu1 %4589  ;;  %7947 = vmatprep.subr.bf16.mxu1 %v7946_v47 }
 0x59b   :  { %v4450_v50 = vpop.permute.xlu0 %4449  ;;  %7949 = vmatpush1.bf16.msra.mxu1 %v7948_v2 }
 0x59c   :  { %4921 = vrot.lane.b32.xlu1 %v4905_v56, %s11224_s11  ;;  %4454 = vst.msk [vmem:[#allocation6 + $0x90] sm:$0xff] %vm3849_vm10, %v4450_v50 }
 0x59d   :  { %4778 = vrot.lane.b32.xlu0 %v10476_v24, %s11075_s12 }
 0x59e   :  { %v4679_v55 = vpop.permute.xlu1 %4678 }
 0x59f   :  { %4684 = vst.msk [vmem:[#allocation6 + $0xc0] sm:$0xff] %vm3771_vm5, %v4679_v55  ;;  %v4548_v13 = vpop.permute.xlu0 %4547 }
 0x5a0   :  { %4933 = vrot.lane.b32.xlu1 %v4905_v56, %s8382_s19  ;;  %4552 = vst.msk [vmem:[#allocation6 + $0xb0] sm:$0xff] %vm3797_vm14, %v4548_v13  ;;  %v4757_v13 = vld [vmem:[#allocation5 + $0xa8] sm:$0xff] }
 0x5a1   :  { %4794 = vrot.lane.b32.xlu0 %v10497_v37, %s8430_s7 }
 0x5a2   :  { %v4695_v15 = vpop.permute.xlu1 %4694 }
 0x5a3   :  { %v4462_v51 = vpop.permute.xlu0 %4461 }
 0x5a4   :  { %4957 = vrot.lane.b32.xlu1 %v4905_v56, %s8415_s18  ;;  %4466 = vst.msk [vmem:[#allocation6 + $0x90] sm:$0xff] %vm3862_vm9, %v4462_v51 }
 0x5a5   :  { %4798 = vrot.lane.b32.xlu0 %v10508_v22, %s8430_s7 }
 0x5a6   :  { %v4699_v24 = vpop.permute.xlu1 %4698 }
 0x5a7   :  { %v4560_v14 = vpop.permute.xlu0 %4559 }
 0x5a8   :  { %4945 = vrot.lane.b32.xlu1 %v4905_v56, %s8433_s0  ;;  %4564 = vst.msk [vmem:[#allocation6 + $0xb0] sm:$0xff] %vm3810_vm6, %v4560_v14 }
 0x5a9   :  { %4813 = vrot.lane.b32.xlu0 %v10508_v22, %s8370_s8 }
 0x5aa   :  { %v4484_v5 = vpop.permute.xlu1 %4483 }
 0x5ab   :  { %4489 = vst.msk [vmem:[#allocation6 + $0x80] sm:$0xff] %vm3888_vm7, %v4484_v5  ;;  %v4474_v37 = vpop.permute.xlu0 %4473 }
 0x5ac   :  { %4501 = vst.msk [vmem:[#allocation6 + $0x80] sm:$0xff] %vm11232_vm0, %v4496_v19  ;;  %4971 = vrot.lane.b32.xlu1 %v4905_v56, %s8434_s3 }
 0x5ad   :  { %4478 = vst.msk [vmem:[#allocation6 + $0x90] sm:$0xff] %vm3875_vm11, %v4474_v37  ;;  %4887 = vrot.lane.b32.xlu0 %v10508_v22, %s8376_s28 }
 0x5ae   :  { %v4510_v26 = vpop.permute.xlu1 %4509 }
 0x5af   :  { %4515 = vst.msk [vmem:[#allocation6 + $0x88] sm:$0xff] %vm3916_vm1, %v4510_v26  ;;  %v4498_v41 = vpop.permute.xlu0 %4497 }
 0x5b0   :  { %4504 = vst.msk [vmem:[#allocation6 + $0x98] sm:$0xff] %vm3902_vm3, %v4498_v41 }
 0x5b1   :  { %4827 = vrot.lane.b32.xlu0 %v10508_v22, %s8431_s23 }
 0x5b2   :  { %v4605_v49 = vpop.permute.xlu1 %4604 }
 0x5b3   :  { %v4572_v35 = vpop.permute.xlu0 %4571  ;;  %v5011_v48 = vld [vmem:[#allocation6 + $0x80] sm:$0xff] }
 0x5b4   :  { %4576 = vst.msk [vmem:[#allocation6 + $0xb0] sm:$0xff] %vm3823_vm4, %v4572_v35 }
 0x5b5   :  { %4899 = vrot.lane.b32.xlu0 %v10508_v22, %s8437_s20 }
 0x5b6   :  { %v4713_v57 = vpop.permute.xlu1 %4712  ;;  %v5012_v4 = vld [vmem:[#allocation6 + $0x88] sm:$0xff] }
 0x5b7   :  { %v4588_v36 = vpop.permute.xlu0 %4587 }
 0x5b8   :  { %v4594_v32 = vsel %vm4593_vm8, %v4586_v63, %v4588_v36 }
 0x5b9   :  { %4598 = vst.msk [vmem:[#allocation6 + $0xa0] sm:$0xff] %vm3836_vm2, %v4594_v32  ;;  %4911 = vrot.lane.b32.xlu0 %v4906_v6, %s11101_s15 }
 0x5ba   :  { %v4617_v30 = vpop.permute.xlu1 %4616  ;;  %4610 = vst.msk [vmem:[#allocation6 + $0xa0] sm:$0xff] %vm3849_vm10, %v4605_v49 }
 0x5bb   :  { %4622 = vst.msk [vmem:[#allocation6 + $0xa0] sm:$0xff] %vm3862_vm9, %v4617_v30  ;;  %v4592_v60 = vpop.permute.xlu0 %4591 }
 0x5bc   :  { %v4595_v17 = vsel %vm4593_vm8, %v4590_v59, %v4592_v60 }
 0x5bd   :  { %4599 = vst.msk [vmem:[#allocation6 + $0xb0] sm:$0xff] %vm3836_vm2, %v4595_v17  ;;  %4923 = vrot.lane.b32.xlu0 %v4906_v6, %s11224_s11 }
 0x5be   :  { %v4725_v22 = vpop.permute.xlu1 %4724 }
 0x5bf   :  { %v4681_v58 = vpop.permute.xlu0 %4680 }
 0x5c0   :  { %4685 = vst.msk [vmem:[#allocation6 + $0xd0] sm:$0xff] %vm3771_vm5, %v4681_v58 }
 0x5c1   :  { %4935 = vrot.lane.b32.xlu0 %v4906_v6, %s8382_s19 }
 0x5c2   :  { %v4629_v40 = vpop.permute.xlu1 %4628 }
 0x5c3   :  { %4634 = vst.msk [vmem:[#allocation6 + $0xa0] sm:$0xff] %vm3875_vm11, %v4629_v40  ;;  %v4697_v18 = vpop.permute.xlu0 %4696 }
 0x5c4   :  { %v4702_v3 = vsel %vm1183_vm13, %v4695_v15, %v4697_v18 }
 0x5c5   :  { %4706 = vst.msk [vmem:[#allocation6 + $0xc0] sm:$0xff] %vm3784_vm15, %v4702_v3  ;;  %4959 = vrot.lane.b32.xlu0 %v4906_v6, %s8415_s18 }
 0x5c6   :  { %v4653_v28 = vpop.permute.xlu1 %4652  ;;  %4718 = vst.msk [vmem:[#allocation6 + $0xc0] sm:$0xff] %vm3797_vm14, %v4713_v57 }
 0x5c7   :  { %4659 = vst.msk [vmem:[#allocation6 + $0xa8] sm:$0xff] %vm3902_vm3, %v4653_v28  ;;  %v4701_v25 = vpop.permute.xlu0 %4700 }
 0x5c8   :  { %4730 = vst.msk [vmem:[#allocation6 + $0xc0] sm:$0xff] %vm3810_vm6, %v4725_v22  ;;  %v4703_v61 = vsel %vm1183_vm13, %v4699_v24, %v4701_v25  ;;  %vm11236_vm13 = vmmov %vm11232_vm0 }
 0x5c9   :  { %4707 = vst.msk [vmem:[#allocation6 + $0xd0] sm:$0xff] %vm3784_vm15, %v4703_v61  ;;  %4947 = vrot.lane.b32.xlu0 %v4906_v6, %s8433_s0 }
 0x5ca   :  { %v4737_v33 = vpop.permute.xlu1 %4736 }
 0x5cb   :  { %4742 = vst.msk [vmem:[#allocation6 + $0xc0] sm:$0xff] %vm3823_vm4, %v4737_v33  ;;  %v4486_v43 = vpop.permute.xlu0 %4485 }
 0x5cc   :  { %4490 = vst.msk [vmem:[#allocation6 + $0x90] sm:$0xff] %vm3888_vm7, %v4486_v43 }
 0x5cd   :  { %4503 = vst.msk [vmem:[#allocation6 + $0x90] sm:$0xff] %vm11235_vm12, %v4498_v41  ;;  %4973 = vrot.lane.b32.xlu0 %v4906_v6, %s8434_s3 }
 0x5ce   :  { %v4838_v42 = vpop.permute.xlu1 %4837 }
 0x5cf   :  { %4843 = vst.msk [vmem:[#allocation6 + $0xe0] sm:$0xff] %vm3771_vm5, %v4838_v42  ;;  %v4512_v29 = vpop.permute.xlu0 %4511 }
 0x5d0   :  { %4516 = vst.msk [vmem:[#allocation6 + $0x98] sm:$0xff] %vm3916_vm1, %v4512_v29 }
 0x5d2   :  { %v4641_v8 = vpop.permute.xlu1 %4640 }
 0x5d3   :  { %4646 = vst.msk [vmem:[#allocation6 + $0xa0] sm:$0xff] %vm3888_vm7, %v4641_v8  ;;  %v4607_v31 = vpop.permute.xlu0 %4606 }
 0x5d4   :  { %4658 = vst.msk [vmem:[#allocation6 + $0xa0] sm:$0xff] %vm11236_vm13, %v4653_v28  ;;  %v5013_v54 = vld [vmem:[#allocation6 + $0x90] sm:$0xff] }
 0x5d5   :  { %4611 = vst.msk [vmem:[#allocation6 + $0xb0] sm:$0xff] %vm3849_vm10, %v4607_v31  ;;  %v7952_v38 = vpack.c.bf16 %v5013_v54, %v5011_v48 }
 0x5d6   :  { %v4667_v7 = vpop.permute.xlu1 %4666 }
 0x5d7   :  { %4672 = vst.msk [vmem:[#allocation6 + $0xa8] sm:$0xff] %vm3916_vm1, %v4667_v7  ;;  %v4715_v1 = vpop.permute.xlu0 %4714  ;;  %v5014_v52 = vld [vmem:[#allocation6 + $0x98] sm:$0xff] }
 0x5d8   :  { %4719 = vst.msk [vmem:[#allocation6 + $0xd0] sm:$0xff] %vm3797_vm14, %v4715_v1  ;;  %v7950_v45 = vpack.c.bf16 %v5014_v52, %v5012_v4 }
 0x5da   :  { %v4749_v46 = vpop.permute.xlu1 %4748  ;;  %7951 = vmatprep.subr.bf16.mxu1 %v7950_v45 }
 0x5db   :  { %4754 = vst.msk [vmem:[#allocation6 + $0xc0] sm:$0xff] %vm3836_vm2, %v4749_v46  ;;  %v4619_v34 = vpop.permute.xlu0 %4618  ;;  %7953 = vmatpush1.bf16.msra.mxu1 %v7952_v38  ;;  %v5015_v26 = vld [vmem:[#allocation6 + $0xa0] sm:$0xff] }
 0x5dc   :  { %4623 = vst.msk [vmem:[#allocation6 + $0xb0] sm:$0xff] %vm3862_vm9, %v4619_v34 }
 0x5dd   :  { %4758 = vst.msk [vmem:[#allocation6 + $0xc0] sm:$0xff] %vm3849_vm10, %v4756_v20 }
 0x5de   :  { %v4850_v19 = vpop.permute.xlu1 %4849  ;;  %v5016_v14 = vld [vmem:[#allocation6 + $0xa8] sm:$0xff] }
 0x5df   :  { %4855 = vst.msk [vmem:[#allocation6 + $0xe0] sm:$0xff] %vm3784_vm15, %v4850_v19  ;;  %v4727_v23 = vpop.permute.xlu0 %4726 }
 0x5e0   :  { %4731 = vst.msk [vmem:[#allocation6 + $0xd0] sm:$0xff] %vm3810_vm6, %v4727_v23 }
 0x5e2   :  { %v4862_v0 = vpop.permute.xlu1 %4861 }
 0x5e3   :  { %4867 = vst.msk [vmem:[#allocation6 + $0xe0] sm:$0xff] %vm3797_vm14, %v4862_v0  ;;  %v4631_v39 = vpop.permute.xlu0 %4630 }
 0x5e4   :  { %4635 = vst.msk [vmem:[#allocation6 + $0xb0] sm:$0xff] %vm3875_vm11, %v4631_v39 }
 0x5e6   :  { %v4765_v63 = vpop.permute.xlu1 %4764 }
 0x5e7   :  { %4770 = vst.msk [vmem:[#allocation6 + $0xc0] sm:$0xff] %vm3862_vm9, %v4765_v63  ;;  %v4655_v27 = vpop.permute.xlu0 %4654  ;;  %v4979_v63 = vld [vmem:[#allocation14] sm:$0xff] }
 0x5e8   :  { %4661 = vst.msk [vmem:[#allocation6 + $0xb8] sm:$0xff] %vm3902_vm3, %v4655_v27 }
 0x5ea   :  { %v4874_v56 = vpop.permute.xlu1 %4873 }
 0x5eb   :  { %4879 = vst.msk [vmem:[#allocation6 + $0xe0] sm:$0xff] %vm3810_vm6, %v4874_v56  ;;  %v4739_v21 = vpop.permute.xlu0 %4738  ;;  %v4981_v56 = vld [vmem:[#allocation14 + $0x10] sm:$0xff] }
 0x5ec   :  { %4743 = vst.msk [vmem:[#allocation6 + $0xd0] sm:$0xff] %vm3823_vm4, %v4739_v21  ;;  %v4982_v21 = vld [vmem:[#allocation14 + $0x18] sm:$0xff] }
 0x5ee   :  { %v4777_v53 = vpop.permute.xlu1 %4776 }
 0x5ef   :  { %4782 = vst.msk [vmem:[#allocation6 + $0xc0] sm:$0xff] %vm3875_vm11, %v4777_v53  ;;  %v4840_v62 = vpop.permute.xlu0 %4839  ;;  %v4983_v53 = vld [vmem:[#allocation14 + $0x20] sm:$0xff] }
 0x5f0   :  { %4844 = vst.msk [vmem:[#allocation6 + $0xf0] sm:$0xff] %vm3771_vm5, %v4840_v62  ;;  %vm4800_vm5 = vcmask 949248   ;;  %v4984_v62 = vld [vmem:[#allocation14 + $0x28] sm:$0xff] }
 0x5f2   :  { %v4793_v47 = vpop.permute.xlu1 %4792 }
 0x5f3   :  { %v4643_v44 = vpop.permute.xlu0 %4642 }
 0x5f4   :  { %4647 = vst.msk [vmem:[#allocation6 + $0xb0] sm:$0xff] %vm3888_vm7, %v4643_v44  ;;  %v4986_v44 = vld [vmem:[#allocation14 + $0x38] sm:$0xff] }
 0x5f5   :  { %4660 = vst.msk [vmem:[#allocation6 + $0xb0] sm:$0xff] %vm11232_vm0, %v4655_v27  ;;  %v4980_v27 = vld [vmem:[#allocation14 + $0x8] sm:$0xff] }
 0x5f6   :  { %v4797_v2 = vpop.permute.xlu1 %4796 }
 0x5f7   :  { %v4669_v59 = vpop.permute.xlu0 %4668 }
 0x5f8   :  { %4673 = vst.msk [vmem:[#allocation6 + $0xb8] sm:$0xff] %vm3916_vm1, %v4669_v59  ;;  %v4988_v59 = vld [vmem:[#allocation14 + $0x48] sm:$0xff] }
 0x5fa   :  { %v4812_v50 = vpop.permute.xlu1 %4811 }
 0x5fb   :  { %4818 = vst.msk [vmem:[#allocation6 + $0xc8] sm:$0xff] %vm3902_vm3, %v4812_v50  ;;  %v4751_v55 = vpop.permute.xlu0 %4750 }
 0x5fc   :  { %4755 = vst.msk [vmem:[#allocation6 + $0xd0] sm:$0xff] %vm3836_vm2, %v4751_v55  ;;  %v5017_v51 = vld [vmem:[#allocation6 + $0xb0] sm:$0xff] }
 0x5fd   :  { %4759 = vst.msk [vmem:[#allocation6 + $0xd0] sm:$0xff] %vm3849_vm10, %v4757_v13  ;;  %v7956_v41 = vpack.c.bf16 %v5017_v51, %v5015_v26  ;;  %v4990_v55 = vld [vmem:[#allocation14 + $0x58] sm:$0xff]  ;;  %v4991_v13 = vld [vmem:[#allocation14 + $0x60] sm:$0xff]  ;;  %v4993_v51 = vld [vmem:[#allocation14 + $0x70] sm:$0xff] }
 0x5fe   :  { %v4886_v15 = vpop.permute.xlu1 %4885 }
 0x5ff   :  { %4891 = vst.msk [vmem:[#allocation6 + $0xe0] sm:$0xff] %vm3823_vm4, %v4886_v15  ;;  %v4852_v24 = vpop.permute.xlu0 %4851  ;;  %v5018_v5 = vld [vmem:[#allocation6 + $0xb8] sm:$0xff]  ;;  %v4992_v15 = vld [vmem:[#allocation14 + $0x68] sm:$0xff] }
 0x600   :  { %4856 = vst.msk [vmem:[#allocation6 + $0xf0] sm:$0xff] %vm3784_vm15, %v4852_v24  ;;  %v7954_v37 = vpack.c.bf16 %v5018_v5, %v5016_v14  ;;  %vm11237_vm15 = vmmov %vm11232_vm0  ;;  %v4994_v24 = vld [vmem:[#allocation14 + $0x78] sm:$0xff] }
 0x602   :  { %v4826_v49 = vpop.permute.xlu1 %4825  ;;  %7955 = vmatprep.subr.bf16.mxu1 %v7954_v37 }
 0x603   :  { %4831 = vst.msk [vmem:[#allocation6 + $0xc8] sm:$0xff] %vm3916_vm1, %v4826_v49  ;;  %v4864_v35 = vpop.permute.xlu0 %4863  ;;  %7957 = vmatpush1.bf16.msra.mxu1 %v7956_v41 }
 0x604   :  { %4868 = vst.msk [vmem:[#allocation6 + $0xf0] sm:$0xff] %vm3797_vm14, %v4864_v35  ;;  %vm11238_vm14 = vmmov %vm11232_vm0 }
 0x606   :  { %v4898_v57 = vpop.permute.xlu1 %4897 }
 0x607   :  { %4903 = vst.msk [vmem:[#allocation6 + $0xe0] sm:$0xff] %vm3836_vm2, %v4898_v57  ;;  %v4767_v36 = vpop.permute.xlu0 %4766 }
 0x608   :  { %4771 = vst.msk [vmem:[#allocation6 + $0xd0] sm:$0xff] %vm3862_vm9, %v4767_v36 }
 0x60a   :  { %v4910_v32 = vpop.permute.xlu1 %4909  ;;  %v5020_v31 = vld [vmem:[#allocation6 + $0xc8] sm:$0xff] }
 0x60b   :  { %4915 = vst.msk [vmem:[#allocation6 + $0xe0] sm:$0xff] %vm3849_vm10, %v4910_v32  ;;  %v4876_v6 = vpop.permute.xlu0 %4875 }
 0x60c   :  { %4880 = vst.msk [vmem:[#allocation6 + $0xf0] sm:$0xff] %vm3810_vm6, %v4876_v6  ;;  %vm11239_vm6 = vmmov %vm11232_vm0 }
 0x60e   :  { %v4922_v30 = vpop.permute.xlu1 %4921 }
 0x60f   :  { %4927 = vst.msk [vmem:[#allocation6 + $0xe0] sm:$0xff] %vm3862_vm9, %v4922_v30  ;;  %v4779_v60 = vpop.permute.xlu0 %4778 }
 0x610   :  { %4783 = vst.msk [vmem:[#allocation6 + $0xd0] sm:$0xff] %vm3875_vm11, %v4779_v60 }
 0x612   :  { %v4934_v17 = vpop.permute.xlu1 %4933 }
 0x613   :  { %4939 = vst.msk [vmem:[#allocation6 + $0xe0] sm:$0xff] %vm3875_vm11, %v4934_v17  ;;  %v4795_v22 = vpop.permute.xlu0 %4794 }
 0x614   :  { %v4801_v58 = vsel %vm4800_vm5, %v4793_v47, %v4795_v22  ;;  %v4985_v47 = vld [vmem:[#allocation14 + $0x30] sm:$0xff] }
 0x615   :  { %4805 = vst.msk [vmem:[#allocation6 + $0xc0] sm:$0xff] %vm3888_vm7, %v4801_v58 }
 0x616   :  { %v4958_v40 = vpop.permute.xlu1 %4957  ;;  %4817 = vst.msk [vmem:[#allocation6 + $0xc0] sm:$0xff] %vm11237_vm15, %v4812_v50  ;;  %v4989_v50 = vld [vmem:[#allocation14 + $0x50] sm:$0xff] }
 0x617   :  { %4964 = vst.msk [vmem:[#allocation6 + $0xe8] sm:$0xff] %vm3902_vm3, %v4958_v40  ;;  %v4799_v18 = vpop.permute.xlu0 %4798 }
 0x618   :  { %v4802_v3 = vsel %vm4800_vm5, %v4797_v2, %v4799_v18  ;;  %v4987_v2 = vld [vmem:[#allocation14 + $0x40] sm:$0xff] }
 0x619   :  { %4806 = vst.msk [vmem:[#allocation6 + $0xd0] sm:$0xff] %vm3888_vm7, %v4802_v3 }
 0x61a   :  { %v4946_v28 = vpop.permute.xlu1 %4945 }
 0x61b   :  { %4951 = vst.msk [vmem:[#allocation6 + $0xe0] sm:$0xff] %vm3888_vm7, %v4946_v28  ;;  %v4814_v25 = vpop.permute.xlu0 %4813 }
 0x61c   :  { %4963 = vst.msk [vmem:[#allocation6 + $0xe0] sm:$0xff] %vm11238_vm14, %v4958_v40 }
 0x61d   :  { %4819 = vst.msk [vmem:[#allocation6 + $0xd0] sm:$0xff] %vm11239_vm6, %v4814_v25  ;;  %v5019_v1 = vld [vmem:[#allocation6 + $0xc0] sm:$0xff] }
 0x61e   :  { %4820 = vst.msk [vmem:[#allocation6 + $0xd8] sm:$0xff] %vm3902_vm3, %v4814_v25  ;;  %v4972_v61 = vpop.permute.xlu1 %4971 }
 0x61f   :  { %4977 = vst.msk [vmem:[#allocation6 + $0xe8] sm:$0xff] %vm3916_vm1, %v4972_v61  ;;  %v4888_v33 = vpop.permute.xlu0 %4887 }
 0x620   :  { %4892 = vst.msk [vmem:[#allocation6 + $0xf0] sm:$0xff] %vm3823_vm4, %v4888_v33  ;;  %vm11240_vm4 = vmmov %vm11232_vm0 }
 0x623   :  { %v4828_v43 = vpop.permute.xlu0 %4827  ;;  %v5023_v0 = vld [vmem:[#allocation6 + $0xe0] sm:$0xff] }
 0x624   :  { %4832 = vst.msk [vmem:[#allocation6 + $0xd8] sm:$0xff] %vm3916_vm1, %v4828_v43  ;;  %v5021_v29 = vld [vmem:[#allocation6 + $0xd0] sm:$0xff] }
 0x625   :  { %v7960_v4 = vpack.c.bf16 %v5021_v29, %v5019_v1 }
 0x626   :  { %v5024_v20 = vld [vmem:[#allocation6 + $0xe8] sm:$0xff] }
 0x627   :  { %v4900_v42 = vpop.permute.xlu0 %4899 }
 0x628   :  { %4904 = vst.msk [vmem:[#allocation6 + $0xf0] sm:$0xff] %vm3836_vm2, %v4900_v42  ;;  %vm11241_vm2 = vcmask 130048  }
 0x62b   :  { %v4912_v8 = vpop.permute.xlu0 %4911  ;;  %v5022_v7 = vld [vmem:[#allocation6 + $0xd8] sm:$0xff] }
 0x62c   :  { %4916 = vst.msk [vmem:[#allocation6 + $0xf0] sm:$0xff] %vm3849_vm10, %v4912_v8  ;;  %v7958_v54 = vpack.c.bf16 %v5022_v7, %v5020_v31  ;;  %vm11242_vm10 = vmmov %vm11241_vm2 }
 0x62e   :  { %7959 = vmatprep.subr.bf16.mxu1 %v7958_v54 }
 0x62f   :  { %v4924_v52 = vpop.permute.xlu0 %4923  ;;  %7961 = vmatpush1.bf16.msra.mxu1 %v7960_v4 }
 0x630   :  { %4928 = vst.msk [vmem:[#allocation6 + $0xf0] sm:$0xff] %vm3862_vm9, %v4924_v52  ;;  %vm11243_vm9 = vmmov %vm11241_vm2 }
 0x633   :  { %v4936_v45 = vpop.permute.xlu0 %4935 }
 0x634   :  { %4940 = vst.msk [vmem:[#allocation6 + $0xf0] sm:$0xff] %vm3875_vm11, %v4936_v45  ;;  %vm11244_vm11 = vmmov %vm11241_vm2 }
 0x637   :  { %v4960_v48 = vpop.permute.xlu0 %4959 }
 0x638   :  { %4966 = vst.msk [vmem:[#allocation6 + $0xf8] sm:$0xff] %vm3902_vm3, %v4960_v48 }
 0x63b   :  { %v4948_v38 = vpop.permute.xlu0 %4947 }
 0x63c   :  { %4952 = vst.msk [vmem:[#allocation6 + $0xf0] sm:$0xff] %vm3888_vm7, %v4948_v38  ;;  %vm11245_vm7 = vmmov %vm11241_vm2 }
 0x63d   :  { %4965 = vst.msk [vmem:[#allocation6 + $0xf0] sm:$0xff] %vm11240_vm4, %v4960_v48 }
 0x63f   :  { %v4974_v46 = vpop.permute.xlu0 %4973 }
 0x640   :  { %4978 = vst.msk [vmem:[#allocation6 + $0xf8] sm:$0xff] %vm3916_vm1, %v4974_v46  ;;  %vm11246_vm1 = vmmov %vm11241_vm2 }
 0x641   :  { %vm11247_vm8 = vmmov %vm11246_vm1 }
 0x642   :  { %vm11248_vm12 = vmmov %vm11246_vm1 }
 0x644   :  { %v5025_v34 = vld [vmem:[#allocation6 + $0xf0] sm:$0xff] }
 0x645   :  { %v7964_v39 = vpack.c.bf16 %v5025_v34, %v5023_v0 }
 0x647   :  { %v5026_v19 = vld [vmem:[#allocation6 + $0xf8] sm:$0xff] }
 0x648   :  { %v7962_v23 = vpack.c.bf16 %v5026_v19, %v5024_v20 }
 0x64a   :  { %7963 = vmatprep.subr.bf16.mxu1 %v7962_v23 }
 0x64b   :  { %7965 = vmatpush1.bf16.msra.mxu1 %v7964_v39 }
 0x64e   :  { %5092 = vmatmul.mubr.f32.vlgmr.msra.gmra.mrb[20].mxu1 %v4979_v63 }
 0x64f   :  { %5097 = vmatprep.mubr.f32.mxu1 %v8383_v16 }
 0x652   :  { %5098 = vmatmul.mubr.f32.gmra.mrb[22].mxu1 %v4980_v27 }
 0x653   :  { %5103 = vmatprep.mubr.f32.mxu1 %v8383_v16 }
 0x656   :  { %5104 = vmatmul.mubr.f32.gmra.mrb[24].mxu1 %v4981_v56 }
 0x657   :  { %5109 = vmatprep.mubr.f32.mxu1 %v8383_v16 }
 0x65a   :  { %5110 = vmatmul.mubr.f32.gmra.mrb[26].mxu1 %v4982_v21 }
 0x65b   :  { %5115 = vmatprep.mubr.f32.mxu1 %v8383_v16 }
 0x65e   :  { %5116 = vmatmul.mubr.f32.gmra.mrb[28].mxu1 %v4983_v53 }
 0x65f   :  { %5121 = vmatprep.mubr.f32.mxu1 %v8383_v16 }
 0x662   :  { %5122 = vmatmul.mubr.f32.gmra.mrb[30].mxu1 %v4984_v62 }
 0x663   :  { %5127 = vmatprep.mubr.f32.mxu1 %v8383_v16 }
 0x666   :  { %5128 = vmatmul.mubr.f32.gmra.mrb[32].mxu1 %v4985_v47 }
 0x667   :  { %5133 = vmatprep.mubr.f32.mxu1 %v8383_v16 }
 0x66a   :  { %5134 = vmatmul.mubr.f32.gmra.mrb[34].mxu1 %v4986_v44 }
 0x66b   :  { %5139 = vmatprep.mubr.f32.mxu1 %v8383_v16 }
 0x66e   :  { %5140 = vmatmul.mubr.f32.gmra.mrb[36].mxu1 %v4987_v2 }
 0x66f   :  { %5145 = vmatprep.mubr.f32.mxu1 %v8383_v16 }
 0x672   :  { %5146 = vmatmul.mubr.f32.gmra.mrb[38].mxu1 %v4988_v59 }
 0x673   :  { %5151 = vmatprep.mubr.f32.mxu1 %v8383_v16 }
 0x676   :  { %5152 = vmatmul.mubr.f32.gmra.mrb[40].mxu1 %v4989_v50 }
 0x677   :  { %5157 = vmatprep.mubr.f32.mxu1 %v8383_v16 }
 0x67a   :  { %5158 = vmatmul.mubr.f32.gmra.mrb[42].mxu1 %v4990_v55 }
 0x67b   :  { %5163 = vmatprep.mubr.f32.mxu1 %v8383_v16 }
 0x67e   :  { %5164 = vmatmul.mubr.f32.gmra.mrb[44].mxu1 %v4991_v13 }
 0x67f   :  { %5169 = vmatprep.mubr.f32.mxu1 %v8383_v16 }
 0x682   :  { %5170 = vmatmul.mubr.f32.gmra.mrb[46].mxu1 %v4992_v15 }
 0x683   :  { %5175 = vmatprep.mubr.f32.mxu1 %v8383_v16 }
 0x686   :  { %5176 = vmatmul.mubr.f32.gmra.mrb[48].mxu1 %v4993_v51 }
 0x687   :  { %5181 = vmatprep.mubr.f32.mxu1 %v8383_v16 }
 0x68a   :  { %5182 = vmatmul.mubr.f32.gmra.mrb[50].mxu1 %v4994_v24 }
 0x721   :  { %v5093_v14 = vpop.f32.mrb[20].mxu1 }
 0x722   :  { %v5095_v5 = vpop.f32.mrb[21].mxu1 }
 0x725   :  { %v5099_v37 = vpop.f32.mrb[22].mxu1 }
 0x726   :  { %v5188_v26 = vpack.c.bf16 %v5099_v37, %v5093_v14  ;;  %v5101_v41 = vpop.f32.mrb[23].mxu1 }
 0x727   :  { %v5189_v49 = vpack.c.bf16 %v5101_v41, %v5095_v5 }
 0x728   :  { %5204 = vst [vmem:[#allocation7] sm:$0xff] %v5188_v26 }
 0x729   :  { %5205 = vst.msk [vmem:[#allocation7 + $0x8] sm:$0xff] %vm11241_vm2, %v5189_v49  ;;  %v5105_v35 = vpop.f32.mrb[24].mxu1 }
 0x72a   :  { %v5107_v57 = vpop.f32.mrb[25].mxu1 }
 0x72d   :  { %v5111_v36 = vpop.f32.mrb[26].mxu1 }
 0x72e   :  { %v5190_v32 = vpack.c.bf16 %v5111_v36, %v5105_v35  ;;  %v5113_v6 = vpop.f32.mrb[27].mxu1 }
 0x72f   :  { %v5191_v30 = vpack.c.bf16 %v5113_v6, %v5107_v57 }
 0x730   :  { %5206 = vst [vmem:[#allocation7 + $0x10] sm:$0xff] %v5190_v32 }
 0x731   :  { %5207 = vst.msk [vmem:[#allocation7 + $0x18] sm:$0xff] %vm11242_vm10, %v5191_v30  ;;  %v5117_v16 = vpop.f32.mrb[28].mxu1 }
 0x732   :  { %v5119_v60 = vpop.f32.mrb[29].mxu1 }
 0x735   :  { %v5123_v17 = vpop.f32.mrb[30].mxu1 }
 0x736   :  { %v5192_v22 = vpack.c.bf16 %v5123_v17, %v5117_v16  ;;  %v5125_v58 = vpop.f32.mrb[31].mxu1 }
 0x737   :  { %v5193_v40 = vpack.c.bf16 %v5125_v58, %v5119_v60 }
 0x738   :  { %5208 = vst [vmem:[#allocation7 + $0x20] sm:$0xff] %v5192_v22 }
 0x739   :  { %5209 = vst.msk [vmem:[#allocation7 + $0x28] sm:$0xff] %vm11243_vm9, %v5193_v40  ;;  %v5129_v18 = vpop.f32.mrb[32].mxu1 }
 0x73a   :  { %v5131_v3 = vpop.f32.mrb[33].mxu1 }
 0x73d   :  { %v5135_v28 = vpop.f32.mrb[34].mxu1 }
 0x73e   :  { %v5194_v25 = vpack.c.bf16 %v5135_v28, %v5129_v18  ;;  %v5137_v61 = vpop.f32.mrb[35].mxu1 }
 0x73f   :  { %v5195_v33 = vpack.c.bf16 %v5137_v61, %v5131_v3 }
 0x740   :  { %5210 = vst [vmem:[#allocation7 + $0x30] sm:$0xff] %v5194_v25 }
 0x741   :  { %5211 = vst.msk [vmem:[#allocation7 + $0x38] sm:$0xff] %vm11244_vm11, %v5195_v33  ;;  %v5141_v43 = vpop.f32.mrb[36].mxu1 }
 0x742   :  { %v5143_v42 = vpop.f32.mrb[37].mxu1 }
 0x745   :  { %v5147_v29 = vpop.f32.mrb[38].mxu1 }
 0x746   :  { %v5196_v8 = vpack.c.bf16 %v5147_v29, %v5141_v43  ;;  %v5149_v31 = vpop.f32.mrb[39].mxu1 }
 0x747   :  { %v5197_v7 = vpack.c.bf16 %v5149_v31, %v5143_v42 }
 0x748   :  { %5212 = vst [vmem:[#allocation7 + $0x40] sm:$0xff] %v5196_v8 }
 0x749   :  { %5213 = vst.msk [vmem:[#allocation7 + $0x48] sm:$0xff] %vm11245_vm7, %v5197_v7  ;;  %v5153_v54 = vpop.f32.mrb[40].mxu1 }
 0x74a   :  { %v5155_v1 = vpop.f32.mrb[41].mxu1 }
 0x74d   :  { %v5159_v4 = vpop.f32.mrb[42].mxu1 }
 0x74e   :  { %v5198_v52 = vpack.c.bf16 %v5159_v4, %v5153_v54  ;;  %v5161_v45 = vpop.f32.mrb[43].mxu1 }
 0x74f   :  { %v5199_v48 = vpack.c.bf16 %v5161_v45, %v5155_v1 }
 0x750   :  { %5214 = vst [vmem:[#allocation7 + $0x50] sm:$0xff] %v5198_v52 }
 0x751   :  { %5215 = vst.msk [vmem:[#allocation7 + $0x58] sm:$0xff] %vm11246_vm1, %v5199_v48  ;;  %v5165_v38 = vpop.f32.mrb[44].mxu1 }
 0x752   :  { %v5167_v46 = vpop.f32.mrb[45].mxu1 }
 0x755   :  { %v5171_v34 = vpop.f32.mrb[46].mxu1 }
 0x756   :  { %v5200_v20 = vpack.c.bf16 %v5171_v34, %v5165_v38  ;;  %v5173_v19 = vpop.f32.mrb[47].mxu1 }
 0x757   :  { %v5201_v23 = vpack.c.bf16 %v5173_v19, %v5167_v46 }
 0x758   :  { %5216 = vst [vmem:[#allocation7 + $0x60] sm:$0xff] %v5200_v20 }
 0x759   :  { %5217 = vst.msk [vmem:[#allocation7 + $0x68] sm:$0xff] %vm11247_vm8, %v5201_v23  ;;  %v5177_v0 = vpop.f32.mrb[48].mxu1 }
 0x75a   :  { %v5179_v39 = vpop.f32.mrb[49].mxu1 }
 0x75d   :  { %v5183_v63 = vpop.f32.mrb[50].mxu1 }
 0x75e   :  { %v5202_v27 = vpack.c.bf16 %v5183_v63, %v5177_v0  ;;  %v5185_v56 = vpop.f32.mrb[51].mxu1 }
 0x75f   :  { %v5203_v21 = vpack.c.bf16 %v5185_v56, %v5179_v39 }
 0x760   :  { %5218 = vst [vmem:[#allocation7 + $0x70] sm:$0xff] %v5202_v27 }
 0x761   :  { %5219 = vst.msk [vmem:[#allocation7 + $0x78] sm:$0xff] %vm11248_vm12, %v5203_v21 }
 0x762   :  { %8334 = dma.done.wait [#allocation9], 18432 }
 0x763   :  { %8335 = vsyncadd [#allocation9], 4294948864  ;;  %v5254_v53 = vld [vmem:[#allocation8 + $0x8] sm:$0xff]  ;;  %v5253_v62 = vld [vmem:[#allocation8] sm:$0xff] }
 0x764   :  { %v5258_v47 = vld [vmem:[#allocation8 + $0x28] sm:$0xff]  ;;  %5292 = vmatprep.subr.bf16.mxu1 %v5254_v53  ;;  %v5257_v44 = vld [vmem:[#allocation8 + $0x20] sm:$0xff]  ;;  %vm11249_vm13 = vmmov %vm11246_vm1 }
 0x765   :  { %5293 = vmatpush1.bf16.msra.mxu1 %v5253_v62  ;;  %v5262_v2 = vld [vmem:[#allocation8 + $0x48] sm:$0xff]  ;;  %v5261_v50 = vld [vmem:[#allocation8 + $0x40] sm:$0xff]  ;;  %v5256_v57 = vld [vmem:[#allocation8 + $0x18] sm:$0xff] }
 0x766   :  { %5294 = vmatprep.subr.bf16.mxu1 %v5258_v47  ;;  %v5252_v59 = vld [vmem:[#allocation7 + $0x8] sm:$0xf]  ;;  %v5265_v13 = vld [vmem:[#allocation8 + $0x60] sm:$0xff]  ;;  %v5255_v32 = vld [vmem:[#allocation8 + $0x10] sm:$0xff] }
 0x767   :  { %7689 = vmatprep.mubr.msk.bf16.mxu1 %vm11249_vm13, %v5252_v59  ;;  %v5266_v55 = vld [vmem:[#allocation8 + $0x68] sm:$0xff]  ;;  %v5269_v51 = vld [vmem:[#allocation8 + $0x80] sm:$0xff]  ;;  %v5260_v6 = vld [vmem:[#allocation8 + $0x38] sm:$0xff] }
 0x768   :  { %v5270_v15 = vld [vmem:[#allocation8 + $0x88] sm:$0xff]  ;;  %v5273_v14 = vld [vmem:[#allocation8 + $0xa0] sm:$0xff]  ;;  %vm11250_vm0 = vmmov %vm11246_vm1 }
 0x769   :  { %5295 = vmatpush1.bf16.msra.mxu1 %v5257_v44  ;;  %v5274_v24 = vld [vmem:[#allocation8 + $0xa8] sm:$0xff]  ;;  %v5277_v37 = vld [vmem:[#allocation8 + $0xc0] sm:$0xff]  ;;  %v5259_v30 = vld [vmem:[#allocation8 + $0x30] sm:$0xff] }
 0x76a   :  { %5296 = vmatprep.subr.bf16.mxu1 %v5262_v2  ;;  %v5278_v5 = vld [vmem:[#allocation8 + $0xc8] sm:$0xff]  ;;  %v5281_v41 = vld [vmem:[#allocation8 + $0xe0] sm:$0xff]  ;;  %v5264_v16 = vld [vmem:[#allocation8 + $0x58] sm:$0xff] }
 0x76b   :  { %v5282_v26 = vld [vmem:[#allocation8 + $0xe8] sm:$0xff]  ;;  %v5285_v35 = vld [vmem:[#allocation8 + $0x100] sm:$0xff]  ;;  %v5263_v60 = vld [vmem:[#allocation8 + $0x50] sm:$0xff] }
 0x76c   :  { %v5286_v49 = vld [vmem:[#allocation8 + $0x108] sm:$0xff]  ;;  %v5251_v36 = vld [vmem:[#allocation7] sm:$0xf]  ;;  %v5268_v17 = vld [vmem:[#allocation8 + $0x78] sm:$0xff] }
 0x76d   :  { %5297 = vmatpush1.bf16.msra.mxu1 %v5261_v50  ;;  %v5267_v22 = vld [vmem:[#allocation8 + $0x70] sm:$0xff]  ;;  %v5272_v58 = vld [vmem:[#allocation8 + $0x98] sm:$0xff]  ;;  %v5379_v29 = vld [vmem:[#allocation7 + $0x8] sm:$0xf0] }
 0x76e   :  { %5298 = vmatprep.subr.bf16.mxu1 %v5266_v55  ;;  %v5271_v40 = vld [vmem:[#allocation8 + $0x90] sm:$0xff]  ;;  %v5276_v18 = vld [vmem:[#allocation8 + $0xb8] sm:$0xff]  ;;  %v5382_v8 = vld [vmem:[#allocation8 + $0x128] sm:$0xff]  ;;  %v5420_v31 = vrot.slane %v5379_v29, 4 }
 0x76f   :  { %v5275_v3 = vld [vmem:[#allocation8 + $0xb0] sm:$0xff]  ;;  %v5280_v28 = vld [vmem:[#allocation8 + $0xd8] sm:$0xff]  ;;  %v5381_v7 = vld [vmem:[#allocation8 + $0x120] sm:$0xff] }
 0x770   :  { %v5279_v25 = vld [vmem:[#allocation8 + $0xd0] sm:$0xff]  ;;  %v5284_v61 = vld [vmem:[#allocation8 + $0xf8] sm:$0xff]  ;;  %v5386_v54 = vld [vmem:[#allocation8 + $0x148] sm:$0xff] }
 0x771   :  { %5299 = vmatpush1.bf16.msra.mxu1 %v5265_v13  ;;  %v5283_v33 = vld [vmem:[#allocation8 + $0xf0] sm:$0xff]  ;;  %v5288_v43 = vld [vmem:[#allocation8 + $0x118] sm:$0xff]  ;;  %vm11251_vm5 = vmmov %vm11250_vm0 }
 0x772   :  { %5300 = vmatprep.subr.bf16.mxu1 %v5270_v15  ;;  %v5287_v42 = vld [vmem:[#allocation8 + $0x110] sm:$0xff]  ;;  %v5385_v1 = vld [vmem:[#allocation8 + $0x140] sm:$0xff]  ;;  %v5390_v4 = vld [vmem:[#allocation8 + $0x168] sm:$0xff] }
 0x773   :  { %v5389_v52 = vld [vmem:[#allocation8 + $0x160] sm:$0xff]  ;;  %v5394_v45 = vld [vmem:[#allocation8 + $0x188] sm:$0xff]  ;;  %v5384_v21 = vld [vmem:[#allocation8 + $0x138] sm:$0xff] }
 0x774   :  { %v5393_v48 = vld [vmem:[#allocation8 + $0x180] sm:$0xff]  ;;  %v5398_v38 = vld [vmem:[#allocation8 + $0x1a8] sm:$0xff]  ;;  %v5383_v62 = vld [vmem:[#allocation8 + $0x130] sm:$0xff] }
 0x775   :  { %5301 = vmatpush1.bf16.msra.mxu1 %v5269_v51  ;;  %v5397_v46 = vld [vmem:[#allocation8 + $0x1a0] sm:$0xff]  ;;  %v5402_v34 = vld [vmem:[#allocation8 + $0x1c8] sm:$0xff]  ;;  %v5388_v47 = vld [vmem:[#allocation8 + $0x158] sm:$0xff] }
 0x776   :  { %5302 = vmatprep.subr.bf16.mxu1 %v5274_v24  ;;  %v5401_v20 = vld [vmem:[#allocation8 + $0x1c0] sm:$0xff]  ;;  %v5406_v19 = vld [vmem:[#allocation8 + $0x1e8] sm:$0xff]  ;;  %vm11252_vm15 = vmmov %vm11250_vm0 }
 0x777   :  { %v5405_v23 = vld [vmem:[#allocation8 + $0x1e0] sm:$0xff]  ;;  %v5410_v0 = vld [vmem:[#allocation8 + $0x208] sm:$0xff]  ;;  %v5387_v44 = vld [vmem:[#allocation8 + $0x150] sm:$0xff] }
 0x778   :  { %v5409_v39 = vld [vmem:[#allocation8 + $0x200] sm:$0xff]  ;;  %v5414_v63 = vld [vmem:[#allocation8 + $0x228] sm:$0xff]  ;;  %v5392_v2 = vld [vmem:[#allocation8 + $0x178] sm:$0xff] }
 0x779   :  { %5303 = vmatpush1.bf16.msra.mxu1 %v5273_v14  ;;  %v5378_v27 = vld [vmem:[#allocation7] sm:$0xf0]  ;;  %v5396_v50 = vld [vmem:[#allocation8 + $0x198] sm:$0xff]  ;;  %v5395_v55 = vld [vmem:[#allocation8 + $0x190] sm:$0xff] }
 0x77a   :  { %5304 = vmatprep.subr.bf16.mxu1 %v5278_v5  ;;  %v5413_v56 = vld [vmem:[#allocation8 + $0x220] sm:$0xff]  ;;  %v5419_v53 = vrot.slane %v5378_v27, 4  ;;  %v5400_v13 = vld [vmem:[#allocation8 + $0x1b8] sm:$0xff]  ;;  %v5399_v15 = vld [vmem:[#allocation8 + $0x1b0] sm:$0xff] }
 0x77b   :  { %v5404_v51 = vld [vmem:[#allocation8 + $0x1d8] sm:$0xff]  ;;  %v5403_v24 = vld [vmem:[#allocation8 + $0x1d0] sm:$0xff]  ;;  %vm11253_vm14 = vmmov %vm11250_vm0 }
 0x77c   :  { %v5408_v14 = vld [vmem:[#allocation8 + $0x1f8] sm:$0xff]  ;;  %v5407_v5 = vld [vmem:[#allocation8 + $0x1f0] sm:$0xff]  ;;  %vm11254_vm6 = vmmov %vm11250_vm0 }
 0x77d   :  { %5305 = vmatpush1.bf16.msra.mxu1 %v5277_v37  ;;  %v5412_v37 = vld [vmem:[#allocation8 + $0x218] sm:$0xff]  ;;  %v5511_v29 = vld [vmem:[#allocation7 + $0x10] sm:$0xf]  ;;  %v5643_v27 = vld [vmem:[#allocation8 + $0x368] sm:$0xff] }
 0x77e   :  { %5306 = vmatprep.subr.bf16.mxu1 %v5282_v26  ;;  %v5411_v26 = vld [vmem:[#allocation8 + $0x210] sm:$0xff]  ;;  %vm11255_vm4 = vmmov %vm11250_vm0 }
 0x77f   :  { %vm11256_vm2 = vmmov %vm11250_vm0 }
 0x781   :  { %5307 = vmatpush1.bf16.msra.mxu1 %v5281_v41  ;;  %v5416_v41 = vld [vmem:[#allocation8 + $0x238] sm:$0xff] }
 0x782   :  { %5308 = vmatprep.subr.bf16.mxu1 %v5286_v49  ;;  %v5415_v49 = vld [vmem:[#allocation8 + $0x230] sm:$0xff] }
 0x785   :  { %5309 = vmatpush1.bf16.msra.mxu1 %v5285_v35  ;;  %v5515_v35 = vld [vmem:[#allocation8 + $0x248] sm:$0xff] }
 0x786   :  { %5333 = vmatprep.subr.bf16.mxu1 %v5256_v57  ;;  %v5514_v57 = vld [vmem:[#allocation8 + $0x240] sm:$0xff] }
 0x788   :  { %5325 = vmatmul.mubr.bf16.vlgmr.msra.gmra.mrb[52].mxu1 %v5251_v36 }
 0x789   :  { %5334 = vmatpush1.bf16.msra.mxu1 %v5255_v32  ;;  %7690 = vmatprep.mubr.msk.bf16.mxu1 %vm11250_vm0, %v5252_v59  ;;  %v5391_v59 = vld [vmem:[#allocation8 + $0x170] sm:$0xff]  ;;  %v5519_v32 = vld [vmem:[#allocation8 + $0x268] sm:$0xff] }
 0x78a   :  { %5335 = vmatprep.subr.bf16.mxu1 %v5260_v6  ;;  %v5518_v6 = vld [vmem:[#allocation8 + $0x260] sm:$0xff] }
 0x78d   :  { %5336 = vmatpush1.bf16.msra.mxu1 %v5259_v30  ;;  %v5523_v30 = vld [vmem:[#allocation8 + $0x288] sm:$0xff] }
 0x78e   :  { %5337 = vmatprep.subr.bf16.mxu1 %v5264_v16  ;;  %v5522_v16 = vld [vmem:[#allocation8 + $0x280] sm:$0xff] }
 0x791   :  { %5338 = vmatpush1.bf16.msra.mxu1 %v5263_v60  ;;  %v5527_v60 = vld [vmem:[#allocation8 + $0x2a8] sm:$0xff] }
 0x792   :  { %5339 = vmatprep.subr.bf16.mxu1 %v5268_v17  ;;  %v5526_v17 = vld [vmem:[#allocation8 + $0x2a0] sm:$0xff] }
 0x795   :  { %5340 = vmatpush1.bf16.msra.mxu1 %v5267_v22  ;;  %v5531_v22 = vld [vmem:[#allocation8 + $0x2c8] sm:$0xff] }
 0x796   :  { %5341 = vmatprep.subr.bf16.mxu1 %v5272_v58  ;;  %v5530_v58 = vld [vmem:[#allocation8 + $0x2c0] sm:$0xff] }
 0x799   :  { %5342 = vmatpush1.bf16.msra.mxu1 %v5271_v40  ;;  %v5535_v40 = vld [vmem:[#allocation8 + $0x2e8] sm:$0xff] }
 0x79a   :  { %5343 = vmatprep.subr.bf16.mxu1 %v5276_v18  ;;  %v5534_v18 = vld [vmem:[#allocation8 + $0x2e0] sm:$0xff] }
 0x79d   :  { %5344 = vmatpush1.bf16.msra.mxu1 %v5275_v3  ;;  %v5539_v3 = vld [vmem:[#allocation8 + $0x308] sm:$0xff] }
 0x79e   :  { %5345 = vmatprep.subr.bf16.mxu1 %v5280_v28  ;;  %v5538_v28 = vld [vmem:[#allocation8 + $0x300] sm:$0xff] }
 0x7a1   :  { %5346 = vmatpush1.bf16.msra.mxu1 %v5279_v25  ;;  %v5543_v25 = vld [vmem:[#allocation8 + $0x328] sm:$0xff] }
 0x7a2   :  { %5347 = vmatprep.subr.bf16.mxu1 %v5284_v61  ;;  %v5542_v61 = vld [vmem:[#allocation8 + $0x320] sm:$0xff] }
 0x7a5   :  { %5348 = vmatpush1.bf16.msra.mxu1 %v5283_v33  ;;  %v5547_v33 = vld [vmem:[#allocation8 + $0x348] sm:$0xff] }
 0x7a6   :  { %5349 = vmatprep.subr.bf16.mxu1 %v5288_v43  ;;  %v5546_v43 = vld [vmem:[#allocation8 + $0x340] sm:$0xff] }
 0x7a9   :  { %5350 = vmatpush1.bf16.msra.mxu1 %v5287_v42  ;;  %v5517_v42 = vld [vmem:[#allocation8 + $0x258] sm:$0xff] }
 0x7aa   :  { %5425 = vmatprep.subr.bf16.mxu1 %v5382_v8  ;;  %v5516_v8 = vld [vmem:[#allocation8 + $0x250] sm:$0xff] }
 0x7ac   :  { %5366 = vmatmul.mubr.bf16.vlgmr.msra.gmra.mrb[56].mxu1 %v5251_v36  ;;  %v5512_v36 = vld [vmem:[#allocation7 + $0x18] sm:$0xf] }
 0x7ad   :  { %5426 = vmatpush1.bf16.msra.mxu1 %v5381_v7  ;;  %7691 = vmatprep.mubr.msk.bf16.mxu1 %vm11251_vm5, %v5420_v31  ;;  %v5520_v7 = vld [vmem:[#allocation8 + $0x270] sm:$0xff] }
 0x7ae   :  { %5427 = vmatprep.subr.bf16.mxu1 %v5386_v54  ;;  %v5525_v54 = vld [vmem:[#allocation8 + $0x298] sm:$0xff] }
 0x7b1   :  { %5428 = vmatpush1.bf16.msra.mxu1 %v5385_v1  ;;  %v5524_v1 = vld [vmem:[#allocation8 + $0x290] sm:$0xff] }
 0x7b2   :  { %5429 = vmatprep.subr.bf16.mxu1 %v5390_v4  ;;  %v5529_v4 = vld [vmem:[#allocation8 + $0x2b8] sm:$0xff] }
 0x7b5   :  { %5430 = vmatpush1.bf16.msra.mxu1 %v5389_v52  ;;  %v5528_v52 = vld [vmem:[#allocation8 + $0x2b0] sm:$0xff] }
 0x7b6   :  { %5431 = vmatprep.subr.bf16.mxu1 %v5394_v45  ;;  %v5533_v45 = vld [vmem:[#allocation8 + $0x2d8] sm:$0xff] }
 0x7b9   :  { %5432 = vmatpush1.bf16.msra.mxu1 %v5393_v48  ;;  %v5532_v48 = vld [vmem:[#allocation8 + $0x2d0] sm:$0xff] }
 0x7ba   :  { %5433 = vmatprep.subr.bf16.mxu1 %v5398_v38  ;;  %v5537_v38 = vld [vmem:[#allocation8 + $0x2f8] sm:$0xff] }
 0x7bd   :  { %5434 = vmatpush1.bf16.msra.mxu1 %v5397_v46  ;;  %v5536_v46 = vld [vmem:[#allocation8 + $0x2f0] sm:$0xff] }
 0x7be   :  { %5435 = vmatprep.subr.bf16.mxu1 %v5402_v34  ;;  %v5541_v34 = vld [vmem:[#allocation8 + $0x318] sm:$0xff] }
 0x7c1   :  { %5436 = vmatpush1.bf16.msra.mxu1 %v5401_v20  ;;  %v5540_v20 = vld [vmem:[#allocation8 + $0x310] sm:$0xff] }
 0x7c2   :  { %5437 = vmatprep.subr.bf16.mxu1 %v5406_v19  ;;  %v5545_v19 = vld [vmem:[#allocation8 + $0x338] sm:$0xff] }
 0x7c5   :  { %5438 = vmatpush1.bf16.msra.mxu1 %v5405_v23  ;;  %v5544_v23 = vld [vmem:[#allocation8 + $0x330] sm:$0xff] }
 0x7c6   :  { %5439 = vmatprep.subr.bf16.mxu1 %v5410_v0  ;;  %v5549_v0 = vld [vmem:[#allocation8 + $0x358] sm:$0xff] }
 0x7c9   :  { %5440 = vmatpush1.bf16.msra.mxu1 %v5409_v39  ;;  %v5548_v39 = vld [vmem:[#allocation8 + $0x350] sm:$0xff] }
 0x7ca   :  { %5441 = vmatprep.subr.bf16.mxu1 %v5414_v63  ;;  %v5640_v63 = vld [vmem:[#allocation7 + $0x18] sm:$0xf0] }
 0x7cd   :  { %5442 = vmatpush1.bf16.msra.mxu1 %v5413_v56  ;;  %v5681_v56 = vrot.slane %v5640_v63, 4 }
 0x7ce   :  { %5466 = vmatprep.subr.bf16.mxu1 %v5384_v21  ;;  %v5642_v21 = vld [vmem:[#allocation8 + $0x360] sm:$0xff] }
 0x7d0   :  { %5458 = vmatmul.mubr.bf16.vlgmr.msra.gmra.mrb[52].mxu1 %v5419_v53 }
 0x7d1   :  { %5467 = vmatpush1.bf16.msra.mxu1 %v5383_v62  ;;  %7692 = vmatprep.mubr.msk.bf16.mxu1 %vm11252_vm15, %v5420_v31  ;;  %v5521_v31 = vld [vmem:[#allocation8 + $0x278] sm:$0xff]  ;;  %v5646_v62 = vld [vmem:[#allocation8 + $0x380] sm:$0xff] }
 0x7d2   :  { %5468 = vmatprep.subr.bf16.mxu1 %v5388_v47  ;;  %v5651_v47 = vld [vmem:[#allocation8 + $0x3a8] sm:$0xff] }
 0x7d5   :  { %5469 = vmatpush1.bf16.msra.mxu1 %v5387_v44  ;;  %v5650_v44 = vld [vmem:[#allocation8 + $0x3a0] sm:$0xff] }
 0x7d6   :  { %5470 = vmatprep.subr.bf16.mxu1 %v5392_v2  ;;  %v5655_v2 = vld [vmem:[#allocation8 + $0x3c8] sm:$0xff] }
 0x7d9   :  { %5471 = vmatpush1.bf16.msra.mxu1 %v5391_v59  ;;  %v5654_v59 = vld [vmem:[#allocation8 + $0x3c0] sm:$0xff] }
 0x7da   :  { %5472 = vmatprep.subr.bf16.mxu1 %v5396_v50  ;;  %v5659_v50 = vld [vmem:[#allocation8 + $0x3e8] sm:$0xff] }
 0x7dd   :  { %5473 = vmatpush1.bf16.msra.mxu1 %v5395_v55  ;;  %v5658_v55 = vld [vmem:[#allocation8 + $0x3e0] sm:$0xff] }
 0x7de   :  { %5474 = vmatprep.subr.bf16.mxu1 %v5400_v13  ;;  %v5663_v13 = vld [vmem:[#allocation8 + $0x408] sm:$0xff] }
 0x7e1   :  { %5475 = vmatpush1.bf16.msra.mxu1 %v5399_v15  ;;  %v5662_v15 = vld [vmem:[#allocation8 + $0x400] sm:$0xff] }
 0x7e2   :  { %5476 = vmatprep.subr.bf16.mxu1 %v5404_v51  ;;  %v5667_v51 = vld [vmem:[#allocation8 + $0x428] sm:$0xff] }
 0x7e5   :  { %5477 = vmatpush1.bf16.msra.mxu1 %v5403_v24  ;;  %v5666_v24 = vld [vmem:[#allocation8 + $0x420] sm:$0xff] }
 0x7e6   :  { %5478 = vmatprep.subr.bf16.mxu1 %v5408_v14  ;;  %v5671_v14 = vld [vmem:[#allocation8 + $0x448] sm:$0xff] }
 0x7e9   :  { %5479 = vmatpush1.bf16.msra.mxu1 %v5407_v5  ;;  %v5670_v5 = vld [vmem:[#allocation8 + $0x440] sm:$0xff] }
 0x7ea   :  { %5480 = vmatprep.subr.bf16.mxu1 %v5412_v37  ;;  %v5675_v37 = vld [vmem:[#allocation8 + $0x468] sm:$0xff] }
 0x7ed   :  { %5481 = vmatpush1.bf16.msra.mxu1 %v5411_v26  ;;  %v5639_v26 = vld [vmem:[#allocation7 + $0x10] sm:$0xf0] }
 0x7ee   :  { %5482 = vmatprep.subr.bf16.mxu1 %v5416_v41  ;;  %v5674_v41 = vld [vmem:[#allocation8 + $0x460] sm:$0xff] }
 0x7f1   :  { %5483 = vmatpush1.bf16.msra.mxu1 %v5415_v49  ;;  %v5645_v49 = vld [vmem:[#allocation8 + $0x378] sm:$0xff] }
 0x7f2   :  { %5553 = vmatprep.subr.bf16.mxu1 %v5515_v35  ;;  %v5680_v35 = vrot.slane %v5639_v26, 4 }
 0x7f4   :  { %5499 = vmatmul.mubr.bf16.vlgmr.msra.gmra.mrb[56].mxu1 %v5419_v53  ;;  %v5647_v53 = vld [vmem:[#allocation8 + $0x388] sm:$0xff] }
 0x7f5   :  { %5554 = vmatpush1.bf16.msra.mxu1 %v5514_v57  ;;  %7693 = vmatprep.mubr.msk.bf16.mxu1 %vm11253_vm14, %v5512_v36  ;;  %v5644_v57 = vld [vmem:[#allocation8 + $0x370] sm:$0xff] }
 0x7f6   :  { %5555 = vmatprep.subr.bf16.mxu1 %v5519_v32  ;;  %v5648_v32 = vld [vmem:[#allocation8 + $0x390] sm:$0xff] }
 0x7f9   :  { %5556 = vmatpush1.bf16.msra.mxu1 %v5518_v6  ;;  %v5653_v6 = vld [vmem:[#allocation8 + $0x3b8] sm:$0xff] }
 0x7fa   :  { %5557 = vmatprep.subr.bf16.mxu1 %v5523_v30  ;;  %v5652_v30 = vld [vmem:[#allocation8 + $0x3b0] sm:$0xff] }
 0x7fd   :  { %5558 = vmatpush1.bf16.msra.mxu1 %v5522_v16  ;;  %v5657_v16 = vld [vmem:[#allocation8 + $0x3d8] sm:$0xff] }
 0x7fe   :  { %5559 = vmatprep.subr.bf16.mxu1 %v5527_v60  ;;  %v5656_v60 = vld [vmem:[#allocation8 + $0x3d0] sm:$0xff] }
 0x801   :  { %5560 = vmatpush1.bf16.msra.mxu1 %v5526_v17  ;;  %v5661_v17 = vld [vmem:[#allocation8 + $0x3f8] sm:$0xff] }
 0x802   :  { %5561 = vmatprep.subr.bf16.mxu1 %v5531_v22  ;;  %v5660_v22 = vld [vmem:[#allocation8 + $0x3f0] sm:$0xff] }
 0x805   :  { %5562 = vmatpush1.bf16.msra.mxu1 %v5530_v58  ;;  %v5665_v58 = vld [vmem:[#allocation8 + $0x418] sm:$0xff] }
 0x806   :  { %5563 = vmatprep.subr.bf16.mxu1 %v5535_v40  ;;  %v5664_v40 = vld [vmem:[#allocation8 + $0x410] sm:$0xff] }
 0x809   :  { %5564 = vmatpush1.bf16.msra.mxu1 %v5534_v18  ;;  %v5669_v18 = vld [vmem:[#allocation8 + $0x438] sm:$0xff] }
 0x80a   :  { %5565 = vmatprep.subr.bf16.mxu1 %v5539_v3  ;;  %v5668_v3 = vld [vmem:[#allocation8 + $0x430] sm:$0xff] }
 0x80d   :  { %5566 = vmatpush1.bf16.msra.mxu1 %v5538_v28  ;;  %v5673_v28 = vld [vmem:[#allocation8 + $0x458] sm:$0xff] }
 0x80e   :  { %5567 = vmatprep.subr.bf16.mxu1 %v5543_v25  ;;  %v5672_v25 = vld [vmem:[#allocation8 + $0x450] sm:$0xff] }
 0x811   :  { %5568 = vmatpush1.bf16.msra.mxu1 %v5542_v61  ;;  %v5677_v61 = vld [vmem:[#allocation8 + $0x478] sm:$0xff] }
 0x812   :  { %5569 = vmatprep.subr.bf16.mxu1 %v5547_v33  ;;  %v5676_v33 = vld [vmem:[#allocation8 + $0x470] sm:$0xff] }
 0x815   :  { %5570 = vmatpush1.bf16.msra.mxu1 %v5546_v43 }
 0x816   :  { %5594 = vmatprep.subr.bf16.mxu1 %v5517_v42 }
 0x818   :  { %5586 = vmatmul.mubr.bf16.vlgmr.msra.gmra.mrb[52].mxu1 %v5511_v29 }
 0x819   :  { %5595 = vmatpush1.bf16.msra.mxu1 %v5516_v8  ;;  %7694 = vmatprep.mubr.msk.bf16.mxu1 %vm11254_vm6, %v5512_v36  ;;  %v5649_v36 = vld [vmem:[#allocation8 + $0x398] sm:$0xff] }
 0x81a   :  { %5596 = vmatprep.subr.bf16.mxu1 %v5521_v31 }
 0x81d   :  { %5597 = vmatpush1.bf16.msra.mxu1 %v5520_v7 }
 0x81e   :  { %5598 = vmatprep.subr.bf16.mxu1 %v5525_v54 }
 0x821   :  { %5599 = vmatpush1.bf16.msra.mxu1 %v5524_v1 }
 0x822   :  { %5600 = vmatprep.subr.bf16.mxu1 %v5529_v4 }
 0x825   :  { %5601 = vmatpush1.bf16.msra.mxu1 %v5528_v52 }
 0x826   :  { %5602 = vmatprep.subr.bf16.mxu1 %v5533_v45 }
 0x829   :  { %5603 = vmatpush1.bf16.msra.mxu1 %v5532_v48 }
 0x82a   :  { %5604 = vmatprep.subr.bf16.mxu1 %v5537_v38 }
 0x82d   :  { %5605 = vmatpush1.bf16.msra.mxu1 %v5536_v46 }
 0x82e   :  { %5606 = vmatprep.subr.bf16.mxu1 %v5541_v34 }
 0x831   :  { %5607 = vmatpush1.bf16.msra.mxu1 %v5540_v20 }
 0x832   :  { %5608 = vmatprep.subr.bf16.mxu1 %v5545_v19 }
 0x835   :  { %5609 = vmatpush1.bf16.msra.mxu1 %v5544_v23 }
 0x836   :  { %5610 = vmatprep.subr.bf16.mxu1 %v5549_v0 }
 0x839   :  { %5611 = vmatpush1.bf16.msra.mxu1 %v5548_v39 }
 0x83a   :  { %5686 = vmatprep.subr.bf16.mxu1 %v5643_v27 }
 0x83c   :  { %5627 = vmatmul.mubr.bf16.vlgmr.msra.gmra.mrb[56].mxu1 %v5511_v29 }
 0x83d   :  { %5687 = vmatpush1.bf16.msra.mxu1 %v5642_v21  ;;  %7695 = vmatprep.mubr.msk.bf16.mxu1 %vm11255_vm4, %v5681_v56 }
 0x83e   :  { %5688 = vmatprep.subr.bf16.mxu1 %v5647_v53 }
 0x841   :  { %5689 = vmatpush1.bf16.msra.mxu1 %v5646_v62 }
 0x842   :  { %5690 = vmatprep.subr.bf16.mxu1 %v5651_v47 }
 0x845   :  { %5691 = vmatpush1.bf16.msra.mxu1 %v5650_v44 }
 0x846   :  { %5692 = vmatprep.subr.bf16.mxu1 %v5655_v2 }
 0x849   :  { %5693 = vmatpush1.bf16.msra.mxu1 %v5654_v59 }
 0x84a   :  { %5694 = vmatprep.subr.bf16.mxu1 %v5659_v50 }
 0x84d   :  { %5695 = vmatpush1.bf16.msra.mxu1 %v5658_v55 }
 0x84e   :  { %5696 = vmatprep.subr.bf16.mxu1 %v5663_v13 }
 0x851   :  { %5697 = vmatpush1.bf16.msra.mxu1 %v5662_v15 }
 0x852   :  { %5698 = vmatprep.subr.bf16.mxu1 %v5667_v51 }
 0x855   :  { %5699 = vmatpush1.bf16.msra.mxu1 %v5666_v24 }
 0x856   :  { %5700 = vmatprep.subr.bf16.mxu1 %v5671_v14 }
 0x859   :  { %5701 = vmatpush1.bf16.msra.mxu1 %v5670_v5 }
 0x85a   :  { %5702 = vmatprep.subr.bf16.mxu1 %v5675_v37 }
 0x85d   :  { %5703 = vmatpush1.bf16.msra.mxu1 %v5674_v41 }
 0x85e   :  { %5727 = vmatprep.subr.bf16.mxu1 %v5645_v49 }
 0x860   :  { %5719 = vmatmul.mubr.bf16.vlgmr.msra.gmra.mrb[52].mxu1 %v5680_v35 }
 0x861   :  { %5728 = vmatpush1.bf16.msra.mxu1 %v5644_v57  ;;  %7696 = vmatprep.mubr.msk.bf16.mxu1 %vm11256_vm2, %v5681_v56 }
 0x862   :  { %5729 = vmatprep.subr.bf16.mxu1 %v5649_v36 }
 0x865   :  { %5730 = vmatpush1.bf16.msra.mxu1 %v5648_v32 }
 0x866   :  { %5731 = vmatprep.subr.bf16.mxu1 %v5653_v6 }
 0x869   :  { %5732 = vmatpush1.bf16.msra.mxu1 %v5652_v30 }
 0x86a   :  { %5733 = vmatprep.subr.bf16.mxu1 %v5657_v16 }
 0x86d   :  { %5734 = vmatpush1.bf16.msra.mxu1 %v5656_v60 }
 0x86e   :  { %5735 = vmatprep.subr.bf16.mxu1 %v5661_v17 }
 0x871   :  { %5736 = vmatpush1.bf16.msra.mxu1 %v5660_v22 }
 0x872   :  { %5737 = vmatprep.subr.bf16.mxu1 %v5665_v58 }
 0x875   :  { %5738 = vmatpush1.bf16.msra.mxu1 %v5664_v40 }
 0x876   :  { %5739 = vmatprep.subr.bf16.mxu1 %v5669_v18 }
 0x879   :  { %5740 = vmatpush1.bf16.msra.mxu1 %v5668_v3 }
 0x87a   :  { %5741 = vmatprep.subr.bf16.mxu1 %v5673_v28 }
 0x87d   :  { %5742 = vmatpush1.bf16.msra.mxu1 %v5672_v25 }
 0x87e   :  { %5743 = vmatprep.subr.bf16.mxu1 %v5677_v61 }
 0x881   :  { %5744 = vmatpush1.bf16.msra.mxu1 %v5676_v33 }
 0x884   :  { %5760 = vmatmul.mubr.bf16.vlgmr.msra.gmra.mrb[56].mxu1 %v5680_v35 }
 0x885   :  { %8336 = dma.done.wait [#allocation9 + $0x1], 18432 }
 0x886   :  { %8337 = vsyncadd [#allocation9 + $0x1], 4294948864  ;;  %v5777_v43 = vld [vmem:[#allocation8 + $0x488] sm:$0xff]  ;;  %v5776_v42 = vld [vmem:[#allocation8 + $0x480] sm:$0xff] }
 0x887   :  { %v5781_v29 = vld [vmem:[#allocation8 + $0x4a8] sm:$0xff]  ;;  %5815 = vmatprep.subr.bf16.mxu1 %v5777_v43  ;;  %v5780_v8 = vld [vmem:[#allocation8 + $0x4a0] sm:$0xff]  ;;  %vm11257_vm10 = vmmov %vm11250_vm0 }
 0x888   :  { %5816 = vmatpush1.bf16.msra.mxu1 %v5776_v42  ;;  %v5785_v31 = vld [vmem:[#allocation8 + $0x4c8] sm:$0xff]  ;;  %v5784_v54 = vld [vmem:[#allocation8 + $0x4c0] sm:$0xff]  ;;  %v5779_v39 = vld [vmem:[#allocation8 + $0x498] sm:$0xff] }
 0x889   :  { %5817 = vmatprep.subr.bf16.mxu1 %v5781_v29  ;;  %v5775_v7 = vld [vmem:[#allocation7 + $0x28] sm:$0xf]  ;;  %v5788_v4 = vld [vmem:[#allocation8 + $0x4e0] sm:$0xff]  ;;  %v5778_v27 = vld [vmem:[#allocation8 + $0x490] sm:$0xff] }
 0x88a   :  { %7697 = vmatprep.mubr.msk.bf16.mxu1 %vm11257_vm10, %v5775_v7  ;;  %v5789_v1 = vld [vmem:[#allocation8 + $0x4e8] sm:$0xff]  ;;  %v5792_v45 = vld [vmem:[#allocation8 + $0x500] sm:$0xff]  ;;  %v5783_v56 = vld [vmem:[#allocation8 + $0x4b8] sm:$0xff] }
 0x88b   :  { %v5793_v52 = vld [vmem:[#allocation8 + $0x508] sm:$0xff]  ;;  %v5796_v38 = vld [vmem:[#allocation8 + $0x520] sm:$0xff]  ;;  %vm11258_vm9 = vmmov %vm11250_vm0 }
 0x88c   :  { %5818 = vmatpush1.bf16.msra.mxu1 %v5780_v8  ;;  %v5797_v48 = vld [vmem:[#allocation8 + $0x528] sm:$0xff]  ;;  %v5800_v34 = vld [vmem:[#allocation8 + $0x540] sm:$0xff]  ;;  %v5782_v21 = vld [vmem:[#allocation8 + $0x4b0] sm:$0xff] }
 0x88d   :  { %5819 = vmatprep.subr.bf16.mxu1 %v5785_v31  ;;  %v5801_v46 = vld [vmem:[#allocation8 + $0x548] sm:$0xff]  ;;  %v5804_v19 = vld [vmem:[#allocation8 + $0x560] sm:$0xff]  ;;  %v5787_v53 = vld [vmem:[#allocation8 + $0x4d8] sm:$0xff] }
 0x88e   :  { %v5805_v20 = vld [vmem:[#allocation8 + $0x568] sm:$0xff]  ;;  %v5808_v0 = vld [vmem:[#allocation8 + $0x580] sm:$0xff]  ;;  %v5786_v62 = vld [vmem:[#allocation8 + $0x4d0] sm:$0xff] }
 0x88f   :  { %v5809_v23 = vld [vmem:[#allocation8 + $0x588] sm:$0xff]  ;;  %v5774_v63 = vld [vmem:[#allocation7 + $0x20] sm:$0xf]  ;;  %v5791_v47 = vld [vmem:[#allocation8 + $0x4f8] sm:$0xff] }
 0x890   :  { %5820 = vmatpush1.bf16.msra.mxu1 %v5784_v54  ;;  %v5790_v44 = vld [vmem:[#allocation8 + $0x4f0] sm:$0xff]  ;;  %v5795_v2 = vld [vmem:[#allocation8 + $0x518] sm:$0xff]  ;;  %v5902_v37 = vld [vmem:[#allocation7 + $0x28] sm:$0xf0] }
 0x891   :  { %5821 = vmatprep.subr.bf16.mxu1 %v5789_v1  ;;  %v5794_v59 = vld [vmem:[#allocation8 + $0x510] sm:$0xff]  ;;  %v5799_v50 = vld [vmem:[#allocation8 + $0x538] sm:$0xff]  ;;  %v5905_v26 = vld [vmem:[#allocation8 + $0x5a8] sm:$0xff]  ;;  %v5943_v41 = vrot.slane %v5902_v37, 4 }
 0x892   :  { %v5798_v55 = vld [vmem:[#allocation8 + $0x530] sm:$0xff]  ;;  %v5803_v13 = vld [vmem:[#allocation8 + $0x558] sm:$0xff]  ;;  %v5904_v49 = vld [vmem:[#allocation8 + $0x5a0] sm:$0xff] }
 0x893   :  { %v5802_v15 = vld [vmem:[#allocation8 + $0x550] sm:$0xff]  ;;  %v5807_v51 = vld [vmem:[#allocation8 + $0x578] sm:$0xff]  ;;  %v5909_v35 = vld [vmem:[#allocation8 + $0x5c8] sm:$0xff] }
 0x894   :  { %5822 = vmatpush1.bf16.msra.mxu1 %v5788_v4  ;;  %v5806_v24 = vld [vmem:[#allocation8 + $0x570] sm:$0xff]  ;;  %v5811_v14 = vld [vmem:[#allocation8 + $0x598] sm:$0xff]  ;;  %vm11259_vm11 = vmmov %vm11250_vm0 }
 0x895   :  { %5823 = vmatprep.subr.bf16.mxu1 %v5793_v52  ;;  %v5810_v5 = vld [vmem:[#allocation8 + $0x590] sm:$0xff]  ;;  %v5908_v57 = vld [vmem:[#allocation8 + $0x5c0] sm:$0xff]  ;;  %v5913_v36 = vld [vmem:[#allocation8 + $0x5e8] sm:$0xff] }
 0x896   :  { %v5912_v32 = vld [vmem:[#allocation8 + $0x5e0] sm:$0xff]  ;;  %v5917_v6 = vld [vmem:[#allocation8 + $0x608] sm:$0xff]  ;;  %v5907_v33 = vld [vmem:[#allocation8 + $0x5b8] sm:$0xff] }
 0x897   :  { %v5916_v30 = vld [vmem:[#allocation8 + $0x600] sm:$0xff]  ;;  %v5921_v16 = vld [vmem:[#allocation8 + $0x628] sm:$0xff]  ;;  %v5906_v42 = vld [vmem:[#allocation8 + $0x5b0] sm:$0xff] }
 0x898   :  { %5824 = vmatpush1.bf16.msra.mxu1 %v5792_v45  ;;  %v5920_v60 = vld [vmem:[#allocation8 + $0x620] sm:$0xff]  ;;  %v5925_v17 = vld [vmem:[#allocation8 + $0x648] sm:$0xff]  ;;  %v5911_v29 = vld [vmem:[#allocation8 + $0x5d8] sm:$0xff] }
 0x899   :  { %5825 = vmatprep.subr.bf16.mxu1 %v5797_v48  ;;  %v5924_v22 = vld [vmem:[#allocation8 + $0x640] sm:$0xff]  ;;  %v5929_v58 = vld [vmem:[#allocation8 + $0x668] sm:$0xff]  ;;  %vm11260_vm7 = vmmov %vm11250_vm0 }
 0x89a   :  { %v5928_v40 = vld [vmem:[#allocation8 + $0x660] sm:$0xff]  ;;  %v5933_v18 = vld [vmem:[#allocation8 + $0x688] sm:$0xff]  ;;  %v5910_v8 = vld [vmem:[#allocation8 + $0x5d0] sm:$0xff] }
 0x89b   :  { %v5932_v3 = vld [vmem:[#allocation8 + $0x680] sm:$0xff]  ;;  %v5937_v28 = vld [vmem:[#allocation8 + $0x6a8] sm:$0xff]  ;;  %v5915_v31 = vld [vmem:[#allocation8 + $0x5f8] sm:$0xff] }
 0x89c   :  { %5826 = vmatpush1.bf16.msra.mxu1 %v5796_v38  ;;  %v5901_v25 = vld [vmem:[#allocation7 + $0x20] sm:$0xf0]  ;;  %v5919_v54 = vld [vmem:[#allocation8 + $0x618] sm:$0xff]  ;;  %v5918_v1 = vld [vmem:[#allocation8 + $0x610] sm:$0xff] }
 0x89d   :  { %5827 = vmatprep.subr.bf16.mxu1 %v5801_v46  ;;  %v5936_v61 = vld [vmem:[#allocation8 + $0x6a0] sm:$0xff]  ;;  %v5942_v43 = vrot.slane %v5901_v25, 4  ;;  %v5923_v4 = vld [vmem:[#allocation8 + $0x638] sm:$0xff]  ;;  %v5922_v48 = vld [vmem:[#allocation8 + $0x630] sm:$0xff] }
 0x89e   :  { %v10880_v52 = vld [vmem:[#allocation7 + $0x38] sm:$0xf0]  ;;  %vm11261_vm1 = vmmov %vm11250_vm0  ;;  %v5926_v46 = vld [vmem:[#allocation8 + $0x650] sm:$0xff] }
 0x89f   :  { %v6204_v45 = vrot.slane %v10880_v52, 4  ;;  %v5927_v38 = vld [vmem:[#allocation8 + $0x658] sm:$0xff]  ;;  %vm11262_vm8 = vmmov %vm11250_vm0  ;;  %v6069_v37 = vld [vmem:[#allocation8 + $0x7c0] sm:$0xff] }
 0x8a0   :  { %5828 = vmatpush1.bf16.msra.mxu1 %v5800_v34  ;;  %v5931_v34 = vld [vmem:[#allocation8 + $0x678] sm:$0xff]  ;;  %vm11263_vm12 = vmmov %vm11250_vm0  ;;  %v6071_v25 = vld [vmem:[#allocation8 + $0x7d0] sm:$0xff] }
 0x8a1   :  { %5829 = vmatprep.subr.bf16.mxu1 %v5805_v20  ;;  %7704 = vmatprep.mubr.msk.bf16.mxu0 %vm11261_vm1, %v6204_v45  ;;  %v5930_v20 = vld [vmem:[#allocation8 + $0x670] sm:$0xff]  ;;  %vm11264_vm13 = vmmov %vm11250_vm0  ;;  %v6185_v52 = vld [vmem:[#allocation8 + $0x880] sm:$0xff] }
 0x8a4   :  { %5830 = vmatpush1.bf16.msra.mxu1 %v5804_v19  ;;  %v5935_v19 = vld [vmem:[#allocation8 + $0x698] sm:$0xff] }
 0x8a5   :  { %5831 = vmatprep.subr.bf16.mxu1 %v5809_v23  ;;  %v5934_v23 = vld [vmem:[#allocation8 + $0x690] sm:$0xff] }
 0x8a8   :  { %5832 = vmatpush1.bf16.msra.mxu1 %v5808_v0  ;;  %v5939_v0 = vld [vmem:[#allocation8 + $0x6b8] sm:$0xff] }
 0x8a9   :  { %5856 = vmatprep.subr.bf16.mxu1 %v5779_v39  ;;  %v5938_v39 = vld [vmem:[#allocation8 + $0x6b0] sm:$0xff] }
 0x8ab   :  { %5848 = vmatmul.mubr.bf16.vlgmr.msra.gmra.mrb[52].mxu1 %v5774_v63 }
 0x8ac   :  { %5857 = vmatpush1.bf16.msra.mxu1 %v5778_v27  ;;  %7698 = vmatprep.mubr.msk.bf16.mxu1 %vm11258_vm9, %v5775_v7  ;;  %v5914_v7 = vld [vmem:[#allocation8 + $0x5f0] sm:$0xff]  ;;  %v6037_v27 = vld [vmem:[#allocation8 + $0x6c0] sm:$0xff] }
 0x8ad   :  { %5858 = vmatprep.subr.bf16.mxu1 %v5783_v56  ;;  %v6035_v56 = vld [vmem:[#allocation7 + $0x38] sm:$0xf] }
 0x8b0   :  { %5859 = vmatpush1.bf16.msra.mxu1 %v5782_v21  ;;  %v6042_v21 = vld [vmem:[#allocation8 + $0x6e8] sm:$0xff] }
 0x8b1   :  { %5860 = vmatprep.subr.bf16.mxu1 %v5787_v53  ;;  %v6041_v53 = vld [vmem:[#allocation8 + $0x6e0] sm:$0xff] }
 0x8b4   :  { %5861 = vmatpush1.bf16.msra.mxu1 %v5786_v62  ;;  %v6046_v62 = vld [vmem:[#allocation8 + $0x708] sm:$0xff] }
 0x8b5   :  { %5862 = vmatprep.subr.bf16.mxu1 %v5791_v47  ;;  %v6045_v47 = vld [vmem:[#allocation8 + $0x700] sm:$0xff] }
 0x8b8   :  { %5863 = vmatpush1.bf16.msra.mxu1 %v5790_v44  ;;  %v6050_v44 = vld [vmem:[#allocation8 + $0x728] sm:$0xff] }
 0x8b9   :  { %5864 = vmatprep.subr.bf16.mxu1 %v5795_v2  ;;  %v6049_v2 = vld [vmem:[#allocation8 + $0x720] sm:$0xff] }
 0x8bc   :  { %5865 = vmatpush1.bf16.msra.mxu1 %v5794_v59  ;;  %v6054_v59 = vld [vmem:[#allocation8 + $0x748] sm:$0xff] }
 0x8bd   :  { %5866 = vmatprep.subr.bf16.mxu1 %v5799_v50  ;;  %v6053_v50 = vld [vmem:[#allocation8 + $0x740] sm:$0xff] }
 0x8c0   :  { %5867 = vmatpush1.bf16.msra.mxu1 %v5798_v55  ;;  %v6058_v55 = vld [vmem:[#allocation8 + $0x768] sm:$0xff] }
 0x8c1   :  { %5868 = vmatprep.subr.bf16.mxu1 %v5803_v13  ;;  %v6057_v13 = vld [vmem:[#allocation8 + $0x760] sm:$0xff] }
 0x8c4   :  { %5869 = vmatpush1.bf16.msra.mxu1 %v5802_v15  ;;  %v6062_v15 = vld [vmem:[#allocation8 + $0x788] sm:$0xff] }
 0x8c5   :  { %5870 = vmatprep.subr.bf16.mxu1 %v5807_v51  ;;  %v6061_v51 = vld [vmem:[#allocation8 + $0x780] sm:$0xff] }
 0x8c8   :  { %5871 = vmatpush1.bf16.msra.mxu1 %v5806_v24  ;;  %v6066_v24 = vld [vmem:[#allocation8 + $0x7a8] sm:$0xff] }
 0x8c9   :  { %5872 = vmatprep.subr.bf16.mxu1 %v5811_v14  ;;  %v6065_v14 = vld [vmem:[#allocation8 + $0x7a0] sm:$0xff] }
 0x8cc   :  { %5873 = vmatpush1.bf16.msra.mxu1 %v5810_v5  ;;  %v6070_v5 = vld [vmem:[#allocation8 + $0x7c8] sm:$0xff] }
 0x8cd   :  { %5948 = vmatprep.subr.bf16.mxu1 %v5905_v26  ;;  %v6040_v26 = vld [vmem:[#allocation8 + $0x6d8] sm:$0xff] }
 0x8cf   :  { %5889 = vmatmul.mubr.bf16.vlgmr.msra.gmra.mrb[56].mxu1 %v5774_v63  ;;  %v6038_v63 = vld [vmem:[#allocation8 + $0x6c8] sm:$0xff] }
 0x8d0   :  { %5949 = vmatpush1.bf16.msra.mxu1 %v5904_v49  ;;  %7699 = vmatprep.mubr.msk.bf16.mxu1 %vm11259_vm11, %v5943_v41  ;;  %v6039_v49 = vld [vmem:[#allocation8 + $0x6d0] sm:$0xff] }
 0x8d1   :  { %5950 = vmatprep.subr.bf16.mxu1 %v5909_v35  ;;  %v6044_v35 = vld [vmem:[#allocation8 + $0x6f8] sm:$0xff] }
 0x8d4   :  { %5951 = vmatpush1.bf16.msra.mxu1 %v5908_v57  ;;  %v6043_v57 = vld [vmem:[#allocation8 + $0x6f0] sm:$0xff] }
 0x8d5   :  { %5952 = vmatprep.subr.bf16.mxu1 %v5913_v36  ;;  %v6048_v36 = vld [vmem:[#allocation8 + $0x718] sm:$0xff] }
 0x8d8   :  { %5953 = vmatpush1.bf16.msra.mxu1 %v5912_v32  ;;  %v6047_v32 = vld [vmem:[#allocation8 + $0x710] sm:$0xff] }
 0x8d9   :  { %5954 = vmatprep.subr.bf16.mxu1 %v5917_v6  ;;  %v6052_v6 = vld [vmem:[#allocation8 + $0x738] sm:$0xff] }
 0x8dc   :  { %5955 = vmatpush1.bf16.msra.mxu1 %v5916_v30  ;;  %v6051_v30 = vld [vmem:[#allocation8 + $0x730] sm:$0xff] }
 0x8dd   :  { %5956 = vmatprep.subr.bf16.mxu1 %v5921_v16  ;;  %v6056_v16 = vld [vmem:[#allocation8 + $0x758] sm:$0xff] }
 0x8e0   :  { %5957 = vmatpush1.bf16.msra.mxu1 %v5920_v60  ;;  %v6055_v60 = vld [vmem:[#allocation8 + $0x750] sm:$0xff] }
 0x8e1   :  { %5958 = vmatprep.subr.bf16.mxu1 %v5925_v17  ;;  %v6060_v17 = vld [vmem:[#allocation8 + $0x778] sm:$0xff] }
 0x8e4   :  { %5959 = vmatpush1.bf16.msra.mxu1 %v5924_v22  ;;  %v6059_v22 = vld [vmem:[#allocation8 + $0x770] sm:$0xff] }
 0x8e5   :  { %5960 = vmatprep.subr.bf16.mxu1 %v5929_v58  ;;  %v6064_v58 = vld [vmem:[#allocation8 + $0x798] sm:$0xff] }
 0x8e8   :  { %5961 = vmatpush1.bf16.msra.mxu1 %v5928_v40  ;;  %v6063_v40 = vld [vmem:[#allocation8 + $0x790] sm:$0xff] }
 0x8e9   :  { %5962 = vmatprep.subr.bf16.mxu1 %v5933_v18  ;;  %v6068_v18 = vld [vmem:[#allocation8 + $0x7b8] sm:$0xff] }
 0x8ec   :  { %5963 = vmatpush1.bf16.msra.mxu1 %v5932_v3  ;;  %v6067_v3 = vld [vmem:[#allocation8 + $0x7b0] sm:$0xff] }
 0x8ed   :  { %5964 = vmatprep.subr.bf16.mxu1 %v5937_v28  ;;  %v6072_v28 = vld [vmem:[#allocation8 + $0x7d8] sm:$0xff] }
 0x8f0   :  { %5965 = vmatpush1.bf16.msra.mxu1 %v5936_v61  ;;  %v6166_v61 = vld [vmem:[#allocation8 + $0x7e8] sm:$0xff] }
 0x8f1   :  { %5989 = vmatprep.subr.bf16.mxu1 %v5907_v33  ;;  %v6165_v33 = vld [vmem:[#allocation8 + $0x7e0] sm:$0xff] }
 0x8f3   :  { %5981 = vmatmul.mubr.bf16.vlgmr.msra.gmra.mrb[52].mxu1 %v5942_v43 }
 0x8f4   :  { %5990 = vmatpush1.bf16.msra.mxu1 %v5906_v42  ;;  %7700 = vmatprep.mubr.msk.bf16.mxu1 %vm11260_vm7, %v5943_v41  ;;  %v6034_v41 = vld [vmem:[#allocation7 + $0x30] sm:$0xf]  ;;  %v6169_v42 = vld [vmem:[#allocation8 + $0x800] sm:$0xff] }
 0x8f5   :  { %5991 = vmatprep.subr.bf16.mxu1 %v5911_v29  ;;  %v6174_v29 = vld [vmem:[#allocation8 + $0x828] sm:$0xff] }
 0x8f8   :  { %5992 = vmatpush1.bf16.msra.mxu1 %v5910_v8  ;;  %v6173_v8 = vld [vmem:[#allocation8 + $0x820] sm:$0xff] }
 0x8f9   :  { %5993 = vmatprep.subr.bf16.mxu1 %v5915_v31  ;;  %v6178_v31 = vld [vmem:[#allocation8 + $0x848] sm:$0xff] }
 0x8fc   :  { %5994 = vmatpush1.bf16.msra.mxu1 %v5914_v7  ;;  %v6177_v7 = vld [vmem:[#allocation8 + $0x840] sm:$0xff] }
 0x8fd   :  { %5995 = vmatprep.subr.bf16.mxu1 %v5919_v54  ;;  %v6182_v54 = vld [vmem:[#allocation8 + $0x868] sm:$0xff] }
 0x900   :  { %5996 = vmatpush1.bf16.msra.mxu1 %v5918_v1  ;;  %v6181_v1 = vld [vmem:[#allocation8 + $0x860] sm:$0xff] }
 0x901   :  { %5997 = vmatprep.subr.bf16.mxu1 %v5923_v4  ;;  %v6186_v4 = vld [vmem:[#allocation8 + $0x888] sm:$0xff] }
 0x904   :  { %5998 = vmatpush1.bf16.msra.mxu1 %v5922_v48  ;;  %v6190_v48 = vld [vmem:[#allocation8 + $0x8a8] sm:$0xff] }
 0x905   :  { %5999 = vmatprep.subr.bf16.mxu1 %v5927_v38  ;;  %v6194_v38 = vld [vmem:[#allocation8 + $0x8c8] sm:$0xff] }
 0x908   :  { %6000 = vmatpush1.bf16.msra.mxu1 %v5926_v46  ;;  %v6193_v46 = vld [vmem:[#allocation8 + $0x8c0] sm:$0xff] }
 0x909   :  { %6001 = vmatprep.subr.bf16.mxu1 %v5931_v34  ;;  %v6198_v34 = vld [vmem:[#allocation8 + $0x8e8] sm:$0xff] }
 0x90c   :  { %6002 = vmatpush1.bf16.msra.mxu1 %v5930_v20  ;;  %v6162_v20 = vld [vmem:[#allocation7 + $0x30] sm:$0xf0] }
 0x90d   :  { %6003 = vmatprep.subr.bf16.mxu1 %v5935_v19  ;;  %v6197_v19 = vld [vmem:[#allocation8 + $0x8e0] sm:$0xff] }
 0x910   :  { %6004 = vmatpush1.bf16.msra.mxu1 %v5934_v23  ;;  %v6203_v23 = vrot.slane %v6162_v20, 4 }
 0x911   :  { %6005 = vmatprep.subr.bf16.mxu1 %v5939_v0  ;;  %v6168_v0 = vld [vmem:[#allocation8 + $0x7f8] sm:$0xff] }
 0x912   :  { %6250 = vmatprep.subr.bf16.mxu0 %v6168_v0 }
 0x914   :  { %6006 = vmatpush1.bf16.msra.mxu1 %v5938_v39  ;;  %v6167_v39 = vld [vmem:[#allocation8 + $0x7f0] sm:$0xff] }
 0x915   :  { %6076 = vmatprep.subr.bf16.mxu1 %v6038_v63  ;;  %v6172_v63 = vld [vmem:[#allocation8 + $0x818] sm:$0xff]  ;;  %6251 = vmatpush1.bf16.msra.mxu0 %v6167_v39 }
 0x916   :  { %6252 = vmatprep.subr.bf16.mxu0 %v6172_v63 }
 0x917   :  { %6022 = vmatmul.mubr.bf16.vlgmr.msra.gmra.mrb[56].mxu1 %v5942_v43  ;;  %v6170_v43 = vld [vmem:[#allocation8 + $0x808] sm:$0xff] }
 0x918   :  { %6077 = vmatpush1.bf16.msra.mxu1 %v6037_v27  ;;  %7701 = vmatprep.mubr.msk.bf16.mxu1 %vm11262_vm8, %v6035_v56  ;;  %v6171_v27 = vld [vmem:[#allocation8 + $0x810] sm:$0xff] }
 0x919   :  { %6078 = vmatprep.subr.bf16.mxu1 %v6042_v21  ;;  %6253 = vmatpush1.bf16.msra.mxu0 %v6171_v27  ;;  %v6175_v21 = vld [vmem:[#allocation8 + $0x830] sm:$0xff] }
 0x91c   :  { %6079 = vmatpush1.bf16.msra.mxu1 %v6041_v53  ;;  %v6180_v53 = vld [vmem:[#allocation8 + $0x858] sm:$0xff] }
 0x91d   :  { %6080 = vmatprep.subr.bf16.mxu1 %v6046_v62  ;;  %v6179_v62 = vld [vmem:[#allocation8 + $0x850] sm:$0xff] }
 0x920   :  { %6081 = vmatpush1.bf16.msra.mxu1 %v6045_v47  ;;  %v6184_v47 = vld [vmem:[#allocation8 + $0x878] sm:$0xff] }
 0x921   :  { %6082 = vmatprep.subr.bf16.mxu1 %v6050_v44  ;;  %v6183_v44 = vld [vmem:[#allocation8 + $0x870] sm:$0xff] }
 0x924   :  { %6083 = vmatpush1.bf16.msra.mxu1 %v6049_v2  ;;  %v6188_v2 = vld [vmem:[#allocation8 + $0x898] sm:$0xff] }
 0x925   :  { %6084 = vmatprep.subr.bf16.mxu1 %v6054_v59  ;;  %v6187_v59 = vld [vmem:[#allocation8 + $0x890] sm:$0xff] }
 0x928   :  { %6085 = vmatpush1.bf16.msra.mxu1 %v6053_v50  ;;  %v6192_v50 = vld [vmem:[#allocation8 + $0x8b8] sm:$0xff] }
 0x929   :  { %6086 = vmatprep.subr.bf16.mxu1 %v6058_v55  ;;  %v6191_v55 = vld [vmem:[#allocation8 + $0x8b0] sm:$0xff] }
 0x92c   :  { %6087 = vmatpush1.bf16.msra.mxu1 %v6057_v13  ;;  %v6196_v13 = vld [vmem:[#allocation8 + $0x8d8] sm:$0xff] }
 0x92d   :  { %6088 = vmatprep.subr.bf16.mxu1 %v6062_v15  ;;  %v6195_v15 = vld [vmem:[#allocation8 + $0x8d0] sm:$0xff] }
 0x930   :  { %6089 = vmatpush1.bf16.msra.mxu1 %v6061_v51  ;;  %v6200_v51 = vld [vmem:[#allocation8 + $0x8f8] sm:$0xff] }
 0x931   :  { %6090 = vmatprep.subr.bf16.mxu1 %v6066_v24  ;;  %v6199_v24 = vld [vmem:[#allocation8 + $0x8f0] sm:$0xff] }
 0x934   :  { %6091 = vmatpush1.bf16.msra.mxu1 %v6065_v14 }
 0x935   :  { %6092 = vmatprep.subr.bf16.mxu1 %v6070_v5 }
 0x938   :  { %6093 = vmatpush1.bf16.msra.mxu1 %v6069_v37 }
 0x939   :  { %6117 = vmatprep.subr.bf16.mxu1 %v6040_v26 }
 0x93b   :  { %6109 = vmatmul.mubr.bf16.vlgmr.msra.gmra.mrb[52].mxu1 %v6034_v41 }
 0x93c   :  { %6118 = vmatpush1.bf16.msra.mxu1 %v6039_v49  ;;  %7702 = vmatprep.mubr.msk.bf16.mxu1 %vm11263_vm12, %v6035_v56  ;;  %v6176_v56 = vld [vmem:[#allocation8 + $0x838] sm:$0xff] }
 0x93d   :  { %6119 = vmatprep.subr.bf16.mxu1 %v6044_v35  ;;  %6254 = vmatprep.subr.bf16.mxu0 %v6176_v56 }
 0x93e   :  { %6255 = vmatpush1.bf16.msra.mxu0 %v6175_v21 }
 0x93f   :  { %6256 = vmatprep.subr.bf16.mxu0 %v6180_v53 }
 0x940   :  { %6120 = vmatpush1.bf16.msra.mxu1 %v6043_v57 }
 0x941   :  { %6121 = vmatprep.subr.bf16.mxu1 %v6048_v36 }
 0x942   :  { %6257 = vmatpush1.bf16.msra.mxu0 %v6179_v62 }
 0x943   :  { %6258 = vmatprep.subr.bf16.mxu0 %v6184_v47 }
 0x944   :  { %6122 = vmatpush1.bf16.msra.mxu1 %v6047_v32 }
 0x945   :  { %6123 = vmatprep.subr.bf16.mxu1 %v6052_v6 }
 0x946   :  { %6259 = vmatpush1.bf16.msra.mxu0 %v6183_v44 }
 0x947   :  { %6260 = vmatprep.subr.bf16.mxu0 %v6188_v2 }
 0x948   :  { %6124 = vmatpush1.bf16.msra.mxu1 %v6051_v30 }
 0x949   :  { %6125 = vmatprep.subr.bf16.mxu1 %v6056_v16 }
 0x94a   :  { %6261 = vmatpush1.bf16.msra.mxu0 %v6187_v59 }
 0x94b   :  { %6262 = vmatprep.subr.bf16.mxu0 %v6192_v50 }
 0x94c   :  { %6126 = vmatpush1.bf16.msra.mxu1 %v6055_v60 }
 0x94d   :  { %6127 = vmatprep.subr.bf16.mxu1 %v6060_v17 }
 0x94e   :  { %6263 = vmatpush1.bf16.msra.mxu0 %v6191_v55 }
 0x94f   :  { %6264 = vmatprep.subr.bf16.mxu0 %v6196_v13 }
 0x950   :  { %6128 = vmatpush1.bf16.msra.mxu1 %v6059_v22 }
 0x951   :  { %6129 = vmatprep.subr.bf16.mxu1 %v6064_v58 }
 0x952   :  { %6265 = vmatpush1.bf16.msra.mxu0 %v6195_v15 }
 0x953   :  { %6266 = vmatprep.subr.bf16.mxu0 %v6200_v51 }
 0x954   :  { %6130 = vmatpush1.bf16.msra.mxu1 %v6063_v40 }
 0x955   :  { %6131 = vmatprep.subr.bf16.mxu1 %v6068_v18 }
 0x956   :  { %6267 = vmatpush1.bf16.msra.mxu0 %v6199_v24 }
 0x958   :  { %6132 = vmatpush1.bf16.msra.mxu1 %v6067_v3 }
 0x959   :  { %6133 = vmatprep.subr.bf16.mxu1 %v6072_v28  ;;  %6283 = vmatmul.mubr.bf16.vlgmr.msra.gmra.mrb[20].mxu0 %v6203_v23 }
 0x95c   :  { %6134 = vmatpush1.bf16.msra.mxu1 %v6071_v25 }
 0x95d   :  { %6209 = vmatprep.subr.bf16.mxu1 %v6166_v61 }
 0x95f   :  { %6150 = vmatmul.mubr.bf16.vlgmr.msra.gmra.mrb[56].mxu1 %v6034_v41 }
 0x960   :  { %6210 = vmatpush1.bf16.msra.mxu1 %v6165_v33  ;;  %7703 = vmatprep.mubr.msk.bf16.mxu1 %vm11264_vm13, %v6204_v45  ;;  %v6189_v45 = vld [vmem:[#allocation8 + $0x8a0] sm:$0xff] }
 0x961   :  { %6211 = vmatprep.subr.bf16.mxu1 %v6170_v43 }
 0x964   :  { %6212 = vmatpush1.bf16.msra.mxu1 %v6169_v42 }
 0x965   :  { %6213 = vmatprep.subr.bf16.mxu1 %v6174_v29 }
 0x968   :  { %6214 = vmatpush1.bf16.msra.mxu1 %v6173_v8 }
 0x969   :  { %6215 = vmatprep.subr.bf16.mxu1 %v6178_v31 }
 0x96c   :  { %6216 = vmatpush1.bf16.msra.mxu1 %v6177_v7 }
 0x96d   :  { %6217 = vmatprep.subr.bf16.mxu1 %v6182_v54 }
 0x970   :  { %6218 = vmatpush1.bf16.msra.mxu1 %v6181_v1 }
 0x971   :  { %6219 = vmatprep.subr.bf16.mxu1 %v6186_v4 }
 0x974   :  { %6220 = vmatpush1.bf16.msra.mxu1 %v6185_v52 }
 0x975   :  { %6221 = vmatprep.subr.bf16.mxu1 %v6190_v48 }
 0x978   :  { %6222 = vmatpush1.bf16.msra.mxu1 %v6189_v45 }
 0x979   :  { %6223 = vmatprep.subr.bf16.mxu1 %v6194_v38 }
 0x97c   :  { %6224 = vmatpush1.bf16.msra.mxu1 %v6193_v46 }
 0x97d   :  { %6225 = vmatprep.subr.bf16.mxu1 %v6198_v34 }
 0x980   :  { %6226 = vmatpush1.bf16.msra.mxu1 %v6197_v19 }
 0x983   :  { %6242 = vmatmul.mubr.bf16.vlgmr.msra.gmra.mrb[52].mxu1 %v6203_v23 }
 0xa32   :  { %v10891_v14 = vpop.f32.mrb[56].mxu1 }
 0xa33   :  { %v10893_v5 = vpop.f32.mrb[57].mxu1 }
 0xa34   :  { %v6155_v37 = vpop.f32.mrb[58].mxu1 }
 0xa35   :  { %v6156_v26 = vpop.f32.mrb[59].mxu1 }
 0xa56   :  { %v10895_v41 = vpop.f32.mrb[52].mxu1 }
 0xa57   :  { %v10897_v49 = vpop.f32.mrb[53].mxu1 }
 0xa58   :  { %v6247_v35 = vpop.f32.mrb[54].mxu1 }
 0xa59   :  { %v6248_v57 = vpop.f32.mrb[55].mxu1 }
 0xa5a   :  { %8338 = dma.done.wait [#allocation9 + $0x2], 18432 }
 0xa5b   :  { %8339 = vsyncadd [#allocation9 + $0x2], 4294948864  ;;  %v6300_v36 = vld [vmem:[#allocation8 + $0x908] sm:$0xff]  ;;  %v6299_v32 = vld [vmem:[#allocation8 + $0x900] sm:$0xff] }
 0xa5c   :  { %v6304_v6 = vld [vmem:[#allocation8 + $0x928] sm:$0xff]  ;;  %6338 = vmatprep.subr.bf16.mxu0 %v6300_v36  ;;  %v6303_v30 = vld [vmem:[#allocation8 + $0x920] sm:$0xff]  ;;  %v6302_v8 = vld [vmem:[#allocation8 + $0x918] sm:$0xff] }
 0xa5d   :  { %6339 = vmatpush1.bf16.msra.mxu0 %v6299_v32  ;;  %v6308_v16 = vld [vmem:[#allocation8 + $0x948] sm:$0xff]  ;;  %v6307_v17 = vld [vmem:[#allocation8 + $0x940] sm:$0xff]  ;;  %v6301_v7 = vld [vmem:[#allocation8 + $0x910] sm:$0xff] }
 0xa5e   :  { %6340 = vmatprep.subr.bf16.mxu0 %v6304_v6  ;;  %v6298_v60 = vld [vmem:[#allocation7 + $0x48] sm:$0xf]  ;;  %v6311_v58 = vld [vmem:[#allocation8 + $0x960] sm:$0xff]  ;;  %v6306_v54 = vld [vmem:[#allocation8 + $0x938] sm:$0xff] }
 0xa5f   :  { %7705 = vmatprep.mubr.msk.bf16.mxu0 %vm11250_vm0, %v6298_v60  ;;  %v6312_v22 = vld [vmem:[#allocation8 + $0x968] sm:$0xff]  ;;  %v6315_v18 = vld [vmem:[#allocation8 + $0x980] sm:$0xff]  ;;  %vm11265_vm5 = vmmov %vm11250_vm0 }
 0xa60   :  { %v6316_v40 = vld [vmem:[#allocation8 + $0x988] sm:$0xff]  ;;  %v6319_v28 = vld [vmem:[#allocation8 + $0x9a0] sm:$0xff]  ;;  %v6305_v1 = vld [vmem:[#allocation8 + $0x930] sm:$0xff] }
 0xa61   :  { %6341 = vmatpush1.bf16.msra.mxu0 %v6303_v30  ;;  %v6320_v3 = vld [vmem:[#allocation8 + $0x9a8] sm:$0xff]  ;;  %v6323_v61 = vld [vmem:[#allocation8 + $0x9c0] sm:$0xff]  ;;  %v6310_v4 = vld [vmem:[#allocation8 + $0x958] sm:$0xff] }
 0xa62   :  { %6342 = vmatprep.subr.bf16.mxu0 %v6308_v16  ;;  %v6324_v25 = vld [vmem:[#allocation8 + $0x9c8] sm:$0xff]  ;;  %v6327_v43 = vld [vmem:[#allocation8 + $0x9e0] sm:$0xff]  ;;  %v6309_v52 = vld [vmem:[#allocation8 + $0x950] sm:$0xff] }
 0xa63   :  { %v6328_v33 = vld [vmem:[#allocation8 + $0x9e8] sm:$0xff]  ;;  %v6331_v29 = vld [vmem:[#allocation8 + $0xa00] sm:$0xff]  ;;  %v6314_v48 = vld [vmem:[#allocation8 + $0x978] sm:$0xff] }
 0xa64   :  { %v6332_v42 = vld [vmem:[#allocation8 + $0xa08] sm:$0xff]  ;;  %v6297_v31 = vld [vmem:[#allocation7 + $0x40] sm:$0xf]  ;;  %v6313_v45 = vld [vmem:[#allocation8 + $0x970] sm:$0xff] }
 0xa65   :  { %6343 = vmatpush1.bf16.msra.mxu0 %v6307_v17  ;;  %v6318_v38 = vld [vmem:[#allocation8 + $0x998] sm:$0xff]  ;;  %v6317_v46 = vld [vmem:[#allocation8 + $0x990] sm:$0xff]  ;;  %v6425_v56 = vld [vmem:[#allocation7 + $0x48] sm:$0xf0] }
 0xa66   :  { %6344 = vmatprep.subr.bf16.mxu0 %v6312_v22  ;;  %v6322_v34 = vld [vmem:[#allocation8 + $0x9b8] sm:$0xff]  ;;  %v6321_v20 = vld [vmem:[#allocation8 + $0x9b0] sm:$0xff]  ;;  %v6428_v21 = vld [vmem:[#allocation8 + $0xa28] sm:$0xff]  ;;  %v6466_v53 = vrot.slane %v6425_v56, 4 }
 0xa67   :  { %v6326_v19 = vld [vmem:[#allocation8 + $0x9d8] sm:$0xff]  ;;  %v6325_v23 = vld [vmem:[#allocation8 + $0x9d0] sm:$0xff]  ;;  %v6427_v62 = vld [vmem:[#allocation8 + $0xa20] sm:$0xff] }
 0xa68   :  { %v6330_v0 = vld [vmem:[#allocation8 + $0x9f8] sm:$0xff]  ;;  %v6329_v39 = vld [vmem:[#allocation8 + $0x9f0] sm:$0xff]  ;;  %v6432_v47 = vld [vmem:[#allocation8 + $0xa48] sm:$0xff] }
 0xa69   :  { %6345 = vmatpush1.bf16.msra.mxu0 %v6311_v58  ;;  %v6334_v63 = vld [vmem:[#allocation8 + $0xa18] sm:$0xff]  ;;  %v6333_v27 = vld [vmem:[#allocation8 + $0xa10] sm:$0xff]  ;;  %vm11266_vm15 = vmmov %vm11250_vm0 }
 0xa6a   :  { %6346 = vmatprep.subr.bf16.mxu0 %v6316_v40  ;;  %v6431_v44 = vld [vmem:[#allocation8 + $0xa40] sm:$0xff]  ;;  %v6436_v2 = vld [vmem:[#allocation8 + $0xa68] sm:$0xff]  ;;  %v6430_v30 = vld [vmem:[#allocation8 + $0xa38] sm:$0xff] }
 0xa6b   :  { %v6435_v59 = vld [vmem:[#allocation8 + $0xa60] sm:$0xff]  ;;  %v6440_v50 = vld [vmem:[#allocation8 + $0xa88] sm:$0xff]  ;;  %v6434_v17 = vld [vmem:[#allocation8 + $0xa58] sm:$0xff] }
 0xa6c   :  { %v6439_v55 = vld [vmem:[#allocation8 + $0xa80] sm:$0xff]  ;;  %v6444_v13 = vld [vmem:[#allocation8 + $0xaa8] sm:$0xff]  ;;  %vm11267_vm14 = vmmov %vm11250_vm0 }
 0xa6d   :  { %6347 = vmatpush1.bf16.msra.mxu0 %v6315_v18  ;;  %v6443_v15 = vld [vmem:[#allocation8 + $0xaa0] sm:$0xff]  ;;  %v6448_v51 = vld [vmem:[#allocation8 + $0xac8] sm:$0xff]  ;;  %v6433_v22 = vld [vmem:[#allocation8 + $0xa50] sm:$0xff] }
 0xa6e   :  { %6348 = vmatprep.subr.bf16.mxu0 %v6320_v3  ;;  %v6447_v24 = vld [vmem:[#allocation8 + $0xac0] sm:$0xff]  ;;  %v6452_v37 = vld [vmem:[#allocation8 + $0xae8] sm:$0xff]  ;;  %v6438_v58 = vld [vmem:[#allocation8 + $0xa78] sm:$0xff] }
 0xa6f   :  { %v6451_v26 = vld [vmem:[#allocation8 + $0xae0] sm:$0xff]  ;;  %v6456_v35 = vld [vmem:[#allocation8 + $0xb08] sm:$0xff]  ;;  %v6437_v40 = vld [vmem:[#allocation8 + $0xa70] sm:$0xff] }
 0xa70   :  { %v6455_v57 = vld [vmem:[#allocation8 + $0xb00] sm:$0xff]  ;;  %v6460_v36 = vld [vmem:[#allocation8 + $0xb28] sm:$0xff]  ;;  %v6442_v18 = vld [vmem:[#allocation8 + $0xa98] sm:$0xff] }
 0xa71   :  { %6349 = vmatpush1.bf16.msra.mxu0 %v6319_v28  ;;  %v6424_v32 = vld [vmem:[#allocation7 + $0x40] sm:$0xf0]  ;;  %v6441_v3 = vld [vmem:[#allocation8 + $0xa90] sm:$0xff]  ;;  %v6446_v28 = vld [vmem:[#allocation8 + $0xab8] sm:$0xff] }
 0xa72   :  { %6350 = vmatprep.subr.bf16.mxu0 %v6324_v25  ;;  %v6459_v6 = vld [vmem:[#allocation8 + $0xb20] sm:$0xff]  ;;  %v6465_v16 = vrot.slane %v6424_v32, 4  ;;  %v6445_v25 = vld [vmem:[#allocation8 + $0xab0] sm:$0xff]  ;;  %vm11268_vm6 = vmmov %vm11250_vm0 }
 0xa73   :  { %v6588_v56 = vld [vmem:[#allocation8 + $0xc20] sm:$0xff]  ;;  %vm11269_vm4 = vmmov %vm11250_vm0  ;;  %v6590_v32 = vld [vmem:[#allocation8 + $0xc30] sm:$0xff] }
 0xa74   :  { %vm11270_vm2 = vmmov %vm11250_vm0 }
 0xa75   :  { %6351 = vmatpush1.bf16.msra.mxu0 %v6323_v61  ;;  %v6450_v61 = vld [vmem:[#allocation8 + $0xad8] sm:$0xff]  ;;  %vm11271_vm10 = vmmov %vm11250_vm0 }
 0xa76   :  { %6352 = vmatprep.subr.bf16.mxu0 %v6328_v33  ;;  %v6449_v33 = vld [vmem:[#allocation8 + $0xad0] sm:$0xff] }
 0xa79   :  { %6353 = vmatpush1.bf16.msra.mxu0 %v6327_v43  ;;  %v6454_v43 = vld [vmem:[#allocation8 + $0xaf8] sm:$0xff] }
 0xa7a   :  { %6354 = vmatprep.subr.bf16.mxu0 %v6332_v42  ;;  %v6453_v42 = vld [vmem:[#allocation8 + $0xaf0] sm:$0xff] }
 0xa7d   :  { %6355 = vmatpush1.bf16.msra.mxu0 %v6331_v29  ;;  %v6458_v29 = vld [vmem:[#allocation8 + $0xb18] sm:$0xff] }
 0xa7e   :  { %6379 = vmatprep.subr.bf16.mxu0 %v6302_v8  ;;  %v6457_v8 = vld [vmem:[#allocation8 + $0xb10] sm:$0xff] }
 0xa80   :  { %6371 = vmatmul.mubr.bf16.vlgmr.msra.gmra.mrb[24].mxu0 %v6297_v31 }
 0xa81   :  { %6380 = vmatpush1.bf16.msra.mxu0 %v6301_v7  ;;  %7706 = vmatprep.mubr.msk.bf16.mxu0 %vm11265_vm5, %v6298_v60  ;;  %v6429_v60 = vld [vmem:[#allocation8 + $0xa30] sm:$0xff] }
 0xa82   :  { %6381 = vmatprep.subr.bf16.mxu0 %v6306_v54  ;;  %v6461_v7 = vld [vmem:[#allocation8 + $0xb30] sm:$0xff]  ;;  %v6561_v54 = vld [vmem:[#allocation8 + $0xb48] sm:$0xff] }
 0xa85   :  { %6382 = vmatpush1.bf16.msra.mxu0 %v6305_v1  ;;  %v6560_v1 = vld [vmem:[#allocation8 + $0xb40] sm:$0xff] }
 0xa86   :  { %6383 = vmatprep.subr.bf16.mxu0 %v6310_v4  ;;  %v6558_v4 = vld [vmem:[#allocation7 + $0x58] sm:$0xf] }
 0xa89   :  { %6384 = vmatpush1.bf16.msra.mxu0 %v6309_v52  ;;  %v6565_v52 = vld [vmem:[#allocation8 + $0xb68] sm:$0xff] }
 0xa8a   :  { %6385 = vmatprep.subr.bf16.mxu0 %v6314_v48  ;;  %v6564_v48 = vld [vmem:[#allocation8 + $0xb60] sm:$0xff] }
 0xa8d   :  { %6386 = vmatpush1.bf16.msra.mxu0 %v6313_v45  ;;  %v6569_v45 = vld [vmem:[#allocation8 + $0xb88] sm:$0xff] }
 0xa8e   :  { %6387 = vmatprep.subr.bf16.mxu0 %v6318_v38  ;;  %v6568_v38 = vld [vmem:[#allocation8 + $0xb80] sm:$0xff] }
 0xa91   :  { %6388 = vmatpush1.bf16.msra.mxu0 %v6317_v46  ;;  %v6573_v46 = vld [vmem:[#allocation8 + $0xba8] sm:$0xff] }
 0xa92   :  { %6389 = vmatprep.subr.bf16.mxu0 %v6322_v34  ;;  %v6572_v34 = vld [vmem:[#allocation8 + $0xba0] sm:$0xff] }
 0xa95   :  { %6390 = vmatpush1.bf16.msra.mxu0 %v6321_v20  ;;  %v6577_v20 = vld [vmem:[#allocation8 + $0xbc8] sm:$0xff] }
 0xa96   :  { %6391 = vmatprep.subr.bf16.mxu0 %v6326_v19  ;;  %v6576_v19 = vld [vmem:[#allocation8 + $0xbc0] sm:$0xff] }
 0xa99   :  { %6392 = vmatpush1.bf16.msra.mxu0 %v6325_v23  ;;  %v6581_v23 = vld [vmem:[#allocation8 + $0xbe8] sm:$0xff] }
 0xa9a   :  { %6393 = vmatprep.subr.bf16.mxu0 %v6330_v0  ;;  %v6580_v0 = vld [vmem:[#allocation8 + $0xbe0] sm:$0xff] }
 0xa9d   :  { %6394 = vmatpush1.bf16.msra.mxu0 %v6329_v39  ;;  %v6585_v39 = vld [vmem:[#allocation8 + $0xc08] sm:$0xff] }
 0xa9e   :  { %6395 = vmatprep.subr.bf16.mxu0 %v6334_v63  ;;  %v6584_v63 = vld [vmem:[#allocation8 + $0xc00] sm:$0xff] }
 0xaa1   :  { %6396 = vmatpush1.bf16.msra.mxu0 %v6333_v27  ;;  %v6589_v27 = vld [vmem:[#allocation8 + $0xc28] sm:$0xff] }
 0xaa2   :  { %6471 = vmatprep.subr.bf16.mxu0 %v6428_v21  ;;  %v6593_v21 = vld [vmem:[#allocation8 + $0xc48] sm:$0xff] }
 0xaa4   :  { %6412 = vmatmul.mubr.bf16.vlgmr.msra.gmra.mrb[20].mxu0 %v6297_v31  ;;  %v6462_v31 = vld [vmem:[#allocation8 + $0xb38] sm:$0xff] }
 0xaa5   :  { %6472 = vmatpush1.bf16.msra.mxu0 %v6427_v62  ;;  %7707 = vmatprep.mubr.msk.bf16.mxu0 %vm11266_vm15, %v6466_v53  ;;  %v6563_v62 = vld [vmem:[#allocation8 + $0xb58] sm:$0xff] }
 0xaa6   :  { %6473 = vmatprep.subr.bf16.mxu0 %v6432_v47  ;;  %v6557_v47 = vld [vmem:[#allocation7 + $0x50] sm:$0xf] }
 0xaa9   :  { %6474 = vmatpush1.bf16.msra.mxu0 %v6431_v44  ;;  %v6562_v44 = vld [vmem:[#allocation8 + $0xb50] sm:$0xff] }
 0xaaa   :  { %6475 = vmatprep.subr.bf16.mxu0 %v6436_v2  ;;  %v6567_v2 = vld [vmem:[#allocation8 + $0xb78] sm:$0xff] }
 0xaad   :  { %6476 = vmatpush1.bf16.msra.mxu0 %v6435_v59  ;;  %v6566_v59 = vld [vmem:[#allocation8 + $0xb70] sm:$0xff] }
 0xaae   :  { %6477 = vmatprep.subr.bf16.mxu0 %v6440_v50  ;;  %v6571_v50 = vld [vmem:[#allocation8 + $0xb98] sm:$0xff] }
 0xab1   :  { %6478 = vmatpush1.bf16.msra.mxu0 %v6439_v55  ;;  %v6570_v55 = vld [vmem:[#allocation8 + $0xb90] sm:$0xff] }
 0xab2   :  { %6479 = vmatprep.subr.bf16.mxu0 %v6444_v13  ;;  %v6575_v13 = vld [vmem:[#allocation8 + $0xbb8] sm:$0xff] }
 0xab5   :  { %6480 = vmatpush1.bf16.msra.mxu0 %v6443_v15  ;;  %v6574_v15 = vld [vmem:[#allocation8 + $0xbb0] sm:$0xff] }
 0xab6   :  { %6481 = vmatprep.subr.bf16.mxu0 %v6448_v51  ;;  %v6579_v51 = vld [vmem:[#allocation8 + $0xbd8] sm:$0xff] }
 0xab9   :  { %6482 = vmatpush1.bf16.msra.mxu0 %v6447_v24  ;;  %v6578_v24 = vld [vmem:[#allocation8 + $0xbd0] sm:$0xff] }
 0xaba   :  { %6483 = vmatprep.subr.bf16.mxu0 %v6452_v37  ;;  %v6583_v37 = vld [vmem:[#allocation8 + $0xbf8] sm:$0xff] }
 0xabd   :  { %6484 = vmatpush1.bf16.msra.mxu0 %v6451_v26  ;;  %v6582_v26 = vld [vmem:[#allocation8 + $0xbf0] sm:$0xff] }
 0xabe   :  { %6485 = vmatprep.subr.bf16.mxu0 %v6456_v35  ;;  %v6587_v35 = vld [vmem:[#allocation8 + $0xc18] sm:$0xff] }
 0xac1   :  { %6486 = vmatpush1.bf16.msra.mxu0 %v6455_v57  ;;  %v6586_v57 = vld [vmem:[#allocation8 + $0xc10] sm:$0xff] }
 0xac2   :  { %6487 = vmatprep.subr.bf16.mxu0 %v6460_v36  ;;  %v6591_v36 = vld [vmem:[#allocation8 + $0xc38] sm:$0xff] }
 0xac5   :  { %6488 = vmatpush1.bf16.msra.mxu0 %v6459_v6  ;;  %v6595_v6 = vld [vmem:[#allocation8 + $0xc58] sm:$0xff] }
 0xac6   :  { %6512 = vmatprep.subr.bf16.mxu0 %v6430_v30  ;;  %v6594_v30 = vld [vmem:[#allocation8 + $0xc50] sm:$0xff] }
 0xac8   :  { %6504 = vmatmul.mubr.bf16.vlgmr.msra.gmra.mrb[24].mxu0 %v6465_v16 }
 0xac9   :  { %6513 = vmatpush1.bf16.msra.mxu0 %v6429_v60  ;;  %7708 = vmatprep.mubr.msk.bf16.mxu0 %vm11267_vm14, %v6466_v53  ;;  %v6592_v53 = vld [vmem:[#allocation8 + $0xc40] sm:$0xff]  ;;  %v6689_v60 = vld [vmem:[#allocation8 + $0xc68] sm:$0xff] }
 0xaca   :  { %6514 = vmatprep.subr.bf16.mxu0 %v6434_v17 }
 0xacd   :  { %6515 = vmatpush1.bf16.msra.mxu0 %v6433_v22  ;;  %v6688_v22 = vld [vmem:[#allocation8 + $0xc60] sm:$0xff] }
 0xace   :  { %6516 = vmatprep.subr.bf16.mxu0 %v6438_v58  ;;  %v6693_v58 = vld [vmem:[#allocation8 + $0xc88] sm:$0xff] }
 0xad1   :  { %6517 = vmatpush1.bf16.msra.mxu0 %v6437_v40  ;;  %v6692_v40 = vld [vmem:[#allocation8 + $0xc80] sm:$0xff] }
 0xad2   :  { %6518 = vmatprep.subr.bf16.mxu0 %v6442_v18  ;;  %v6697_v18 = vld [vmem:[#allocation8 + $0xca8] sm:$0xff] }
 0xad5   :  { %6519 = vmatpush1.bf16.msra.mxu0 %v6441_v3  ;;  %v6696_v3 = vld [vmem:[#allocation8 + $0xca0] sm:$0xff] }
 0xad6   :  { %6520 = vmatprep.subr.bf16.mxu0 %v6446_v28  ;;  %v6701_v28 = vld [vmem:[#allocation8 + $0xcc8] sm:$0xff] }
 0xad9   :  { %6521 = vmatpush1.bf16.msra.mxu0 %v6445_v25  ;;  %v6700_v25 = vld [vmem:[#allocation8 + $0xcc0] sm:$0xff] }
 0xada   :  { %6522 = vmatprep.subr.bf16.mxu0 %v6450_v61  ;;  %v6705_v61 = vld [vmem:[#allocation8 + $0xce8] sm:$0xff] }
 0xadd   :  { %6523 = vmatpush1.bf16.msra.mxu0 %v6449_v33  ;;  %v6704_v33 = vld [vmem:[#allocation8 + $0xce0] sm:$0xff] }
 0xade   :  { %6524 = vmatprep.subr.bf16.mxu0 %v6454_v43  ;;  %v6709_v43 = vld [vmem:[#allocation8 + $0xd08] sm:$0xff] }
 0xae1   :  { %6525 = vmatpush1.bf16.msra.mxu0 %v6453_v42  ;;  %v6708_v42 = vld [vmem:[#allocation8 + $0xd00] sm:$0xff] }
 0xae2   :  { %6526 = vmatprep.subr.bf16.mxu0 %v6458_v29  ;;  %v6713_v29 = vld [vmem:[#allocation8 + $0xd28] sm:$0xff] }
 0xae5   :  { %6527 = vmatpush1.bf16.msra.mxu0 %v6457_v8  ;;  %v6712_v8 = vld [vmem:[#allocation8 + $0xd20] sm:$0xff] }
 0xae6   :  { %6528 = vmatprep.subr.bf16.mxu0 %v6462_v31  ;;  %v6717_v31 = vld [vmem:[#allocation8 + $0xd48] sm:$0xff] }
 0xae9   :  { %6529 = vmatpush1.bf16.msra.mxu0 %v6461_v7  ;;  %v6716_v7 = vld [vmem:[#allocation8 + $0xd40] sm:$0xff] }
 0xaea   :  { %6599 = vmatprep.subr.bf16.mxu0 %v6561_v54  ;;  %v6721_v54 = vld [vmem:[#allocation8 + $0xd68] sm:$0xff] }
 0xaec   :  { %6545 = vmatmul.mubr.bf16.vlgmr.msra.gmra.mrb[20].mxu0 %v6465_v16  ;;  %v6686_v16 = vld [vmem:[#allocation7 + $0x58] sm:$0xf0] }
 0xaed   :  { %6600 = vmatpush1.bf16.msra.mxu0 %v6560_v1  ;;  %7709 = vmatprep.mubr.msk.bf16.mxu0 %vm11268_vm6, %v6558_v4  ;;  %v6727_v17 = vrot.slane %v6686_v16, 4  ;;  %v6685_v1 = vld [vmem:[#allocation7 + $0x50] sm:$0xf0] }
 0xaee   :  { %6601 = vmatprep.subr.bf16.mxu0 %v6565_v52  ;;  %v6691_v52 = vld [vmem:[#allocation8 + $0xc78] sm:$0xff] }
 0xaf1   :  { %6602 = vmatpush1.bf16.msra.mxu0 %v6564_v48  ;;  %v6726_v48 = vrot.slane %v6685_v1, 4 }
 0xaf2   :  { %6603 = vmatprep.subr.bf16.mxu0 %v6569_v45  ;;  %v6690_v45 = vld [vmem:[#allocation8 + $0xc70] sm:$0xff] }
 0xaf5   :  { %6604 = vmatpush1.bf16.msra.mxu0 %v6568_v38  ;;  %v6695_v38 = vld [vmem:[#allocation8 + $0xc98] sm:$0xff] }
 0xaf6   :  { %6605 = vmatprep.subr.bf16.mxu0 %v6573_v46  ;;  %v6694_v46 = vld [vmem:[#allocation8 + $0xc90] sm:$0xff] }
 0xaf9   :  { %6606 = vmatpush1.bf16.msra.mxu0 %v6572_v34  ;;  %v6699_v34 = vld [vmem:[#allocation8 + $0xcb8] sm:$0xff] }
 0xafa   :  { %6607 = vmatprep.subr.bf16.mxu0 %v6577_v20  ;;  %v6698_v20 = vld [vmem:[#allocation8 + $0xcb0] sm:$0xff] }
 0xafd   :  { %6608 = vmatpush1.bf16.msra.mxu0 %v6576_v19  ;;  %v6703_v19 = vld [vmem:[#allocation8 + $0xcd8] sm:$0xff] }
 0xafe   :  { %6609 = vmatprep.subr.bf16.mxu0 %v6581_v23  ;;  %v6702_v23 = vld [vmem:[#allocation8 + $0xcd0] sm:$0xff] }
 0xb01   :  { %6610 = vmatpush1.bf16.msra.mxu0 %v6580_v0  ;;  %v6707_v0 = vld [vmem:[#allocation8 + $0xcf8] sm:$0xff] }
 0xb02   :  { %6611 = vmatprep.subr.bf16.mxu0 %v6585_v39  ;;  %v6706_v39 = vld [vmem:[#allocation8 + $0xcf0] sm:$0xff] }
 0xb05   :  { %6612 = vmatpush1.bf16.msra.mxu0 %v6584_v63  ;;  %v6711_v63 = vld [vmem:[#allocation8 + $0xd18] sm:$0xff] }
 0xb06   :  { %6613 = vmatprep.subr.bf16.mxu0 %v6589_v27  ;;  %v6710_v27 = vld [vmem:[#allocation8 + $0xd10] sm:$0xff] }
 0xb09   :  { %6614 = vmatpush1.bf16.msra.mxu0 %v6588_v56  ;;  %v6715_v56 = vld [vmem:[#allocation8 + $0xd38] sm:$0xff] }
 0xb0a   :  { %6615 = vmatprep.subr.bf16.mxu0 %v6593_v21  ;;  %v6714_v21 = vld [vmem:[#allocation8 + $0xd30] sm:$0xff] }
 0xb0d   :  { %6616 = vmatpush1.bf16.msra.mxu0 %v6592_v53  ;;  %v6719_v53 = vld [vmem:[#allocation8 + $0xd58] sm:$0xff] }
 0xb0e   :  { %6640 = vmatprep.subr.bf16.mxu0 %v6563_v62  ;;  %v6718_v62 = vld [vmem:[#allocation8 + $0xd50] sm:$0xff] }
 0xb10   :  { %6632 = vmatmul.mubr.bf16.vlgmr.msra.gmra.mrb[24].mxu0 %v6557_v47 }
 0xb11   :  { %6641 = vmatpush1.bf16.msra.mxu0 %v6562_v44  ;;  %7710 = vmatprep.mubr.msk.bf16.mxu0 %vm11269_vm4, %v6558_v4  ;;  %v6720_v4 = vld [vmem:[#allocation8 + $0xd60] sm:$0xff]  ;;  %v6722_v44 = vld [vmem:[#allocation8 + $0xd70] sm:$0xff] }
 0xb12   :  { %6642 = vmatprep.subr.bf16.mxu0 %v6567_v2 }
 0xb15   :  { %6643 = vmatpush1.bf16.msra.mxu0 %v6566_v59 }
 0xb16   :  { %6644 = vmatprep.subr.bf16.mxu0 %v6571_v50 }
 0xb19   :  { %6645 = vmatpush1.bf16.msra.mxu0 %v6570_v55 }
 0xb1a   :  { %6646 = vmatprep.subr.bf16.mxu0 %v6575_v13 }
 0xb1d   :  { %6647 = vmatpush1.bf16.msra.mxu0 %v6574_v15 }
 0xb1e   :  { %6648 = vmatprep.subr.bf16.mxu0 %v6579_v51 }
 0xb21   :  { %6649 = vmatpush1.bf16.msra.mxu0 %v6578_v24 }
 0xb22   :  { %6650 = vmatprep.subr.bf16.mxu0 %v6583_v37 }
 0xb25   :  { %6651 = vmatpush1.bf16.msra.mxu0 %v6582_v26 }
 0xb26   :  { %6652 = vmatprep.subr.bf16.mxu0 %v6587_v35 }
 0xb29   :  { %6653 = vmatpush1.bf16.msra.mxu0 %v6586_v57 }
 0xb2a   :  { %6654 = vmatprep.subr.bf16.mxu0 %v6591_v36 }
 0xb2d   :  { %6655 = vmatpush1.bf16.msra.mxu0 %v6590_v32 }
 0xb2e   :  { %6656 = vmatprep.subr.bf16.mxu0 %v6595_v6 }
 0xb31   :  { %6657 = vmatpush1.bf16.msra.mxu0 %v6594_v30 }
 0xb32   :  { %6732 = vmatprep.subr.bf16.mxu0 %v6689_v60 }
 0xb34   :  { %6673 = vmatmul.mubr.bf16.vlgmr.msra.gmra.mrb[20].mxu0 %v6557_v47  ;;  %v6723_v47 = vld [vmem:[#allocation8 + $0xd78] sm:$0xff] }
 0xb35   :  { %6733 = vmatpush1.bf16.msra.mxu0 %v6688_v22  ;;  %7711 = vmatprep.mubr.msk.bf16.mxu0 %vm11270_vm2, %v6727_v17 }
 0xb36   :  { %6734 = vmatprep.subr.bf16.mxu0 %v6693_v58 }
 0xb39   :  { %6735 = vmatpush1.bf16.msra.mxu0 %v6692_v40 }
 0xb3a   :  { %6736 = vmatprep.subr.bf16.mxu0 %v6697_v18 }
 0xb3d   :  { %6737 = vmatpush1.bf16.msra.mxu0 %v6696_v3 }
 0xb3e   :  { %6738 = vmatprep.subr.bf16.mxu0 %v6701_v28 }
 0xb41   :  { %6739 = vmatpush1.bf16.msra.mxu0 %v6700_v25 }
 0xb42   :  { %6740 = vmatprep.subr.bf16.mxu0 %v6705_v61 }
 0xb45   :  { %6741 = vmatpush1.bf16.msra.mxu0 %v6704_v33 }
 0xb46   :  { %6742 = vmatprep.subr.bf16.mxu0 %v6709_v43 }
 0xb49   :  { %6743 = vmatpush1.bf16.msra.mxu0 %v6708_v42 }
 0xb4a   :  { %6744 = vmatprep.subr.bf16.mxu0 %v6713_v29 }
 0xb4d   :  { %6745 = vmatpush1.bf16.msra.mxu0 %v6712_v8 }
 0xb4e   :  { %6746 = vmatprep.subr.bf16.mxu0 %v6717_v31 }
 0xb51   :  { %6747 = vmatpush1.bf16.msra.mxu0 %v6716_v7 }
 0xb52   :  { %6748 = vmatprep.subr.bf16.mxu0 %v6721_v54 }
 0xb55   :  { %6749 = vmatpush1.bf16.msra.mxu0 %v6720_v4 }
 0xb56   :  { %6773 = vmatprep.subr.bf16.mxu0 %v6691_v52 }
 0xb58   :  { %6765 = vmatmul.mubr.bf16.vlgmr.msra.gmra.mrb[24].mxu0 %v6726_v48 }
 0xb59   :  { %6774 = vmatpush1.bf16.msra.mxu0 %v6690_v45  ;;  %7712 = vmatprep.mubr.msk.bf16.mxu0 %vm11271_vm10, %v6727_v17 }
 0xb5a   :  { %6775 = vmatprep.subr.bf16.mxu0 %v6695_v38 }
 0xb5d   :  { %6776 = vmatpush1.bf16.msra.mxu0 %v6694_v46 }
 0xb5e   :  { %6777 = vmatprep.subr.bf16.mxu0 %v6699_v34 }
 0xb61   :  { %6778 = vmatpush1.bf16.msra.mxu0 %v6698_v20 }
 0xb62   :  { %6779 = vmatprep.subr.bf16.mxu0 %v6703_v19 }
 0xb65   :  { %6780 = vmatpush1.bf16.msra.mxu0 %v6702_v23 }
 0xb66   :  { %6781 = vmatprep.subr.bf16.mxu0 %v6707_v0 }
 0xb69   :  { %6782 = vmatpush1.bf16.msra.mxu0 %v6706_v39 }
 0xb6a   :  { %6783 = vmatprep.subr.bf16.mxu0 %v6711_v63 }
 0xb6d   :  { %6784 = vmatpush1.bf16.msra.mxu0 %v6710_v27 }
 0xb6e   :  { %6785 = vmatprep.subr.bf16.mxu0 %v6715_v56 }
 0xb71   :  { %6786 = vmatpush1.bf16.msra.mxu0 %v6714_v21 }
 0xb72   :  { %6787 = vmatprep.subr.bf16.mxu0 %v6719_v53 }
 0xb75   :  { %6788 = vmatpush1.bf16.msra.mxu0 %v6718_v62 }
 0xb76   :  { %6789 = vmatprep.subr.bf16.mxu0 %v6723_v47 }
 0xb79   :  { %6790 = vmatpush1.bf16.msra.mxu0 %v6722_v44 }
 0xb7c   :  { %6806 = vmatmul.mubr.bf16.vlgmr.msra.gmra.mrb[20].mxu0 %v6726_v48 }
 0xb7d   :  { %8340 = dma.done.wait [#allocation9 + $0x3], 18432 }
 0xb7e   :  { %8341 = vsyncadd [#allocation9 + $0x3], 4294948864  ;;  %v6823_v2 = vld [vmem:[#allocation8 + $0xd88] sm:$0xff]  ;;  %v6822_v59 = vld [vmem:[#allocation8 + $0xd80] sm:$0xff] }
 0xb7f   :  { %v6827_v50 = vld [vmem:[#allocation8 + $0xda8] sm:$0xff]  ;;  %6861 = vmatprep.subr.bf16.mxu0 %v6823_v2  ;;  %v6826_v55 = vld [vmem:[#allocation8 + $0xda0] sm:$0xff]  ;;  %vm11272_vm9 = vmmov %vm11250_vm0 }
 0xb80   :  { %6862 = vmatpush1.bf16.msra.mxu0 %v6822_v59  ;;  %v6831_v13 = vld [vmem:[#allocation8 + $0xdc8] sm:$0xff]  ;;  %v6830_v51 = vld [vmem:[#allocation8 + $0xdc0] sm:$0xff]  ;;  %v6825_v22 = vld [vmem:[#allocation8 + $0xd98] sm:$0xff] }
 0xb81   :  { %6863 = vmatprep.subr.bf16.mxu0 %v6827_v50  ;;  %v6821_v15 = vld [vmem:[#allocation7 + $0x68] sm:$0xf]  ;;  %v6834_v37 = vld [vmem:[#allocation8 + $0xde0] sm:$0xff]  ;;  %v6824_v40 = vld [vmem:[#allocation8 + $0xd90] sm:$0xff] }
 0xb82   :  { %7713 = vmatprep.mubr.msk.bf16.mxu0 %vm11272_vm9, %v6821_v15  ;;  %v6835_v24 = vld [vmem:[#allocation8 + $0xde8] sm:$0xff]  ;;  %v6838_v35 = vld [vmem:[#allocation8 + $0xe00] sm:$0xff]  ;;  %v6829_v18 = vld [vmem:[#allocation8 + $0xdb8] sm:$0xff] }
 0xb83   :  { %v6839_v26 = vld [vmem:[#allocation8 + $0xe08] sm:$0xff]  ;;  %v6842_v36 = vld [vmem:[#allocation8 + $0xe20] sm:$0xff]  ;;  %vm11273_vm11 = vmmov %vm11250_vm0 }
 0xb84   :  { %6864 = vmatpush1.bf16.msra.mxu0 %v6826_v55  ;;  %v6843_v57 = vld [vmem:[#allocation8 + $0xe28] sm:$0xff]  ;;  %v6846_v6 = vld [vmem:[#allocation8 + $0xe40] sm:$0xff]  ;;  %v6828_v3 = vld [vmem:[#allocation8 + $0xdb0] sm:$0xff] }
 0xb85   :  { %6865 = vmatprep.subr.bf16.mxu0 %v6831_v13  ;;  %v6847_v32 = vld [vmem:[#allocation8 + $0xe48] sm:$0xff]  ;;  %v6850_v16 = vld [vmem:[#allocation8 + $0xe60] sm:$0xff]  ;;  %v6833_v28 = vld [vmem:[#allocation8 + $0xdd8] sm:$0xff] }
 0xb86   :  { %v6851_v30 = vld [vmem:[#allocation8 + $0xe68] sm:$0xff]  ;;  %v6854_v17 = vld [vmem:[#allocation8 + $0xe80] sm:$0xff]  ;;  %v6832_v25 = vld [vmem:[#allocation8 + $0xdd0] sm:$0xff] }
 0xb87   :  { %v6855_v60 = vld [vmem:[#allocation8 + $0xe88] sm:$0xff]  ;;  %v6820_v58 = vld [vmem:[#allocation7 + $0x60] sm:$0xf]  ;;  %v6837_v61 = vld [vmem:[#allocation8 + $0xdf8] sm:$0xff] }
 0xb88   :  { %6866 = vmatpush1.bf16.msra.mxu0 %v6830_v51  ;;  %v6836_v33 = vld [vmem:[#allocation8 + $0xdf0] sm:$0xff]  ;;  %v6841_v43 = vld [vmem:[#allocation8 + $0xe18] sm:$0xff]  ;;  %v6948_v48 = vld [vmem:[#allocation7 + $0x68] sm:$0xf0] }
 0xb89   :  { %6867 = vmatprep.subr.bf16.mxu0 %v6835_v24  ;;  %v6840_v42 = vld [vmem:[#allocation8 + $0xe10] sm:$0xff]  ;;  %v6845_v29 = vld [vmem:[#allocation8 + $0xe38] sm:$0xff]  ;;  %v6951_v45 = vld [vmem:[#allocation8 + $0xea8] sm:$0xff]  ;;  %v6989_v38 = vrot.slane %v6948_v48, 4 }
 0xb8a   :  { %v6844_v8 = vld [vmem:[#allocation8 + $0xe30] sm:$0xff]  ;;  %v6849_v31 = vld [vmem:[#allocation8 + $0xe58] sm:$0xff]  ;;  %v6950_v46 = vld [vmem:[#allocation8 + $0xea0] sm:$0xff] }
 0xb8b   :  { %v6848_v7 = vld [vmem:[#allocation8 + $0xe50] sm:$0xff]  ;;  %v6853_v54 = vld [vmem:[#allocation8 + $0xe78] sm:$0xff]  ;;  %v6955_v34 = vld [vmem:[#allocation8 + $0xec8] sm:$0xff] }
 0xb8c   :  { %6868 = vmatpush1.bf16.msra.mxu0 %v6834_v37  ;;  %v6852_v1 = vld [vmem:[#allocation8 + $0xe70] sm:$0xff]  ;;  %v6857_v4 = vld [vmem:[#allocation8 + $0xe98] sm:$0xff]  ;;  %vm11274_vm7 = vmmov %vm11250_vm0 }
 0xb8d   :  { %6869 = vmatprep.subr.bf16.mxu0 %v6839_v26  ;;  %v6856_v52 = vld [vmem:[#allocation8 + $0xe90] sm:$0xff]  ;;  %v6954_v20 = vld [vmem:[#allocation8 + $0xec0] sm:$0xff]  ;;  %v6959_v19 = vld [vmem:[#allocation8 + $0xee8] sm:$0xff] }
 0xb8e   :  { %v6958_v23 = vld [vmem:[#allocation8 + $0xee0] sm:$0xff]  ;;  %v6963_v0 = vld [vmem:[#allocation8 + $0xf08] sm:$0xff]  ;;  %v6953_v55 = vld [vmem:[#allocation8 + $0xeb8] sm:$0xff] }
 0xb8f   :  { %v6962_v39 = vld [vmem:[#allocation8 + $0xf00] sm:$0xff]  ;;  %v6967_v63 = vld [vmem:[#allocation8 + $0xf28] sm:$0xff]  ;;  %v6957_v51 = vld [vmem:[#allocation8 + $0xed8] sm:$0xff] }
 0xb90   :  { %6870 = vmatpush1.bf16.msra.mxu0 %v6838_v35  ;;  %v6966_v27 = vld [vmem:[#allocation8 + $0xf20] sm:$0xff]  ;;  %v6971_v56 = vld [vmem:[#allocation8 + $0xf48] sm:$0xff]  ;;  %vm11275_vm1 = vmmov %vm11250_vm0 }
 0xb91   :  { %6871 = vmatprep.subr.bf16.mxu0 %v6843_v57  ;;  %v6970_v21 = vld [vmem:[#allocation8 + $0xf40] sm:$0xff]  ;;  %v6975_v53 = vld [vmem:[#allocation8 + $0xf68] sm:$0xff]  ;;  %v6956_v24 = vld [vmem:[#allocation8 + $0xed0] sm:$0xff] }
 0xb92   :  { %v6974_v62 = vld [vmem:[#allocation8 + $0xf60] sm:$0xff]  ;;  %v6979_v47 = vld [vmem:[#allocation8 + $0xf88] sm:$0xff]  ;;  %v6961_v37 = vld [vmem:[#allocation8 + $0xef8] sm:$0xff] }
 0xb93   :  { %v6978_v44 = vld [vmem:[#allocation8 + $0xf80] sm:$0xff]  ;;  %v6983_v2 = vld [vmem:[#allocation8 + $0xfa8] sm:$0xff]  ;;  %v6960_v26 = vld [vmem:[#allocation8 + $0xef0] sm:$0xff] }
 0xb94   :  { %6872 = vmatpush1.bf16.msra.mxu0 %v6842_v36  ;;  %v6947_v59 = vld [vmem:[#allocation7 + $0x60] sm:$0xf0]  ;;  %v6965_v35 = vld [vmem:[#allocation8 + $0xf18] sm:$0xff]  ;;  %v6964_v57 = vld [vmem:[#allocation8 + $0xf10] sm:$0xff] }
 0xb95   :  { %6873 = vmatprep.subr.bf16.mxu0 %v6847_v32  ;;  %v6982_v50 = vld [vmem:[#allocation8 + $0xfa0] sm:$0xff]  ;;  %v6988_v13 = vrot.slane %v6947_v59, 4  ;;  %v6969_v36 = vld [vmem:[#allocation8 + $0xf38] sm:$0xff]  ;;  %v6968_v32 = vld [vmem:[#allocation8 + $0xf30] sm:$0xff] }
 0xb96   :  { %vm11276_vm8 = vmmov %vm11250_vm0  ;;  %v7111_v48 = vld [vmem:[#allocation8 + $0x10a0] sm:$0xff]  ;;  %v7113_v59 = vld [vmem:[#allocation8 + $0x10b0] sm:$0xff] }
 0xb97   :  { %vm11277_vm12 = vmmov %vm11250_vm0 }
 0xb98   :  { %6874 = vmatpush1.bf16.msra.mxu0 %v6846_v6  ;;  %v6973_v6 = vld [vmem:[#allocation8 + $0xf58] sm:$0xff]  ;;  %vm11278_vm13 = vmmov %vm11250_vm0 }
 0xb99   :  { %6875 = vmatprep.subr.bf16.mxu0 %v6851_v30  ;;  %v6972_v30 = vld [vmem:[#allocation8 + $0xf50] sm:$0xff] }
 0xb9c   :  { %6876 = vmatpush1.bf16.msra.mxu0 %v6850_v16  ;;  %v6977_v16 = vld [vmem:[#allocation8 + $0xf78] sm:$0xff] }
 0xb9d   :  { %6877 = vmatprep.subr.bf16.mxu0 %v6855_v60  ;;  %v6976_v60 = vld [vmem:[#allocation8 + $0xf70] sm:$0xff] }
 0xba0   :  { %6878 = vmatpush1.bf16.msra.mxu0 %v6854_v17  ;;  %v6981_v17 = vld [vmem:[#allocation8 + $0xf98] sm:$0xff] }
 0xba1   :  { %6902 = vmatprep.subr.bf16.mxu0 %v6825_v22  ;;  %v6980_v22 = vld [vmem:[#allocation8 + $0xf90] sm:$0xff] }
 0xba3   :  { %6894 = vmatmul.mubr.bf16.vlgmr.msra.gmra.mrb[24].mxu0 %v6820_v58 }
 0xba4   :  { %6903 = vmatpush1.bf16.msra.mxu0 %v6824_v40  ;;  %7714 = vmatprep.mubr.msk.bf16.mxu0 %vm11273_vm11, %v6821_v15  ;;  %v6952_v15 = vld [vmem:[#allocation8 + $0xeb0] sm:$0xff] }
 0xba5   :  { %6904 = vmatprep.subr.bf16.mxu0 %v6829_v18  ;;  %v6984_v40 = vld [vmem:[#allocation8 + $0xfb0] sm:$0xff]  ;;  %v7084_v18 = vld [vmem:[#allocation8 + $0xfc8] sm:$0xff] }
 0xba8   :  { %6905 = vmatpush1.bf16.msra.mxu0 %v6828_v3  ;;  %v7083_v3 = vld [vmem:[#allocation8 + $0xfc0] sm:$0xff] }
 0xba9   :  { %6906 = vmatprep.subr.bf16.mxu0 %v6833_v28  ;;  %v7081_v28 = vld [vmem:[#allocation7 + $0x78] sm:$0xf] }
 0xbac   :  { %6907 = vmatpush1.bf16.msra.mxu0 %v6832_v25  ;;  %v7088_v25 = vld [vmem:[#allocation8 + $0xfe8] sm:$0xff] }
 0xbad   :  { %6908 = vmatprep.subr.bf16.mxu0 %v6837_v61  ;;  %v7087_v61 = vld [vmem:[#allocation8 + $0xfe0] sm:$0xff] }
 0xbb0   :  { %6909 = vmatpush1.bf16.msra.mxu0 %v6836_v33  ;;  %v7092_v33 = vld [vmem:[#allocation8 + $0x1008] sm:$0xff] }
 0xbb1   :  { %6910 = vmatprep.subr.bf16.mxu0 %v6841_v43  ;;  %v7091_v43 = vld [vmem:[#allocation8 + $0x1000] sm:$0xff] }
 0xbb4   :  { %6911 = vmatpush1.bf16.msra.mxu0 %v6840_v42  ;;  %v7096_v42 = vld [vmem:[#allocation8 + $0x1028] sm:$0xff] }
 0xbb5   :  { %6912 = vmatprep.subr.bf16.mxu0 %v6845_v29  ;;  %v7095_v29 = vld [vmem:[#allocation8 + $0x1020] sm:$0xff] }
 0xbb8   :  { %6913 = vmatpush1.bf16.msra.mxu0 %v6844_v8  ;;  %v7100_v8 = vld [vmem:[#allocation8 + $0x1048] sm:$0xff] }
 0xbb9   :  { %6914 = vmatprep.subr.bf16.mxu0 %v6849_v31  ;;  %v7099_v31 = vld [vmem:[#allocation8 + $0x1040] sm:$0xff] }
 0xbbc   :  { %6915 = vmatpush1.bf16.msra.mxu0 %v6848_v7  ;;  %v7104_v7 = vld [vmem:[#allocation8 + $0x1068] sm:$0xff] }
 0xbbd   :  { %6916 = vmatprep.subr.bf16.mxu0 %v6853_v54  ;;  %v7103_v54 = vld [vmem:[#allocation8 + $0x1060] sm:$0xff] }
 0xbc0   :  { %6917 = vmatpush1.bf16.msra.mxu0 %v6852_v1  ;;  %v7108_v1 = vld [vmem:[#allocation8 + $0x1088] sm:$0xff] }
 0xbc1   :  { %6918 = vmatprep.subr.bf16.mxu0 %v6857_v4  ;;  %v7107_v4 = vld [vmem:[#allocation8 + $0x1080] sm:$0xff] }
 0xbc4   :  { %6919 = vmatpush1.bf16.msra.mxu0 %v6856_v52  ;;  %v7112_v52 = vld [vmem:[#allocation8 + $0x10a8] sm:$0xff] }
 0xbc5   :  { %6994 = vmatprep.subr.bf16.mxu0 %v6951_v45  ;;  %v7116_v45 = vld [vmem:[#allocation8 + $0x10c8] sm:$0xff] }
 0xbc7   :  { %6935 = vmatmul.mubr.bf16.vlgmr.msra.gmra.mrb[20].mxu0 %v6820_v58  ;;  %v6985_v58 = vld [vmem:[#allocation8 + $0xfb8] sm:$0xff] }
 0xbc8   :  { %6995 = vmatpush1.bf16.msra.mxu0 %v6950_v46  ;;  %7715 = vmatprep.mubr.msk.bf16.mxu0 %vm11274_vm7, %v6989_v38  ;;  %v7086_v46 = vld [vmem:[#allocation8 + $0xfd8] sm:$0xff] }
 0xbc9   :  { %6996 = vmatprep.subr.bf16.mxu0 %v6955_v34  ;;  %v7080_v34 = vld [vmem:[#allocation7 + $0x70] sm:$0xf] }
 0xbcc   :  { %6997 = vmatpush1.bf16.msra.mxu0 %v6954_v20  ;;  %v7085_v20 = vld [vmem:[#allocation8 + $0xfd0] sm:$0xff] }
 0xbcd   :  { %6998 = vmatprep.subr.bf16.mxu0 %v6959_v19  ;;  %v7090_v19 = vld [vmem:[#allocation8 + $0xff8] sm:$0xff] }
 0xbd0   :  { %6999 = vmatpush1.bf16.msra.mxu0 %v6958_v23  ;;  %v7089_v23 = vld [vmem:[#allocation8 + $0xff0] sm:$0xff] }
 0xbd1   :  { %7000 = vmatprep.subr.bf16.mxu0 %v6963_v0  ;;  %v7094_v0 = vld [vmem:[#allocation8 + $0x1018] sm:$0xff] }
 0xbd4   :  { %7001 = vmatpush1.bf16.msra.mxu0 %v6962_v39  ;;  %v7093_v39 = vld [vmem:[#allocation8 + $0x1010] sm:$0xff] }
 0xbd5   :  { %7002 = vmatprep.subr.bf16.mxu0 %v6967_v63  ;;  %v7098_v63 = vld [vmem:[#allocation8 + $0x1038] sm:$0xff] }
 0xbd8   :  { %7003 = vmatpush1.bf16.msra.mxu0 %v6966_v27  ;;  %v7097_v27 = vld [vmem:[#allocation8 + $0x1030] sm:$0xff] }
 0xbd9   :  { %7004 = vmatprep.subr.bf16.mxu0 %v6971_v56  ;;  %v7102_v56 = vld [vmem:[#allocation8 + $0x1058] sm:$0xff] }
 0xbdc   :  { %7005 = vmatpush1.bf16.msra.mxu0 %v6970_v21  ;;  %v7101_v21 = vld [vmem:[#allocation8 + $0x1050] sm:$0xff] }
 0xbdd   :  { %7006 = vmatprep.subr.bf16.mxu0 %v6975_v53  ;;  %v7106_v53 = vld [vmem:[#allocation8 + $0x1078] sm:$0xff] }
 0xbe0   :  { %7007 = vmatpush1.bf16.msra.mxu0 %v6974_v62  ;;  %v7105_v62 = vld [vmem:[#allocation8 + $0x1070] sm:$0xff] }
 0xbe1   :  { %7008 = vmatprep.subr.bf16.mxu0 %v6979_v47  ;;  %v7110_v47 = vld [vmem:[#allocation8 + $0x1098] sm:$0xff] }
 0xbe4   :  { %7009 = vmatpush1.bf16.msra.mxu0 %v6978_v44  ;;  %v7109_v44 = vld [vmem:[#allocation8 + $0x1090] sm:$0xff] }
 0xbe5   :  { %7010 = vmatprep.subr.bf16.mxu0 %v6983_v2  ;;  %v7114_v2 = vld [vmem:[#allocation8 + $0x10b8] sm:$0xff] }
 0xbe8   :  { %7011 = vmatpush1.bf16.msra.mxu0 %v6982_v50  ;;  %v7118_v50 = vld [vmem:[#allocation8 + $0x10d8] sm:$0xff] }
 0xbe9   :  { %7035 = vmatprep.subr.bf16.mxu0 %v6953_v55  ;;  %v7117_v55 = vld [vmem:[#allocation8 + $0x10d0] sm:$0xff] }
 0xbeb   :  { %7027 = vmatmul.mubr.bf16.vlgmr.msra.gmra.mrb[24].mxu0 %v6988_v13 }
 0xbec   :  { %7036 = vmatpush1.bf16.msra.mxu0 %v6952_v15  ;;  %7716 = vmatprep.mubr.msk.bf16.mxu0 %vm11275_vm1, %v6989_v38  ;;  %v7115_v38 = vld [vmem:[#allocation8 + $0x10c0] sm:$0xff]  ;;  %v7212_v15 = vld [vmem:[#allocation8 + $0x10e8] sm:$0xff] }
 0xbed   :  { %7037 = vmatprep.subr.bf16.mxu0 %v6957_v51 }
 0xbf0   :  { %7038 = vmatpush1.bf16.msra.mxu0 %v6956_v24  ;;  %v7211_v24 = vld [vmem:[#allocation8 + $0x10e0] sm:$0xff] }
 0xbf1   :  { %7039 = vmatprep.subr.bf16.mxu0 %v6961_v37  ;;  %v7216_v37 = vld [vmem:[#allocation8 + $0x1108] sm:$0xff] }
 0xbf4   :  { %7040 = vmatpush1.bf16.msra.mxu0 %v6960_v26  ;;  %v7215_v26 = vld [vmem:[#allocation8 + $0x1100] sm:$0xff] }
 0xbf5   :  { %7041 = vmatprep.subr.bf16.mxu0 %v6965_v35  ;;  %v7220_v35 = vld [vmem:[#allocation8 + $0x1128] sm:$0xff] }
 0xbf8   :  { %7042 = vmatpush1.bf16.msra.mxu0 %v6964_v57  ;;  %v7219_v57 = vld [vmem:[#allocation8 + $0x1120] sm:$0xff] }
 0xbf9   :  { %7043 = vmatprep.subr.bf16.mxu0 %v6969_v36  ;;  %v7224_v36 = vld [vmem:[#allocation8 + $0x1148] sm:$0xff] }
 0xbfc   :  { %7044 = vmatpush1.bf16.msra.mxu0 %v6968_v32  ;;  %v7223_v32 = vld [vmem:[#allocation8 + $0x1140] sm:$0xff] }
 0xbfd   :  { %7045 = vmatprep.subr.bf16.mxu0 %v6973_v6  ;;  %v7228_v6 = vld [vmem:[#allocation8 + $0x1168] sm:$0xff] }
 0xc00   :  { %7046 = vmatpush1.bf16.msra.mxu0 %v6972_v30  ;;  %v7227_v30 = vld [vmem:[#allocation8 + $0x1160] sm:$0xff] }
 0xc01   :  { %7047 = vmatprep.subr.bf16.mxu0 %v6977_v16  ;;  %v7232_v16 = vld [vmem:[#allocation8 + $0x1188] sm:$0xff] }
 0xc04   :  { %7048 = vmatpush1.bf16.msra.mxu0 %v6976_v60  ;;  %v7231_v60 = vld [vmem:[#allocation8 + $0x1180] sm:$0xff] }
 0xc05   :  { %7049 = vmatprep.subr.bf16.mxu0 %v6981_v17  ;;  %v7236_v17 = vld [vmem:[#allocation8 + $0x11a8] sm:$0xff] }
 0xc08   :  { %7050 = vmatpush1.bf16.msra.mxu0 %v6980_v22  ;;  %v7235_v22 = vld [vmem:[#allocation8 + $0x11a0] sm:$0xff] }
 0xc09   :  { %7051 = vmatprep.subr.bf16.mxu0 %v6985_v58  ;;  %v7240_v58 = vld [vmem:[#allocation8 + $0x11c8] sm:$0xff] }
 0xc0c   :  { %7052 = vmatpush1.bf16.msra.mxu0 %v6984_v40  ;;  %v7239_v40 = vld [vmem:[#allocation8 + $0x11c0] sm:$0xff] }
 0xc0d   :  { %7122 = vmatprep.subr.bf16.mxu0 %v7084_v18  ;;  %v7244_v18 = vld [vmem:[#allocation8 + $0x11e8] sm:$0xff] }
 0xc0f   :  { %7068 = vmatmul.mubr.bf16.vlgmr.msra.gmra.mrb[20].mxu0 %v6988_v13  ;;  %v7209_v13 = vld [vmem:[#allocation7 + $0x78] sm:$0xf0] }
 0xc10   :  { %7123 = vmatpush1.bf16.msra.mxu0 %v7083_v3  ;;  %7717 = vmatprep.mubr.msk.bf16.mxu0 %vm11276_vm8, %v7081_v28  ;;  %v7250_v51 = vrot.slane %v7209_v13, 4  ;;  %v7208_v3 = vld [vmem:[#allocation7 + $0x70] sm:$0xf0] }
 0xc11   :  { %7124 = vmatprep.subr.bf16.mxu0 %v7088_v25  ;;  %v7214_v25 = vld [vmem:[#allocation8 + $0x10f8] sm:$0xff] }
 0xc14   :  { %7125 = vmatpush1.bf16.msra.mxu0 %v7087_v61  ;;  %v7249_v61 = vrot.slane %v7208_v3, 4 }
 0xc15   :  { %7126 = vmatprep.subr.bf16.mxu0 %v7092_v33  ;;  %v7213_v33 = vld [vmem:[#allocation8 + $0x10f0] sm:$0xff] }
 0xc18   :  { %7127 = vmatpush1.bf16.msra.mxu0 %v7091_v43  ;;  %v7218_v43 = vld [vmem:[#allocation8 + $0x1118] sm:$0xff] }
 0xc19   :  { %7128 = vmatprep.subr.bf16.mxu0 %v7096_v42  ;;  %v7217_v42 = vld [vmem:[#allocation8 + $0x1110] sm:$0xff] }
 0xc1c   :  { %7129 = vmatpush1.bf16.msra.mxu0 %v7095_v29  ;;  %v7222_v29 = vld [vmem:[#allocation8 + $0x1138] sm:$0xff] }
 0xc1d   :  { %7130 = vmatprep.subr.bf16.mxu0 %v7100_v8  ;;  %v7221_v8 = vld [vmem:[#allocation8 + $0x1130] sm:$0xff] }
 0xc20   :  { %7131 = vmatpush1.bf16.msra.mxu0 %v7099_v31  ;;  %v7226_v31 = vld [vmem:[#allocation8 + $0x1158] sm:$0xff] }
 0xc21   :  { %7132 = vmatprep.subr.bf16.mxu0 %v7104_v7  ;;  %v7225_v7 = vld [vmem:[#allocation8 + $0x1150] sm:$0xff] }
 0xc24   :  { %7133 = vmatpush1.bf16.msra.mxu0 %v7103_v54  ;;  %v7230_v54 = vld [vmem:[#allocation8 + $0x1178] sm:$0xff] }
 0xc25   :  { %7134 = vmatprep.subr.bf16.mxu0 %v7108_v1  ;;  %v7229_v1 = vld [vmem:[#allocation8 + $0x1170] sm:$0xff] }
 0xc28   :  { %7135 = vmatpush1.bf16.msra.mxu0 %v7107_v4  ;;  %v7234_v4 = vld [vmem:[#allocation8 + $0x1198] sm:$0xff] }
 0xc29   :  { %7136 = vmatprep.subr.bf16.mxu0 %v7112_v52  ;;  %v7233_v52 = vld [vmem:[#allocation8 + $0x1190] sm:$0xff] }
 0xc2c   :  { %7137 = vmatpush1.bf16.msra.mxu0 %v7111_v48  ;;  %v7238_v48 = vld [vmem:[#allocation8 + $0x11b8] sm:$0xff] }
 0xc2d   :  { %7138 = vmatprep.subr.bf16.mxu0 %v7116_v45  ;;  %v7237_v45 = vld [vmem:[#allocation8 + $0x11b0] sm:$0xff] }
 0xc30   :  { %7139 = vmatpush1.bf16.msra.mxu0 %v7115_v38  ;;  %v7242_v38 = vld [vmem:[#allocation8 + $0x11d8] sm:$0xff] }
 0xc31   :  { %7163 = vmatprep.subr.bf16.mxu0 %v7086_v46  ;;  %v7241_v46 = vld [vmem:[#allocation8 + $0x11d0] sm:$0xff] }
 0xc33   :  { %7155 = vmatmul.mubr.bf16.vlgmr.msra.gmra.mrb[24].mxu0 %v7080_v34 }
 0xc34   :  { %7164 = vmatpush1.bf16.msra.mxu0 %v7085_v20  ;;  %7718 = vmatprep.mubr.msk.bf16.mxu0 %vm11277_vm12, %v7081_v28  ;;  %v7243_v28 = vld [vmem:[#allocation8 + $0x11e0] sm:$0xff]  ;;  %v7245_v20 = vld [vmem:[#allocation8 + $0x11f0] sm:$0xff] }
 0xc35   :  { %7165 = vmatprep.subr.bf16.mxu0 %v7090_v19  ;;  %v7345_v19 = vld [vmem:[#allocation17] sm:$0xff] }
 0xc38   :  { %7166 = vmatpush1.bf16.msra.mxu0 %v7089_v23  ;;  %v7356_v23 = vcombine.high %v7345_v19, %v7345_v19 }
 0xc39   :  { %7167 = vmatprep.subr.bf16.mxu0 %v7094_v0  ;;  %v7346_v0 = vld [vmem:[#allocation17 + $0x8] sm:$0xff] }
 0xc3c   :  { %7168 = vmatpush1.bf16.msra.mxu0 %v7093_v39  ;;  %v7357_v39 = vcombine.high %v7346_v0, %v7346_v0 }
 0xc3d   :  { %7169 = vmatprep.subr.bf16.mxu0 %v7098_v63  ;;  %v7966_v63 = vadd.f32 %v10895_v41, %v8633_v9  ;;  %v7972_v9 = vadd.f32 %v10893_v5, %v8639_v12 }
 0xc40   :  { %7170 = vmatpush1.bf16.msra.mxu0 %v7097_v27  ;;  %v7968_v27 = vadd.f32 %v10897_v49, %v8635_v10 }
 0xc41   :  { %7171 = vmatprep.subr.bf16.mxu0 %v7102_v56 }
 0xc44   :  { %7172 = vmatpush1.bf16.msra.mxu0 %v7101_v21 }
 0xc45   :  { %7173 = vmatprep.subr.bf16.mxu0 %v7106_v53 }
 0xc48   :  { %7174 = vmatpush1.bf16.msra.mxu0 %v7105_v62 }
 0xc49   :  { %7175 = vmatprep.subr.bf16.mxu0 %v7110_v47 }
 0xc4c   :  { %7176 = vmatpush1.bf16.msra.mxu0 %v7109_v44 }
 0xc4d   :  { %7177 = vmatprep.subr.bf16.mxu0 %v7114_v2 }
 0xc50   :  { %7178 = vmatpush1.bf16.msra.mxu0 %v7113_v59 }
 0xc51   :  { %7179 = vmatprep.subr.bf16.mxu0 %v7118_v50  ;;  %v7970_v50 = vadd.f32 %v10891_v14, %v8637_v11 }
 0xc54   :  { %7180 = vmatpush1.bf16.msra.mxu0 %v7117_v55 }
 0xc55   :  { %7255 = vmatprep.subr.bf16.mxu0 %v7212_v15 }
 0xc57   :  { %7196 = vmatmul.mubr.bf16.vlgmr.msra.gmra.mrb[20].mxu0 %v7080_v34  ;;  %v7246_v34 = vld [vmem:[#allocation8 + $0x11f8] sm:$0xff] }
 0xc58   :  { %7256 = vmatpush1.bf16.msra.mxu0 %v7211_v24  ;;  %7719 = vmatprep.mubr.msk.bf16.mxu0 %vm11278_vm13, %v7250_v51 }
 0xc59   :  { %7257 = vmatprep.subr.bf16.mxu0 %v7216_v37  ;;  %v7721_v37 = vld [vmem:[#allocation18] ss:$0 sm:$0xff] }
 0xc5c   :  { %7258 = vmatpush1.bf16.msra.mxu0 %v7215_v26 }
 0xc5d   :  { %7259 = vmatprep.subr.bf16.mxu0 %v7220_v35 }
 0xc60   :  { %7260 = vmatpush1.bf16.msra.mxu0 %v7219_v57 }
 0xc61   :  { %7261 = vmatprep.subr.bf16.mxu0 %v7224_v36 }
 0xc64   :  { %7262 = vmatpush1.bf16.msra.mxu0 %v7223_v32 }
 0xc65   :  { %7263 = vmatprep.subr.bf16.mxu0 %v7228_v6 }
 0xc68   :  { %7264 = vmatpush1.bf16.msra.mxu0 %v7227_v30 }
 0xc69   :  { %7265 = vmatprep.subr.bf16.mxu0 %v7232_v16 }
 0xc6c   :  { %7266 = vmatpush1.bf16.msra.mxu0 %v7231_v60 }
 0xc6d   :  { %7267 = vmatprep.subr.bf16.mxu0 %v7236_v17 }
 0xc70   :  { %7268 = vmatpush1.bf16.msra.mxu0 %v7235_v22 }
 0xc71   :  { %7269 = vmatprep.subr.bf16.mxu0 %v7240_v58 }
 0xc74   :  { %7270 = vmatpush1.bf16.msra.mxu0 %v7239_v40 }
 0xc75   :  { %7271 = vmatprep.subr.bf16.mxu0 %v7244_v18 }
 0xc78   :  { %7272 = vmatpush1.bf16.msra.mxu0 %v7243_v28 }
 0xc79   :  { %7296 = vmatprep.subr.bf16.mxu0 %v7214_v25 }
 0xc7b   :  { %7288 = vmatmul.mubr.bf16.vlgmr.msra.gmra.mrb[24].mxu0 %v7249_v61 }
 0xc7c   :  { %7297 = vmatpush1.bf16.msra.mxu0 %v7213_v33  ;;  %7720 = vmatprep.mubr.msk.bf16.mxu0 %vm11250_vm0, %v7250_v51 }
 0xc7d   :  { %7298 = vmatprep.subr.bf16.mxu0 %v7218_v43 }
 0xc80   :  { %7299 = vmatpush1.bf16.msra.mxu0 %v7217_v42 }
 0xc81   :  { %7300 = vmatprep.subr.bf16.mxu0 %v7222_v29 }
 0xc84   :  { %7301 = vmatpush1.bf16.msra.mxu0 %v7221_v8 }
 0xc85   :  { %7302 = vmatprep.subr.bf16.mxu0 %v7226_v31 }
 0xc88   :  { %7303 = vmatpush1.bf16.msra.mxu0 %v7225_v7 }
 0xc89   :  { %7304 = vmatprep.subr.bf16.mxu0 %v7230_v54 }
 0xc8c   :  { %7305 = vmatpush1.bf16.msra.mxu0 %v7229_v1 }
 0xc8d   :  { %7306 = vmatprep.subr.bf16.mxu0 %v7234_v4 }
 0xc90   :  { %7307 = vmatpush1.bf16.msra.mxu0 %v7233_v52 }
 0xc91   :  { %7308 = vmatprep.subr.bf16.mxu0 %v7238_v48 }
 0xc94   :  { %7309 = vmatpush1.bf16.msra.mxu0 %v7237_v45 }
 0xc95   :  { %7310 = vmatprep.subr.bf16.mxu0 %v7242_v38 }
 0xc98   :  { %7311 = vmatpush1.bf16.msra.mxu0 %v7241_v46 }
 0xc99   :  { %7312 = vmatprep.subr.bf16.mxu0 %v7246_v34 }
 0xc9c   :  { %7313 = vmatpush1.bf16.msra.mxu0 %v7245_v20 }
 0xc9d   :  { %7360 = vmatprep.subr.mxu0 %v7356_v23 }
 0xc9f   :  { %7329 = vmatmul.mubr.bf16.vlgmr.msra.gmra.mrb[20].mxu0 %v7249_v61 }
 0xca5   :  { %7361 = vmatpush1.xpose.msra.mxu0 %v7345_v19 }
 0xca6   :  { %7430 = vmatprep.subr.mxu0 %v7357_v39 }
 0xd4e   :  { %v7289_v56 = vpop.f32.mrb[24].mxu0 }
 0xd4f   :  { %v7967_v21 = vadd.f32 %v7966_v63, %v7289_v56  ;;  %v7291_v53 = vpop.f32.mrb[25].mxu0 }
 0xd50   :  { %v7969_v62 = vadd.f32 %v7968_v27, %v7291_v53  ;;  %v7293_v47 = vpop.f32.mrb[26].mxu0 }
 0xd51   :  { %v7294_v44 = vpop.f32.mrb[27].mxu0  ;;  %v7341_v59 = vmax.f32 %v7967_v21, 0.0 }
 0xd52   :  { %v7342_v2 = vmax.f32 %v7969_v62, 0.0 }
 0xd54   :  { %7424 = vmatprep.mubr.f32.mxu0 %v7342_v2 }
 0xd55   :  { %7425 = vmatmul.mubr.f32.vlgmr.msra.gmra.mrb[18].mxu0 %v7341_v59 }
 0xd56   :  { %7431 = vmatpush1.xpose.msra.mxu0 %v7346_v0 }
 0xd72   :  { %v7330_v41 = vpop.f32.mrb[20].mxu0 }
 0xd73   :  { %v7971_v55 = vadd.f32 %v7970_v50, %v7330_v41  ;;  %v7332_v10 = vpop.f32.mrb[21].mxu0 }
 0xd74   :  { %v7973_v49 = vadd.f32 %v7972_v9, %v7332_v10  ;;  %v7334_v13 = vpop.f32.mrb[22].mxu0 }
 0xd75   :  { %v7335_v15 = vpop.f32.mrb[23].mxu0  ;;  %v7343_v24 = vmax.f32 %v7971_v55, 0.0 }
 0xd76   :  { %v7344_v51 = vmax.f32 %v7973_v49, 0.0 }
 0xd78   :  { %7494 = vmatprep.mubr.f32.mxu0 %v7344_v51 }
 0xd79   :  { %7495 = vmatmul.mubr.f32.vlgmr.msra.gmra.mrb[18].mxu0 %v7343_v24 }
 0xe4c   :  { %v7496_v26 = vpop.f32.mrb[18].mxu0 }
 0xe4d   :  { %v7974_v35 = vadd.f32 %v7721_v37, %v7496_v26  ;;  %v7498_v57 = vpop.f32.mrb[19].mxu0 }
 0xe4f   :  { %7500 = vst.msk [vmem:[%s10937_s10] sm:$0xff] %vm3902_vm3, %v7974_v35 }
 0xe50   :  { %7505 = vsyncpa [#allocation11], 1 }
 0xe51   :  { %7506 = vsyncpa [#allocation13], 1 }
 0xe52   :  { %7507 = vsyncpa [#allocation16], 1 }
 0xe53   :  { %7508 = vsyncpa [#allocation19], 1 }
 0xe54   :  { %7509 = vsyncmov [#allocation9] }
 0xe57   :  { %s7510_s28 = vpop.sfrf %7509 }
 0xe58   :  { %p7722_p6 = scmp.ne.s32.totalorder %s7510_s28, 0 }
 0xe5a   :  { %7514 = shalt.err (%p7722_p6)  }
 0xe5b   :  { %7516 = vsyncmov [#allocation9 + $0x1] }
 0xe5e   :  { %s7517_s19 = vpop.sfrf %7516 }
 0xe5f   :  { %p7723_p7 = scmp.ne.s32.totalorder %s7517_s19, 0 }
 0xe61   :  { %7521 = shalt.err (%p7723_p7)  }
 0xe62   :  { %7523 = vsyncmov [#allocation9 + $0x2] }
 0xe65   :  { %s7524_s6 = vpop.sfrf %7523 }
 0xe66   :  { %p7724_p8 = scmp.ne.s32.totalorder %s7524_s6, 0 }
 0xe68   :  { %7528 = shalt.err (%p7724_p8)  }
 0xe69   :  { %7530 = vsyncmov [#allocation9 + $0x3] }
 0xe6c   :  { %s7531_s18 = vpop.sfrf %7530 }
 0xe6d   :  { %p7725_p9 = scmp.ne.s32.totalorder %s7531_s18, 0 }
 0xe6f   :  { %7535 = shalt.err (%p7725_p9)  }

</bundles_post_ra>
